<compile_context>
chip_gen: v6e
topology: v6e:2x2x1
jax: 0.10.0
libtpu: 0.0.40
codegen_flags: <defaults>
</compile_context>

<pallas_src>
import jax
import jax.numpy as jnp
import numpy as np
from jax.experimental import pallas as pl
from jax.experimental.pallas import tpu as pltpu


def _convt_silu_kernel(x_ref, w_ref, b_ref, o_ref):
    # x_ref: (Cin, TH, Wo)          column-upsampled input rows: x_up[ci, r, w*K+kw] = x[ci, r, w]
    # w_ref: (K*Cin*Cout, Wo)       column-tiled weights: row (kh*Cin+ci)*Cout+oc, col w*K+kw
    #                               holds weight[ci, oc, kh, kw]
    # b_ref: (Cout, 1)              bias
    # o_ref: (Cout, TH, K*Wo)       final-layout rows: o[oc, r, kh*Wo + (w*K+kw)]
    cin, th, wo = x_ref.shape
    cout = o_ref.shape[0]
    k = o_ref.shape[2] // wo

    # Static (K * Cout) unroll; each strip works on a (TH, Wo) slab so the live vreg set
    # stays small (no spill storm) while the output block itself stays large.
    for kh in range(k):
        for oc in range(cout):
            b = b_ref[oc:oc + 1, :]                                     # (1, 1)
            row0 = (kh * cin + 0) * cout + oc
            acc = x_ref[0] * w_ref[row0:row0 + 1, :] + b                # (TH, Wo) f32
            for ci in range(1, cin):                                    # Cin = 3, unrolled
                row = (kh * cin + ci) * cout + oc
                acc = acc + x_ref[ci] * w_ref[row:row + 1, :]
            # SiLU: acc * sigmoid(acc); exp and reciprocal both go to the EUP slot.
            sig = pl.reciprocal(1.0 + jnp.exp(-acc), approx=True)
            o_ref[oc, :, kh * wo:(kh + 1) * wo] = (acc * sig).astype(o_ref.dtype)


def _choose_th(h, n, *, row_bytes, budget=8 << 20):
    """Tile height: a multiple-of-8 divisor of H (or full H), VMEM-bounded, and giving
    >= 2 total grid steps when possible (keeps both v7x TensorCores busy)."""
    cands = [d for d in range(8, h + 1, 8) if h % d == 0]
    if not cands:
        cands = [h]                       # full extent is always a legal block dim
    within = [d for d in cands if 2 * d * row_bytes <= budget]
    cands = within or [min(cands)]        # worst case: smallest tile (still << scoped VMEM)
    th = max(cands)
    if n * (h // th) < 2:
        smaller = [d for d in cands if n * (h // d) >= 2]
        if smaller:
            th = max(smaller)
    return th


def convtranspose_silu(x_nchw, weight, bias, *, stride=5, out_dtype=jnp.float32):
    """x_nchw: (N, Cin, H, W); weight: (Cin, Cout, K, K) (PyTorch layout); bias: (Cout,).
    out_dtype=jnp.bfloat16 halves the dominant HBM write if downstream tolerates it."""
    N, Cin, H, W = x_nchw.shape
    Cin_w, Cout, K, Kw = weight.shape
    assert Cin == Cin_w and K == Kw and stride == K, "kernel assumes stride == kernel_size"

    Wo = W * K                              # interleaved output columns per kh-chunk

    # Column-upsampled input (5x the *small* input): x_up[..., w*K+kw] = x[..., w].
    x_up = jnp.repeat(x_nchw, K, axis=-1)                               # (N, Cin, H, Wo)

    # Column-tiled weights: wcol[(kh*Cin+ci)*Cout+oc, w*K+kw] = weight[ci, oc, kh, kw].
    wct = jnp.transpose(weight, (2, 0, 1, 3))                           # (K, Cin, Cout, K)
    wcol = jnp.tile(wct[..., None, :], (1, 1, 1, W, 1)).reshape(K * Cin * Cout, Wo)
    b_col = bias.reshape(Cout, 1).astype(jnp.float32)

    row_bytes = Cout * K * Wo * 4           # output bytes produced per input row
    TH = _choose_th(H, N, row_bytes=row_bytes)
    grid = (N, H // TH)

    cost = pl.CostEstimate(
        flops=2 * N * H * W * Cin * Cout * K * K,
        transcendentals=2 * N * Cout * (H * K) * (W * K),
        bytes_accessed=4 * (x_up.size + wcol.size + b_col.size) + N * Cout * H * K * Wo * jnp.dtype(out_dtype).itemsize,
    )

    # Output viewed as (N, Cout, H, K*W*K); blocks are contiguous rectangles of the FINAL
    # NCHW tensor, so the post-call conversion is a free adjacent-dims reshape.
    out5 = pl.pallas_call(
        _convt_silu_kernel,
        out_shape=jax.ShapeDtypeStruct((N, Cout, H, K * Wo), out_dtype),
        grid=grid,
        in_specs=[
            pl.BlockSpec((None, Cin, TH, Wo), lambda n, i: (n, 0, i, 0)),   # x_up tile
            pl.BlockSpec((K * Cin * Cout, Wo), lambda n, i: (0, 0)),        # weights, resident
            pl.BlockSpec((Cout, 1), lambda n, i: (0, 0)),                   # bias, resident
        ],
        out_specs=pl.BlockSpec((None, Cout, TH, K * Wo), lambda n, i: (n, 0, i, 0)),
        compiler_params=pltpu.CompilerParams(
            dimension_semantics=("parallel", "parallel")),
        cost_estimate=cost,
    )(x_up, wcol, b_col)

    # Free reshape (merge of adjacent dims only — no transpose, no extra HBM traffic):
    # (N, Cout, H, K*W*K) -> (N, Cout, H*K, W*K), matching PyTorch's NCHW output.
    return out5.reshape(N, Cout, H * K, W * K)


if __name__ == "__main__":
    # Small shapes consistent with ConvTranspose2d(3, 8, 5, stride=5)
    N, Cin, H, W = 2, 3, 16, 16
    Cout, K = 8, 5

    key = jax.random.PRNGKey(0)
    kx, kw, kb = jax.random.split(key, 3)

    x = jax.random.normal(kx, (N, Cin, H, W), dtype=jnp.float32)
    bound = 1.0 / np.sqrt(Cin * K * K)
    weight = jax.random.uniform(kw, (Cin, Cout, K, K), minval=-bound, maxval=bound,
                                dtype=jnp.float32)
    bias = jax.random.uniform(kb, (Cout,), minval=-bound, maxval=bound, dtype=jnp.float32)

    fn = jax.jit(convtranspose_silu, static_argnames=("stride", "out_dtype"))
    out = fn(x, weight, bias, stride=K)
    out = jax.block_until_ready(out)

    # Independent numpy reference (stride == kernel => block scatter of per-pixel matmul).
    xn, wn, bn = np.asarray(x), np.asarray(weight), np.asarray(bias)
    blocks = np.einsum("nihw,iokl->nohkwl", xn, wn)                    # (N,Cout,H,K,W,K)
    v1 = blocks.reshape(N, Cout, H * K, W * K) + bn[None, :, None, None]
    ref = v1 * (1.0 / (1.0 + np.exp(-v1)))
    # Tolerance accounts for the EUP approximate reciprocal used for the sigmoid.
    np.testing.assert_allclose(np.asarray(out), ref, rtol=2e-3, atol=2e-3)

    print("KERNEL_OK")
</pallas_src>

<mosaic_0001>
module attributes {stable_mosaic.version = 11 : i64} {
  func.func @_convt_silu_kernel(%arg0: i32, %arg1: i32, %arg2: memref<1x3x16x80xf32, #tpu.memory_space<vmem>>, %arg3: memref<120x80xf32, #tpu.memory_space<vmem>>, %arg4: memref<8x1xf32, #tpu.memory_space<vmem>>, %arg5: memref<1x8x16x400xf32, #tpu.memory_space<vmem>>) attributes {dimension_semantics = [#tpu.dimension_semantics<parallel>, #tpu.dimension_semantics<parallel>], iteration_bounds = array<i64: 2, 1>, scalar_prefetch = 0 : i64, scratch_operands = 0 : i64, tpu.core_type = #tpu.core_type<tc>, window_params = [{transform_indices = @transform_0, window_bounds = array<i64: 1, 3, 16, 80>}, {pipeline_mode = #tpu.pipeline_mode<synchronous>, transform_indices = @transform_1, window_bounds = array<i64: 120, 80>}, {pipeline_mode = #tpu.pipeline_mode<synchronous>, transform_indices = @transform_2, window_bounds = array<i64: 8, 1>}, {transform_indices = @transform_3, window_bounds = array<i64: 1, 8, 16, 400>}]} {
    %c0 = arith.constant 0 : index
    %c0_0 = arith.constant 0 : index
    %0 = vector.load %arg4[%c0, %c0_0] : memref<8x1xf32, #tpu.memory_space<vmem>>, vector<1x1xf32>
    %c0_1 = arith.constant 0 : index
    %c0_2 = arith.constant 0 : index
    %c0_3 = arith.constant 0 : index
    %c0_4 = arith.constant 0 : index
    %1 = vector.load %arg2[%c0_1, %c0_2, %c0_3, %c0_4] : memref<1x3x16x80xf32, #tpu.memory_space<vmem>>, vector<1x1x16x80xf32>
    %2 = vector.shape_cast %1 : vector<1x1x16x80xf32> to vector<16x80xf32>
    %c0_5 = arith.constant 0 : index
    %c0_6 = arith.constant 0 : index
    %3 = vector.load %arg3[%c0_5, %c0_6] : memref<120x80xf32, #tpu.memory_space<vmem>>, vector<1x80xf32>
    %4 = vector.broadcast %3 : vector<1x80xf32> to vector<16x80xf32>
    %5 = arith.mulf %2, %4 : vector<16x80xf32>
    %6 = vector.broadcast %0 : vector<1x1xf32> to vector<16x80xf32>
    %7 = arith.addf %5, %6 : vector<16x80xf32>
    %c0_7 = arith.constant 0 : index
    %c1 = arith.constant 1 : index
    %c0_8 = arith.constant 0 : index
    %c0_9 = arith.constant 0 : index
    %8 = vector.load %arg2[%c0_7, %c1, %c0_8, %c0_9] : memref<1x3x16x80xf32, #tpu.memory_space<vmem>>, vector<1x1x16x80xf32>
    %9 = vector.shape_cast %8 : vector<1x1x16x80xf32> to vector<16x80xf32>
    %c8 = arith.constant 8 : index
    %c0_10 = arith.constant 0 : index
    %10 = vector.load %arg3[%c8, %c0_10] : memref<120x80xf32, #tpu.memory_space<vmem>>, vector<1x80xf32>
    %11 = vector.broadcast %10 : vector<1x80xf32> to vector<16x80xf32>
    %12 = arith.mulf %9, %11 : vector<16x80xf32>
    %13 = arith.addf %7, %12 : vector<16x80xf32>
    %c0_11 = arith.constant 0 : index
    %c2 = arith.constant 2 : index
    %c0_12 = arith.constant 0 : index
    %c0_13 = arith.constant 0 : index
    %14 = vector.load %arg2[%c0_11, %c2, %c0_12, %c0_13] : memref<1x3x16x80xf32, #tpu.memory_space<vmem>>, vector<1x1x16x80xf32>
    %15 = vector.shape_cast %14 : vector<1x1x16x80xf32> to vector<16x80xf32>
    %c16 = arith.constant 16 : index
    %c0_14 = arith.constant 0 : index
    %16 = vector.load %arg3[%c16, %c0_14] : memref<120x80xf32, #tpu.memory_space<vmem>>, vector<1x80xf32>
    %17 = vector.broadcast %16 : vector<1x80xf32> to vector<16x80xf32>
    %18 = arith.mulf %15, %17 : vector<16x80xf32>
    %19 = arith.addf %13, %18 : vector<16x80xf32>
    %cst = arith.constant 0.000000e+00 : f32
    %20 = vector.broadcast %cst : f32 to vector<16x80xf32>
    %21 = arith.subf %20, %19 : vector<16x80xf32>
    %22 = math.exp %21 : vector<16x80xf32>
    %cst_15 = arith.constant 1.000000e+00 : f32
    %23 = vector.broadcast %cst_15 : f32 to vector<16x80xf32>
    %24 = arith.addf %23, %22 : vector<16x80xf32>
    %25 = tpu.reciprocal %24 {approx = true} : vector<16x80xf32> -> vector<16x80xf32>
    %26 = arith.mulf %19, %25 : vector<16x80xf32>
    %c0_16 = arith.constant 0 : index
    %c0_17 = arith.constant 0 : index
    %c0_18 = arith.constant 0 : index
    %c0_19 = arith.constant 0 : index
    %27 = vector.load %arg5[%c0_16, %c0_17, %c0_18, %c0_19] : memref<1x8x16x400xf32, #tpu.memory_space<vmem>>, vector<1x1x16x80xf32>
    %28 = vector.shape_cast %27 : vector<1x1x16x80xf32> to vector<16x80xf32>
    %29 = vector.shape_cast %26 : vector<16x80xf32> to vector<1x1x16x80xf32>
    tpu.vector_store %arg5[%c0_16, %c0_17, %c0_18, %c0_19], %29 {strides = array<i32>} : memref<1x8x16x400xf32, #tpu.memory_space<vmem>>, vector<1x1x16x80xf32>,
    %c1_20 = arith.constant 1 : index
    %c0_21 = arith.constant 0 : index
    %30 = vector.load %arg4[%c1_20, %c0_21] : memref<8x1xf32, #tpu.memory_space<vmem>>, vector<1x1xf32>
    %c0_22 = arith.constant 0 : index
    %c0_23 = arith.constant 0 : index
    %c0_24 = arith.constant 0 : index
    %c0_25 = arith.constant 0 : index
    %31 = vector.load %arg2[%c0_22, %c0_23, %c0_24, %c0_25] : memref<1x3x16x80xf32, #tpu.memory_space<vmem>>, vector<1x1x16x80xf32>
    %32 = vector.shape_cast %31 : vector<1x1x16x80xf32> to vector<16x80xf32>
    %c1_26 = arith.constant 1 : index
    %c0_27 = arith.constant 0 : index
    %33 = vector.load %arg3[%c1_26, %c0_27] : memref<120x80xf32, #tpu.memory_space<vmem>>, vector<1x80xf32>
    %34 = vector.broadcast %33 : vector<1x80xf32> to vector<16x80xf32>
    %35 = arith.mulf %32, %34 : vector<16x80xf32>
    %36 = vector.broadcast %30 : vector<1x1xf32> to vector<16x80xf32>
    %37 = arith.addf %35, %36 : vector<16x80xf32>
    %c0_28 = arith.constant 0 : index
    %c1_29 = arith.constant 1 : index
    %c0_30 = arith.constant 0 : index
    %c0_31 = arith.constant 0 : index
    %38 = vector.load %arg2[%c0_28, %c1_29, %c0_30, %c0_31] : memref<1x3x16x80xf32, #tpu.memory_space<vmem>>, vector<1x1x16x80xf32>
    %39 = vector.shape_cast %38 : vector<1x1x16x80xf32> to vector<16x80xf32>
    %c9 = arith.constant 9 : index
    %c0_32 = arith.constant 0 : index
    %40 = vector.load %arg3[%c9, %c0_32] : memref<120x80xf32, #tpu.memory_space<vmem>>, vector<1x80xf32>
    %41 = vector.broadcast %40 : vector<1x80xf32> to vector<16x80xf32>
    %42 = arith.mulf %39, %41 : vector<16x80xf32>
    %43 = arith.addf %37, %42 : vector<16x80xf32>
    %c0_33 = arith.constant 0 : index
    %c2_34 = arith.constant 2 : index
    %c0_35 = arith.constant 0 : index
    %c0_36 = arith.constant 0 : index
    %44 = vector.load %arg2[%c0_33, %c2_34, %c0_35, %c0_36] : memref<1x3x16x80xf32, #tpu.memory_space<vmem>>, vector<1x1x16x80xf32>
    %45 = vector.shape_cast %44 : vector<1x1x16x80xf32> to vector<16x80xf32>
    %c17 = arith.constant 17 : index
    %c0_37 = arith.constant 0 : index
    %46 = vector.load %arg3[%c17, %c0_37] : memref<120x80xf32, #tpu.memory_space<vmem>>, vector<1x80xf32>
    %47 = vector.broadcast %46 : vector<1x80xf32> to vector<16x80xf32>
    %48 = arith.mulf %45, %47 : vector<16x80xf32>
    %49 = arith.addf %43, %48 : vector<16x80xf32>
    %cst_38 = arith.constant 0.000000e+00 : f32
    %50 = vector.broadcast %cst_38 : f32 to vector<16x80xf32>
    %51 = arith.subf %50, %49 : vector<16x80xf32>
    %52 = math.exp %51 : vector<16x80xf32>
    %cst_39 = arith.constant 1.000000e+00 : f32
    %53 = vector.broadcast %cst_39 : f32 to vector<16x80xf32>
    %54 = arith.addf %53, %52 : vector<16x80xf32>
    %55 = tpu.reciprocal %54 {approx = true} : vector<16x80xf32> -> vector<16x80xf32>
    %56 = arith.mulf %49, %55 : vector<16x80xf32>
    %c0_40 = arith.constant 0 : index
    %c1_41 = arith.constant 1 : index
    %c0_42 = arith.constant 0 : index
    %c0_43 = arith.constant 0 : index
    %57 = vector.load %arg5[%c0_40, %c1_41, %c0_42, %c0_43] : memref<1x8x16x400xf32, #tpu.memory_space<vmem>>, vector<1x1x16x80xf32>
    %58 = vector.shape_cast %57 : vector<1x1x16x80xf32> to vector<16x80xf32>
    %59 = vector.shape_cast %56 : vector<16x80xf32> to vector<1x1x16x80xf32>
    tpu.vector_store %arg5[%c0_40, %c1_41, %c0_42, %c0_43], %59 {strides = array<i32>} : memref<1x8x16x400xf32, #tpu.memory_space<vmem>>, vector<1x1x16x80xf32>,
    %c2_44 = arith.constant 2 : index
    %c0_45 = arith.constant 0 : index
    %60 = vector.load %arg4[%c2_44, %c0_45] : memref<8x1xf32, #tpu.memory_space<vmem>>, vector<1x1xf32>
    %c0_46 = arith.constant 0 : index
    %c0_47 = arith.constant 0 : index
    %c0_48 = arith.constant 0 : index
    %c0_49 = arith.constant 0 : index
    %61 = vector.load %arg2[%c0_46, %c0_47, %c0_48, %c0_49] : memref<1x3x16x80xf32, #tpu.memory_space<vmem>>, vector<1x1x16x80xf32>
    %62 = vector.shape_cast %61 : vector<1x1x16x80xf32> to vector<16x80xf32>
    %c2_50 = arith.constant 2 : index
    %c0_51 = arith.constant 0 : index
    %63 = vector.load %arg3[%c2_50, %c0_51] : memref<120x80xf32, #tpu.memory_space<vmem>>, vector<1x80xf32>
    %64 = vector.broadcast %63 : vector<1x80xf32> to vector<16x80xf32>
    %65 = arith.mulf %62, %64 : vector<16x80xf32>
    %66 = vector.broadcast %60 : vector<1x1xf32> to vector<16x80xf32>
    %67 = arith.addf %65, %66 : vector<16x80xf32>
    %c0_52 = arith.constant 0 : index
    %c1_53 = arith.constant 1 : index
    %c0_54 = arith.constant 0 : index
    %c0_55 = arith.constant 0 : index
    %68 = vector.load %arg2[%c0_52, %c1_53, %c0_54, %c0_55] : memref<1x3x16x80xf32, #tpu.memory_space<vmem>>, vector<1x1x16x80xf32>
    %69 = vector.shape_cast %68 : vector<1x1x16x80xf32> to vector<16x80xf32>
    %c10 = arith.constant 10 : index
    %c0_56 = arith.constant 0 : index
    %70 = vector.load %arg3[%c10, %c0_56] : memref<120x80xf32, #tpu.memory_space<vmem>>, vector<1x80xf32>
    %71 = vector.broadcast %70 : vector<1x80xf32> to vector<16x80xf32>
    %72 = arith.mulf %69, %71 : vector<16x80xf32>
    %73 = arith.addf %67, %72 : vector<16x80xf32>
    %c0_57 = arith.constant 0 : index
    %c2_58 = arith.constant 2 : index
    %c0_59 = arith.constant 0 : index
    %c0_60 = arith.constant 0 : index
    %74 = vector.load %arg2[%c0_57, %c2_58, %c0_59, %c0_60] : memref<1x3x16x80xf32, #tpu.memory_space<vmem>>, vector<1x1x16x80xf32>
    %75 = vector.shape_cast %74 : vector<1x1x16x80xf32> to vector<16x80xf32>
    %c18 = arith.constant 18 : index
    %c0_61 = arith.constant 0 : index
    %76 = vector.load %arg3[%c18, %c0_61] : memref<120x80xf32, #tpu.memory_space<vmem>>, vector<1x80xf32>
    %77 = vector.broadcast %76 : vector<1x80xf32> to vector<16x80xf32>
    %78 = arith.mulf %75, %77 : vector<16x80xf32>
    %79 = arith.addf %73, %78 : vector<16x80xf32>
    %cst_62 = arith.constant 0.000000e+00 : f32
    %80 = vector.broadcast %cst_62 : f32 to vector<16x80xf32>
    %81 = arith.subf %80, %79 : vector<16x80xf32>
    %82 = math.exp %81 : vector<16x80xf32>
    %cst_63 = arith.constant 1.000000e+00 : f32
    %83 = vector.broadcast %cst_63 : f32 to vector<16x80xf32>
    %84 = arith.addf %83, %82 : vector<16x80xf32>
    %85 = tpu.reciprocal %84 {approx = true} : vector<16x80xf32> -> vector<16x80xf32>
    %86 = arith.mulf %79, %85 : vector<16x80xf32>
    %c0_64 = arith.constant 0 : index
    %c2_65 = arith.constant 2 : index
    %c0_66 = arith.constant 0 : index
    %c0_67 = arith.constant 0 : index
    %87 = vector.load %arg5[%c0_64, %c2_65, %c0_66, %c0_67] : memref<1x8x16x400xf32, #tpu.memory_space<vmem>>, vector<1x1x16x80xf32>
    %88 = vector.shape_cast %87 : vector<1x1x16x80xf32> to vector<16x80xf32>
    %89 = vector.shape_cast %86 : vector<16x80xf32> to vector<1x1x16x80xf32>
    tpu.vector_store %arg5[%c0_64, %c2_65, %c0_66, %c0_67], %89 {strides = array<i32>} : memref<1x8x16x400xf32, #tpu.memory_space<vmem>>, vector<1x1x16x80xf32>,
    %c3 = arith.constant 3 : index
    %c0_68 = arith.constant 0 : index
    %90 = vector.load %arg4[%c3, %c0_68] : memref<8x1xf32, #tpu.memory_space<vmem>>, vector<1x1xf32>
    %c0_69 = arith.constant 0 : index
    %c0_70 = arith.constant 0 : index
    %c0_71 = arith.constant 0 : index
    %c0_72 = arith.constant 0 : index
    %91 = vector.load %arg2[%c0_69, %c0_70, %c0_71, %c0_72] : memref<1x3x16x80xf32, #tpu.memory_space<vmem>>, vector<1x1x16x80xf32>
    %92 = vector.shape_cast %91 : vector<1x1x16x80xf32> to vector<16x80xf32>
    %c3_73 = arith.constant 3 : index
    %c0_74 = arith.constant 0 : index
    %93 = vector.load %arg3[%c3_73, %c0_74] : memref<120x80xf32, #tpu.memory_space<vmem>>, vector<1x80xf32>
    %94 = vector.broadcast %93 : vector<1x80xf32> to vector<16x80xf32>
    %95 = arith.mulf %92, %94 : vector<16x80xf32>
    %96 = vector.broadcast %90 : vector<1x1xf32> to vector<16x80xf32>
    %97 = arith.addf %95, %96 : vector<16x80xf32>
    %c0_75 = arith.constant 0 : index
    %c1_76 = arith.constant 1 : index
    %c0_77 = arith.constant 0 : index
    %c0_78 = arith.constant 0 : index
    %98 = vector.load %arg2[%c0_75, %c1_76, %c0_77, %c0_78] : memref<1x3x16x80xf32, #tpu.memory_space<vmem>>, vector<1x1x16x80xf32>
    %99 = vector.shape_cast %98 : vector<1x1x16x80xf32> to vector<16x80xf32>
    %c11 = arith.constant 11 : index
    %c0_79 = arith.constant 0 : index
    %100 = vector.load %arg3[%c11, %c0_79] : memref<120x80xf32, #tpu.memory_space<vmem>>, vector<1x80xf32>
    %101 = vector.broadcast %100 : vector<1x80xf32> to vector<16x80xf32>
    %102 = arith.mulf %99, %101 : vector<16x80xf32>
    %103 = arith.addf %97, %102 : vector<16x80xf32>
    %c0_80 = arith.constant 0 : index
    %c2_81 = arith.constant 2 : index
    %c0_82 = arith.constant 0 : index
    %c0_83 = arith.constant 0 : index
    %104 = vector.load %arg2[%c0_80, %c2_81, %c0_82, %c0_83] : memref<1x3x16x80xf32, #tpu.memory_space<vmem>>, vector<1x1x16x80xf32>
    %105 = vector.shape_cast %104 : vector<1x1x16x80xf32> to vector<16x80xf32>
    %c19 = arith.constant 19 : index
    %c0_84 = arith.constant 0 : index
    %106 = vector.load %arg3[%c19, %c0_84] : memref<120x80xf32, #tpu.memory_space<vmem>>, vector<1x80xf32>
    %107 = vector.broadcast %106 : vector<1x80xf32> to vector<16x80xf32>
    %108 = arith.mulf %105, %107 : vector<16x80xf32>
    %109 = arith.addf %103, %108 : vector<16x80xf32>
    %cst_85 = arith.constant 0.000000e+00 : f32
    %110 = vector.broadcast %cst_85 : f32 to vector<16x80xf32>
    %111 = arith.subf %110, %109 : vector<16x80xf32>
    %112 = math.exp %111 : vector<16x80xf32>
    %cst_86 = arith.constant 1.000000e+00 : f32
    %113 = vector.broadcast %cst_86 : f32 to vector<16x80xf32>
    %114 = arith.addf %113, %112 : vector<16x80xf32>
    %115 = tpu.reciprocal %114 {approx = true} : vector<16x80xf32> -> vector<16x80xf32>
    %116 = arith.mulf %109, %115 : vector<16x80xf32>
    %c0_87 = arith.constant 0 : index
    %c3_88 = arith.constant 3 : index
    %c0_89 = arith.constant 0 : index
    %c0_90 = arith.constant 0 : index
    %117 = vector.load %arg5[%c0_87, %c3_88, %c0_89, %c0_90] : memref<1x8x16x400xf32, #tpu.memory_space<vmem>>, vector<1x1x16x80xf32>
    %118 = vector.shape_cast %117 : vector<1x1x16x80xf32> to vector<16x80xf32>
    %119 = vector.shape_cast %116 : vector<16x80xf32> to vector<1x1x16x80xf32>
    tpu.vector_store %arg5[%c0_87, %c3_88, %c0_89, %c0_90], %119 {strides = array<i32>} : memref<1x8x16x400xf32, #tpu.memory_space<vmem>>, vector<1x1x16x80xf32>,
    %c4 = arith.constant 4 : index
    %c0_91 = arith.constant 0 : index
    %120 = vector.load %arg4[%c4, %c0_91] : memref<8x1xf32, #tpu.memory_space<vmem>>, vector<1x1xf32>
    %c0_92 = arith.constant 0 : index
    %c0_93 = arith.constant 0 : index
    %c0_94 = arith.constant 0 : index
    %c0_95 = arith.constant 0 : index
    %121 = vector.load %arg2[%c0_92, %c0_93, %c0_94, %c0_95] : memref<1x3x16x80xf32, #tpu.memory_space<vmem>>, vector<1x1x16x80xf32>
    %122 = vector.shape_cast %121 : vector<1x1x16x80xf32> to vector<16x80xf32>
    %c4_96 = arith.constant 4 : index
    %c0_97 = arith.constant 0 : index
    %123 = vector.load %arg3[%c4_96, %c0_97] : memref<120x80xf32, #tpu.memory_space<vmem>>, vector<1x80xf32>
    %124 = vector.broadcast %123 : vector<1x80xf32> to vector<16x80xf32>
    %125 = arith.mulf %122, %124 : vector<16x80xf32>
    %126 = vector.broadcast %120 : vector<1x1xf32> to vector<16x80xf32>
    %127 = arith.addf %125, %126 : vector<16x80xf32>
    %c0_98 = arith.constant 0 : index
    %c1_99 = arith.constant 1 : index
    %c0_100 = arith.constant 0 : index
    %c0_101 = arith.constant 0 : index
    %128 = vector.load %arg2[%c0_98, %c1_99, %c0_100, %c0_101] : memref<1x3x16x80xf32, #tpu.memory_space<vmem>>, vector<1x1x16x80xf32>
    %129 = vector.shape_cast %128 : vector<1x1x16x80xf32> to vector<16x80xf32>
    %c12 = arith.constant 12 : index
    %c0_102 = arith.constant 0 : index
    %130 = vector.load %arg3[%c12, %c0_102] : memref<120x80xf32, #tpu.memory_space<vmem>>, vector<1x80xf32>
    %131 = vector.broadcast %130 : vector<1x80xf32> to vector<16x80xf32>
    %132 = arith.mulf %129, %131 : vector<16x80xf32>
    %133 = arith.addf %127, %132 : vector<16x80xf32>
    %c0_103 = arith.constant 0 : index
    %c2_104 = arith.constant 2 : index
    %c0_105 = arith.constant 0 : index
    %c0_106 = arith.constant 0 : index
    %134 = vector.load %arg2[%c0_103, %c2_104, %c0_105, %c0_106] : memref<1x3x16x80xf32, #tpu.memory_space<vmem>>, vector<1x1x16x80xf32>
    %135 = vector.shape_cast %134 : vector<1x1x16x80xf32> to vector<16x80xf32>
    %c20 = arith.constant 20 : index
    %c0_107 = arith.constant 0 : index
    %136 = vector.load %arg3[%c20, %c0_107] : memref<120x80xf32, #tpu.memory_space<vmem>>, vector<1x80xf32>
    %137 = vector.broadcast %136 : vector<1x80xf32> to vector<16x80xf32>
    %138 = arith.mulf %135, %137 : vector<16x80xf32>
    %139 = arith.addf %133, %138 : vector<16x80xf32>
    %cst_108 = arith.constant 0.000000e+00 : f32
    %140 = vector.broadcast %cst_108 : f32 to vector<16x80xf32>
    %141 = arith.subf %140, %139 : vector<16x80xf32>
    %142 = math.exp %141 : vector<16x80xf32>
    %cst_109 = arith.constant 1.000000e+00 : f32
    %143 = vector.broadcast %cst_109 : f32 to vector<16x80xf32>
    %144 = arith.addf %143, %142 : vector<16x80xf32>
    %145 = tpu.reciprocal %144 {approx = true} : vector<16x80xf32> -> vector<16x80xf32>
    %146 = arith.mulf %139, %145 : vector<16x80xf32>
    %c0_110 = arith.constant 0 : index
    %c4_111 = arith.constant 4 : index
    %c0_112 = arith.constant 0 : index
    %c0_113 = arith.constant 0 : index
    %147 = vector.load %arg5[%c0_110, %c4_111, %c0_112, %c0_113] : memref<1x8x16x400xf32, #tpu.memory_space<vmem>>, vector<1x1x16x80xf32>
    %148 = vector.shape_cast %147 : vector<1x1x16x80xf32> to vector<16x80xf32>
    %149 = vector.shape_cast %146 : vector<16x80xf32> to vector<1x1x16x80xf32>
    tpu.vector_store %arg5[%c0_110, %c4_111, %c0_112, %c0_113], %149 {strides = array<i32>} : memref<1x8x16x400xf32, #tpu.memory_space<vmem>>, vector<1x1x16x80xf32>,
    %c5 = arith.constant 5 : index
    %c0_114 = arith.constant 0 : index
    %150 = vector.load %arg4[%c5, %c0_114] : memref<8x1xf32, #tpu.memory_space<vmem>>, vector<1x1xf32>
    %c0_115 = arith.constant 0 : index
    %c0_116 = arith.constant 0 : index
    %c0_117 = arith.constant 0 : index
    %c0_118 = arith.constant 0 : index
    %151 = vector.load %arg2[%c0_115, %c0_116, %c0_117, %c0_118] : memref<1x3x16x80xf32, #tpu.memory_space<vmem>>, vector<1x1x16x80xf32>
    %152 = vector.shape_cast %151 : vector<1x1x16x80xf32> to vector<16x80xf32>
    %c5_119 = arith.constant 5 : index
    %c0_120 = arith.constant 0 : index
    %153 = vector.load %arg3[%c5_119, %c0_120] : memref<120x80xf32, #tpu.memory_space<vmem>>, vector<1x80xf32>
    %154 = vector.broadcast %153 : vector<1x80xf32> to vector<16x80xf32>
    %155 = arith.mulf %152, %154 : vector<16x80xf32>
    %156 = vector.broadcast %150 : vector<1x1xf32> to vector<16x80xf32>
    %157 = arith.addf %155, %156 : vector<16x80xf32>
    %c0_121 = arith.constant 0 : index
    %c1_122 = arith.constant 1 : index
    %c0_123 = arith.constant 0 : index
    %c0_124 = arith.constant 0 : index
    %158 = vector.load %arg2[%c0_121, %c1_122, %c0_123, %c0_124] : memref<1x3x16x80xf32, #tpu.memory_space<vmem>>, vector<1x1x16x80xf32>
    %159 = vector.shape_cast %158 : vector<1x1x16x80xf32> to vector<16x80xf32>
    %c13 = arith.constant 13 : index
    %c0_125 = arith.constant 0 : index
    %160 = vector.load %arg3[%c13, %c0_125] : memref<120x80xf32, #tpu.memory_space<vmem>>, vector<1x80xf32>
    %161 = vector.broadcast %160 : vector<1x80xf32> to vector<16x80xf32>
    %162 = arith.mulf %159, %161 : vector<16x80xf32>
    %163 = arith.addf %157, %162 : vector<16x80xf32>
    %c0_126 = arith.constant 0 : index
    %c2_127 = arith.constant 2 : index
    %c0_128 = arith.constant 0 : index
    %c0_129 = arith.constant 0 : index
    %164 = vector.load %arg2[%c0_126, %c2_127, %c0_128, %c0_129] : memref<1x3x16x80xf32, #tpu.memory_space<vmem>>, vector<1x1x16x80xf32>
    %165 = vector.shape_cast %164 : vector<1x1x16x80xf32> to vector<16x80xf32>
    %c21 = arith.constant 21 : index
    %c0_130 = arith.constant 0 : index
    %166 = vector.load %arg3[%c21, %c0_130] : memref<120x80xf32, #tpu.memory_space<vmem>>, vector<1x80xf32>
    %167 = vector.broadcast %166 : vector<1x80xf32> to vector<16x80xf32>
    %168 = arith.mulf %165, %167 : vector<16x80xf32>
    %169 = arith.addf %163, %168 : vector<16x80xf32>
    %cst_131 = arith.constant 0.000000e+00 : f32
    %170 = vector.broadcast %cst_131 : f32 to vector<16x80xf32>
    %171 = arith.subf %170, %169 : vector<16x80xf32>
    %172 = math.exp %171 : vector<16x80xf32>
    %cst_132 = arith.constant 1.000000e+00 : f32
    %173 = vector.broadcast %cst_132 : f32 to vector<16x80xf32>
    %174 = arith.addf %173, %172 : vector<16x80xf32>
    %175 = tpu.reciprocal %174 {approx = true} : vector<16x80xf32> -> vector<16x80xf32>
    %176 = arith.mulf %169, %175 : vector<16x80xf32>
    %c0_133 = arith.constant 0 : index
    %c5_134 = arith.constant 5 : index
    %c0_135 = arith.constant 0 : index
    %c0_136 = arith.constant 0 : index
    %177 = vector.load %arg5[%c0_133, %c5_134, %c0_135, %c0_136] : memref<1x8x16x400xf32, #tpu.memory_space<vmem>>, vector<1x1x16x80xf32>
    %178 = vector.shape_cast %177 : vector<1x1x16x80xf32> to vector<16x80xf32>
    %179 = vector.shape_cast %176 : vector<16x80xf32> to vector<1x1x16x80xf32>
    tpu.vector_store %arg5[%c0_133, %c5_134, %c0_135, %c0_136], %179 {strides = array<i32>} : memref<1x8x16x400xf32, #tpu.memory_space<vmem>>, vector<1x1x16x80xf32>,
    %c6 = arith.constant 6 : index
    %c0_137 = arith.constant 0 : index
    %180 = vector.load %arg4[%c6, %c0_137] : memref<8x1xf32, #tpu.memory_space<vmem>>, vector<1x1xf32>
    %c0_138 = arith.constant 0 : index
    %c0_139 = arith.constant 0 : index
    %c0_140 = arith.constant 0 : index
    %c0_141 = arith.constant 0 : index
    %181 = vector.load %arg2[%c0_138, %c0_139, %c0_140, %c0_141] : memref<1x3x16x80xf32, #tpu.memory_space<vmem>>, vector<1x1x16x80xf32>
    %182 = vector.shape_cast %181 : vector<1x1x16x80xf32> to vector<16x80xf32>
    %c6_142 = arith.constant 6 : index
    %c0_143 = arith.constant 0 : index
    %183 = vector.load %arg3[%c6_142, %c0_143] : memref<120x80xf32, #tpu.memory_space<vmem>>, vector<1x80xf32>
    %184 = vector.broadcast %183 : vector<1x80xf32> to vector<16x80xf32>
    %185 = arith.mulf %182, %184 : vector<16x80xf32>
    %186 = vector.broadcast %180 : vector<1x1xf32> to vector<16x80xf32>
    %187 = arith.addf %185, %186 : vector<16x80xf32>
    %c0_144 = arith.constant 0 : index
    %c1_145 = arith.constant 1 : index
    %c0_146 = arith.constant 0 : index
    %c0_147 = arith.constant 0 : index
    %188 = vector.load %arg2[%c0_144, %c1_145, %c0_146, %c0_147] : memref<1x3x16x80xf32, #tpu.memory_space<vmem>>, vector<1x1x16x80xf32>
    %189 = vector.shape_cast %188 : vector<1x1x16x80xf32> to vector<16x80xf32>
    %c14 = arith.constant 14 : index
    %c0_148 = arith.constant 0 : index
    %190 = vector.load %arg3[%c14, %c0_148] : memref<120x80xf32, #tpu.memory_space<vmem>>, vector<1x80xf32>
    %191 = vector.broadcast %190 : vector<1x80xf32> to vector<16x80xf32>
    %192 = arith.mulf %189, %191 : vector<16x80xf32>
    %193 = arith.addf %187, %192 : vector<16x80xf32>
    %c0_149 = arith.constant 0 : index
    %c2_150 = arith.constant 2 : index
    %c0_151 = arith.constant 0 : index
    %c0_152 = arith.constant 0 : index
    %194 = vector.load %arg2[%c0_149, %c2_150, %c0_151, %c0_152] : memref<1x3x16x80xf32, #tpu.memory_space<vmem>>, vector<1x1x16x80xf32>
    %195 = vector.shape_cast %194 : vector<1x1x16x80xf32> to vector<16x80xf32>
    %c22 = arith.constant 22 : index
    %c0_153 = arith.constant 0 : index
    %196 = vector.load %arg3[%c22, %c0_153] : memref<120x80xf32, #tpu.memory_space<vmem>>, vector<1x80xf32>
    %197 = vector.broadcast %196 : vector<1x80xf32> to vector<16x80xf32>
    %198 = arith.mulf %195, %197 : vector<16x80xf32>
    %199 = arith.addf %193, %198 : vector<16x80xf32>
    %cst_154 = arith.constant 0.000000e+00 : f32
    %200 = vector.broadcast %cst_154 : f32 to vector<16x80xf32>
    %201 = arith.subf %200, %199 : vector<16x80xf32>
    %202 = math.exp %201 : vector<16x80xf32>
    %cst_155 = arith.constant 1.000000e+00 : f32
    %203 = vector.broadcast %cst_155 : f32 to vector<16x80xf32>
    %204 = arith.addf %203, %202 : vector<16x80xf32>
    %205 = tpu.reciprocal %204 {approx = true} : vector<16x80xf32> -> vector<16x80xf32>
    %206 = arith.mulf %199, %205 : vector<16x80xf32>
    %c0_156 = arith.constant 0 : index
    %c6_157 = arith.constant 6 : index
    %c0_158 = arith.constant 0 : index
    %c0_159 = arith.constant 0 : index
    %207 = vector.load %arg5[%c0_156, %c6_157, %c0_158, %c0_159] : memref<1x8x16x400xf32, #tpu.memory_space<vmem>>, vector<1x1x16x80xf32>
    %208 = vector.shape_cast %207 : vector<1x1x16x80xf32> to vector<16x80xf32>
    %209 = vector.shape_cast %206 : vector<16x80xf32> to vector<1x1x16x80xf32>
    tpu.vector_store %arg5[%c0_156, %c6_157, %c0_158, %c0_159], %209 {strides = array<i32>} : memref<1x8x16x400xf32, #tpu.memory_space<vmem>>, vector<1x1x16x80xf32>,
    %c7 = arith.constant 7 : index
    %c0_160 = arith.constant 0 : index
    %210 = vector.load %arg4[%c7, %c0_160] : memref<8x1xf32, #tpu.memory_space<vmem>>, vector<1x1xf32>
    %c0_161 = arith.constant 0 : index
    %c0_162 = arith.constant 0 : index
    %c0_163 = arith.constant 0 : index
    %c0_164 = arith.constant 0 : index
    %211 = vector.load %arg2[%c0_161, %c0_162, %c0_163, %c0_164] : memref<1x3x16x80xf32, #tpu.memory_space<vmem>>, vector<1x1x16x80xf32>
    %212 = vector.shape_cast %211 : vector<1x1x16x80xf32> to vector<16x80xf32>
    %c7_165 = arith.constant 7 : index
    %c0_166 = arith.constant 0 : index
    %213 = vector.load %arg3[%c7_165, %c0_166] : memref<120x80xf32, #tpu.memory_space<vmem>>, vector<1x80xf32>
    %214 = vector.broadcast %213 : vector<1x80xf32> to vector<16x80xf32>
    %215 = arith.mulf %212, %214 : vector<16x80xf32>
    %216 = vector.broadcast %210 : vector<1x1xf32> to vector<16x80xf32>
    %217 = arith.addf %215, %216 : vector<16x80xf32>
    %c0_167 = arith.constant 0 : index
    %c1_168 = arith.constant 1 : index
    %c0_169 = arith.constant 0 : index
    %c0_170 = arith.constant 0 : index
    %218 = vector.load %arg2[%c0_167, %c1_168, %c0_169, %c0_170] : memref<1x3x16x80xf32, #tpu.memory_space<vmem>>, vector<1x1x16x80xf32>
    %219 = vector.shape_cast %218 : vector<1x1x16x80xf32> to vector<16x80xf32>
    %c15 = arith.constant 15 : index
    %c0_171 = arith.constant 0 : index
    %220 = vector.load %arg3[%c15, %c0_171] : memref<120x80xf32, #tpu.memory_space<vmem>>, vector<1x80xf32>
    %221 = vector.broadcast %220 : vector<1x80xf32> to vector<16x80xf32>
    %222 = arith.mulf %219, %221 : vector<16x80xf32>
    %223 = arith.addf %217, %222 : vector<16x80xf32>
    %c0_172 = arith.constant 0 : index
    %c2_173 = arith.constant 2 : index
    %c0_174 = arith.constant 0 : index
    %c0_175 = arith.constant 0 : index
    %224 = vector.load %arg2[%c0_172, %c2_173, %c0_174, %c0_175] : memref<1x3x16x80xf32, #tpu.memory_space<vmem>>, vector<1x1x16x80xf32>
    %225 = vector.shape_cast %224 : vector<1x1x16x80xf32> to vector<16x80xf32>
    %c23 = arith.constant 23 : index
    %c0_176 = arith.constant 0 : index
    %226 = vector.load %arg3[%c23, %c0_176] : memref<120x80xf32, #tpu.memory_space<vmem>>, vector<1x80xf32>
    %227 = vector.broadcast %226 : vector<1x80xf32> to vector<16x80xf32>
    %228 = arith.mulf %225, %227 : vector<16x80xf32>
    %229 = arith.addf %223, %228 : vector<16x80xf32>
    %cst_177 = arith.constant 0.000000e+00 : f32
    %230 = vector.broadcast %cst_177 : f32 to vector<16x80xf32>
    %231 = arith.subf %230, %229 : vector<16x80xf32>
    %232 = math.exp %231 : vector<16x80xf32>
    %cst_178 = arith.constant 1.000000e+00 : f32
    %233 = vector.broadcast %cst_178 : f32 to vector<16x80xf32>
    %234 = arith.addf %233, %232 : vector<16x80xf32>
    %235 = tpu.reciprocal %234 {approx = true} : vector<16x80xf32> -> vector<16x80xf32>
    %236 = arith.mulf %229, %235 : vector<16x80xf32>
    %c0_179 = arith.constant 0 : index
    %c7_180 = arith.constant 7 : index
    %c0_181 = arith.constant 0 : index
    %c0_182 = arith.constant 0 : index
    %237 = vector.load %arg5[%c0_179, %c7_180, %c0_181, %c0_182] : memref<1x8x16x400xf32, #tpu.memory_space<vmem>>, vector<1x1x16x80xf32>
    %238 = vector.shape_cast %237 : vector<1x1x16x80xf32> to vector<16x80xf32>
    %239 = vector.shape_cast %236 : vector<16x80xf32> to vector<1x1x16x80xf32>
    tpu.vector_store %arg5[%c0_179, %c7_180, %c0_181, %c0_182], %239 {strides = array<i32>} : memref<1x8x16x400xf32, #tpu.memory_space<vmem>>, vector<1x1x16x80xf32>,
    %c0_183 = arith.constant 0 : index
    %c0_184 = arith.constant 0 : index
    %240 = vector.load %arg4[%c0_183, %c0_184] : memref<8x1xf32, #tpu.memory_space<vmem>>, vector<1x1xf32>
    %c0_185 = arith.constant 0 : index
    %c0_186 = arith.constant 0 : index
    %c0_187 = arith.constant 0 : index
    %c0_188 = arith.constant 0 : index
    %241 = vector.load %arg2[%c0_185, %c0_186, %c0_187, %c0_188] : memref<1x3x16x80xf32, #tpu.memory_space<vmem>>, vector<1x1x16x80xf32>
    %242 = vector.shape_cast %241 : vector<1x1x16x80xf32> to vector<16x80xf32>
    %c24 = arith.constant 24 : index
    %c0_189 = arith.constant 0 : index
    %243 = vector.load %arg3[%c24, %c0_189] : memref<120x80xf32, #tpu.memory_space<vmem>>, vector<1x80xf32>
    %244 = vector.broadcast %243 : vector<1x80xf32> to vector<16x80xf32>
    %245 = arith.mulf %242, %244 : vector<16x80xf32>
    %246 = vector.broadcast %240 : vector<1x1xf32> to vector<16x80xf32>
    %247 = arith.addf %245, %246 : vector<16x80xf32>
    %c0_190 = arith.constant 0 : index
    %c1_191 = arith.constant 1 : index
    %c0_192 = arith.constant 0 : index
    %c0_193 = arith.constant 0 : index
    %248 = vector.load %arg2[%c0_190, %c1_191, %c0_192, %c0_193] : memref<1x3x16x80xf32, #tpu.memory_space<vmem>>, vector<1x1x16x80xf32>
    %249 = vector.shape_cast %248 : vector<1x1x16x80xf32> to vector<16x80xf32>
    %c32 = arith.constant 32 : index
    %c0_194 = arith.constant 0 : index
    %250 = vector.load %arg3[%c32, %c0_194] : memref<120x80xf32, #tpu.memory_space<vmem>>, vector<1x80xf32>
    %251 = vector.broadcast %250 : vector<1x80xf32> to vector<16x80xf32>
    %252 = arith.mulf %249, %251 : vector<16x80xf32>
    %253 = arith.addf %247, %252 : vector<16x80xf32>
    %c0_195 = arith.constant 0 : index
    %c2_196 = arith.constant 2 : index
    %c0_197 = arith.constant 0 : index
    %c0_198 = arith.constant 0 : index
    %254 = vector.load %arg2[%c0_195, %c2_196, %c0_197, %c0_198] : memref<1x3x16x80xf32, #tpu.memory_space<vmem>>, vector<1x1x16x80xf32>
    %255 = vector.shape_cast %254 : vector<1x1x16x80xf32> to vector<16x80xf32>
    %c40 = arith.constant 40 : index
    %c0_199 = arith.constant 0 : index
    %256 = vector.load %arg3[%c40, %c0_199] : memref<120x80xf32, #tpu.memory_space<vmem>>, vector<1x80xf32>
    %257 = vector.broadcast %256 : vector<1x80xf32> to vector<16x80xf32>
    %258 = arith.mulf %255, %257 : vector<16x80xf32>
    %259 = arith.addf %253, %258 : vector<16x80xf32>
    %cst_200 = arith.constant 0.000000e+00 : f32
    %260 = vector.broadcast %cst_200 : f32 to vector<16x80xf32>
    %261 = arith.subf %260, %259 : vector<16x80xf32>
    %262 = math.exp %261 : vector<16x80xf32>
    %cst_201 = arith.constant 1.000000e+00 : f32
    %263 = vector.broadcast %cst_201 : f32 to vector<16x80xf32>
    %264 = arith.addf %263, %262 : vector<16x80xf32>
    %265 = tpu.reciprocal %264 {approx = true} : vector<16x80xf32> -> vector<16x80xf32>
    %266 = arith.mulf %259, %265 : vector<16x80xf32>
    %c0_202 = arith.constant 0 : index
    %c0_203 = arith.constant 0 : index
    %c0_204 = arith.constant 0 : index
    %c80 = arith.constant 80 : index
    %267 = vector.load %arg5[%c0_202, %c0_203, %c0_204, %c80] : memref<1x8x16x400xf32, #tpu.memory_space<vmem>>, vector<1x1x16x80xf32>
    %268 = vector.shape_cast %267 : vector<1x1x16x80xf32> to vector<16x80xf32>
    %269 = vector.shape_cast %266 : vector<16x80xf32> to vector<1x1x16x80xf32>
    tpu.vector_store %arg5[%c0_202, %c0_203, %c0_204, %c80], %269 {strides = array<i32>} : memref<1x8x16x400xf32, #tpu.memory_space<vmem>>, vector<1x1x16x80xf32>,
    %c1_205 = arith.constant 1 : index
    %c0_206 = arith.constant 0 : index
    %270 = vector.load %arg4[%c1_205, %c0_206] : memref<8x1xf32, #tpu.memory_space<vmem>>, vector<1x1xf32>
    %c0_207 = arith.constant 0 : index
    %c0_208 = arith.constant 0 : index
    %c0_209 = arith.constant 0 : index
    %c0_210 = arith.constant 0 : index
    %271 = vector.load %arg2[%c0_207, %c0_208, %c0_209, %c0_210] : memref<1x3x16x80xf32, #tpu.memory_space<vmem>>, vector<1x1x16x80xf32>
    %272 = vector.shape_cast %271 : vector<1x1x16x80xf32> to vector<16x80xf32>
    %c25 = arith.constant 25 : index
    %c0_211 = arith.constant 0 : index
    %273 = vector.load %arg3[%c25, %c0_211] : memref<120x80xf32, #tpu.memory_space<vmem>>, vector<1x80xf32>
    %274 = vector.broadcast %273 : vector<1x80xf32> to vector<16x80xf32>
    %275 = arith.mulf %272, %274 : vector<16x80xf32>
    %276 = vector.broadcast %270 : vector<1x1xf32> to vector<16x80xf32>
    %277 = arith.addf %275, %276 : vector<16x80xf32>
    %c0_212 = arith.constant 0 : index
    %c1_213 = arith.constant 1 : index
    %c0_214 = arith.constant 0 : index
    %c0_215 = arith.constant 0 : index
    %278 = vector.load %arg2[%c0_212, %c1_213, %c0_214, %c0_215] : memref<1x3x16x80xf32, #tpu.memory_space<vmem>>, vector<1x1x16x80xf32>
    %279 = vector.shape_cast %278 : vector<1x1x16x80xf32> to vector<16x80xf32>
    %c33 = arith.constant 33 : index
    %c0_216 = arith.constant 0 : index
    %280 = vector.load %arg3[%c33, %c0_216] : memref<120x80xf32, #tpu.memory_space<vmem>>, vector<1x80xf32>
    %281 = vector.broadcast %280 : vector<1x80xf32> to vector<16x80xf32>
    %282 = arith.mulf %279, %281 : vector<16x80xf32>
    %283 = arith.addf %277, %282 : vector<16x80xf32>
    %c0_217 = arith.constant 0 : index
    %c2_218 = arith.constant 2 : index
    %c0_219 = arith.constant 0 : index
    %c0_220 = arith.constant 0 : index
    %284 = vector.load %arg2[%c0_217, %c2_218, %c0_219, %c0_220] : memref<1x3x16x80xf32, #tpu.memory_space<vmem>>, vector<1x1x16x80xf32>
    %285 = vector.shape_cast %284 : vector<1x1x16x80xf32> to vector<16x80xf32>
    %c41 = arith.constant 41 : index
    %c0_221 = arith.constant 0 : index
    %286 = vector.load %arg3[%c41, %c0_221] : memref<120x80xf32, #tpu.memory_space<vmem>>, vector<1x80xf32>
    %287 = vector.broadcast %286 : vector<1x80xf32> to vector<16x80xf32>
    %288 = arith.mulf %285, %287 : vector<16x80xf32>
    %289 = arith.addf %283, %288 : vector<16x80xf32>
    %cst_222 = arith.constant 0.000000e+00 : f32
    %290 = vector.broadcast %cst_222 : f32 to vector<16x80xf32>
    %291 = arith.subf %290, %289 : vector<16x80xf32>
    %292 = math.exp %291 : vector<16x80xf32>
    %cst_223 = arith.constant 1.000000e+00 : f32
    %293 = vector.broadcast %cst_223 : f32 to vector<16x80xf32>
    %294 = arith.addf %293, %292 : vector<16x80xf32>
    %295 = tpu.reciprocal %294 {approx = true} : vector<16x80xf32> -> vector<16x80xf32>
    %296 = arith.mulf %289, %295 : vector<16x80xf32>
    %c0_224 = arith.constant 0 : index
    %c1_225 = arith.constant 1 : index
    %c0_226 = arith.constant 0 : index
    %c80_227 = arith.constant 80 : index
    %297 = vector.load %arg5[%c0_224, %c1_225, %c0_226, %c80_227] : memref<1x8x16x400xf32, #tpu.memory_space<vmem>>, vector<1x1x16x80xf32>
    %298 = vector.shape_cast %297 : vector<1x1x16x80xf32> to vector<16x80xf32>
    %299 = vector.shape_cast %296 : vector<16x80xf32> to vector<1x1x16x80xf32>
    tpu.vector_store %arg5[%c0_224, %c1_225, %c0_226, %c80_227], %299 {strides = array<i32>} : memref<1x8x16x400xf32, #tpu.memory_space<vmem>>, vector<1x1x16x80xf32>,
    %c2_228 = arith.constant 2 : index
    %c0_229 = arith.constant 0 : index
    %300 = vector.load %arg4[%c2_228, %c0_229] : memref<8x1xf32, #tpu.memory_space<vmem>>, vector<1x1xf32>
    %c0_230 = arith.constant 0 : index
    %c0_231 = arith.constant 0 : index
    %c0_232 = arith.constant 0 : index
    %c0_233 = arith.constant 0 : index
    %301 = vector.load %arg2[%c0_230, %c0_231, %c0_232, %c0_233] : memref<1x3x16x80xf32, #tpu.memory_space<vmem>>, vector<1x1x16x80xf32>
    %302 = vector.shape_cast %301 : vector<1x1x16x80xf32> to vector<16x80xf32>
    %c26 = arith.constant 26 : index
    %c0_234 = arith.constant 0 : index
    %303 = vector.load %arg3[%c26, %c0_234] : memref<120x80xf32, #tpu.memory_space<vmem>>, vector<1x80xf32>
    %304 = vector.broadcast %303 : vector<1x80xf32> to vector<16x80xf32>
    %305 = arith.mulf %302, %304 : vector<16x80xf32>
    %306 = vector.broadcast %300 : vector<1x1xf32> to vector<16x80xf32>
    %307 = arith.addf %305, %306 : vector<16x80xf32>
    %c0_235 = arith.constant 0 : index
    %c1_236 = arith.constant 1 : index
    %c0_237 = arith.constant 0 : index
    %c0_238 = arith.constant 0 : index
    %308 = vector.load %arg2[%c0_235, %c1_236, %c0_237, %c0_238] : memref<1x3x16x80xf32, #tpu.memory_space<vmem>>, vector<1x1x16x80xf32>
    %309 = vector.shape_cast %308 : vector<1x1x16x80xf32> to vector<16x80xf32>
    %c34 = arith.constant 34 : index
    %c0_239 = arith.constant 0 : index
    %310 = vector.load %arg3[%c34, %c0_239] : memref<120x80xf32, #tpu.memory_space<vmem>>, vector<1x80xf32>
    %311 = vector.broadcast %310 : vector<1x80xf32> to vector<16x80xf32>
    %312 = arith.mulf %309, %311 : vector<16x80xf32>
    %313 = arith.addf %307, %312 : vector<16x80xf32>
    %c0_240 = arith.constant 0 : index
    %c2_241 = arith.constant 2 : index
    %c0_242 = arith.constant 0 : index
    %c0_243 = arith.constant 0 : index
    %314 = vector.load %arg2[%c0_240, %c2_241, %c0_242, %c0_243] : memref<1x3x16x80xf32, #tpu.memory_space<vmem>>, vector<1x1x16x80xf32>
    %315 = vector.shape_cast %314 : vector<1x1x16x80xf32> to vector<16x80xf32>
    %c42 = arith.constant 42 : index
    %c0_244 = arith.constant 0 : index
    %316 = vector.load %arg3[%c42, %c0_244] : memref<120x80xf32, #tpu.memory_space<vmem>>, vector<1x80xf32>
    %317 = vector.broadcast %316 : vector<1x80xf32> to vector<16x80xf32>
    %318 = arith.mulf %315, %317 : vector<16x80xf32>
    %319 = arith.addf %313, %318 : vector<16x80xf32>
    %cst_245 = arith.constant 0.000000e+00 : f32
    %320 = vector.broadcast %cst_245 : f32 to vector<16x80xf32>
    %321 = arith.subf %320, %319 : vector<16x80xf32>
    %322 = math.exp %321 : vector<16x80xf32>
    %cst_246 = arith.constant 1.000000e+00 : f32
    %323 = vector.broadcast %cst_246 : f32 to vector<16x80xf32>
    %324 = arith.addf %323, %322 : vector<16x80xf32>
    %325 = tpu.reciprocal %324 {approx = true} : vector<16x80xf32> -> vector<16x80xf32>
    %326 = arith.mulf %319, %325 : vector<16x80xf32>
    %c0_247 = arith.constant 0 : index
    %c2_248 = arith.constant 2 : index
    %c0_249 = arith.constant 0 : index
    %c80_250 = arith.constant 80 : index
    %327 = vector.load %arg5[%c0_247, %c2_248, %c0_249, %c80_250] : memref<1x8x16x400xf32, #tpu.memory_space<vmem>>, vector<1x1x16x80xf32>
    %328 = vector.shape_cast %327 : vector<1x1x16x80xf32> to vector<16x80xf32>
    %329 = vector.shape_cast %326 : vector<16x80xf32> to vector<1x1x16x80xf32>
    tpu.vector_store %arg5[%c0_247, %c2_248, %c0_249, %c80_250], %329 {strides = array<i32>} : memref<1x8x16x400xf32, #tpu.memory_space<vmem>>, vector<1x1x16x80xf32>,
    %c3_251 = arith.constant 3 : index
    %c0_252 = arith.constant 0 : index
    %330 = vector.load %arg4[%c3_251, %c0_252] : memref<8x1xf32, #tpu.memory_space<vmem>>, vector<1x1xf32>
    %c0_253 = arith.constant 0 : index
    %c0_254 = arith.constant 0 : index
    %c0_255 = arith.constant 0 : index
    %c0_256 = arith.constant 0 : index
    %331 = vector.load %arg2[%c0_253, %c0_254, %c0_255, %c0_256] : memref<1x3x16x80xf32, #tpu.memory_space<vmem>>, vector<1x1x16x80xf32>
    %332 = vector.shape_cast %331 : vector<1x1x16x80xf32> to vector<16x80xf32>
    %c27 = arith.constant 27 : index
    %c0_257 = arith.constant 0 : index
    %333 = vector.load %arg3[%c27, %c0_257] : memref<120x80xf32, #tpu.memory_space<vmem>>, vector<1x80xf32>
    %334 = vector.broadcast %333 : vector<1x80xf32> to vector<16x80xf32>
    %335 = arith.mulf %332, %334 : vector<16x80xf32>
    %336 = vector.broadcast %330 : vector<1x1xf32> to vector<16x80xf32>
    %337 = arith.addf %335, %336 : vector<16x80xf32>
    %c0_258 = arith.constant 0 : index
    %c1_259 = arith.constant 1 : index
    %c0_260 = arith.constant 0 : index
    %c0_261 = arith.constant 0 : index
    %338 = vector.load %arg2[%c0_258, %c1_259, %c0_260, %c0_261] : memref<1x3x16x80xf32, #tpu.memory_space<vmem>>, vector<1x1x16x80xf32>
    %339 = vector.shape_cast %338 : vector<1x1x16x80xf32> to vector<16x80xf32>
    %c35 = arith.constant 35 : index
    %c0_262 = arith.constant 0 : index
    %340 = vector.load %arg3[%c35, %c0_262] : memref<120x80xf32, #tpu.memory_space<vmem>>, vector<1x80xf32>
    %341 = vector.broadcast %340 : vector<1x80xf32> to vector<16x80xf32>
    %342 = arith.mulf %339, %341 : vector<16x80xf32>
    %343 = arith.addf %337, %342 : vector<16x80xf32>
    %c0_263 = arith.constant 0 : index
    %c2_264 = arith.constant 2 : index
    %c0_265 = arith.constant 0 : index
    %c0_266 = arith.constant 0 : index
    %344 = vector.load %arg2[%c0_263, %c2_264, %c0_265, %c0_266] : memref<1x3x16x80xf32, #tpu.memory_space<vmem>>, vector<1x1x16x80xf32>
    %345 = vector.shape_cast %344 : vector<1x1x16x80xf32> to vector<16x80xf32>
    %c43 = arith.constant 43 : index
    %c0_267 = arith.constant 0 : index
    %346 = vector.load %arg3[%c43, %c0_267] : memref<120x80xf32, #tpu.memory_space<vmem>>, vector<1x80xf32>
    %347 = vector.broadcast %346 : vector<1x80xf32> to vector<16x80xf32>
    %348 = arith.mulf %345, %347 : vector<16x80xf32>
    %349 = arith.addf %343, %348 : vector<16x80xf32>
    %cst_268 = arith.constant 0.000000e+00 : f32
    %350 = vector.broadcast %cst_268 : f32 to vector<16x80xf32>
    %351 = arith.subf %350, %349 : vector<16x80xf32>
    %352 = math.exp %351 : vector<16x80xf32>
    %cst_269 = arith.constant 1.000000e+00 : f32
    %353 = vector.broadcast %cst_269 : f32 to vector<16x80xf32>
    %354 = arith.addf %353, %352 : vector<16x80xf32>
    %355 = tpu.reciprocal %354 {approx = true} : vector<16x80xf32> -> vector<16x80xf32>
    %356 = arith.mulf %349, %355 : vector<16x80xf32>
    %c0_270 = arith.constant 0 : index
    %c3_271 = arith.constant 3 : index
    %c0_272 = arith.constant 0 : index
    %c80_273 = arith.constant 80 : index
    %357 = vector.load %arg5[%c0_270, %c3_271, %c0_272, %c80_273] : memref<1x8x16x400xf32, #tpu.memory_space<vmem>>, vector<1x1x16x80xf32>
    %358 = vector.shape_cast %357 : vector<1x1x16x80xf32> to vector<16x80xf32>
    %359 = vector.shape_cast %356 : vector<16x80xf32> to vector<1x1x16x80xf32>
    tpu.vector_store %arg5[%c0_270, %c3_271, %c0_272, %c80_273], %359 {strides = array<i32>} : memref<1x8x16x400xf32, #tpu.memory_space<vmem>>, vector<1x1x16x80xf32>,
    %c4_274 = arith.constant 4 : index
    %c0_275 = arith.constant 0 : index
    %360 = vector.load %arg4[%c4_274, %c0_275] : memref<8x1xf32, #tpu.memory_space<vmem>>, vector<1x1xf32>
    %c0_276 = arith.constant 0 : index
    %c0_277 = arith.constant 0 : index
    %c0_278 = arith.constant 0 : index
    %c0_279 = arith.constant 0 : index
    %361 = vector.load %arg2[%c0_276, %c0_277, %c0_278, %c0_279] : memref<1x3x16x80xf32, #tpu.memory_space<vmem>>, vector<1x1x16x80xf32>
    %362 = vector.shape_cast %361 : vector<1x1x16x80xf32> to vector<16x80xf32>
    %c28 = arith.constant 28 : index
    %c0_280 = arith.constant 0 : index
    %363 = vector.load %arg3[%c28, %c0_280] : memref<120x80xf32, #tpu.memory_space<vmem>>, vector<1x80xf32>
    %364 = vector.broadcast %363 : vector<1x80xf32> to vector<16x80xf32>
    %365 = arith.mulf %362, %364 : vector<16x80xf32>
    %366 = vector.broadcast %360 : vector<1x1xf32> to vector<16x80xf32>
    %367 = arith.addf %365, %366 : vector<16x80xf32>
    %c0_281 = arith.constant 0 : index
    %c1_282 = arith.constant 1 : index
    %c0_283 = arith.constant 0 : index
    %c0_284 = arith.constant 0 : index
    %368 = vector.load %arg2[%c0_281, %c1_282, %c0_283, %c0_284] : memref<1x3x16x80xf32, #tpu.memory_space<vmem>>, vector<1x1x16x80xf32>
    %369 = vector.shape_cast %368 : vector<1x1x16x80xf32> to vector<16x80xf32>
    %c36 = arith.constant 36 : index
    %c0_285 = arith.constant 0 : index
    %370 = vector.load %arg3[%c36, %c0_285] : memref<120x80xf32, #tpu.memory_space<vmem>>, vector<1x80xf32>
    %371 = vector.broadcast %370 : vector<1x80xf32> to vector<16x80xf32>
    %372 = arith.mulf %369, %371 : vector<16x80xf32>
    %373 = arith.addf %367, %372 : vector<16x80xf32>
    %c0_286 = arith.constant 0 : index
    %c2_287 = arith.constant 2 : index
    %c0_288 = arith.constant 0 : index
    %c0_289 = arith.constant 0 : index
    %374 = vector.load %arg2[%c0_286, %c2_287, %c0_288, %c0_289] : memref<1x3x16x80xf32, #tpu.memory_space<vmem>>, vector<1x1x16x80xf32>
    %375 = vector.shape_cast %374 : vector<1x1x16x80xf32> to vector<16x80xf32>
    %c44 = arith.constant 44 : index
    %c0_290 = arith.constant 0 : index
    %376 = vector.load %arg3[%c44, %c0_290] : memref<120x80xf32, #tpu.memory_space<vmem>>, vector<1x80xf32>
    %377 = vector.broadcast %376 : vector<1x80xf32> to vector<16x80xf32>
    %378 = arith.mulf %375, %377 : vector<16x80xf32>
    %379 = arith.addf %373, %378 : vector<16x80xf32>
    %cst_291 = arith.constant 0.000000e+00 : f32
    %380 = vector.broadcast %cst_291 : f32 to vector<16x80xf32>
    %381 = arith.subf %380, %379 : vector<16x80xf32>
    %382 = math.exp %381 : vector<16x80xf32>
    %cst_292 = arith.constant 1.000000e+00 : f32
    %383 = vector.broadcast %cst_292 : f32 to vector<16x80xf32>
    %384 = arith.addf %383, %382 : vector<16x80xf32>
    %385 = tpu.reciprocal %384 {approx = true} : vector<16x80xf32> -> vector<16x80xf32>
    %386 = arith.mulf %379, %385 : vector<16x80xf32>
    %c0_293 = arith.constant 0 : index
    %c4_294 = arith.constant 4 : index
    %c0_295 = arith.constant 0 : index
    %c80_296 = arith.constant 80 : index
    %387 = vector.load %arg5[%c0_293, %c4_294, %c0_295, %c80_296] : memref<1x8x16x400xf32, #tpu.memory_space<vmem>>, vector<1x1x16x80xf32>
    %388 = vector.shape_cast %387 : vector<1x1x16x80xf32> to vector<16x80xf32>
    %389 = vector.shape_cast %386 : vector<16x80xf32> to vector<1x1x16x80xf32>
    tpu.vector_store %arg5[%c0_293, %c4_294, %c0_295, %c80_296], %389 {strides = array<i32>} : memref<1x8x16x400xf32, #tpu.memory_space<vmem>>, vector<1x1x16x80xf32>,
    %c5_297 = arith.constant 5 : index
    %c0_298 = arith.constant 0 : index
    %390 = vector.load %arg4[%c5_297, %c0_298] : memref<8x1xf32, #tpu.memory_space<vmem>>, vector<1x1xf32>
    %c0_299 = arith.constant 0 : index
    %c0_300 = arith.constant 0 : index
    %c0_301 = arith.constant 0 : index
    %c0_302 = arith.constant 0 : index
    %391 = vector.load %arg2[%c0_299, %c0_300, %c0_301, %c0_302] : memref<1x3x16x80xf32, #tpu.memory_space<vmem>>, vector<1x1x16x80xf32>
    %392 = vector.shape_cast %391 : vector<1x1x16x80xf32> to vector<16x80xf32>
    %c29 = arith.constant 29 : index
    %c0_303 = arith.constant 0 : index
    %393 = vector.load %arg3[%c29, %c0_303] : memref<120x80xf32, #tpu.memory_space<vmem>>, vector<1x80xf32>
    %394 = vector.broadcast %393 : vector<1x80xf32> to vector<16x80xf32>
    %395 = arith.mulf %392, %394 : vector<16x80xf32>
    %396 = vector.broadcast %390 : vector<1x1xf32> to vector<16x80xf32>
    %397 = arith.addf %395, %396 : vector<16x80xf32>
    %c0_304 = arith.constant 0 : index
    %c1_305 = arith.constant 1 : index
    %c0_306 = arith.constant 0 : index
    %c0_307 = arith.constant 0 : index
    %398 = vector.load %arg2[%c0_304, %c1_305, %c0_306, %c0_307] : memref<1x3x16x80xf32, #tpu.memory_space<vmem>>, vector<1x1x16x80xf32>
    %399 = vector.shape_cast %398 : vector<1x1x16x80xf32> to vector<16x80xf32>
    %c37 = arith.constant 37 : index
    %c0_308 = arith.constant 0 : index
    %400 = vector.load %arg3[%c37, %c0_308] : memref<120x80xf32, #tpu.memory_space<vmem>>, vector<1x80xf32>
    %401 = vector.broadcast %400 : vector<1x80xf32> to vector<16x80xf32>
    %402 = arith.mulf %399, %401 : vector<16x80xf32>
    %403 = arith.addf %397, %402 : vector<16x80xf32>
    %c0_309 = arith.constant 0 : index
    %c2_310 = arith.constant 2 : index
    %c0_311 = arith.constant 0 : index
    %c0_312 = arith.constant 0 : index
    %404 = vector.load %arg2[%c0_309, %c2_310, %c0_311, %c0_312] : memref<1x3x16x80xf32, #tpu.memory_space<vmem>>, vector<1x1x16x80xf32>
    %405 = vector.shape_cast %404 : vector<1x1x16x80xf32> to vector<16x80xf32>
    %c45 = arith.constant 45 : index
    %c0_313 = arith.constant 0 : index
    %406 = vector.load %arg3[%c45, %c0_313] : memref<120x80xf32, #tpu.memory_space<vmem>>, vector<1x80xf32>
    %407 = vector.broadcast %406 : vector<1x80xf32> to vector<16x80xf32>
    %408 = arith.mulf %405, %407 : vector<16x80xf32>
    %409 = arith.addf %403, %408 : vector<16x80xf32>
    %cst_314 = arith.constant 0.000000e+00 : f32
    %410 = vector.broadcast %cst_314 : f32 to vector<16x80xf32>
    %411 = arith.subf %410, %409 : vector<16x80xf32>
    %412 = math.exp %411 : vector<16x80xf32>
    %cst_315 = arith.constant 1.000000e+00 : f32
    %413 = vector.broadcast %cst_315 : f32 to vector<16x80xf32>
    %414 = arith.addf %413, %412 : vector<16x80xf32>
    %415 = tpu.reciprocal %414 {approx = true} : vector<16x80xf32> -> vector<16x80xf32>
    %416 = arith.mulf %409, %415 : vector<16x80xf32>
    %c0_316 = arith.constant 0 : index
    %c5_317 = arith.constant 5 : index
    %c0_318 = arith.constant 0 : index
    %c80_319 = arith.constant 80 : index
    %417 = vector.load %arg5[%c0_316, %c5_317, %c0_318, %c80_319] : memref<1x8x16x400xf32, #tpu.memory_space<vmem>>, vector<1x1x16x80xf32>
    %418 = vector.shape_cast %417 : vector<1x1x16x80xf32> to vector<16x80xf32>
    %419 = vector.shape_cast %416 : vector<16x80xf32> to vector<1x1x16x80xf32>
    tpu.vector_store %arg5[%c0_316, %c5_317, %c0_318, %c80_319], %419 {strides = array<i32>} : memref<1x8x16x400xf32, #tpu.memory_space<vmem>>, vector<1x1x16x80xf32>,
    %c6_320 = arith.constant 6 : index
    %c0_321 = arith.constant 0 : index
    %420 = vector.load %arg4[%c6_320, %c0_321] : memref<8x1xf32, #tpu.memory_space<vmem>>, vector<1x1xf32>
    %c0_322 = arith.constant 0 : index
    %c0_323 = arith.constant 0 : index
    %c0_324 = arith.constant 0 : index
    %c0_325 = arith.constant 0 : index
    %421 = vector.load %arg2[%c0_322, %c0_323, %c0_324, %c0_325] : memref<1x3x16x80xf32, #tpu.memory_space<vmem>>, vector<1x1x16x80xf32>
    %422 = vector.shape_cast %421 : vector<1x1x16x80xf32> to vector<16x80xf32>
    %c30 = arith.constant 30 : index
    %c0_326 = arith.constant 0 : index
    %423 = vector.load %arg3[%c30, %c0_326] : memref<120x80xf32, #tpu.memory_space<vmem>>, vector<1x80xf32>
    %424 = vector.broadcast %423 : vector<1x80xf32> to vector<16x80xf32>
    %425 = arith.mulf %422, %424 : vector<16x80xf32>
    %426 = vector.broadcast %420 : vector<1x1xf32> to vector<16x80xf32>
    %427 = arith.addf %425, %426 : vector<16x80xf32>
    %c0_327 = arith.constant 0 : index
    %c1_328 = arith.constant 1 : index
    %c0_329 = arith.constant 0 : index
    %c0_330 = arith.constant 0 : index
    %428 = vector.load %arg2[%c0_327, %c1_328, %c0_329, %c0_330] : memref<1x3x16x80xf32, #tpu.memory_space<vmem>>, vector<1x1x16x80xf32>
    %429 = vector.shape_cast %428 : vector<1x1x16x80xf32> to vector<16x80xf32>
    %c38 = arith.constant 38 : index
    %c0_331 = arith.constant 0 : index
    %430 = vector.load %arg3[%c38, %c0_331] : memref<120x80xf32, #tpu.memory_space<vmem>>, vector<1x80xf32>
    %431 = vector.broadcast %430 : vector<1x80xf32> to vector<16x80xf32>
    %432 = arith.mulf %429, %431 : vector<16x80xf32>
    %433 = arith.addf %427, %432 : vector<16x80xf32>
    %c0_332 = arith.constant 0 : index
    %c2_333 = arith.constant 2 : index
    %c0_334 = arith.constant 0 : index
    %c0_335 = arith.constant 0 : index
    %434 = vector.load %arg2[%c0_332, %c2_333, %c0_334, %c0_335] : memref<1x3x16x80xf32, #tpu.memory_space<vmem>>, vector<1x1x16x80xf32>
    %435 = vector.shape_cast %434 : vector<1x1x16x80xf32> to vector<16x80xf32>
    %c46 = arith.constant 46 : index
    %c0_336 = arith.constant 0 : index
    %436 = vector.load %arg3[%c46, %c0_336] : memref<120x80xf32, #tpu.memory_space<vmem>>, vector<1x80xf32>
    %437 = vector.broadcast %436 : vector<1x80xf32> to vector<16x80xf32>
    %438 = arith.mulf %435, %437 : vector<16x80xf32>
    %439 = arith.addf %433, %438 : vector<16x80xf32>
    %cst_337 = arith.constant 0.000000e+00 : f32
    %440 = vector.broadcast %cst_337 : f32 to vector<16x80xf32>
    %441 = arith.subf %440, %439 : vector<16x80xf32>
    %442 = math.exp %441 : vector<16x80xf32>
    %cst_338 = arith.constant 1.000000e+00 : f32
    %443 = vector.broadcast %cst_338 : f32 to vector<16x80xf32>
    %444 = arith.addf %443, %442 : vector<16x80xf32>
    %445 = tpu.reciprocal %444 {approx = true} : vector<16x80xf32> -> vector<16x80xf32>
    %446 = arith.mulf %439, %445 : vector<16x80xf32>
    %c0_339 = arith.constant 0 : index
    %c6_340 = arith.constant 6 : index
    %c0_341 = arith.constant 0 : index
    %c80_342 = arith.constant 80 : index
    %447 = vector.load %arg5[%c0_339, %c6_340, %c0_341, %c80_342] : memref<1x8x16x400xf32, #tpu.memory_space<vmem>>, vector<1x1x16x80xf32>
    %448 = vector.shape_cast %447 : vector<1x1x16x80xf32> to vector<16x80xf32>
    %449 = vector.shape_cast %446 : vector<16x80xf32> to vector<1x1x16x80xf32>
    tpu.vector_store %arg5[%c0_339, %c6_340, %c0_341, %c80_342], %449 {strides = array<i32>} : memref<1x8x16x400xf32, #tpu.memory_space<vmem>>, vector<1x1x16x80xf32>,
    %c7_343 = arith.constant 7 : index
    %c0_344 = arith.constant 0 : index
    %450 = vector.load %arg4[%c7_343, %c0_344] : memref<8x1xf32, #tpu.memory_space<vmem>>, vector<1x1xf32>
    %c0_345 = arith.constant 0 : index
    %c0_346 = arith.constant 0 : index
    %c0_347 = arith.constant 0 : index
    %c0_348 = arith.constant 0 : index
    %451 = vector.load %arg2[%c0_345, %c0_346, %c0_347, %c0_348] : memref<1x3x16x80xf32, #tpu.memory_space<vmem>>, vector<1x1x16x80xf32>
    %452 = vector.shape_cast %451 : vector<1x1x16x80xf32> to vector<16x80xf32>
    %c31 = arith.constant 31 : index
    %c0_349 = arith.constant 0 : index
    %453 = vector.load %arg3[%c31, %c0_349] : memref<120x80xf32, #tpu.memory_space<vmem>>, vector<1x80xf32>
    %454 = vector.broadcast %453 : vector<1x80xf32> to vector<16x80xf32>
    %455 = arith.mulf %452, %454 : vector<16x80xf32>
    %456 = vector.broadcast %450 : vector<1x1xf32> to vector<16x80xf32>
    %457 = arith.addf %455, %456 : vector<16x80xf32>
    %c0_350 = arith.constant 0 : index
    %c1_351 = arith.constant 1 : index
    %c0_352 = arith.constant 0 : index
    %c0_353 = arith.constant 0 : index
    %458 = vector.load %arg2[%c0_350, %c1_351, %c0_352, %c0_353] : memref<1x3x16x80xf32, #tpu.memory_space<vmem>>, vector<1x1x16x80xf32>
    %459 = vector.shape_cast %458 : vector<1x1x16x80xf32> to vector<16x80xf32>
    %c39 = arith.constant 39 : index
    %c0_354 = arith.constant 0 : index
    %460 = vector.load %arg3[%c39, %c0_354] : memref<120x80xf32, #tpu.memory_space<vmem>>, vector<1x80xf32>
    %461 = vector.broadcast %460 : vector<1x80xf32> to vector<16x80xf32>
    %462 = arith.mulf %459, %461 : vector<16x80xf32>
    %463 = arith.addf %457, %462 : vector<16x80xf32>
    %c0_355 = arith.constant 0 : index
    %c2_356 = arith.constant 2 : index
    %c0_357 = arith.constant 0 : index
    %c0_358 = arith.constant 0 : index
    %464 = vector.load %arg2[%c0_355, %c2_356, %c0_357, %c0_358] : memref<1x3x16x80xf32, #tpu.memory_space<vmem>>, vector<1x1x16x80xf32>
    %465 = vector.shape_cast %464 : vector<1x1x16x80xf32> to vector<16x80xf32>
    %c47 = arith.constant 47 : index
    %c0_359 = arith.constant 0 : index
    %466 = vector.load %arg3[%c47, %c0_359] : memref<120x80xf32, #tpu.memory_space<vmem>>, vector<1x80xf32>
    %467 = vector.broadcast %466 : vector<1x80xf32> to vector<16x80xf32>
    %468 = arith.mulf %465, %467 : vector<16x80xf32>
    %469 = arith.addf %463, %468 : vector<16x80xf32>
    %cst_360 = arith.constant 0.000000e+00 : f32
    %470 = vector.broadcast %cst_360 : f32 to vector<16x80xf32>
    %471 = arith.subf %470, %469 : vector<16x80xf32>
    %472 = math.exp %471 : vector<16x80xf32>
    %cst_361 = arith.constant 1.000000e+00 : f32
    %473 = vector.broadcast %cst_361 : f32 to vector<16x80xf32>
    %474 = arith.addf %473, %472 : vector<16x80xf32>
    %475 = tpu.reciprocal %474 {approx = true} : vector<16x80xf32> -> vector<16x80xf32>
    %476 = arith.mulf %469, %475 : vector<16x80xf32>
    %c0_362 = arith.constant 0 : index
    %c7_363 = arith.constant 7 : index
    %c0_364 = arith.constant 0 : index
    %c80_365 = arith.constant 80 : index
    %477 = vector.load %arg5[%c0_362, %c7_363, %c0_364, %c80_365] : memref<1x8x16x400xf32, #tpu.memory_space<vmem>>, vector<1x1x16x80xf32>
    %478 = vector.shape_cast %477 : vector<1x1x16x80xf32> to vector<16x80xf32>
    %479 = vector.shape_cast %476 : vector<16x80xf32> to vector<1x1x16x80xf32>
    tpu.vector_store %arg5[%c0_362, %c7_363, %c0_364, %c80_365], %479 {strides = array<i32>} : memref<1x8x16x400xf32, #tpu.memory_space<vmem>>, vector<1x1x16x80xf32>,
    %c0_366 = arith.constant 0 : index
    %c0_367 = arith.constant 0 : index
    %480 = vector.load %arg4[%c0_366, %c0_367] : memref<8x1xf32, #tpu.memory_space<vmem>>, vector<1x1xf32>
    %c0_368 = arith.constant 0 : index
    %c0_369 = arith.constant 0 : index
    %c0_370 = arith.constant 0 : index
    %c0_371 = arith.constant 0 : index
    %481 = vector.load %arg2[%c0_368, %c0_369, %c0_370, %c0_371] : memref<1x3x16x80xf32, #tpu.memory_space<vmem>>, vector<1x1x16x80xf32>
    %482 = vector.shape_cast %481 : vector<1x1x16x80xf32> to vector<16x80xf32>
    %c48 = arith.constant 48 : index
    %c0_372 = arith.constant 0 : index
    %483 = vector.load %arg3[%c48, %c0_372] : memref<120x80xf32, #tpu.memory_space<vmem>>, vector<1x80xf32>
    %484 = vector.broadcast %483 : vector<1x80xf32> to vector<16x80xf32>
    %485 = arith.mulf %482, %484 : vector<16x80xf32>
    %486 = vector.broadcast %480 : vector<1x1xf32> to vector<16x80xf32>
    %487 = arith.addf %485, %486 : vector<16x80xf32>
    %c0_373 = arith.constant 0 : index
    %c1_374 = arith.constant 1 : index
    %c0_375 = arith.constant 0 : index
    %c0_376 = arith.constant 0 : index
    %488 = vector.load %arg2[%c0_373, %c1_374, %c0_375, %c0_376] : memref<1x3x16x80xf32, #tpu.memory_space<vmem>>, vector<1x1x16x80xf32>
    %489 = vector.shape_cast %488 : vector<1x1x16x80xf32> to vector<16x80xf32>
    %c56 = arith.constant 56 : index
    %c0_377 = arith.constant 0 : index
    %490 = vector.load %arg3[%c56, %c0_377] : memref<120x80xf32, #tpu.memory_space<vmem>>, vector<1x80xf32>
    %491 = vector.broadcast %490 : vector<1x80xf32> to vector<16x80xf32>
    %492 = arith.mulf %489, %491 : vector<16x80xf32>
    %493 = arith.addf %487, %492 : vector<16x80xf32>
    %c0_378 = arith.constant 0 : index
    %c2_379 = arith.constant 2 : index
    %c0_380 = arith.constant 0 : index
    %c0_381 = arith.constant 0 : index
    %494 = vector.load %arg2[%c0_378, %c2_379, %c0_380, %c0_381] : memref<1x3x16x80xf32, #tpu.memory_space<vmem>>, vector<1x1x16x80xf32>
    %495 = vector.shape_cast %494 : vector<1x1x16x80xf32> to vector<16x80xf32>
    %c64 = arith.constant 64 : index
    %c0_382 = arith.constant 0 : index
    %496 = vector.load %arg3[%c64, %c0_382] : memref<120x80xf32, #tpu.memory_space<vmem>>, vector<1x80xf32>
    %497 = vector.broadcast %496 : vector<1x80xf32> to vector<16x80xf32>
    %498 = arith.mulf %495, %497 : vector<16x80xf32>
    %499 = arith.addf %493, %498 : vector<16x80xf32>
    %cst_383 = arith.constant 0.000000e+00 : f32
    %500 = vector.broadcast %cst_383 : f32 to vector<16x80xf32>
    %501 = arith.subf %500, %499 : vector<16x80xf32>
    %502 = math.exp %501 : vector<16x80xf32>
    %cst_384 = arith.constant 1.000000e+00 : f32
    %503 = vector.broadcast %cst_384 : f32 to vector<16x80xf32>
    %504 = arith.addf %503, %502 : vector<16x80xf32>
    %505 = tpu.reciprocal %504 {approx = true} : vector<16x80xf32> -> vector<16x80xf32>
    %506 = arith.mulf %499, %505 : vector<16x80xf32>
    %c0_385 = arith.constant 0 : index
    %c0_386 = arith.constant 0 : index
    %c0_387 = arith.constant 0 : index
    %c160 = arith.constant 160 : index
    %507 = vector.load %arg5[%c0_385, %c0_386, %c0_387, %c160] : memref<1x8x16x400xf32, #tpu.memory_space<vmem>>, vector<1x1x16x80xf32>
    %508 = vector.shape_cast %507 : vector<1x1x16x80xf32> to vector<16x80xf32>
    %509 = vector.shape_cast %506 : vector<16x80xf32> to vector<1x1x16x80xf32>
    tpu.vector_store %arg5[%c0_385, %c0_386, %c0_387, %c160], %509 {strides = array<i32>} : memref<1x8x16x400xf32, #tpu.memory_space<vmem>>, vector<1x1x16x80xf32>,
    %c1_388 = arith.constant 1 : index
    %c0_389 = arith.constant 0 : index
    %510 = vector.load %arg4[%c1_388, %c0_389] : memref<8x1xf32, #tpu.memory_space<vmem>>, vector<1x1xf32>
    %c0_390 = arith.constant 0 : index
    %c0_391 = arith.constant 0 : index
    %c0_392 = arith.constant 0 : index
    %c0_393 = arith.constant 0 : index
    %511 = vector.load %arg2[%c0_390, %c0_391, %c0_392, %c0_393] : memref<1x3x16x80xf32, #tpu.memory_space<vmem>>, vector<1x1x16x80xf32>
    %512 = vector.shape_cast %511 : vector<1x1x16x80xf32> to vector<16x80xf32>
    %c49 = arith.constant 49 : index
    %c0_394 = arith.constant 0 : index
    %513 = vector.load %arg3[%c49, %c0_394] : memref<120x80xf32, #tpu.memory_space<vmem>>, vector<1x80xf32>
    %514 = vector.broadcast %513 : vector<1x80xf32> to vector<16x80xf32>
    %515 = arith.mulf %512, %514 : vector<16x80xf32>
    %516 = vector.broadcast %510 : vector<1x1xf32> to vector<16x80xf32>
    %517 = arith.addf %515, %516 : vector<16x80xf32>
    %c0_395 = arith.constant 0 : index
    %c1_396 = arith.constant 1 : index
    %c0_397 = arith.constant 0 : index
    %c0_398 = arith.constant 0 : index
    %518 = vector.load %arg2[%c0_395, %c1_396, %c0_397, %c0_398] : memref<1x3x16x80xf32, #tpu.memory_space<vmem>>, vector<1x1x16x80xf32>
    %519 = vector.shape_cast %518 : vector<1x1x16x80xf32> to vector<16x80xf32>
    %c57 = arith.constant 57 : index
    %c0_399 = arith.constant 0 : index
    %520 = vector.load %arg3[%c57, %c0_399] : memref<120x80xf32, #tpu.memory_space<vmem>>, vector<1x80xf32>
    %521 = vector.broadcast %520 : vector<1x80xf32> to vector<16x80xf32>
    %522 = arith.mulf %519, %521 : vector<16x80xf32>
    %523 = arith.addf %517, %522 : vector<16x80xf32>
    %c0_400 = arith.constant 0 : index
    %c2_401 = arith.constant 2 : index
    %c0_402 = arith.constant 0 : index
    %c0_403 = arith.constant 0 : index
    %524 = vector.load %arg2[%c0_400, %c2_401, %c0_402, %c0_403] : memref<1x3x16x80xf32, #tpu.memory_space<vmem>>, vector<1x1x16x80xf32>
    %525 = vector.shape_cast %524 : vector<1x1x16x80xf32> to vector<16x80xf32>
    %c65 = arith.constant 65 : index
    %c0_404 = arith.constant 0 : index
    %526 = vector.load %arg3[%c65, %c0_404] : memref<120x80xf32, #tpu.memory_space<vmem>>, vector<1x80xf32>
    %527 = vector.broadcast %526 : vector<1x80xf32> to vector<16x80xf32>
    %528 = arith.mulf %525, %527 : vector<16x80xf32>
    %529 = arith.addf %523, %528 : vector<16x80xf32>
    %cst_405 = arith.constant 0.000000e+00 : f32
    %530 = vector.broadcast %cst_405 : f32 to vector<16x80xf32>
    %531 = arith.subf %530, %529 : vector<16x80xf32>
    %532 = math.exp %531 : vector<16x80xf32>
    %cst_406 = arith.constant 1.000000e+00 : f32
    %533 = vector.broadcast %cst_406 : f32 to vector<16x80xf32>
    %534 = arith.addf %533, %532 : vector<16x80xf32>
    %535 = tpu.reciprocal %534 {approx = true} : vector<16x80xf32> -> vector<16x80xf32>
    %536 = arith.mulf %529, %535 : vector<16x80xf32>
    %c0_407 = arith.constant 0 : index
    %c1_408 = arith.constant 1 : index
    %c0_409 = arith.constant 0 : index
    %c160_410 = arith.constant 160 : index
    %537 = vector.load %arg5[%c0_407, %c1_408, %c0_409, %c160_410] : memref<1x8x16x400xf32, #tpu.memory_space<vmem>>, vector<1x1x16x80xf32>
    %538 = vector.shape_cast %537 : vector<1x1x16x80xf32> to vector<16x80xf32>
    %539 = vector.shape_cast %536 : vector<16x80xf32> to vector<1x1x16x80xf32>
    tpu.vector_store %arg5[%c0_407, %c1_408, %c0_409, %c160_410], %539 {strides = array<i32>} : memref<1x8x16x400xf32, #tpu.memory_space<vmem>>, vector<1x1x16x80xf32>,
    %c2_411 = arith.constant 2 : index
    %c0_412 = arith.constant 0 : index
    %540 = vector.load %arg4[%c2_411, %c0_412] : memref<8x1xf32, #tpu.memory_space<vmem>>, vector<1x1xf32>
    %c0_413 = arith.constant 0 : index
    %c0_414 = arith.constant 0 : index
    %c0_415 = arith.constant 0 : index
    %c0_416 = arith.constant 0 : index
    %541 = vector.load %arg2[%c0_413, %c0_414, %c0_415, %c0_416] : memref<1x3x16x80xf32, #tpu.memory_space<vmem>>, vector<1x1x16x80xf32>
    %542 = vector.shape_cast %541 : vector<1x1x16x80xf32> to vector<16x80xf32>
    %c50 = arith.constant 50 : index
    %c0_417 = arith.constant 0 : index
    %543 = vector.load %arg3[%c50, %c0_417] : memref<120x80xf32, #tpu.memory_space<vmem>>, vector<1x80xf32>
    %544 = vector.broadcast %543 : vector<1x80xf32> to vector<16x80xf32>
    %545 = arith.mulf %542, %544 : vector<16x80xf32>
    %546 = vector.broadcast %540 : vector<1x1xf32> to vector<16x80xf32>
    %547 = arith.addf %545, %546 : vector<16x80xf32>
    %c0_418 = arith.constant 0 : index
    %c1_419 = arith.constant 1 : index
    %c0_420 = arith.constant 0 : index
    %c0_421 = arith.constant 0 : index
    %548 = vector.load %arg2[%c0_418, %c1_419, %c0_420, %c0_421] : memref<1x3x16x80xf32, #tpu.memory_space<vmem>>, vector<1x1x16x80xf32>
    %549 = vector.shape_cast %548 : vector<1x1x16x80xf32> to vector<16x80xf32>
    %c58 = arith.constant 58 : index
    %c0_422 = arith.constant 0 : index
    %550 = vector.load %arg3[%c58, %c0_422] : memref<120x80xf32, #tpu.memory_space<vmem>>, vector<1x80xf32>
    %551 = vector.broadcast %550 : vector<1x80xf32> to vector<16x80xf32>
    %552 = arith.mulf %549, %551 : vector<16x80xf32>
    %553 = arith.addf %547, %552 : vector<16x80xf32>
    %c0_423 = arith.constant 0 : index
    %c2_424 = arith.constant 2 : index
    %c0_425 = arith.constant 0 : index
    %c0_426 = arith.constant 0 : index
    %554 = vector.load %arg2[%c0_423, %c2_424, %c0_425, %c0_426] : memref<1x3x16x80xf32, #tpu.memory_space<vmem>>, vector<1x1x16x80xf32>
    %555 = vector.shape_cast %554 : vector<1x1x16x80xf32> to vector<16x80xf32>
    %c66 = arith.constant 66 : index
    %c0_427 = arith.constant 0 : index
    %556 = vector.load %arg3[%c66, %c0_427] : memref<120x80xf32, #tpu.memory_space<vmem>>, vector<1x80xf32>
    %557 = vector.broadcast %556 : vector<1x80xf32> to vector<16x80xf32>
    %558 = arith.mulf %555, %557 : vector<16x80xf32>
    %559 = arith.addf %553, %558 : vector<16x80xf32>
    %cst_428 = arith.constant 0.000000e+00 : f32
    %560 = vector.broadcast %cst_428 : f32 to vector<16x80xf32>
    %561 = arith.subf %560, %559 : vector<16x80xf32>
    %562 = math.exp %561 : vector<16x80xf32>
    %cst_429 = arith.constant 1.000000e+00 : f32
    %563 = vector.broadcast %cst_429 : f32 to vector<16x80xf32>
    %564 = arith.addf %563, %562 : vector<16x80xf32>
    %565 = tpu.reciprocal %564 {approx = true} : vector<16x80xf32> -> vector<16x80xf32>
    %566 = arith.mulf %559, %565 : vector<16x80xf32>
    %c0_430 = arith.constant 0 : index
    %c2_431 = arith.constant 2 : index
    %c0_432 = arith.constant 0 : index
    %c160_433 = arith.constant 160 : index
    %567 = vector.load %arg5[%c0_430, %c2_431, %c0_432, %c160_433] : memref<1x8x16x400xf32, #tpu.memory_space<vmem>>, vector<1x1x16x80xf32>
    %568 = vector.shape_cast %567 : vector<1x1x16x80xf32> to vector<16x80xf32>
    %569 = vector.shape_cast %566 : vector<16x80xf32> to vector<1x1x16x80xf32>
    tpu.vector_store %arg5[%c0_430, %c2_431, %c0_432, %c160_433], %569 {strides = array<i32>} : memref<1x8x16x400xf32, #tpu.memory_space<vmem>>, vector<1x1x16x80xf32>,
    %c3_434 = arith.constant 3 : index
    %c0_435 = arith.constant 0 : index
    %570 = vector.load %arg4[%c3_434, %c0_435] : memref<8x1xf32, #tpu.memory_space<vmem>>, vector<1x1xf32>
    %c0_436 = arith.constant 0 : index
    %c0_437 = arith.constant 0 : index
    %c0_438 = arith.constant 0 : index
    %c0_439 = arith.constant 0 : index
    %571 = vector.load %arg2[%c0_436, %c0_437, %c0_438, %c0_439] : memref<1x3x16x80xf32, #tpu.memory_space<vmem>>, vector<1x1x16x80xf32>
    %572 = vector.shape_cast %571 : vector<1x1x16x80xf32> to vector<16x80xf32>
    %c51 = arith.constant 51 : index
    %c0_440 = arith.constant 0 : index
    %573 = vector.load %arg3[%c51, %c0_440] : memref<120x80xf32, #tpu.memory_space<vmem>>, vector<1x80xf32>
    %574 = vector.broadcast %573 : vector<1x80xf32> to vector<16x80xf32>
    %575 = arith.mulf %572, %574 : vector<16x80xf32>
    %576 = vector.broadcast %570 : vector<1x1xf32> to vector<16x80xf32>
    %577 = arith.addf %575, %576 : vector<16x80xf32>
    %c0_441 = arith.constant 0 : index
    %c1_442 = arith.constant 1 : index
    %c0_443 = arith.constant 0 : index
    %c0_444 = arith.constant 0 : index
    %578 = vector.load %arg2[%c0_441, %c1_442, %c0_443, %c0_444] : memref<1x3x16x80xf32, #tpu.memory_space<vmem>>, vector<1x1x16x80xf32>
    %579 = vector.shape_cast %578 : vector<1x1x16x80xf32> to vector<16x80xf32>
    %c59 = arith.constant 59 : index
    %c0_445 = arith.constant 0 : index
    %580 = vector.load %arg3[%c59, %c0_445] : memref<120x80xf32, #tpu.memory_space<vmem>>, vector<1x80xf32>
    %581 = vector.broadcast %580 : vector<1x80xf32> to vector<16x80xf32>
    %582 = arith.mulf %579, %581 : vector<16x80xf32>
    %583 = arith.addf %577, %582 : vector<16x80xf32>
    %c0_446 = arith.constant 0 : index
    %c2_447 = arith.constant 2 : index
    %c0_448 = arith.constant 0 : index
    %c0_449 = arith.constant 0 : index
    %584 = vector.load %arg2[%c0_446, %c2_447, %c0_448, %c0_449] : memref<1x3x16x80xf32, #tpu.memory_space<vmem>>, vector<1x1x16x80xf32>
    %585 = vector.shape_cast %584 : vector<1x1x16x80xf32> to vector<16x80xf32>
    %c67 = arith.constant 67 : index
    %c0_450 = arith.constant 0 : index
    %586 = vector.load %arg3[%c67, %c0_450] : memref<120x80xf32, #tpu.memory_space<vmem>>, vector<1x80xf32>
    %587 = vector.broadcast %586 : vector<1x80xf32> to vector<16x80xf32>
    %588 = arith.mulf %585, %587 : vector<16x80xf32>
    %589 = arith.addf %583, %588 : vector<16x80xf32>
    %cst_451 = arith.constant 0.000000e+00 : f32
    %590 = vector.broadcast %cst_451 : f32 to vector<16x80xf32>
    %591 = arith.subf %590, %589 : vector<16x80xf32>
    %592 = math.exp %591 : vector<16x80xf32>
    %cst_452 = arith.constant 1.000000e+00 : f32
    %593 = vector.broadcast %cst_452 : f32 to vector<16x80xf32>
    %594 = arith.addf %593, %592 : vector<16x80xf32>
    %595 = tpu.reciprocal %594 {approx = true} : vector<16x80xf32> -> vector<16x80xf32>
    %596 = arith.mulf %589, %595 : vector<16x80xf32>
    %c0_453 = arith.constant 0 : index
    %c3_454 = arith.constant 3 : index
    %c0_455 = arith.constant 0 : index
    %c160_456 = arith.constant 160 : index
    %597 = vector.load %arg5[%c0_453, %c3_454, %c0_455, %c160_456] : memref<1x8x16x400xf32, #tpu.memory_space<vmem>>, vector<1x1x16x80xf32>
    %598 = vector.shape_cast %597 : vector<1x1x16x80xf32> to vector<16x80xf32>
    %599 = vector.shape_cast %596 : vector<16x80xf32> to vector<1x1x16x80xf32>
    tpu.vector_store %arg5[%c0_453, %c3_454, %c0_455, %c160_456], %599 {strides = array<i32>} : memref<1x8x16x400xf32, #tpu.memory_space<vmem>>, vector<1x1x16x80xf32>,
    %c4_457 = arith.constant 4 : index
    %c0_458 = arith.constant 0 : index
    %600 = vector.load %arg4[%c4_457, %c0_458] : memref<8x1xf32, #tpu.memory_space<vmem>>, vector<1x1xf32>
    %c0_459 = arith.constant 0 : index
    %c0_460 = arith.constant 0 : index
    %c0_461 = arith.constant 0 : index
    %c0_462 = arith.constant 0 : index
    %601 = vector.load %arg2[%c0_459, %c0_460, %c0_461, %c0_462] : memref<1x3x16x80xf32, #tpu.memory_space<vmem>>, vector<1x1x16x80xf32>
    %602 = vector.shape_cast %601 : vector<1x1x16x80xf32> to vector<16x80xf32>
    %c52 = arith.constant 52 : index
    %c0_463 = arith.constant 0 : index
    %603 = vector.load %arg3[%c52, %c0_463] : memref<120x80xf32, #tpu.memory_space<vmem>>, vector<1x80xf32>
    %604 = vector.broadcast %603 : vector<1x80xf32> to vector<16x80xf32>
    %605 = arith.mulf %602, %604 : vector<16x80xf32>
    %606 = vector.broadcast %600 : vector<1x1xf32> to vector<16x80xf32>
    %607 = arith.addf %605, %606 : vector<16x80xf32>
    %c0_464 = arith.constant 0 : index
    %c1_465 = arith.constant 1 : index
    %c0_466 = arith.constant 0 : index
    %c0_467 = arith.constant 0 : index
    %608 = vector.load %arg2[%c0_464, %c1_465, %c0_466, %c0_467] : memref<1x3x16x80xf32, #tpu.memory_space<vmem>>, vector<1x1x16x80xf32>
    %609 = vector.shape_cast %608 : vector<1x1x16x80xf32> to vector<16x80xf32>
    %c60 = arith.constant 60 : index
    %c0_468 = arith.constant 0 : index
    %610 = vector.load %arg3[%c60, %c0_468] : memref<120x80xf32, #tpu.memory_space<vmem>>, vector<1x80xf32>
    %611 = vector.broadcast %610 : vector<1x80xf32> to vector<16x80xf32>
    %612 = arith.mulf %609, %611 : vector<16x80xf32>
    %613 = arith.addf %607, %612 : vector<16x80xf32>
    %c0_469 = arith.constant 0 : index
    %c2_470 = arith.constant 2 : index
    %c0_471 = arith.constant 0 : index
    %c0_472 = arith.constant 0 : index
    %614 = vector.load %arg2[%c0_469, %c2_470, %c0_471, %c0_472] : memref<1x3x16x80xf32, #tpu.memory_space<vmem>>, vector<1x1x16x80xf32>
    %615 = vector.shape_cast %614 : vector<1x1x16x80xf32> to vector<16x80xf32>
    %c68 = arith.constant 68 : index
    %c0_473 = arith.constant 0 : index
    %616 = vector.load %arg3[%c68, %c0_473] : memref<120x80xf32, #tpu.memory_space<vmem>>, vector<1x80xf32>
    %617 = vector.broadcast %616 : vector<1x80xf32> to vector<16x80xf32>
    %618 = arith.mulf %615, %617 : vector<16x80xf32>
    %619 = arith.addf %613, %618 : vector<16x80xf32>
    %cst_474 = arith.constant 0.000000e+00 : f32
    %620 = vector.broadcast %cst_474 : f32 to vector<16x80xf32>
    %621 = arith.subf %620, %619 : vector<16x80xf32>
    %622 = math.exp %621 : vector<16x80xf32>
    %cst_475 = arith.constant 1.000000e+00 : f32
    %623 = vector.broadcast %cst_475 : f32 to vector<16x80xf32>
    %624 = arith.addf %623, %622 : vector<16x80xf32>
    %625 = tpu.reciprocal %624 {approx = true} : vector<16x80xf32> -> vector<16x80xf32>
    %626 = arith.mulf %619, %625 : vector<16x80xf32>
    %c0_476 = arith.constant 0 : index
    %c4_477 = arith.constant 4 : index
    %c0_478 = arith.constant 0 : index
    %c160_479 = arith.constant 160 : index
    %627 = vector.load %arg5[%c0_476, %c4_477, %c0_478, %c160_479] : memref<1x8x16x400xf32, #tpu.memory_space<vmem>>, vector<1x1x16x80xf32>
    %628 = vector.shape_cast %627 : vector<1x1x16x80xf32> to vector<16x80xf32>
    %629 = vector.shape_cast %626 : vector<16x80xf32> to vector<1x1x16x80xf32>
    tpu.vector_store %arg5[%c0_476, %c4_477, %c0_478, %c160_479], %629 {strides = array<i32>} : memref<1x8x16x400xf32, #tpu.memory_space<vmem>>, vector<1x1x16x80xf32>,
    %c5_480 = arith.constant 5 : index
    %c0_481 = arith.constant 0 : index
    %630 = vector.load %arg4[%c5_480, %c0_481] : memref<8x1xf32, #tpu.memory_space<vmem>>, vector<1x1xf32>
    %c0_482 = arith.constant 0 : index
    %c0_483 = arith.constant 0 : index
    %c0_484 = arith.constant 0 : index
    %c0_485 = arith.constant 0 : index
    %631 = vector.load %arg2[%c0_482, %c0_483, %c0_484, %c0_485] : memref<1x3x16x80xf32, #tpu.memory_space<vmem>>, vector<1x1x16x80xf32>
    %632 = vector.shape_cast %631 : vector<1x1x16x80xf32> to vector<16x80xf32>
    %c53 = arith.constant 53 : index
    %c0_486 = arith.constant 0 : index
    %633 = vector.load %arg3[%c53, %c0_486] : memref<120x80xf32, #tpu.memory_space<vmem>>, vector<1x80xf32>
    %634 = vector.broadcast %633 : vector<1x80xf32> to vector<16x80xf32>
    %635 = arith.mulf %632, %634 : vector<16x80xf32>
    %636 = vector.broadcast %630 : vector<1x1xf32> to vector<16x80xf32>
    %637 = arith.addf %635, %636 : vector<16x80xf32>
    %c0_487 = arith.constant 0 : index
    %c1_488 = arith.constant 1 : index
    %c0_489 = arith.constant 0 : index
    %c0_490 = arith.constant 0 : index
    %638 = vector.load %arg2[%c0_487, %c1_488, %c0_489, %c0_490] : memref<1x3x16x80xf32, #tpu.memory_space<vmem>>, vector<1x1x16x80xf32>
    %639 = vector.shape_cast %638 : vector<1x1x16x80xf32> to vector<16x80xf32>
    %c61 = arith.constant 61 : index
    %c0_491 = arith.constant 0 : index
    %640 = vector.load %arg3[%c61, %c0_491] : memref<120x80xf32, #tpu.memory_space<vmem>>, vector<1x80xf32>
    %641 = vector.broadcast %640 : vector<1x80xf32> to vector<16x80xf32>
    %642 = arith.mulf %639, %641 : vector<16x80xf32>
    %643 = arith.addf %637, %642 : vector<16x80xf32>
    %c0_492 = arith.constant 0 : index
    %c2_493 = arith.constant 2 : index
    %c0_494 = arith.constant 0 : index
    %c0_495 = arith.constant 0 : index
    %644 = vector.load %arg2[%c0_492, %c2_493, %c0_494, %c0_495] : memref<1x3x16x80xf32, #tpu.memory_space<vmem>>, vector<1x1x16x80xf32>
    %645 = vector.shape_cast %644 : vector<1x1x16x80xf32> to vector<16x80xf32>
    %c69 = arith.constant 69 : index
    %c0_496 = arith.constant 0 : index
    %646 = vector.load %arg3[%c69, %c0_496] : memref<120x80xf32, #tpu.memory_space<vmem>>, vector<1x80xf32>
    %647 = vector.broadcast %646 : vector<1x80xf32> to vector<16x80xf32>
    %648 = arith.mulf %645, %647 : vector<16x80xf32>
    %649 = arith.addf %643, %648 : vector<16x80xf32>
    %cst_497 = arith.constant 0.000000e+00 : f32
    %650 = vector.broadcast %cst_497 : f32 to vector<16x80xf32>
    %651 = arith.subf %650, %649 : vector<16x80xf32>
    %652 = math.exp %651 : vector<16x80xf32>
    %cst_498 = arith.constant 1.000000e+00 : f32
    %653 = vector.broadcast %cst_498 : f32 to vector<16x80xf32>
    %654 = arith.addf %653, %652 : vector<16x80xf32>
    %655 = tpu.reciprocal %654 {approx = true} : vector<16x80xf32> -> vector<16x80xf32>
    %656 = arith.mulf %649, %655 : vector<16x80xf32>
    %c0_499 = arith.constant 0 : index
    %c5_500 = arith.constant 5 : index
    %c0_501 = arith.constant 0 : index
    %c160_502 = arith.constant 160 : index
    %657 = vector.load %arg5[%c0_499, %c5_500, %c0_501, %c160_502] : memref<1x8x16x400xf32, #tpu.memory_space<vmem>>, vector<1x1x16x80xf32>
    %658 = vector.shape_cast %657 : vector<1x1x16x80xf32> to vector<16x80xf32>
    %659 = vector.shape_cast %656 : vector<16x80xf32> to vector<1x1x16x80xf32>
    tpu.vector_store %arg5[%c0_499, %c5_500, %c0_501, %c160_502], %659 {strides = array<i32>} : memref<1x8x16x400xf32, #tpu.memory_space<vmem>>, vector<1x1x16x80xf32>,
    %c6_503 = arith.constant 6 : index
    %c0_504 = arith.constant 0 : index
    %660 = vector.load %arg4[%c6_503, %c0_504] : memref<8x1xf32, #tpu.memory_space<vmem>>, vector<1x1xf32>
    %c0_505 = arith.constant 0 : index
    %c0_506 = arith.constant 0 : index
    %c0_507 = arith.constant 0 : index
    %c0_508 = arith.constant 0 : index
    %661 = vector.load %arg2[%c0_505, %c0_506, %c0_507, %c0_508] : memref<1x3x16x80xf32, #tpu.memory_space<vmem>>, vector<1x1x16x80xf32>
    %662 = vector.shape_cast %661 : vector<1x1x16x80xf32> to vector<16x80xf32>
    %c54 = arith.constant 54 : index
    %c0_509 = arith.constant 0 : index
    %663 = vector.load %arg3[%c54, %c0_509] : memref<120x80xf32, #tpu.memory_space<vmem>>, vector<1x80xf32>
    %664 = vector.broadcast %663 : vector<1x80xf32> to vector<16x80xf32>
    %665 = arith.mulf %662, %664 : vector<16x80xf32>
    %666 = vector.broadcast %660 : vector<1x1xf32> to vector<16x80xf32>
    %667 = arith.addf %665, %666 : vector<16x80xf32>
    %c0_510 = arith.constant 0 : index
    %c1_511 = arith.constant 1 : index
    %c0_512 = arith.constant 0 : index
    %c0_513 = arith.constant 0 : index
    %668 = vector.load %arg2[%c0_510, %c1_511, %c0_512, %c0_513] : memref<1x3x16x80xf32, #tpu.memory_space<vmem>>, vector<1x1x16x80xf32>
    %669 = vector.shape_cast %668 : vector<1x1x16x80xf32> to vector<16x80xf32>
    %c62 = arith.constant 62 : index
    %c0_514 = arith.constant 0 : index
    %670 = vector.load %arg3[%c62, %c0_514] : memref<120x80xf32, #tpu.memory_space<vmem>>, vector<1x80xf32>
    %671 = vector.broadcast %670 : vector<1x80xf32> to vector<16x80xf32>
    %672 = arith.mulf %669, %671 : vector<16x80xf32>
    %673 = arith.addf %667, %672 : vector<16x80xf32>
    %c0_515 = arith.constant 0 : index
    %c2_516 = arith.constant 2 : index
    %c0_517 = arith.constant 0 : index
    %c0_518 = arith.constant 0 : index
    %674 = vector.load %arg2[%c0_515, %c2_516, %c0_517, %c0_518] : memref<1x3x16x80xf32, #tpu.memory_space<vmem>>, vector<1x1x16x80xf32>
    %675 = vector.shape_cast %674 : vector<1x1x16x80xf32> to vector<16x80xf32>
    %c70 = arith.constant 70 : index
    %c0_519 = arith.constant 0 : index
    %676 = vector.load %arg3[%c70, %c0_519] : memref<120x80xf32, #tpu.memory_space<vmem>>, vector<1x80xf32>
    %677 = vector.broadcast %676 : vector<1x80xf32> to vector<16x80xf32>
    %678 = arith.mulf %675, %677 : vector<16x80xf32>
    %679 = arith.addf %673, %678 : vector<16x80xf32>
    %cst_520 = arith.constant 0.000000e+00 : f32
    %680 = vector.broadcast %cst_520 : f32 to vector<16x80xf32>
    %681 = arith.subf %680, %679 : vector<16x80xf32>
    %682 = math.exp %681 : vector<16x80xf32>
    %cst_521 = arith.constant 1.000000e+00 : f32
    %683 = vector.broadcast %cst_521 : f32 to vector<16x80xf32>
    %684 = arith.addf %683, %682 : vector<16x80xf32>
    %685 = tpu.reciprocal %684 {approx = true} : vector<16x80xf32> -> vector<16x80xf32>
    %686 = arith.mulf %679, %685 : vector<16x80xf32>
    %c0_522 = arith.constant 0 : index
    %c6_523 = arith.constant 6 : index
    %c0_524 = arith.constant 0 : index
    %c160_525 = arith.constant 160 : index
    %687 = vector.load %arg5[%c0_522, %c6_523, %c0_524, %c160_525] : memref<1x8x16x400xf32, #tpu.memory_space<vmem>>, vector<1x1x16x80xf32>
    %688 = vector.shape_cast %687 : vector<1x1x16x80xf32> to vector<16x80xf32>
    %689 = vector.shape_cast %686 : vector<16x80xf32> to vector<1x1x16x80xf32>
    tpu.vector_store %arg5[%c0_522, %c6_523, %c0_524, %c160_525], %689 {strides = array<i32>} : memref<1x8x16x400xf32, #tpu.memory_space<vmem>>, vector<1x1x16x80xf32>,
    %c7_526 = arith.constant 7 : index
    %c0_527 = arith.constant 0 : index
    %690 = vector.load %arg4[%c7_526, %c0_527] : memref<8x1xf32, #tpu.memory_space<vmem>>, vector<1x1xf32>
    %c0_528 = arith.constant 0 : index
    %c0_529 = arith.constant 0 : index
    %c0_530 = arith.constant 0 : index
    %c0_531 = arith.constant 0 : index
    %691 = vector.load %arg2[%c0_528, %c0_529, %c0_530, %c0_531] : memref<1x3x16x80xf32, #tpu.memory_space<vmem>>, vector<1x1x16x80xf32>
    %692 = vector.shape_cast %691 : vector<1x1x16x80xf32> to vector<16x80xf32>
    %c55 = arith.constant 55 : index
    %c0_532 = arith.constant 0 : index
    %693 = vector.load %arg3[%c55, %c0_532] : memref<120x80xf32, #tpu.memory_space<vmem>>, vector<1x80xf32>
    %694 = vector.broadcast %693 : vector<1x80xf32> to vector<16x80xf32>
    %695 = arith.mulf %692, %694 : vector<16x80xf32>
    %696 = vector.broadcast %690 : vector<1x1xf32> to vector<16x80xf32>
    %697 = arith.addf %695, %696 : vector<16x80xf32>
    %c0_533 = arith.constant 0 : index
    %c1_534 = arith.constant 1 : index
    %c0_535 = arith.constant 0 : index
    %c0_536 = arith.constant 0 : index
    %698 = vector.load %arg2[%c0_533, %c1_534, %c0_535, %c0_536] : memref<1x3x16x80xf32, #tpu.memory_space<vmem>>, vector<1x1x16x80xf32>
    %699 = vector.shape_cast %698 : vector<1x1x16x80xf32> to vector<16x80xf32>
    %c63 = arith.constant 63 : index
    %c0_537 = arith.constant 0 : index
    %700 = vector.load %arg3[%c63, %c0_537] : memref<120x80xf32, #tpu.memory_space<vmem>>, vector<1x80xf32>
    %701 = vector.broadcast %700 : vector<1x80xf32> to vector<16x80xf32>
    %702 = arith.mulf %699, %701 : vector<16x80xf32>
    %703 = arith.addf %697, %702 : vector<16x80xf32>
    %c0_538 = arith.constant 0 : index
    %c2_539 = arith.constant 2 : index
    %c0_540 = arith.constant 0 : index
    %c0_541 = arith.constant 0 : index
    %704 = vector.load %arg2[%c0_538, %c2_539, %c0_540, %c0_541] : memref<1x3x16x80xf32, #tpu.memory_space<vmem>>, vector<1x1x16x80xf32>
    %705 = vector.shape_cast %704 : vector<1x1x16x80xf32> to vector<16x80xf32>
    %c71 = arith.constant 71 : index
    %c0_542 = arith.constant 0 : index
    %706 = vector.load %arg3[%c71, %c0_542] : memref<120x80xf32, #tpu.memory_space<vmem>>, vector<1x80xf32>
    %707 = vector.broadcast %706 : vector<1x80xf32> to vector<16x80xf32>
    %708 = arith.mulf %705, %707 : vector<16x80xf32>
    %709 = arith.addf %703, %708 : vector<16x80xf32>
    %cst_543 = arith.constant 0.000000e+00 : f32
    %710 = vector.broadcast %cst_543 : f32 to vector<16x80xf32>
    %711 = arith.subf %710, %709 : vector<16x80xf32>
    %712 = math.exp %711 : vector<16x80xf32>
    %cst_544 = arith.constant 1.000000e+00 : f32
    %713 = vector.broadcast %cst_544 : f32 to vector<16x80xf32>
    %714 = arith.addf %713, %712 : vector<16x80xf32>
    %715 = tpu.reciprocal %714 {approx = true} : vector<16x80xf32> -> vector<16x80xf32>
    %716 = arith.mulf %709, %715 : vector<16x80xf32>
    %c0_545 = arith.constant 0 : index
    %c7_546 = arith.constant 7 : index
    %c0_547 = arith.constant 0 : index
    %c160_548 = arith.constant 160 : index
    %717 = vector.load %arg5[%c0_545, %c7_546, %c0_547, %c160_548] : memref<1x8x16x400xf32, #tpu.memory_space<vmem>>, vector<1x1x16x80xf32>
    %718 = vector.shape_cast %717 : vector<1x1x16x80xf32> to vector<16x80xf32>
    %719 = vector.shape_cast %716 : vector<16x80xf32> to vector<1x1x16x80xf32>
    tpu.vector_store %arg5[%c0_545, %c7_546, %c0_547, %c160_548], %719 {strides = array<i32>} : memref<1x8x16x400xf32, #tpu.memory_space<vmem>>, vector<1x1x16x80xf32>,
    %c0_549 = arith.constant 0 : index
    %c0_550 = arith.constant 0 : index
    %720 = vector.load %arg4[%c0_549, %c0_550] : memref<8x1xf32, #tpu.memory_space<vmem>>, vector<1x1xf32>
    %c0_551 = arith.constant 0 : index
    %c0_552 = arith.constant 0 : index
    %c0_553 = arith.constant 0 : index
    %c0_554 = arith.constant 0 : index
    %721 = vector.load %arg2[%c0_551, %c0_552, %c0_553, %c0_554] : memref<1x3x16x80xf32, #tpu.memory_space<vmem>>, vector<1x1x16x80xf32>
    %722 = vector.shape_cast %721 : vector<1x1x16x80xf32> to vector<16x80xf32>
    %c72 = arith.constant 72 : index
    %c0_555 = arith.constant 0 : index
    %723 = vector.load %arg3[%c72, %c0_555] : memref<120x80xf32, #tpu.memory_space<vmem>>, vector<1x80xf32>
    %724 = vector.broadcast %723 : vector<1x80xf32> to vector<16x80xf32>
    %725 = arith.mulf %722, %724 : vector<16x80xf32>
    %726 = vector.broadcast %720 : vector<1x1xf32> to vector<16x80xf32>
    %727 = arith.addf %725, %726 : vector<16x80xf32>
    %c0_556 = arith.constant 0 : index
    %c1_557 = arith.constant 1 : index
    %c0_558 = arith.constant 0 : index
    %c0_559 = arith.constant 0 : index
    %728 = vector.load %arg2[%c0_556, %c1_557, %c0_558, %c0_559] : memref<1x3x16x80xf32, #tpu.memory_space<vmem>>, vector<1x1x16x80xf32>
    %729 = vector.shape_cast %728 : vector<1x1x16x80xf32> to vector<16x80xf32>
    %c80_560 = arith.constant 80 : index
    %c0_561 = arith.constant 0 : index
    %730 = vector.load %arg3[%c80_560, %c0_561] : memref<120x80xf32, #tpu.memory_space<vmem>>, vector<1x80xf32>
    %731 = vector.broadcast %730 : vector<1x80xf32> to vector<16x80xf32>
    %732 = arith.mulf %729, %731 : vector<16x80xf32>
    %733 = arith.addf %727, %732 : vector<16x80xf32>
    %c0_562 = arith.constant 0 : index
    %c2_563 = arith.constant 2 : index
    %c0_564 = arith.constant 0 : index
    %c0_565 = arith.constant 0 : index
    %734 = vector.load %arg2[%c0_562, %c2_563, %c0_564, %c0_565] : memref<1x3x16x80xf32, #tpu.memory_space<vmem>>, vector<1x1x16x80xf32>
    %735 = vector.shape_cast %734 : vector<1x1x16x80xf32> to vector<16x80xf32>
    %c88 = arith.constant 88 : index
    %c0_566 = arith.constant 0 : index
    %736 = vector.load %arg3[%c88, %c0_566] : memref<120x80xf32, #tpu.memory_space<vmem>>, vector<1x80xf32>
    %737 = vector.broadcast %736 : vector<1x80xf32> to vector<16x80xf32>
    %738 = arith.mulf %735, %737 : vector<16x80xf32>
    %739 = arith.addf %733, %738 : vector<16x80xf32>
    %cst_567 = arith.constant 0.000000e+00 : f32
    %740 = vector.broadcast %cst_567 : f32 to vector<16x80xf32>
    %741 = arith.subf %740, %739 : vector<16x80xf32>
    %742 = math.exp %741 : vector<16x80xf32>
    %cst_568 = arith.constant 1.000000e+00 : f32
    %743 = vector.broadcast %cst_568 : f32 to vector<16x80xf32>
    %744 = arith.addf %743, %742 : vector<16x80xf32>
    %745 = tpu.reciprocal %744 {approx = true} : vector<16x80xf32> -> vector<16x80xf32>
    %746 = arith.mulf %739, %745 : vector<16x80xf32>
    %c0_569 = arith.constant 0 : index
    %c0_570 = arith.constant 0 : index
    %c0_571 = arith.constant 0 : index
    %c240 = arith.constant 240 : index
    %747 = vector.load %arg5[%c0_569, %c0_570, %c0_571, %c240] : memref<1x8x16x400xf32, #tpu.memory_space<vmem>>, vector<1x1x16x80xf32>
    %748 = vector.shape_cast %747 : vector<1x1x16x80xf32> to vector<16x80xf32>
    %749 = vector.shape_cast %746 : vector<16x80xf32> to vector<1x1x16x80xf32>
    tpu.vector_store %arg5[%c0_569, %c0_570, %c0_571, %c240], %749 {strides = array<i32>} : memref<1x8x16x400xf32, #tpu.memory_space<vmem>>, vector<1x1x16x80xf32>,
    %c1_572 = arith.constant 1 : index
    %c0_573 = arith.constant 0 : index
    %750 = vector.load %arg4[%c1_572, %c0_573] : memref<8x1xf32, #tpu.memory_space<vmem>>, vector<1x1xf32>
    %c0_574 = arith.constant 0 : index
    %c0_575 = arith.constant 0 : index
    %c0_576 = arith.constant 0 : index
    %c0_577 = arith.constant 0 : index
    %751 = vector.load %arg2[%c0_574, %c0_575, %c0_576, %c0_577] : memref<1x3x16x80xf32, #tpu.memory_space<vmem>>, vector<1x1x16x80xf32>
    %752 = vector.shape_cast %751 : vector<1x1x16x80xf32> to vector<16x80xf32>
    %c73 = arith.constant 73 : index
    %c0_578 = arith.constant 0 : index
    %753 = vector.load %arg3[%c73, %c0_578] : memref<120x80xf32, #tpu.memory_space<vmem>>, vector<1x80xf32>
    %754 = vector.broadcast %753 : vector<1x80xf32> to vector<16x80xf32>
    %755 = arith.mulf %752, %754 : vector<16x80xf32>
    %756 = vector.broadcast %750 : vector<1x1xf32> to vector<16x80xf32>
    %757 = arith.addf %755, %756 : vector<16x80xf32>
    %c0_579 = arith.constant 0 : index
    %c1_580 = arith.constant 1 : index
    %c0_581 = arith.constant 0 : index
    %c0_582 = arith.constant 0 : index
    %758 = vector.load %arg2[%c0_579, %c1_580, %c0_581, %c0_582] : memref<1x3x16x80xf32, #tpu.memory_space<vmem>>, vector<1x1x16x80xf32>
    %759 = vector.shape_cast %758 : vector<1x1x16x80xf32> to vector<16x80xf32>
    %c81 = arith.constant 81 : index
    %c0_583 = arith.constant 0 : index
    %760 = vector.load %arg3[%c81, %c0_583] : memref<120x80xf32, #tpu.memory_space<vmem>>, vector<1x80xf32>
    %761 = vector.broadcast %760 : vector<1x80xf32> to vector<16x80xf32>
    %762 = arith.mulf %759, %761 : vector<16x80xf32>
    %763 = arith.addf %757, %762 : vector<16x80xf32>
    %c0_584 = arith.constant 0 : index
    %c2_585 = arith.constant 2 : index
    %c0_586 = arith.constant 0 : index
    %c0_587 = arith.constant 0 : index
    %764 = vector.load %arg2[%c0_584, %c2_585, %c0_586, %c0_587] : memref<1x3x16x80xf32, #tpu.memory_space<vmem>>, vector<1x1x16x80xf32>
    %765 = vector.shape_cast %764 : vector<1x1x16x80xf32> to vector<16x80xf32>
    %c89 = arith.constant 89 : index
    %c0_588 = arith.constant 0 : index
    %766 = vector.load %arg3[%c89, %c0_588] : memref<120x80xf32, #tpu.memory_space<vmem>>, vector<1x80xf32>
    %767 = vector.broadcast %766 : vector<1x80xf32> to vector<16x80xf32>
    %768 = arith.mulf %765, %767 : vector<16x80xf32>
    %769 = arith.addf %763, %768 : vector<16x80xf32>
    %cst_589 = arith.constant 0.000000e+00 : f32
    %770 = vector.broadcast %cst_589 : f32 to vector<16x80xf32>
    %771 = arith.subf %770, %769 : vector<16x80xf32>
    %772 = math.exp %771 : vector<16x80xf32>
    %cst_590 = arith.constant 1.000000e+00 : f32
    %773 = vector.broadcast %cst_590 : f32 to vector<16x80xf32>
    %774 = arith.addf %773, %772 : vector<16x80xf32>
    %775 = tpu.reciprocal %774 {approx = true} : vector<16x80xf32> -> vector<16x80xf32>
    %776 = arith.mulf %769, %775 : vector<16x80xf32>
    %c0_591 = arith.constant 0 : index
    %c1_592 = arith.constant 1 : index
    %c0_593 = arith.constant 0 : index
    %c240_594 = arith.constant 240 : index
    %777 = vector.load %arg5[%c0_591, %c1_592, %c0_593, %c240_594] : memref<1x8x16x400xf32, #tpu.memory_space<vmem>>, vector<1x1x16x80xf32>
    %778 = vector.shape_cast %777 : vector<1x1x16x80xf32> to vector<16x80xf32>
    %779 = vector.shape_cast %776 : vector<16x80xf32> to vector<1x1x16x80xf32>
    tpu.vector_store %arg5[%c0_591, %c1_592, %c0_593, %c240_594], %779 {strides = array<i32>} : memref<1x8x16x400xf32, #tpu.memory_space<vmem>>, vector<1x1x16x80xf32>,
    %c2_595 = arith.constant 2 : index
    %c0_596 = arith.constant 0 : index
    %780 = vector.load %arg4[%c2_595, %c0_596] : memref<8x1xf32, #tpu.memory_space<vmem>>, vector<1x1xf32>
    %c0_597 = arith.constant 0 : index
    %c0_598 = arith.constant 0 : index
    %c0_599 = arith.constant 0 : index
    %c0_600 = arith.constant 0 : index
    %781 = vector.load %arg2[%c0_597, %c0_598, %c0_599, %c0_600] : memref<1x3x16x80xf32, #tpu.memory_space<vmem>>, vector<1x1x16x80xf32>
    %782 = vector.shape_cast %781 : vector<1x1x16x80xf32> to vector<16x80xf32>
    %c74 = arith.constant 74 : index
    %c0_601 = arith.constant 0 : index
    %783 = vector.load %arg3[%c74, %c0_601] : memref<120x80xf32, #tpu.memory_space<vmem>>, vector<1x80xf32>
    %784 = vector.broadcast %783 : vector<1x80xf32> to vector<16x80xf32>
    %785 = arith.mulf %782, %784 : vector<16x80xf32>
    %786 = vector.broadcast %780 : vector<1x1xf32> to vector<16x80xf32>
    %787 = arith.addf %785, %786 : vector<16x80xf32>
    %c0_602 = arith.constant 0 : index
    %c1_603 = arith.constant 1 : index
    %c0_604 = arith.constant 0 : index
    %c0_605 = arith.constant 0 : index
    %788 = vector.load %arg2[%c0_602, %c1_603, %c0_604, %c0_605] : memref<1x3x16x80xf32, #tpu.memory_space<vmem>>, vector<1x1x16x80xf32>
    %789 = vector.shape_cast %788 : vector<1x1x16x80xf32> to vector<16x80xf32>
    %c82 = arith.constant 82 : index
    %c0_606 = arith.constant 0 : index
    %790 = vector.load %arg3[%c82, %c0_606] : memref<120x80xf32, #tpu.memory_space<vmem>>, vector<1x80xf32>
    %791 = vector.broadcast %790 : vector<1x80xf32> to vector<16x80xf32>
    %792 = arith.mulf %789, %791 : vector<16x80xf32>
    %793 = arith.addf %787, %792 : vector<16x80xf32>
    %c0_607 = arith.constant 0 : index
    %c2_608 = arith.constant 2 : index
    %c0_609 = arith.constant 0 : index
    %c0_610 = arith.constant 0 : index
    %794 = vector.load %arg2[%c0_607, %c2_608, %c0_609, %c0_610] : memref<1x3x16x80xf32, #tpu.memory_space<vmem>>, vector<1x1x16x80xf32>
    %795 = vector.shape_cast %794 : vector<1x1x16x80xf32> to vector<16x80xf32>
    %c90 = arith.constant 90 : index
    %c0_611 = arith.constant 0 : index
    %796 = vector.load %arg3[%c90, %c0_611] : memref<120x80xf32, #tpu.memory_space<vmem>>, vector<1x80xf32>
    %797 = vector.broadcast %796 : vector<1x80xf32> to vector<16x80xf32>
    %798 = arith.mulf %795, %797 : vector<16x80xf32>
    %799 = arith.addf %793, %798 : vector<16x80xf32>
    %cst_612 = arith.constant 0.000000e+00 : f32
    %800 = vector.broadcast %cst_612 : f32 to vector<16x80xf32>
    %801 = arith.subf %800, %799 : vector<16x80xf32>
    %802 = math.exp %801 : vector<16x80xf32>
    %cst_613 = arith.constant 1.000000e+00 : f32
    %803 = vector.broadcast %cst_613 : f32 to vector<16x80xf32>
    %804 = arith.addf %803, %802 : vector<16x80xf32>
    %805 = tpu.reciprocal %804 {approx = true} : vector<16x80xf32> -> vector<16x80xf32>
    %806 = arith.mulf %799, %805 : vector<16x80xf32>
    %c0_614 = arith.constant 0 : index
    %c2_615 = arith.constant 2 : index
    %c0_616 = arith.constant 0 : index
    %c240_617 = arith.constant 240 : index
    %807 = vector.load %arg5[%c0_614, %c2_615, %c0_616, %c240_617] : memref<1x8x16x400xf32, #tpu.memory_space<vmem>>, vector<1x1x16x80xf32>
    %808 = vector.shape_cast %807 : vector<1x1x16x80xf32> to vector<16x80xf32>
    %809 = vector.shape_cast %806 : vector<16x80xf32> to vector<1x1x16x80xf32>
    tpu.vector_store %arg5[%c0_614, %c2_615, %c0_616, %c240_617], %809 {strides = array<i32>} : memref<1x8x16x400xf32, #tpu.memory_space<vmem>>, vector<1x1x16x80xf32>,
    %c3_618 = arith.constant 3 : index
    %c0_619 = arith.constant 0 : index
    %810 = vector.load %arg4[%c3_618, %c0_619] : memref<8x1xf32, #tpu.memory_space<vmem>>, vector<1x1xf32>
    %c0_620 = arith.constant 0 : index
    %c0_621 = arith.constant 0 : index
    %c0_622 = arith.constant 0 : index
    %c0_623 = arith.constant 0 : index
    %811 = vector.load %arg2[%c0_620, %c0_621, %c0_622, %c0_623] : memref<1x3x16x80xf32, #tpu.memory_space<vmem>>, vector<1x1x16x80xf32>
    %812 = vector.shape_cast %811 : vector<1x1x16x80xf32> to vector<16x80xf32>
    %c75 = arith.constant 75 : index
    %c0_624 = arith.constant 0 : index
    %813 = vector.load %arg3[%c75, %c0_624] : memref<120x80xf32, #tpu.memory_space<vmem>>, vector<1x80xf32>
    %814 = vector.broadcast %813 : vector<1x80xf32> to vector<16x80xf32>
    %815 = arith.mulf %812, %814 : vector<16x80xf32>
    %816 = vector.broadcast %810 : vector<1x1xf32> to vector<16x80xf32>
    %817 = arith.addf %815, %816 : vector<16x80xf32>
    %c0_625 = arith.constant 0 : index
    %c1_626 = arith.constant 1 : index
    %c0_627 = arith.constant 0 : index
    %c0_628 = arith.constant 0 : index
    %818 = vector.load %arg2[%c0_625, %c1_626, %c0_627, %c0_628] : memref<1x3x16x80xf32, #tpu.memory_space<vmem>>, vector<1x1x16x80xf32>
    %819 = vector.shape_cast %818 : vector<1x1x16x80xf32> to vector<16x80xf32>
    %c83 = arith.constant 83 : index
    %c0_629 = arith.constant 0 : index
    %820 = vector.load %arg3[%c83, %c0_629] : memref<120x80xf32, #tpu.memory_space<vmem>>, vector<1x80xf32>
    %821 = vector.broadcast %820 : vector<1x80xf32> to vector<16x80xf32>
    %822 = arith.mulf %819, %821 : vector<16x80xf32>
    %823 = arith.addf %817, %822 : vector<16x80xf32>
    %c0_630 = arith.constant 0 : index
    %c2_631 = arith.constant 2 : index
    %c0_632 = arith.constant 0 : index
    %c0_633 = arith.constant 0 : index
    %824 = vector.load %arg2[%c0_630, %c2_631, %c0_632, %c0_633] : memref<1x3x16x80xf32, #tpu.memory_space<vmem>>, vector<1x1x16x80xf32>
    %825 = vector.shape_cast %824 : vector<1x1x16x80xf32> to vector<16x80xf32>
    %c91 = arith.constant 91 : index
    %c0_634 = arith.constant 0 : index
    %826 = vector.load %arg3[%c91, %c0_634] : memref<120x80xf32, #tpu.memory_space<vmem>>, vector<1x80xf32>
    %827 = vector.broadcast %826 : vector<1x80xf32> to vector<16x80xf32>
    %828 = arith.mulf %825, %827 : vector<16x80xf32>
    %829 = arith.addf %823, %828 : vector<16x80xf32>
    %cst_635 = arith.constant 0.000000e+00 : f32
    %830 = vector.broadcast %cst_635 : f32 to vector<16x80xf32>
    %831 = arith.subf %830, %829 : vector<16x80xf32>
    %832 = math.exp %831 : vector<16x80xf32>
    %cst_636 = arith.constant 1.000000e+00 : f32
    %833 = vector.broadcast %cst_636 : f32 to vector<16x80xf32>
    %834 = arith.addf %833, %832 : vector<16x80xf32>
    %835 = tpu.reciprocal %834 {approx = true} : vector<16x80xf32> -> vector<16x80xf32>
    %836 = arith.mulf %829, %835 : vector<16x80xf32>
    %c0_637 = arith.constant 0 : index
    %c3_638 = arith.constant 3 : index
    %c0_639 = arith.constant 0 : index
    %c240_640 = arith.constant 240 : index
    %837 = vector.load %arg5[%c0_637, %c3_638, %c0_639, %c240_640] : memref<1x8x16x400xf32, #tpu.memory_space<vmem>>, vector<1x1x16x80xf32>
    %838 = vector.shape_cast %837 : vector<1x1x16x80xf32> to vector<16x80xf32>
    %839 = vector.shape_cast %836 : vector<16x80xf32> to vector<1x1x16x80xf32>
    tpu.vector_store %arg5[%c0_637, %c3_638, %c0_639, %c240_640], %839 {strides = array<i32>} : memref<1x8x16x400xf32, #tpu.memory_space<vmem>>, vector<1x1x16x80xf32>,
    %c4_641 = arith.constant 4 : index
    %c0_642 = arith.constant 0 : index
    %840 = vector.load %arg4[%c4_641, %c0_642] : memref<8x1xf32, #tpu.memory_space<vmem>>, vector<1x1xf32>
    %c0_643 = arith.constant 0 : index
    %c0_644 = arith.constant 0 : index
    %c0_645 = arith.constant 0 : index
    %c0_646 = arith.constant 0 : index
    %841 = vector.load %arg2[%c0_643, %c0_644, %c0_645, %c0_646] : memref<1x3x16x80xf32, #tpu.memory_space<vmem>>, vector<1x1x16x80xf32>
    %842 = vector.shape_cast %841 : vector<1x1x16x80xf32> to vector<16x80xf32>
    %c76 = arith.constant 76 : index
    %c0_647 = arith.constant 0 : index
    %843 = vector.load %arg3[%c76, %c0_647] : memref<120x80xf32, #tpu.memory_space<vmem>>, vector<1x80xf32>
    %844 = vector.broadcast %843 : vector<1x80xf32> to vector<16x80xf32>
    %845 = arith.mulf %842, %844 : vector<16x80xf32>
    %846 = vector.broadcast %840 : vector<1x1xf32> to vector<16x80xf32>
    %847 = arith.addf %845, %846 : vector<16x80xf32>
    %c0_648 = arith.constant 0 : index
    %c1_649 = arith.constant 1 : index
    %c0_650 = arith.constant 0 : index
    %c0_651 = arith.constant 0 : index
    %848 = vector.load %arg2[%c0_648, %c1_649, %c0_650, %c0_651] : memref<1x3x16x80xf32, #tpu.memory_space<vmem>>, vector<1x1x16x80xf32>
    %849 = vector.shape_cast %848 : vector<1x1x16x80xf32> to vector<16x80xf32>
    %c84 = arith.constant 84 : index
    %c0_652 = arith.constant 0 : index
    %850 = vector.load %arg3[%c84, %c0_652] : memref<120x80xf32, #tpu.memory_space<vmem>>, vector<1x80xf32>
    %851 = vector.broadcast %850 : vector<1x80xf32> to vector<16x80xf32>
    %852 = arith.mulf %849, %851 : vector<16x80xf32>
    %853 = arith.addf %847, %852 : vector<16x80xf32>
    %c0_653 = arith.constant 0 : index
    %c2_654 = arith.constant 2 : index
    %c0_655 = arith.constant 0 : index
    %c0_656 = arith.constant 0 : index
    %854 = vector.load %arg2[%c0_653, %c2_654, %c0_655, %c0_656] : memref<1x3x16x80xf32, #tpu.memory_space<vmem>>, vector<1x1x16x80xf32>
    %855 = vector.shape_cast %854 : vector<1x1x16x80xf32> to vector<16x80xf32>
    %c92 = arith.constant 92 : index
    %c0_657 = arith.constant 0 : index
    %856 = vector.load %arg3[%c92, %c0_657] : memref<120x80xf32, #tpu.memory_space<vmem>>, vector<1x80xf32>
    %857 = vector.broadcast %856 : vector<1x80xf32> to vector<16x80xf32>
    %858 = arith.mulf %855, %857 : vector<16x80xf32>
    %859 = arith.addf %853, %858 : vector<16x80xf32>
    %cst_658 = arith.constant 0.000000e+00 : f32
    %860 = vector.broadcast %cst_658 : f32 to vector<16x80xf32>
    %861 = arith.subf %860, %859 : vector<16x80xf32>
    %862 = math.exp %861 : vector<16x80xf32>
    %cst_659 = arith.constant 1.000000e+00 : f32
    %863 = vector.broadcast %cst_659 : f32 to vector<16x80xf32>
    %864 = arith.addf %863, %862 : vector<16x80xf32>
    %865 = tpu.reciprocal %864 {approx = true} : vector<16x80xf32> -> vector<16x80xf32>
    %866 = arith.mulf %859, %865 : vector<16x80xf32>
    %c0_660 = arith.constant 0 : index
    %c4_661 = arith.constant 4 : index
    %c0_662 = arith.constant 0 : index
    %c240_663 = arith.constant 240 : index
    %867 = vector.load %arg5[%c0_660, %c4_661, %c0_662, %c240_663] : memref<1x8x16x400xf32, #tpu.memory_space<vmem>>, vector<1x1x16x80xf32>
    %868 = vector.shape_cast %867 : vector<1x1x16x80xf32> to vector<16x80xf32>
    %869 = vector.shape_cast %866 : vector<16x80xf32> to vector<1x1x16x80xf32>
    tpu.vector_store %arg5[%c0_660, %c4_661, %c0_662, %c240_663], %869 {strides = array<i32>} : memref<1x8x16x400xf32, #tpu.memory_space<vmem>>, vector<1x1x16x80xf32>,
    %c5_664 = arith.constant 5 : index
    %c0_665 = arith.constant 0 : index
    %870 = vector.load %arg4[%c5_664, %c0_665] : memref<8x1xf32, #tpu.memory_space<vmem>>, vector<1x1xf32>
    %c0_666 = arith.constant 0 : index
    %c0_667 = arith.constant 0 : index
    %c0_668 = arith.constant 0 : index
    %c0_669 = arith.constant 0 : index
    %871 = vector.load %arg2[%c0_666, %c0_667, %c0_668, %c0_669] : memref<1x3x16x80xf32, #tpu.memory_space<vmem>>, vector<1x1x16x80xf32>
    %872 = vector.shape_cast %871 : vector<1x1x16x80xf32> to vector<16x80xf32>
    %c77 = arith.constant 77 : index
    %c0_670 = arith.constant 0 : index
    %873 = vector.load %arg3[%c77, %c0_670] : memref<120x80xf32, #tpu.memory_space<vmem>>, vector<1x80xf32>
    %874 = vector.broadcast %873 : vector<1x80xf32> to vector<16x80xf32>
    %875 = arith.mulf %872, %874 : vector<16x80xf32>
    %876 = vector.broadcast %870 : vector<1x1xf32> to vector<16x80xf32>
    %877 = arith.addf %875, %876 : vector<16x80xf32>
    %c0_671 = arith.constant 0 : index
    %c1_672 = arith.constant 1 : index
    %c0_673 = arith.constant 0 : index
    %c0_674 = arith.constant 0 : index
    %878 = vector.load %arg2[%c0_671, %c1_672, %c0_673, %c0_674] : memref<1x3x16x80xf32, #tpu.memory_space<vmem>>, vector<1x1x16x80xf32>
    %879 = vector.shape_cast %878 : vector<1x1x16x80xf32> to vector<16x80xf32>
    %c85 = arith.constant 85 : index
    %c0_675 = arith.constant 0 : index
    %880 = vector.load %arg3[%c85, %c0_675] : memref<120x80xf32, #tpu.memory_space<vmem>>, vector<1x80xf32>
    %881 = vector.broadcast %880 : vector<1x80xf32> to vector<16x80xf32>
    %882 = arith.mulf %879, %881 : vector<16x80xf32>
    %883 = arith.addf %877, %882 : vector<16x80xf32>
    %c0_676 = arith.constant 0 : index
    %c2_677 = arith.constant 2 : index
    %c0_678 = arith.constant 0 : index
    %c0_679 = arith.constant 0 : index
    %884 = vector.load %arg2[%c0_676, %c2_677, %c0_678, %c0_679] : memref<1x3x16x80xf32, #tpu.memory_space<vmem>>, vector<1x1x16x80xf32>
    %885 = vector.shape_cast %884 : vector<1x1x16x80xf32> to vector<16x80xf32>
    %c93 = arith.constant 93 : index
    %c0_680 = arith.constant 0 : index
    %886 = vector.load %arg3[%c93, %c0_680] : memref<120x80xf32, #tpu.memory_space<vmem>>, vector<1x80xf32>
    %887 = vector.broadcast %886 : vector<1x80xf32> to vector<16x80xf32>
    %888 = arith.mulf %885, %887 : vector<16x80xf32>
    %889 = arith.addf %883, %888 : vector<16x80xf32>
    %cst_681 = arith.constant 0.000000e+00 : f32
    %890 = vector.broadcast %cst_681 : f32 to vector<16x80xf32>
    %891 = arith.subf %890, %889 : vector<16x80xf32>
    %892 = math.exp %891 : vector<16x80xf32>
    %cst_682 = arith.constant 1.000000e+00 : f32
    %893 = vector.broadcast %cst_682 : f32 to vector<16x80xf32>
    %894 = arith.addf %893, %892 : vector<16x80xf32>
    %895 = tpu.reciprocal %894 {approx = true} : vector<16x80xf32> -> vector<16x80xf32>
    %896 = arith.mulf %889, %895 : vector<16x80xf32>
    %c0_683 = arith.constant 0 : index
    %c5_684 = arith.constant 5 : index
    %c0_685 = arith.constant 0 : index
    %c240_686 = arith.constant 240 : index
    %897 = vector.load %arg5[%c0_683, %c5_684, %c0_685, %c240_686] : memref<1x8x16x400xf32, #tpu.memory_space<vmem>>, vector<1x1x16x80xf32>
    %898 = vector.shape_cast %897 : vector<1x1x16x80xf32> to vector<16x80xf32>
    %899 = vector.shape_cast %896 : vector<16x80xf32> to vector<1x1x16x80xf32>
    tpu.vector_store %arg5[%c0_683, %c5_684, %c0_685, %c240_686], %899 {strides = array<i32>} : memref<1x8x16x400xf32, #tpu.memory_space<vmem>>, vector<1x1x16x80xf32>,
    %c6_687 = arith.constant 6 : index
    %c0_688 = arith.constant 0 : index
    %900 = vector.load %arg4[%c6_687, %c0_688] : memref<8x1xf32, #tpu.memory_space<vmem>>, vector<1x1xf32>
    %c0_689 = arith.constant 0 : index
    %c0_690 = arith.constant 0 : index
    %c0_691 = arith.constant 0 : index
    %c0_692 = arith.constant 0 : index
    %901 = vector.load %arg2[%c0_689, %c0_690, %c0_691, %c0_692] : memref<1x3x16x80xf32, #tpu.memory_space<vmem>>, vector<1x1x16x80xf32>
    %902 = vector.shape_cast %901 : vector<1x1x16x80xf32> to vector<16x80xf32>
    %c78 = arith.constant 78 : index
    %c0_693 = arith.constant 0 : index
    %903 = vector.load %arg3[%c78, %c0_693] : memref<120x80xf32, #tpu.memory_space<vmem>>, vector<1x80xf32>
    %904 = vector.broadcast %903 : vector<1x80xf32> to vector<16x80xf32>
    %905 = arith.mulf %902, %904 : vector<16x80xf32>
    %906 = vector.broadcast %900 : vector<1x1xf32> to vector<16x80xf32>
    %907 = arith.addf %905, %906 : vector<16x80xf32>
    %c0_694 = arith.constant 0 : index
    %c1_695 = arith.constant 1 : index
    %c0_696 = arith.constant 0 : index
    %c0_697 = arith.constant 0 : index
    %908 = vector.load %arg2[%c0_694, %c1_695, %c0_696, %c0_697] : memref<1x3x16x80xf32, #tpu.memory_space<vmem>>, vector<1x1x16x80xf32>
    %909 = vector.shape_cast %908 : vector<1x1x16x80xf32> to vector<16x80xf32>
    %c86 = arith.constant 86 : index
    %c0_698 = arith.constant 0 : index
    %910 = vector.load %arg3[%c86, %c0_698] : memref<120x80xf32, #tpu.memory_space<vmem>>, vector<1x80xf32>
    %911 = vector.broadcast %910 : vector<1x80xf32> to vector<16x80xf32>
    %912 = arith.mulf %909, %911 : vector<16x80xf32>
    %913 = arith.addf %907, %912 : vector<16x80xf32>
    %c0_699 = arith.constant 0 : index
    %c2_700 = arith.constant 2 : index
    %c0_701 = arith.constant 0 : index
    %c0_702 = arith.constant 0 : index
    %914 = vector.load %arg2[%c0_699, %c2_700, %c0_701, %c0_702] : memref<1x3x16x80xf32, #tpu.memory_space<vmem>>, vector<1x1x16x80xf32>
    %915 = vector.shape_cast %914 : vector<1x1x16x80xf32> to vector<16x80xf32>
    %c94 = arith.constant 94 : index
    %c0_703 = arith.constant 0 : index
    %916 = vector.load %arg3[%c94, %c0_703] : memref<120x80xf32, #tpu.memory_space<vmem>>, vector<1x80xf32>
    %917 = vector.broadcast %916 : vector<1x80xf32> to vector<16x80xf32>
    %918 = arith.mulf %915, %917 : vector<16x80xf32>
    %919 = arith.addf %913, %918 : vector<16x80xf32>
    %cst_704 = arith.constant 0.000000e+00 : f32
    %920 = vector.broadcast %cst_704 : f32 to vector<16x80xf32>
    %921 = arith.subf %920, %919 : vector<16x80xf32>
    %922 = math.exp %921 : vector<16x80xf32>
    %cst_705 = arith.constant 1.000000e+00 : f32
    %923 = vector.broadcast %cst_705 : f32 to vector<16x80xf32>
    %924 = arith.addf %923, %922 : vector<16x80xf32>
    %925 = tpu.reciprocal %924 {approx = true} : vector<16x80xf32> -> vector<16x80xf32>
    %926 = arith.mulf %919, %925 : vector<16x80xf32>
    %c0_706 = arith.constant 0 : index
    %c6_707 = arith.constant 6 : index
    %c0_708 = arith.constant 0 : index
    %c240_709 = arith.constant 240 : index
    %927 = vector.load %arg5[%c0_706, %c6_707, %c0_708, %c240_709] : memref<1x8x16x400xf32, #tpu.memory_space<vmem>>, vector<1x1x16x80xf32>
    %928 = vector.shape_cast %927 : vector<1x1x16x80xf32> to vector<16x80xf32>
    %929 = vector.shape_cast %926 : vector<16x80xf32> to vector<1x1x16x80xf32>
    tpu.vector_store %arg5[%c0_706, %c6_707, %c0_708, %c240_709], %929 {strides = array<i32>} : memref<1x8x16x400xf32, #tpu.memory_space<vmem>>, vector<1x1x16x80xf32>,
    %c7_710 = arith.constant 7 : index
    %c0_711 = arith.constant 0 : index
    %930 = vector.load %arg4[%c7_710, %c0_711] : memref<8x1xf32, #tpu.memory_space<vmem>>, vector<1x1xf32>
    %c0_712 = arith.constant 0 : index
    %c0_713 = arith.constant 0 : index
    %c0_714 = arith.constant 0 : index
    %c0_715 = arith.constant 0 : index
    %931 = vector.load %arg2[%c0_712, %c0_713, %c0_714, %c0_715] : memref<1x3x16x80xf32, #tpu.memory_space<vmem>>, vector<1x1x16x80xf32>
    %932 = vector.shape_cast %931 : vector<1x1x16x80xf32> to vector<16x80xf32>
    %c79 = arith.constant 79 : index
    %c0_716 = arith.constant 0 : index
    %933 = vector.load %arg3[%c79, %c0_716] : memref<120x80xf32, #tpu.memory_space<vmem>>, vector<1x80xf32>
    %934 = vector.broadcast %933 : vector<1x80xf32> to vector<16x80xf32>
    %935 = arith.mulf %932, %934 : vector<16x80xf32>
    %936 = vector.broadcast %930 : vector<1x1xf32> to vector<16x80xf32>
    %937 = arith.addf %935, %936 : vector<16x80xf32>
    %c0_717 = arith.constant 0 : index
    %c1_718 = arith.constant 1 : index
    %c0_719 = arith.constant 0 : index
    %c0_720 = arith.constant 0 : index
    %938 = vector.load %arg2[%c0_717, %c1_718, %c0_719, %c0_720] : memref<1x3x16x80xf32, #tpu.memory_space<vmem>>, vector<1x1x16x80xf32>
    %939 = vector.shape_cast %938 : vector<1x1x16x80xf32> to vector<16x80xf32>
    %c87 = arith.constant 87 : index
    %c0_721 = arith.constant 0 : index
    %940 = vector.load %arg3[%c87, %c0_721] : memref<120x80xf32, #tpu.memory_space<vmem>>, vector<1x80xf32>
    %941 = vector.broadcast %940 : vector<1x80xf32> to vector<16x80xf32>
    %942 = arith.mulf %939, %941 : vector<16x80xf32>
    %943 = arith.addf %937, %942 : vector<16x80xf32>
    %c0_722 = arith.constant 0 : index
    %c2_723 = arith.constant 2 : index
    %c0_724 = arith.constant 0 : index
    %c0_725 = arith.constant 0 : index
    %944 = vector.load %arg2[%c0_722, %c2_723, %c0_724, %c0_725] : memref<1x3x16x80xf32, #tpu.memory_space<vmem>>, vector<1x1x16x80xf32>
    %945 = vector.shape_cast %944 : vector<1x1x16x80xf32> to vector<16x80xf32>
    %c95 = arith.constant 95 : index
    %c0_726 = arith.constant 0 : index
    %946 = vector.load %arg3[%c95, %c0_726] : memref<120x80xf32, #tpu.memory_space<vmem>>, vector<1x80xf32>
    %947 = vector.broadcast %946 : vector<1x80xf32> to vector<16x80xf32>
    %948 = arith.mulf %945, %947 : vector<16x80xf32>
    %949 = arith.addf %943, %948 : vector<16x80xf32>
    %cst_727 = arith.constant 0.000000e+00 : f32
    %950 = vector.broadcast %cst_727 : f32 to vector<16x80xf32>
    %951 = arith.subf %950, %949 : vector<16x80xf32>
    %952 = math.exp %951 : vector<16x80xf32>
    %cst_728 = arith.constant 1.000000e+00 : f32
    %953 = vector.broadcast %cst_728 : f32 to vector<16x80xf32>
    %954 = arith.addf %953, %952 : vector<16x80xf32>
    %955 = tpu.reciprocal %954 {approx = true} : vector<16x80xf32> -> vector<16x80xf32>
    %956 = arith.mulf %949, %955 : vector<16x80xf32>
    %c0_729 = arith.constant 0 : index
    %c7_730 = arith.constant 7 : index
    %c0_731 = arith.constant 0 : index
    %c240_732 = arith.constant 240 : index
    %957 = vector.load %arg5[%c0_729, %c7_730, %c0_731, %c240_732] : memref<1x8x16x400xf32, #tpu.memory_space<vmem>>, vector<1x1x16x80xf32>
    %958 = vector.shape_cast %957 : vector<1x1x16x80xf32> to vector<16x80xf32>
    %959 = vector.shape_cast %956 : vector<16x80xf32> to vector<1x1x16x80xf32>
    tpu.vector_store %arg5[%c0_729, %c7_730, %c0_731, %c240_732], %959 {strides = array<i32>} : memref<1x8x16x400xf32, #tpu.memory_space<vmem>>, vector<1x1x16x80xf32>,
    %c0_733 = arith.constant 0 : index
    %c0_734 = arith.constant 0 : index
    %960 = vector.load %arg4[%c0_733, %c0_734] : memref<8x1xf32, #tpu.memory_space<vmem>>, vector<1x1xf32>
    %c0_735 = arith.constant 0 : index
    %c0_736 = arith.constant 0 : index
    %c0_737 = arith.constant 0 : index
    %c0_738 = arith.constant 0 : index
    %961 = vector.load %arg2[%c0_735, %c0_736, %c0_737, %c0_738] : memref<1x3x16x80xf32, #tpu.memory_space<vmem>>, vector<1x1x16x80xf32>
    %962 = vector.shape_cast %961 : vector<1x1x16x80xf32> to vector<16x80xf32>
    %c96 = arith.constant 96 : index
    %c0_739 = arith.constant 0 : index
    %963 = vector.load %arg3[%c96, %c0_739] : memref<120x80xf32, #tpu.memory_space<vmem>>, vector<1x80xf32>
    %964 = vector.broadcast %963 : vector<1x80xf32> to vector<16x80xf32>
    %965 = arith.mulf %962, %964 : vector<16x80xf32>
    %966 = vector.broadcast %960 : vector<1x1xf32> to vector<16x80xf32>
    %967 = arith.addf %965, %966 : vector<16x80xf32>
    %c0_740 = arith.constant 0 : index
    %c1_741 = arith.constant 1 : index
    %c0_742 = arith.constant 0 : index
    %c0_743 = arith.constant 0 : index
    %968 = vector.load %arg2[%c0_740, %c1_741, %c0_742, %c0_743] : memref<1x3x16x80xf32, #tpu.memory_space<vmem>>, vector<1x1x16x80xf32>
    %969 = vector.shape_cast %968 : vector<1x1x16x80xf32> to vector<16x80xf32>
    %c104 = arith.constant 104 : index
    %c0_744 = arith.constant 0 : index
    %970 = vector.load %arg3[%c104, %c0_744] : memref<120x80xf32, #tpu.memory_space<vmem>>, vector<1x80xf32>
    %971 = vector.broadcast %970 : vector<1x80xf32> to vector<16x80xf32>
    %972 = arith.mulf %969, %971 : vector<16x80xf32>
    %973 = arith.addf %967, %972 : vector<16x80xf32>
    %c0_745 = arith.constant 0 : index
    %c2_746 = arith.constant 2 : index
    %c0_747 = arith.constant 0 : index
    %c0_748 = arith.constant 0 : index
    %974 = vector.load %arg2[%c0_745, %c2_746, %c0_747, %c0_748] : memref<1x3x16x80xf32, #tpu.memory_space<vmem>>, vector<1x1x16x80xf32>
    %975 = vector.shape_cast %974 : vector<1x1x16x80xf32> to vector<16x80xf32>
    %c112 = arith.constant 112 : index
    %c0_749 = arith.constant 0 : index
    %976 = vector.load %arg3[%c112, %c0_749] : memref<120x80xf32, #tpu.memory_space<vmem>>, vector<1x80xf32>
    %977 = vector.broadcast %976 : vector<1x80xf32> to vector<16x80xf32>
    %978 = arith.mulf %975, %977 : vector<16x80xf32>
    %979 = arith.addf %973, %978 : vector<16x80xf32>
    %cst_750 = arith.constant 0.000000e+00 : f32
    %980 = vector.broadcast %cst_750 : f32 to vector<16x80xf32>
    %981 = arith.subf %980, %979 : vector<16x80xf32>
    %982 = math.exp %981 : vector<16x80xf32>
    %cst_751 = arith.constant 1.000000e+00 : f32
    %983 = vector.broadcast %cst_751 : f32 to vector<16x80xf32>
    %984 = arith.addf %983, %982 : vector<16x80xf32>
    %985 = tpu.reciprocal %984 {approx = true} : vector<16x80xf32> -> vector<16x80xf32>
    %986 = arith.mulf %979, %985 : vector<16x80xf32>
    %c0_752 = arith.constant 0 : index
    %c0_753 = arith.constant 0 : index
    %c0_754 = arith.constant 0 : index
    %c320 = arith.constant 320 : index
    %987 = vector.load %arg5[%c0_752, %c0_753, %c0_754, %c320] : memref<1x8x16x400xf32, #tpu.memory_space<vmem>>, vector<1x1x16x80xf32>
    %988 = vector.shape_cast %987 : vector<1x1x16x80xf32> to vector<16x80xf32>
    %989 = vector.shape_cast %986 : vector<16x80xf32> to vector<1x1x16x80xf32>
    tpu.vector_store %arg5[%c0_752, %c0_753, %c0_754, %c320], %989 {strides = array<i32>} : memref<1x8x16x400xf32, #tpu.memory_space<vmem>>, vector<1x1x16x80xf32>,
    %c1_755 = arith.constant 1 : index
    %c0_756 = arith.constant 0 : index
    %990 = vector.load %arg4[%c1_755, %c0_756] : memref<8x1xf32, #tpu.memory_space<vmem>>, vector<1x1xf32>
    %c0_757 = arith.constant 0 : index
    %c0_758 = arith.constant 0 : index
    %c0_759 = arith.constant 0 : index
    %c0_760 = arith.constant 0 : index
    %991 = vector.load %arg2[%c0_757, %c0_758, %c0_759, %c0_760] : memref<1x3x16x80xf32, #tpu.memory_space<vmem>>, vector<1x1x16x80xf32>
    %992 = vector.shape_cast %991 : vector<1x1x16x80xf32> to vector<16x80xf32>
    %c97 = arith.constant 97 : index
    %c0_761 = arith.constant 0 : index
    %993 = vector.load %arg3[%c97, %c0_761] : memref<120x80xf32, #tpu.memory_space<vmem>>, vector<1x80xf32>
    %994 = vector.broadcast %993 : vector<1x80xf32> to vector<16x80xf32>
    %995 = arith.mulf %992, %994 : vector<16x80xf32>
    %996 = vector.broadcast %990 : vector<1x1xf32> to vector<16x80xf32>
    %997 = arith.addf %995, %996 : vector<16x80xf32>
    %c0_762 = arith.constant 0 : index
    %c1_763 = arith.constant 1 : index
    %c0_764 = arith.constant 0 : index
    %c0_765 = arith.constant 0 : index
    %998 = vector.load %arg2[%c0_762, %c1_763, %c0_764, %c0_765] : memref<1x3x16x80xf32, #tpu.memory_space<vmem>>, vector<1x1x16x80xf32>
    %999 = vector.shape_cast %998 : vector<1x1x16x80xf32> to vector<16x80xf32>
    %c105 = arith.constant 105 : index
    %c0_766 = arith.constant 0 : index
    %1000 = vector.load %arg3[%c105, %c0_766] : memref<120x80xf32, #tpu.memory_space<vmem>>, vector<1x80xf32>
    %1001 = vector.broadcast %1000 : vector<1x80xf32> to vector<16x80xf32>
    %1002 = arith.mulf %999, %1001 : vector<16x80xf32>
    %1003 = arith.addf %997, %1002 : vector<16x80xf32>
    %c0_767 = arith.constant 0 : index
    %c2_768 = arith.constant 2 : index
    %c0_769 = arith.constant 0 : index
    %c0_770 = arith.constant 0 : index
    %1004 = vector.load %arg2[%c0_767, %c2_768, %c0_769, %c0_770] : memref<1x3x16x80xf32, #tpu.memory_space<vmem>>, vector<1x1x16x80xf32>
    %1005 = vector.shape_cast %1004 : vector<1x1x16x80xf32> to vector<16x80xf32>
    %c113 = arith.constant 113 : index
    %c0_771 = arith.constant 0 : index
    %1006 = vector.load %arg3[%c113, %c0_771] : memref<120x80xf32, #tpu.memory_space<vmem>>, vector<1x80xf32>
    %1007 = vector.broadcast %1006 : vector<1x80xf32> to vector<16x80xf32>
    %1008 = arith.mulf %1005, %1007 : vector<16x80xf32>
    %1009 = arith.addf %1003, %1008 : vector<16x80xf32>
    %cst_772 = arith.constant 0.000000e+00 : f32
    %1010 = vector.broadcast %cst_772 : f32 to vector<16x80xf32>
    %1011 = arith.subf %1010, %1009 : vector<16x80xf32>
    %1012 = math.exp %1011 : vector<16x80xf32>
    %cst_773 = arith.constant 1.000000e+00 : f32
    %1013 = vector.broadcast %cst_773 : f32 to vector<16x80xf32>
    %1014 = arith.addf %1013, %1012 : vector<16x80xf32>
    %1015 = tpu.reciprocal %1014 {approx = true} : vector<16x80xf32> -> vector<16x80xf32>
    %1016 = arith.mulf %1009, %1015 : vector<16x80xf32>
    %c0_774 = arith.constant 0 : index
    %c1_775 = arith.constant 1 : index
    %c0_776 = arith.constant 0 : index
    %c320_777 = arith.constant 320 : index
    %1017 = vector.load %arg5[%c0_774, %c1_775, %c0_776, %c320_777] : memref<1x8x16x400xf32, #tpu.memory_space<vmem>>, vector<1x1x16x80xf32>
    %1018 = vector.shape_cast %1017 : vector<1x1x16x80xf32> to vector<16x80xf32>
    %1019 = vector.shape_cast %1016 : vector<16x80xf32> to vector<1x1x16x80xf32>
    tpu.vector_store %arg5[%c0_774, %c1_775, %c0_776, %c320_777], %1019 {strides = array<i32>} : memref<1x8x16x400xf32, #tpu.memory_space<vmem>>, vector<1x1x16x80xf32>,
    %c2_778 = arith.constant 2 : index
    %c0_779 = arith.constant 0 : index
    %1020 = vector.load %arg4[%c2_778, %c0_779] : memref<8x1xf32, #tpu.memory_space<vmem>>, vector<1x1xf32>
    %c0_780 = arith.constant 0 : index
    %c0_781 = arith.constant 0 : index
    %c0_782 = arith.constant 0 : index
    %c0_783 = arith.constant 0 : index
    %1021 = vector.load %arg2[%c0_780, %c0_781, %c0_782, %c0_783] : memref<1x3x16x80xf32, #tpu.memory_space<vmem>>, vector<1x1x16x80xf32>
    %1022 = vector.shape_cast %1021 : vector<1x1x16x80xf32> to vector<16x80xf32>
    %c98 = arith.constant 98 : index
    %c0_784 = arith.constant 0 : index
    %1023 = vector.load %arg3[%c98, %c0_784] : memref<120x80xf32, #tpu.memory_space<vmem>>, vector<1x80xf32>
    %1024 = vector.broadcast %1023 : vector<1x80xf32> to vector<16x80xf32>
    %1025 = arith.mulf %1022, %1024 : vector<16x80xf32>
    %1026 = vector.broadcast %1020 : vector<1x1xf32> to vector<16x80xf32>
    %1027 = arith.addf %1025, %1026 : vector<16x80xf32>
    %c0_785 = arith.constant 0 : index
    %c1_786 = arith.constant 1 : index
    %c0_787 = arith.constant 0 : index
    %c0_788 = arith.constant 0 : index
    %1028 = vector.load %arg2[%c0_785, %c1_786, %c0_787, %c0_788] : memref<1x3x16x80xf32, #tpu.memory_space<vmem>>, vector<1x1x16x80xf32>
    %1029 = vector.shape_cast %1028 : vector<1x1x16x80xf32> to vector<16x80xf32>
    %c106 = arith.constant 106 : index
    %c0_789 = arith.constant 0 : index
    %1030 = vector.load %arg3[%c106, %c0_789] : memref<120x80xf32, #tpu.memory_space<vmem>>, vector<1x80xf32>
    %1031 = vector.broadcast %1030 : vector<1x80xf32> to vector<16x80xf32>
    %1032 = arith.mulf %1029, %1031 : vector<16x80xf32>
    %1033 = arith.addf %1027, %1032 : vector<16x80xf32>
    %c0_790 = arith.constant 0 : index
    %c2_791 = arith.constant 2 : index
    %c0_792 = arith.constant 0 : index
    %c0_793 = arith.constant 0 : index
    %1034 = vector.load %arg2[%c0_790, %c2_791, %c0_792, %c0_793] : memref<1x3x16x80xf32, #tpu.memory_space<vmem>>, vector<1x1x16x80xf32>
    %1035 = vector.shape_cast %1034 : vector<1x1x16x80xf32> to vector<16x80xf32>
    %c114 = arith.constant 114 : index
    %c0_794 = arith.constant 0 : index
    %1036 = vector.load %arg3[%c114, %c0_794] : memref<120x80xf32, #tpu.memory_space<vmem>>, vector<1x80xf32>
    %1037 = vector.broadcast %1036 : vector<1x80xf32> to vector<16x80xf32>
    %1038 = arith.mulf %1035, %1037 : vector<16x80xf32>
    %1039 = arith.addf %1033, %1038 : vector<16x80xf32>
    %cst_795 = arith.constant 0.000000e+00 : f32
    %1040 = vector.broadcast %cst_795 : f32 to vector<16x80xf32>
    %1041 = arith.subf %1040, %1039 : vector<16x80xf32>
    %1042 = math.exp %1041 : vector<16x80xf32>
    %cst_796 = arith.constant 1.000000e+00 : f32
    %1043 = vector.broadcast %cst_796 : f32 to vector<16x80xf32>
    %1044 = arith.addf %1043, %1042 : vector<16x80xf32>
    %1045 = tpu.reciprocal %1044 {approx = true} : vector<16x80xf32> -> vector<16x80xf32>
    %1046 = arith.mulf %1039, %1045 : vector<16x80xf32>
    %c0_797 = arith.constant 0 : index
    %c2_798 = arith.constant 2 : index
    %c0_799 = arith.constant 0 : index
    %c320_800 = arith.constant 320 : index
    %1047 = vector.load %arg5[%c0_797, %c2_798, %c0_799, %c320_800] : memref<1x8x16x400xf32, #tpu.memory_space<vmem>>, vector<1x1x16x80xf32>
    %1048 = vector.shape_cast %1047 : vector<1x1x16x80xf32> to vector<16x80xf32>
    %1049 = vector.shape_cast %1046 : vector<16x80xf32> to vector<1x1x16x80xf32>
    tpu.vector_store %arg5[%c0_797, %c2_798, %c0_799, %c320_800], %1049 {strides = array<i32>} : memref<1x8x16x400xf32, #tpu.memory_space<vmem>>, vector<1x1x16x80xf32>,
    %c3_801 = arith.constant 3 : index
    %c0_802 = arith.constant 0 : index
    %1050 = vector.load %arg4[%c3_801, %c0_802] : memref<8x1xf32, #tpu.memory_space<vmem>>, vector<1x1xf32>
    %c0_803 = arith.constant 0 : index
    %c0_804 = arith.constant 0 : index
    %c0_805 = arith.constant 0 : index
    %c0_806 = arith.constant 0 : index
    %1051 = vector.load %arg2[%c0_803, %c0_804, %c0_805, %c0_806] : memref<1x3x16x80xf32, #tpu.memory_space<vmem>>, vector<1x1x16x80xf32>
    %1052 = vector.shape_cast %1051 : vector<1x1x16x80xf32> to vector<16x80xf32>
    %c99 = arith.constant 99 : index
    %c0_807 = arith.constant 0 : index
    %1053 = vector.load %arg3[%c99, %c0_807] : memref<120x80xf32, #tpu.memory_space<vmem>>, vector<1x80xf32>
    %1054 = vector.broadcast %1053 : vector<1x80xf32> to vector<16x80xf32>
    %1055 = arith.mulf %1052, %1054 : vector<16x80xf32>
    %1056 = vector.broadcast %1050 : vector<1x1xf32> to vector<16x80xf32>
    %1057 = arith.addf %1055, %1056 : vector<16x80xf32>
    %c0_808 = arith.constant 0 : index
    %c1_809 = arith.constant 1 : index
    %c0_810 = arith.constant 0 : index
    %c0_811 = arith.constant 0 : index
    %1058 = vector.load %arg2[%c0_808, %c1_809, %c0_810, %c0_811] : memref<1x3x16x80xf32, #tpu.memory_space<vmem>>, vector<1x1x16x80xf32>
    %1059 = vector.shape_cast %1058 : vector<1x1x16x80xf32> to vector<16x80xf32>
    %c107 = arith.constant 107 : index
    %c0_812 = arith.constant 0 : index
    %1060 = vector.load %arg3[%c107, %c0_812] : memref<120x80xf32, #tpu.memory_space<vmem>>, vector<1x80xf32>
    %1061 = vector.broadcast %1060 : vector<1x80xf32> to vector<16x80xf32>
    %1062 = arith.mulf %1059, %1061 : vector<16x80xf32>
    %1063 = arith.addf %1057, %1062 : vector<16x80xf32>
    %c0_813 = arith.constant 0 : index
    %c2_814 = arith.constant 2 : index
    %c0_815 = arith.constant 0 : index
    %c0_816 = arith.constant 0 : index
    %1064 = vector.load %arg2[%c0_813, %c2_814, %c0_815, %c0_816] : memref<1x3x16x80xf32, #tpu.memory_space<vmem>>, vector<1x1x16x80xf32>
    %1065 = vector.shape_cast %1064 : vector<1x1x16x80xf32> to vector<16x80xf32>
    %c115 = arith.constant 115 : index
    %c0_817 = arith.constant 0 : index
    %1066 = vector.load %arg3[%c115, %c0_817] : memref<120x80xf32, #tpu.memory_space<vmem>>, vector<1x80xf32>
    %1067 = vector.broadcast %1066 : vector<1x80xf32> to vector<16x80xf32>
    %1068 = arith.mulf %1065, %1067 : vector<16x80xf32>
    %1069 = arith.addf %1063, %1068 : vector<16x80xf32>
    %cst_818 = arith.constant 0.000000e+00 : f32
    %1070 = vector.broadcast %cst_818 : f32 to vector<16x80xf32>
    %1071 = arith.subf %1070, %1069 : vector<16x80xf32>
    %1072 = math.exp %1071 : vector<16x80xf32>
    %cst_819 = arith.constant 1.000000e+00 : f32
    %1073 = vector.broadcast %cst_819 : f32 to vector<16x80xf32>
    %1074 = arith.addf %1073, %1072 : vector<16x80xf32>
    %1075 = tpu.reciprocal %1074 {approx = true} : vector<16x80xf32> -> vector<16x80xf32>
    %1076 = arith.mulf %1069, %1075 : vector<16x80xf32>
    %c0_820 = arith.constant 0 : index
    %c3_821 = arith.constant 3 : index
    %c0_822 = arith.constant 0 : index
    %c320_823 = arith.constant 320 : index
    %1077 = vector.load %arg5[%c0_820, %c3_821, %c0_822, %c320_823] : memref<1x8x16x400xf32, #tpu.memory_space<vmem>>, vector<1x1x16x80xf32>
    %1078 = vector.shape_cast %1077 : vector<1x1x16x80xf32> to vector<16x80xf32>
    %1079 = vector.shape_cast %1076 : vector<16x80xf32> to vector<1x1x16x80xf32>
    tpu.vector_store %arg5[%c0_820, %c3_821, %c0_822, %c320_823], %1079 {strides = array<i32>} : memref<1x8x16x400xf32, #tpu.memory_space<vmem>>, vector<1x1x16x80xf32>,
    %c4_824 = arith.constant 4 : index
    %c0_825 = arith.constant 0 : index
    %1080 = vector.load %arg4[%c4_824, %c0_825] : memref<8x1xf32, #tpu.memory_space<vmem>>, vector<1x1xf32>
    %c0_826 = arith.constant 0 : index
    %c0_827 = arith.constant 0 : index
    %c0_828 = arith.constant 0 : index
    %c0_829 = arith.constant 0 : index
    %1081 = vector.load %arg2[%c0_826, %c0_827, %c0_828, %c0_829] : memref<1x3x16x80xf32, #tpu.memory_space<vmem>>, vector<1x1x16x80xf32>
    %1082 = vector.shape_cast %1081 : vector<1x1x16x80xf32> to vector<16x80xf32>
    %c100 = arith.constant 100 : index
    %c0_830 = arith.constant 0 : index
    %1083 = vector.load %arg3[%c100, %c0_830] : memref<120x80xf32, #tpu.memory_space<vmem>>, vector<1x80xf32>
    %1084 = vector.broadcast %1083 : vector<1x80xf32> to vector<16x80xf32>
    %1085 = arith.mulf %1082, %1084 : vector<16x80xf32>
    %1086 = vector.broadcast %1080 : vector<1x1xf32> to vector<16x80xf32>
    %1087 = arith.addf %1085, %1086 : vector<16x80xf32>
    %c0_831 = arith.constant 0 : index
    %c1_832 = arith.constant 1 : index
    %c0_833 = arith.constant 0 : index
    %c0_834 = arith.constant 0 : index
    %1088 = vector.load %arg2[%c0_831, %c1_832, %c0_833, %c0_834] : memref<1x3x16x80xf32, #tpu.memory_space<vmem>>, vector<1x1x16x80xf32>
    %1089 = vector.shape_cast %1088 : vector<1x1x16x80xf32> to vector<16x80xf32>
    %c108 = arith.constant 108 : index
    %c0_835 = arith.constant 0 : index
    %1090 = vector.load %arg3[%c108, %c0_835] : memref<120x80xf32, #tpu.memory_space<vmem>>, vector<1x80xf32>
    %1091 = vector.broadcast %1090 : vector<1x80xf32> to vector<16x80xf32>
    %1092 = arith.mulf %1089, %1091 : vector<16x80xf32>
    %1093 = arith.addf %1087, %1092 : vector<16x80xf32>
    %c0_836 = arith.constant 0 : index
    %c2_837 = arith.constant 2 : index
    %c0_838 = arith.constant 0 : index
    %c0_839 = arith.constant 0 : index
    %1094 = vector.load %arg2[%c0_836, %c2_837, %c0_838, %c0_839] : memref<1x3x16x80xf32, #tpu.memory_space<vmem>>, vector<1x1x16x80xf32>
    %1095 = vector.shape_cast %1094 : vector<1x1x16x80xf32> to vector<16x80xf32>
    %c116 = arith.constant 116 : index
    %c0_840 = arith.constant 0 : index
    %1096 = vector.load %arg3[%c116, %c0_840] : memref<120x80xf32, #tpu.memory_space<vmem>>, vector<1x80xf32>
    %1097 = vector.broadcast %1096 : vector<1x80xf32> to vector<16x80xf32>
    %1098 = arith.mulf %1095, %1097 : vector<16x80xf32>
    %1099 = arith.addf %1093, %1098 : vector<16x80xf32>
    %cst_841 = arith.constant 0.000000e+00 : f32
    %1100 = vector.broadcast %cst_841 : f32 to vector<16x80xf32>
    %1101 = arith.subf %1100, %1099 : vector<16x80xf32>
    %1102 = math.exp %1101 : vector<16x80xf32>
    %cst_842 = arith.constant 1.000000e+00 : f32
    %1103 = vector.broadcast %cst_842 : f32 to vector<16x80xf32>
    %1104 = arith.addf %1103, %1102 : vector<16x80xf32>
    %1105 = tpu.reciprocal %1104 {approx = true} : vector<16x80xf32> -> vector<16x80xf32>
    %1106 = arith.mulf %1099, %1105 : vector<16x80xf32>
    %c0_843 = arith.constant 0 : index
    %c4_844 = arith.constant 4 : index
    %c0_845 = arith.constant 0 : index
    %c320_846 = arith.constant 320 : index
    %1107 = vector.load %arg5[%c0_843, %c4_844, %c0_845, %c320_846] : memref<1x8x16x400xf32, #tpu.memory_space<vmem>>, vector<1x1x16x80xf32>
    %1108 = vector.shape_cast %1107 : vector<1x1x16x80xf32> to vector<16x80xf32>
    %1109 = vector.shape_cast %1106 : vector<16x80xf32> to vector<1x1x16x80xf32>
    tpu.vector_store %arg5[%c0_843, %c4_844, %c0_845, %c320_846], %1109 {strides = array<i32>} : memref<1x8x16x400xf32, #tpu.memory_space<vmem>>, vector<1x1x16x80xf32>,
    %c5_847 = arith.constant 5 : index
    %c0_848 = arith.constant 0 : index
    %1110 = vector.load %arg4[%c5_847, %c0_848] : memref<8x1xf32, #tpu.memory_space<vmem>>, vector<1x1xf32>
    %c0_849 = arith.constant 0 : index
    %c0_850 = arith.constant 0 : index
    %c0_851 = arith.constant 0 : index
    %c0_852 = arith.constant 0 : index
    %1111 = vector.load %arg2[%c0_849, %c0_850, %c0_851, %c0_852] : memref<1x3x16x80xf32, #tpu.memory_space<vmem>>, vector<1x1x16x80xf32>
    %1112 = vector.shape_cast %1111 : vector<1x1x16x80xf32> to vector<16x80xf32>
    %c101 = arith.constant 101 : index
    %c0_853 = arith.constant 0 : index
    %1113 = vector.load %arg3[%c101, %c0_853] : memref<120x80xf32, #tpu.memory_space<vmem>>, vector<1x80xf32>
    %1114 = vector.broadcast %1113 : vector<1x80xf32> to vector<16x80xf32>
    %1115 = arith.mulf %1112, %1114 : vector<16x80xf32>
    %1116 = vector.broadcast %1110 : vector<1x1xf32> to vector<16x80xf32>
    %1117 = arith.addf %1115, %1116 : vector<16x80xf32>
    %c0_854 = arith.constant 0 : index
    %c1_855 = arith.constant 1 : index
    %c0_856 = arith.constant 0 : index
    %c0_857 = arith.constant 0 : index
    %1118 = vector.load %arg2[%c0_854, %c1_855, %c0_856, %c0_857] : memref<1x3x16x80xf32, #tpu.memory_space<vmem>>, vector<1x1x16x80xf32>
    %1119 = vector.shape_cast %1118 : vector<1x1x16x80xf32> to vector<16x80xf32>
    %c109 = arith.constant 109 : index
    %c0_858 = arith.constant 0 : index
    %1120 = vector.load %arg3[%c109, %c0_858] : memref<120x80xf32, #tpu.memory_space<vmem>>, vector<1x80xf32>
    %1121 = vector.broadcast %1120 : vector<1x80xf32> to vector<16x80xf32>
    %1122 = arith.mulf %1119, %1121 : vector<16x80xf32>
    %1123 = arith.addf %1117, %1122 : vector<16x80xf32>
    %c0_859 = arith.constant 0 : index
    %c2_860 = arith.constant 2 : index
    %c0_861 = arith.constant 0 : index
    %c0_862 = arith.constant 0 : index
    %1124 = vector.load %arg2[%c0_859, %c2_860, %c0_861, %c0_862] : memref<1x3x16x80xf32, #tpu.memory_space<vmem>>, vector<1x1x16x80xf32>
    %1125 = vector.shape_cast %1124 : vector<1x1x16x80xf32> to vector<16x80xf32>
    %c117 = arith.constant 117 : index
    %c0_863 = arith.constant 0 : index
    %1126 = vector.load %arg3[%c117, %c0_863] : memref<120x80xf32, #tpu.memory_space<vmem>>, vector<1x80xf32>
    %1127 = vector.broadcast %1126 : vector<1x80xf32> to vector<16x80xf32>
    %1128 = arith.mulf %1125, %1127 : vector<16x80xf32>
    %1129 = arith.addf %1123, %1128 : vector<16x80xf32>
    %cst_864 = arith.constant 0.000000e+00 : f32
    %1130 = vector.broadcast %cst_864 : f32 to vector<16x80xf32>
    %1131 = arith.subf %1130, %1129 : vector<16x80xf32>
    %1132 = math.exp %1131 : vector<16x80xf32>
    %cst_865 = arith.constant 1.000000e+00 : f32
    %1133 = vector.broadcast %cst_865 : f32 to vector<16x80xf32>
    %1134 = arith.addf %1133, %1132 : vector<16x80xf32>
    %1135 = tpu.reciprocal %1134 {approx = true} : vector<16x80xf32> -> vector<16x80xf32>
    %1136 = arith.mulf %1129, %1135 : vector<16x80xf32>
    %c0_866 = arith.constant 0 : index
    %c5_867 = arith.constant 5 : index
    %c0_868 = arith.constant 0 : index
    %c320_869 = arith.constant 320 : index
    %1137 = vector.load %arg5[%c0_866, %c5_867, %c0_868, %c320_869] : memref<1x8x16x400xf32, #tpu.memory_space<vmem>>, vector<1x1x16x80xf32>
    %1138 = vector.shape_cast %1137 : vector<1x1x16x80xf32> to vector<16x80xf32>
    %1139 = vector.shape_cast %1136 : vector<16x80xf32> to vector<1x1x16x80xf32>
    tpu.vector_store %arg5[%c0_866, %c5_867, %c0_868, %c320_869], %1139 {strides = array<i32>} : memref<1x8x16x400xf32, #tpu.memory_space<vmem>>, vector<1x1x16x80xf32>,
    %c6_870 = arith.constant 6 : index
    %c0_871 = arith.constant 0 : index
    %1140 = vector.load %arg4[%c6_870, %c0_871] : memref<8x1xf32, #tpu.memory_space<vmem>>, vector<1x1xf32>
    %c0_872 = arith.constant 0 : index
    %c0_873 = arith.constant 0 : index
    %c0_874 = arith.constant 0 : index
    %c0_875 = arith.constant 0 : index
    %1141 = vector.load %arg2[%c0_872, %c0_873, %c0_874, %c0_875] : memref<1x3x16x80xf32, #tpu.memory_space<vmem>>, vector<1x1x16x80xf32>
    %1142 = vector.shape_cast %1141 : vector<1x1x16x80xf32> to vector<16x80xf32>
    %c102 = arith.constant 102 : index
    %c0_876 = arith.constant 0 : index
    %1143 = vector.load %arg3[%c102, %c0_876] : memref<120x80xf32, #tpu.memory_space<vmem>>, vector<1x80xf32>
    %1144 = vector.broadcast %1143 : vector<1x80xf32> to vector<16x80xf32>
    %1145 = arith.mulf %1142, %1144 : vector<16x80xf32>
    %1146 = vector.broadcast %1140 : vector<1x1xf32> to vector<16x80xf32>
    %1147 = arith.addf %1145, %1146 : vector<16x80xf32>
    %c0_877 = arith.constant 0 : index
    %c1_878 = arith.constant 1 : index
    %c0_879 = arith.constant 0 : index
    %c0_880 = arith.constant 0 : index
    %1148 = vector.load %arg2[%c0_877, %c1_878, %c0_879, %c0_880] : memref<1x3x16x80xf32, #tpu.memory_space<vmem>>, vector<1x1x16x80xf32>
    %1149 = vector.shape_cast %1148 : vector<1x1x16x80xf32> to vector<16x80xf32>
    %c110 = arith.constant 110 : index
    %c0_881 = arith.constant 0 : index
    %1150 = vector.load %arg3[%c110, %c0_881] : memref<120x80xf32, #tpu.memory_space<vmem>>, vector<1x80xf32>
    %1151 = vector.broadcast %1150 : vector<1x80xf32> to vector<16x80xf32>
    %1152 = arith.mulf %1149, %1151 : vector<16x80xf32>
    %1153 = arith.addf %1147, %1152 : vector<16x80xf32>
    %c0_882 = arith.constant 0 : index
    %c2_883 = arith.constant 2 : index
    %c0_884 = arith.constant 0 : index
    %c0_885 = arith.constant 0 : index
    %1154 = vector.load %arg2[%c0_882, %c2_883, %c0_884, %c0_885] : memref<1x3x16x80xf32, #tpu.memory_space<vmem>>, vector<1x1x16x80xf32>
    %1155 = vector.shape_cast %1154 : vector<1x1x16x80xf32> to vector<16x80xf32>
    %c118 = arith.constant 118 : index
    %c0_886 = arith.constant 0 : index
    %1156 = vector.load %arg3[%c118, %c0_886] : memref<120x80xf32, #tpu.memory_space<vmem>>, vector<1x80xf32>
    %1157 = vector.broadcast %1156 : vector<1x80xf32> to vector<16x80xf32>
    %1158 = arith.mulf %1155, %1157 : vector<16x80xf32>
    %1159 = arith.addf %1153, %1158 : vector<16x80xf32>
    %cst_887 = arith.constant 0.000000e+00 : f32
    %1160 = vector.broadcast %cst_887 : f32 to vector<16x80xf32>
    %1161 = arith.subf %1160, %1159 : vector<16x80xf32>
    %1162 = math.exp %1161 : vector<16x80xf32>
    %cst_888 = arith.constant 1.000000e+00 : f32
    %1163 = vector.broadcast %cst_888 : f32 to vector<16x80xf32>
    %1164 = arith.addf %1163, %1162 : vector<16x80xf32>
    %1165 = tpu.reciprocal %1164 {approx = true} : vector<16x80xf32> -> vector<16x80xf32>
    %1166 = arith.mulf %1159, %1165 : vector<16x80xf32>
    %c0_889 = arith.constant 0 : index
    %c6_890 = arith.constant 6 : index
    %c0_891 = arith.constant 0 : index
    %c320_892 = arith.constant 320 : index
    %1167 = vector.load %arg5[%c0_889, %c6_890, %c0_891, %c320_892] : memref<1x8x16x400xf32, #tpu.memory_space<vmem>>, vector<1x1x16x80xf32>
    %1168 = vector.shape_cast %1167 : vector<1x1x16x80xf32> to vector<16x80xf32>
    %1169 = vector.shape_cast %1166 : vector<16x80xf32> to vector<1x1x16x80xf32>
    tpu.vector_store %arg5[%c0_889, %c6_890, %c0_891, %c320_892], %1169 {strides = array<i32>} : memref<1x8x16x400xf32, #tpu.memory_space<vmem>>, vector<1x1x16x80xf32>,
    %c7_893 = arith.constant 7 : index
    %c0_894 = arith.constant 0 : index
    %1170 = vector.load %arg4[%c7_893, %c0_894] : memref<8x1xf32, #tpu.memory_space<vmem>>, vector<1x1xf32>
    %c0_895 = arith.constant 0 : index
    %c0_896 = arith.constant 0 : index
    %c0_897 = arith.constant 0 : index
    %c0_898 = arith.constant 0 : index
    %1171 = vector.load %arg2[%c0_895, %c0_896, %c0_897, %c0_898] : memref<1x3x16x80xf32, #tpu.memory_space<vmem>>, vector<1x1x16x80xf32>
    %1172 = vector.shape_cast %1171 : vector<1x1x16x80xf32> to vector<16x80xf32>
    %c103 = arith.constant 103 : index
    %c0_899 = arith.constant 0 : index
    %1173 = vector.load %arg3[%c103, %c0_899] : memref<120x80xf32, #tpu.memory_space<vmem>>, vector<1x80xf32>
    %1174 = vector.broadcast %1173 : vector<1x80xf32> to vector<16x80xf32>
    %1175 = arith.mulf %1172, %1174 : vector<16x80xf32>
    %1176 = vector.broadcast %1170 : vector<1x1xf32> to vector<16x80xf32>
    %1177 = arith.addf %1175, %1176 : vector<16x80xf32>
    %c0_900 = arith.constant 0 : index
    %c1_901 = arith.constant 1 : index
    %c0_902 = arith.constant 0 : index
    %c0_903 = arith.constant 0 : index
    %1178 = vector.load %arg2[%c0_900, %c1_901, %c0_902, %c0_903] : memref<1x3x16x80xf32, #tpu.memory_space<vmem>>, vector<1x1x16x80xf32>
    %1179 = vector.shape_cast %1178 : vector<1x1x16x80xf32> to vector<16x80xf32>
    %c111 = arith.constant 111 : index
    %c0_904 = arith.constant 0 : index
    %1180 = vector.load %arg3[%c111, %c0_904] : memref<120x80xf32, #tpu.memory_space<vmem>>, vector<1x80xf32>
    %1181 = vector.broadcast %1180 : vector<1x80xf32> to vector<16x80xf32>
    %1182 = arith.mulf %1179, %1181 : vector<16x80xf32>
    %1183 = arith.addf %1177, %1182 : vector<16x80xf32>
    %c0_905 = arith.constant 0 : index
    %c2_906 = arith.constant 2 : index
    %c0_907 = arith.constant 0 : index
    %c0_908 = arith.constant 0 : index
    %1184 = vector.load %arg2[%c0_905, %c2_906, %c0_907, %c0_908] : memref<1x3x16x80xf32, #tpu.memory_space<vmem>>, vector<1x1x16x80xf32>
    %1185 = vector.shape_cast %1184 : vector<1x1x16x80xf32> to vector<16x80xf32>
    %c119 = arith.constant 119 : index
    %c0_909 = arith.constant 0 : index
    %1186 = vector.load %arg3[%c119, %c0_909] : memref<120x80xf32, #tpu.memory_space<vmem>>, vector<1x80xf32>
    %1187 = vector.broadcast %1186 : vector<1x80xf32> to vector<16x80xf32>
    %1188 = arith.mulf %1185, %1187 : vector<16x80xf32>
    %1189 = arith.addf %1183, %1188 : vector<16x80xf32>
    %cst_910 = arith.constant 0.000000e+00 : f32
    %1190 = vector.broadcast %cst_910 : f32 to vector<16x80xf32>
    %1191 = arith.subf %1190, %1189 : vector<16x80xf32>
    %1192 = math.exp %1191 : vector<16x80xf32>
    %cst_911 = arith.constant 1.000000e+00 : f32
    %1193 = vector.broadcast %cst_911 : f32 to vector<16x80xf32>
    %1194 = arith.addf %1193, %1192 : vector<16x80xf32>
    %1195 = tpu.reciprocal %1194 {approx = true} : vector<16x80xf32> -> vector<16x80xf32>
    %1196 = arith.mulf %1189, %1195 : vector<16x80xf32>
    %c0_912 = arith.constant 0 : index
    %c7_913 = arith.constant 7 : index
    %c0_914 = arith.constant 0 : index
    %c320_915 = arith.constant 320 : index
    %1197 = vector.load %arg5[%c0_912, %c7_913, %c0_914, %c320_915] : memref<1x8x16x400xf32, #tpu.memory_space<vmem>>, vector<1x1x16x80xf32>
    %1198 = vector.shape_cast %1197 : vector<1x1x16x80xf32> to vector<16x80xf32>
    %1199 = vector.shape_cast %1196 : vector<16x80xf32> to vector<1x1x16x80xf32>
    tpu.vector_store %arg5[%c0_912, %c7_913, %c0_914, %c320_915], %1199 {strides = array<i32>} : memref<1x8x16x400xf32, #tpu.memory_space<vmem>>, vector<1x1x16x80xf32>,
    return
  }
  func.func @transform_0(%arg0: i32, %arg1: i32) -> (i32, i32, i32, i32) {
    %c0_i32 = arith.constant 0 : i32
    %c0_i32_0 = arith.constant 0 : i32
    %c0_i32_1 = arith.constant 0 : i32
    return %arg0, %c0_i32, %arg1, %c0_i32_0 : i32, i32, i32, i32
  }
  func.func @transform_1(%arg0: i32, %arg1: i32) -> (i32, i32) {
    %c0_i32 = arith.constant 0 : i32
    %c0_i32_0 = arith.constant 0 : i32
    %c0_i32_1 = arith.constant 0 : i32
    return %c0_i32, %c0_i32_0 : i32, i32
  }
  func.func @transform_2(%arg0: i32, %arg1: i32) -> (i32, i32) {
    %c0_i32 = arith.constant 0 : i32
    %c0_i32_0 = arith.constant 0 : i32
    %c0_i32_1 = arith.constant 0 : i32
    return %c0_i32, %c0_i32_0 : i32, i32
  }
  func.func @transform_3(%arg0: i32, %arg1: i32) -> (i32, i32, i32, i32) {
    %c0_i32 = arith.constant 0 : i32
    %c0_i32_0 = arith.constant 0 : i32
    %c0_i32_1 = arith.constant 0 : i32
    return %arg0, %c0_i32, %arg1, %c0_i32_0 : i32, i32, i32, i32
  }
}

</mosaic_0001>

<bundles_post_ra>
// kernel: tile.7
= control target key start
LH: loop header
LB: loop body
LE: loop exit
PB: predicated region body
PF: predicated region fallthrough
CT: control target
= control target key end

     0   :  { %vm2003_vm0 = vcmask 1047556   ;;  %s4560_s10 = smov 112   ;;  %vm2005_vm1 = vcmask 64512   ;;  %vm2096_vm2 = vcmask 982912   ;;  %vm2205_vm3 = vcmask 917312   ;;  %s4568_s12 = smov 48   ;;  %s6701_s0 = inlined_call_operand.vmem [shape: f32[5,1,3,1,8,16,1,1,5], index: 0, kind: input, shape index: {}]   ;;  %s6702_s1 = inlined_call_operand.vmem [shape: f32[120,80], index: 1, kind: output, shape index: {}]  }
   0x1   :  { %v4372_v0 = vld [vmem:[%s6701_s0 + $0x9c] sm:$0xf]  ;;  %v4377_v1 = vld [vmem:[%s6701_s0 + $0x88] sm:$0xf]  ;;  %v4382_v2 = vld [vmem:[%s6701_s0 + $0x74] sm:$0xf] }
   0x2   :  { %1809 = vst [vmem:[#allocation0 + $0x138] sm:$0xf] %v4372_v0  ;;  %1834 = vst [vmem:[#allocation0 + $0x110] sm:$0xf] %v4377_v1  ;;  %v4387_v3 = vld [vmem:[%s6701_s0 + $0x60] sm:$0xf] }
   0x3   :  { %1859 = vst [vmem:[#allocation0 + $0xe8] sm:$0xf] %v4382_v2  ;;  %v4392_v4 = vld [vmem:[%s6701_s0 + $0x4c] sm:$0xf]  ;;  %v4397_v5 = vld [vmem:[%s6701_s0 + $0x38] sm:$0xf] }
   0x4   :  { %1884 = vst [vmem:[#allocation0 + $0xc0] sm:$0xf] %v4387_v3  ;;  %1909 = vst [vmem:[#allocation0 + $0x98] sm:$0xf] %v4392_v4  ;;  %v4402_v6 = vld [vmem:[%s6701_s0 + $0x24] sm:$0xf] }
   0x5   :  { %1934 = vst [vmem:[#allocation0 + $0x70] sm:$0xf] %v4397_v5  ;;  %v4407_v7 = vld [vmem:[%s6701_s0 + $0x10] sm:$0xf]  ;;  %1959 = vst [vmem:[#allocation0 + $0x48] sm:$0xf] %v4402_v6 }
   0x6   :  { %1984 = vst [vmem:[#allocation0 + $0x20] sm:$0xf] %v4407_v7  ;;  %v4052_v8 = vld [vmem:[%s6701_s0 + $0x59c] sm:$0xf]  ;;  %v4057_v9 = vld [vmem:[%s6701_s0 + $0x588] sm:$0xf] }
   0x7   :  { %v4062_v10 = vld [vmem:[%s6701_s0 + $0x574] sm:$0xf]  ;;  %209 = vst [vmem:[#allocation0 + $0xb38] sm:$0xf] %v4052_v8  ;;  %234 = vst [vmem:[#allocation0 + $0xb10] sm:$0xf] %v4057_v9 }
   0x8   :  { %259 = vst [vmem:[#allocation0 + $0xae8] sm:$0xf] %v4062_v10  ;;  %v4067_v11 = vld [vmem:[%s6701_s0 + $0x560] sm:$0xf]  ;;  %v4072_v12 = vld [vmem:[%s6701_s0 + $0x54c] sm:$0xf] }
   0x9   :  { %v4077_v13 = vld [vmem:[%s6701_s0 + $0x538] sm:$0xf]  ;;  %284 = vst [vmem:[#allocation0 + $0xac0] sm:$0xf] %v4067_v11  ;;  %309 = vst [vmem:[#allocation0 + $0xa98] sm:$0xf] %v4072_v12 }
   0xa   :  { %334 = vst [vmem:[#allocation0 + $0xa70] sm:$0xf] %v4077_v13  ;;  %v4082_v14 = vld [vmem:[%s6701_s0 + $0x524] sm:$0xf]  ;;  %v4087_v15 = vld [vmem:[%s6701_s0 + $0x510] sm:$0xf] }
   0xb   :  { %v4212_v16 = vld [vmem:[%s6701_s0 + $0x31c] sm:$0xf]  ;;  %359 = vst [vmem:[#allocation0 + $0xa48] sm:$0xf] %v4082_v14  ;;  %384 = vst [vmem:[#allocation0 + $0xa20] sm:$0xf] %v4087_v15 }
   0xc   :  { %1009 = vst [vmem:[#allocation0 + $0x638] sm:$0xf] %v4212_v16  ;;  %v4217_v17 = vld [vmem:[%s6701_s0 + $0x308] sm:$0xf]  ;;  %v4222_v18 = vld [vmem:[%s6701_s0 + $0x2f4] sm:$0xf] }
   0xd   :  { %v4227_v19 = vld [vmem:[%s6701_s0 + $0x2e0] sm:$0xf]  ;;  %1034 = vst [vmem:[#allocation0 + $0x610] sm:$0xf] %v4217_v17  ;;  %1059 = vst [vmem:[#allocation0 + $0x5e8] sm:$0xf] %v4222_v18 }
   0xe   :  { %1084 = vst [vmem:[#allocation0 + $0x5c0] sm:$0xf] %v4227_v19  ;;  %v4232_v20 = vld [vmem:[%s6701_s0 + $0x2cc] sm:$0xf]  ;;  %v4237_v21 = vld [vmem:[%s6701_s0 + $0x2b8] sm:$0xf] }
   0xf   :  { %v4242_v22 = vld [vmem:[%s6701_s0 + $0x2a4] sm:$0xf]  ;;  %1109 = vst [vmem:[#allocation0 + $0x598] sm:$0xf] %v4232_v20  ;;  %1134 = vst [vmem:[#allocation0 + $0x570] sm:$0xf] %v4237_v21 }
  0x10   :  { %1159 = vst [vmem:[#allocation0 + $0x548] sm:$0xf] %v4242_v22  ;;  %v4247_v23 = vld [vmem:[%s6701_s0 + $0x290] sm:$0xf]  ;;  %v4332_v24 = vld [vmem:[%s6701_s0 + $0x13c] sm:$0xf] }
  0x11   :  { %v4337_v25 = vld [vmem:[%s6701_s0 + $0x128] sm:$0xf]  ;;  %1184 = vst [vmem:[#allocation0 + $0x520] sm:$0xf] %v4247_v23  ;;  %1609 = vst [vmem:[#allocation0 + $0x278] sm:$0xf] %v4332_v24 }
  0x12   :  { %v2091_v26 = vld [vmem:[#allocation0 + $0x22] ss:$40 sm:$0xf0]   ;;  %1634 = vst [vmem:[#allocation0 + $0x250] sm:$0xf] %v4337_v25  ;;  %vm2314_vm4 = vcmask 851712  }
  0x13   :  { %v4342_v27 = vld [vmem:[%s6701_s0 + $0x114] sm:$0xf]  ;;  %v2089_v28 = vld [vmem:[#allocation0 + $0x22] ss:$40 sm:$0xf]   ;;  %vm2423_vm5 = vcmask 786112  }
  0x14   :  { %1659 = vst [vmem:[#allocation0 + $0x228] sm:$0xf] %v4342_v27  ;;  %v4347_v29 = vld [vmem:[%s6701_s0 + $0x100] sm:$0xf]  ;;  %v2093_v30 = vsel %vm2003_vm0, %v2091_v26, %v2089_v28  ;;  %v4352_v31 = vld [vmem:[%s6701_s0 + $0xec] sm:$0xf] }
  0x15   :  { %1684 = vst [vmem:[#allocation0 + $0x200] sm:$0xf] %v4347_v29  ;;  %v4357_v32 = vld [vmem:[%s6701_s0 + $0xd8] sm:$0xf]  ;;  %v4362_v33 = vld [vmem:[%s6701_s0 + $0xc4] sm:$0xf]  ;;  %2094 = vrot.lane.b32.xlu0 %v2093_v30, %s4560_s10 }
  0x16   :  { %v2112_v34 = vld [vmem:[#allocation0 + $0xa22] ss:$40 sm:$0xf0]   ;;  %1709 = vst [vmem:[#allocation0 + $0x1d8] sm:$0xf] %v4352_v31  ;;  %vm2532_vm6 = vcmask 720512  }
  0x17   :  { %1734 = vst [vmem:[#allocation0 + $0x1b0] sm:$0xf] %v4357_v32  ;;  %1759 = vst [vmem:[#allocation0 + $0x188] sm:$0xf] %v4362_v33  ;;  %v4367_v35 = vld [vmem:[%s6701_s0 + $0xb0] sm:$0xf] }
  0x18   :  { %v2110_v36 = vld [vmem:[#allocation0 + $0xa22] ss:$40 sm:$0xf]   ;;  %1784 = vst [vmem:[#allocation0 + $0x160] sm:$0xf] %v4367_v35  ;;  %vm2641_vm7 = vcmask 654912  }
  0x19   :  { %v4172_v37 = vld [vmem:[%s6701_s0 + $0x3bc] sm:$0xf]  ;;  %v2114_v38 = vsel %vm2003_vm0, %v2112_v34, %v2110_v36  ;;  %v2101_v39 = vld [vmem:[#allocation0 + $0x522] ss:$40 sm:$0xf0]   ;;  %s4569_s24 = smov 40  }
  0x1a   :  { %809 = vst [vmem:[#allocation0 + $0x778] sm:$0xf] %v4172_v37  ;;  %v4177_v40 = vld [vmem:[%s6701_s0 + $0x3a8] sm:$0xf]  ;;  %2115 = vrot.lane.b32.xlu1 %v2114_v38, %s4560_s10  ;;  %v4182_v41 = vld [vmem:[%s6701_s0 + $0x394] sm:$0xf] }
  0x1b   :  { %834 = vst [vmem:[#allocation0 + $0x750] sm:$0xf] %v4177_v40  ;;  %v4187_v42 = vld [vmem:[%s6701_s0 + $0x380] sm:$0xf]  ;;  %v4192_v43 = vld [vmem:[%s6701_s0 + $0x36c] sm:$0xf] }
  0x1c   :  { %v2099_v44 = vld [vmem:[#allocation0 + $0x522] ss:$40 sm:$0xf]   ;;  %859 = vst [vmem:[#allocation0 + $0x728] sm:$0xf] %v4182_v41  ;;  %vm2750_vm8 = vcmask 589312  }
  0x1d   :  { %884 = vst [vmem:[#allocation0 + $0x700] sm:$0xf] %v4187_v42  ;;  %909 = vst [vmem:[#allocation0 + $0x6d8] sm:$0xf] %v4192_v43  ;;  %v4197_v45 = vld [vmem:[%s6701_s0 + $0x358] sm:$0xf]  ;;  %v2103_v46 = vsel %vm2003_vm0, %v2101_v39, %v2099_v44 }
  0x1e   :  { %934 = vst [vmem:[#allocation0 + $0x6b0] sm:$0xf] %v4197_v45  ;;  %v4202_v47 = vld [vmem:[%s6701_s0 + $0x344] sm:$0xf]  ;;  %v4207_v48 = vld [vmem:[%s6701_s0 + $0x330] sm:$0xf]  ;;  %2104 = vrot.lane.b32.xlu0 %v2103_v46, %s4560_s10 }
  0x1f   :  { %v4012_v49 = vld [vmem:[%s6701_s0 + $0x63c] sm:$0xf]  ;;  %v2123_v50 = vld [vmem:[#allocation0 + $0x162] ss:$40 sm:$0xf0]   ;;  %s4571_s28 = smov 24  }
  0x20   :  { %959 = vst [vmem:[#allocation0 + $0x688] sm:$0xf] %v4202_v47  ;;  %984 = vst [vmem:[#allocation0 + $0x660] sm:$0xf] %v4207_v48  ;;  %v4017_v51 = vld [vmem:[%s6701_s0 + $0x628] sm:$0xf] }
  0x21   :  { %9 = vst [vmem:[#allocation0 + $0xc78] sm:$0xf] %v4012_v49  ;;  %34 = vst [vmem:[#allocation0 + $0xc50] sm:$0xf] %v4017_v51  ;;  %v4022_v52 = vld [vmem:[%s6701_s0 + $0x614] sm:$0xf] }
  0x22   :  { %v4027_v53 = vld [vmem:[%s6701_s0 + $0x600] sm:$0xf]  ;;  %v4032_v54 = vld [vmem:[%s6701_s0 + $0x5ec] sm:$0xf]  ;;  %59 = vst [vmem:[#allocation0 + $0xc28] sm:$0xf] %v4022_v52 }
  0x23   :  { %v2121_v55 = vld [vmem:[#allocation0 + $0x162] ss:$40 sm:$0xf]   ;;  %84 = vst [vmem:[#allocation0 + $0xc00] sm:$0xf] %v4027_v53  ;;  %s4572_s4 = smov 16  }
  0x24   :  { %109 = vst [vmem:[#allocation0 + $0xbd8] sm:$0xf] %v4032_v54  ;;  %v4037_v56 = vld [vmem:[%s6701_s0 + $0x5d8] sm:$0xf]  ;;  %v2125_v57 = vsel %vm2003_vm0, %v2123_v50, %v2121_v55  ;;  %v4042_v58 = vld [vmem:[%s6701_s0 + $0x5c4] sm:$0xf] }
  0x25   :  { %134 = vst [vmem:[#allocation0 + $0xbb0] sm:$0xf] %v4037_v56  ;;  %v4047_v59 = vld [vmem:[%s6701_s0 + $0x5b0] sm:$0xf]  ;;  %v4292_v60 = vld [vmem:[%s6701_s0 + $0x1dc] sm:$0xf]  ;;  %2126 = vrot.lane.b32.xlu1 %v2125_v57, %s4560_s10 }
  0x26   :  { %159 = vst [vmem:[#allocation0 + $0xb88] sm:$0xf] %v4042_v58  ;;  %184 = vst [vmem:[#allocation0 + $0xb60] sm:$0xf] %v4047_v59  ;;  %v4297_v61 = vld [vmem:[%s6701_s0 + $0x1c8] sm:$0xf] }
  0x27   :  { %1409 = vst [vmem:[#allocation0 + $0x3b8] sm:$0xf] %v4292_v60  ;;  %v4302_v62 = vld [vmem:[%s6701_s0 + $0x1b4] sm:$0xf]  ;;  %v4307_v63 = vld [vmem:[%s6701_s0 + $0x1a0] sm:$0xf] }
  0x28   :  { %v2134_v0 = vld [vmem:[#allocation0 + $0x662] ss:$40 sm:$0xf0]   ;;  %1434 = vst [vmem:[#allocation0 + $0x390] sm:$0xf] %v4297_v61  ;;  %vm2859_vm9 = vcmask 523712  }
  0x29   :  { %1459 = vst [vmem:[#allocation0 + $0x368] sm:$0xf] %v4302_v62  ;;  %1484 = vst [vmem:[#allocation0 + $0x340] sm:$0xf] %v4307_v63  ;;  %v4312_v1 = vld [vmem:[%s6701_s0 + $0x18c] sm:$0xf] }
  0x2a   :  { %1509 = vst [vmem:[#allocation0 + $0x318] sm:$0xf] %v4312_v1  ;;  %v4317_v2 = vld [vmem:[%s6701_s0 + $0x178] sm:$0xf]  ;;  %v4322_v3 = vld [vmem:[%s6701_s0 + $0x164] sm:$0xf] }
  0x2b   :  { %v4327_v4 = vld [vmem:[%s6701_s0 + $0x150] sm:$0xf]  ;;  %1534 = vst [vmem:[#allocation0 + $0x2f0] sm:$0xf] %v4317_v2  ;;  %1559 = vst [vmem:[#allocation0 + $0x2c8] sm:$0xf] %v4322_v3 }
  0x2c   :  { %v2132_v5 = vld [vmem:[#allocation0 + $0x662] ss:$40 sm:$0xf]   ;;  %1584 = vst [vmem:[#allocation0 + $0x2a0] sm:$0xf] %v4327_v4  ;;  %s4573_s19 = smov 8  }
  0x2d   :  { %v4132_v6 = vld [vmem:[%s6701_s0 + $0x45c] sm:$0xf]  ;;  %v2136_v7 = vsel %vm2003_vm0, %v2134_v0, %v2132_v5  ;;  %v4137_v8 = vld [vmem:[%s6701_s0 + $0x448] sm:$0xf]  ;;  %v4142_v9 = vld [vmem:[%s6701_s0 + $0x434] sm:$0xf] }
  0x2e   :  { %609 = vst [vmem:[#allocation0 + $0x8b8] sm:$0xf] %v4132_v6  ;;  %v4147_v10 = vld [vmem:[%s6701_s0 + $0x420] sm:$0xf]  ;;  %2137 = vrot.lane.b32.xlu0 %v2136_v7, %s4560_s10  ;;  %634 = vst [vmem:[#allocation0 + $0x890] sm:$0xf] %v4137_v8 }
  0x2f   :  { %v2145_v11 = vld [vmem:[#allocation0 + $0xb62] ss:$40 sm:$0xf0]   ;;  %659 = vst [vmem:[#allocation0 + $0x868] sm:$0xf] %v4142_v9  ;;  %vm2968_vm10 = vcmask 458112  }
  0x30   :  { %684 = vst [vmem:[#allocation0 + $0x840] sm:$0xf] %v4147_v10  ;;  %v4152_v12 = vld [vmem:[%s6701_s0 + $0x40c] sm:$0xf]  ;;  %v4157_v13 = vld [vmem:[%s6701_s0 + $0x3f8] sm:$0xf] }
  0x31   :  { %709 = vst [vmem:[#allocation0 + $0x818] sm:$0xf] %v4152_v12  ;;  %v4162_v14 = vld [vmem:[%s6701_s0 + $0x3e4] sm:$0xf]  ;;  %v4167_v15 = vld [vmem:[%s6701_s0 + $0x3d0] sm:$0xf] }
  0x32   :  { %v2143_v16 = vld [vmem:[#allocation0 + $0xb62] ss:$40 sm:$0xf]   ;;  %734 = vst [vmem:[#allocation0 + $0x7f0] sm:$0xf] %v4157_v13  ;;  %vm3077_vm11 = vcmask 392512  }
  0x33   :  { %759 = vst [vmem:[#allocation0 + $0x7c8] sm:$0xf] %v4162_v14  ;;  %784 = vst [vmem:[#allocation0 + $0x7a0] sm:$0xf] %v4167_v15  ;;  %v4252_v17 = vld [vmem:[%s6701_s0 + $0x27c] sm:$0xf]  ;;  %v2147_v18 = vsel %vm2003_vm0, %v2145_v11, %v2143_v16 }
  0x34   :  { %v2156_v19 = vld [vmem:[#allocation0 + $0x2a2] ss:$40 sm:$0xf0]   ;;  %1209 = vst [vmem:[#allocation0 + $0x4f8] sm:$0xf] %v4252_v17  ;;  %2148 = vrot.lane.b32.xlu1 %v2147_v18, %s4560_s10  ;;  %vm3186_vm12 = vcmask 326912  }
  0x35   :  { %v4257_v20 = vld [vmem:[%s6701_s0 + $0x268] sm:$0xf]  ;;  %v4262_v21 = vld [vmem:[%s6701_s0 + $0x254] sm:$0xf]  ;;  %v4267_v22 = vld [vmem:[%s6701_s0 + $0x240] sm:$0xf] }
  0x36   :  { %1234 = vst [vmem:[#allocation0 + $0x4d0] sm:$0xf] %v4257_v20  ;;  %v4272_v23 = vld [vmem:[%s6701_s0 + $0x22c] sm:$0xf]  ;;  %1259 = vst [vmem:[#allocation0 + $0x4a8] sm:$0xf] %v4262_v21 }
  0x37   :  { %v2154_v24 = vld [vmem:[#allocation0 + $0x2a2] ss:$40 sm:$0xf]   ;;  %1284 = vst [vmem:[#allocation0 + $0x480] sm:$0xf] %v4267_v22  ;;  %vm3295_vm13 = vcmask 261312  }
  0x38   :  { %1309 = vst [vmem:[#allocation0 + $0x458] sm:$0xf] %v4272_v23  ;;  %v4277_v25 = vld [vmem:[%s6701_s0 + $0x218] sm:$0xf]  ;;  %v2158_v26 = vsel %vm2003_vm0, %v2156_v19, %v2154_v24  ;;  %v4282_v27 = vld [vmem:[%s6701_s0 + $0x204] sm:$0xf] }
  0x39   :  { %1334 = vst [vmem:[#allocation0 + $0x430] sm:$0xf] %v4277_v25  ;;  %v4287_v28 = vld [vmem:[%s6701_s0 + $0x1f0] sm:$0xf]  ;;  %v4092_v29 = vld [vmem:[%s6701_s0 + $0x4fc] sm:$0xf]  ;;  %2159 = vrot.lane.b32.xlu0 %v2158_v26, %s4560_s10 }
  0x3a   :  { %v2167_v30 = vld [vmem:[#allocation0 + $0x7a2] ss:$40 sm:$0xf0]   ;;  %1359 = vst [vmem:[#allocation0 + $0x408] sm:$0xf] %v4282_v27  ;;  %vm3404_vm14 = vcmask 195712  }
  0x3b   :  { %1384 = vst [vmem:[#allocation0 + $0x3e0] sm:$0xf] %v4287_v28  ;;  %409 = vst [vmem:[#allocation0 + $0x9f8] sm:$0xf] %v4092_v29  ;;  %v4097_v31 = vld [vmem:[%s6701_s0 + $0x4e8] sm:$0xf] }
  0x3c   :  { %434 = vst [vmem:[#allocation0 + $0x9d0] sm:$0xf] %v4097_v31  ;;  %v4102_v32 = vld [vmem:[%s6701_s0 + $0x4d4] sm:$0xf]  ;;  %v4107_v33 = vld [vmem:[%s6701_s0 + $0x4c0] sm:$0xf] }
  0x3d   :  { %v4112_v34 = vld [vmem:[%s6701_s0 + $0x4ac] sm:$0xf]  ;;  %v2165_v35 = vld [vmem:[#allocation0 + $0x7a2] ss:$40 sm:$0xf]   ;;  %vm3513_vm15 = vcmask 130112  }
  0x3e   :  { %459 = vst [vmem:[#allocation0 + $0x9a8] sm:$0xf] %v4102_v32  ;;  %484 = vst [vmem:[#allocation0 + $0x980] sm:$0xf] %v4107_v33  ;;  %v4117_v36 = vld [vmem:[%s6701_s0 + $0x498] sm:$0xf]  ;;  %v2169_v37 = vsel %vm2003_vm0, %v2167_v30, %v2165_v35 }
  0x3f   :  { %509 = vst [vmem:[#allocation0 + $0x958] sm:$0xf] %v4112_v34  ;;  %534 = vst [vmem:[#allocation0 + $0x930] sm:$0xf] %v4117_v36  ;;  %v4122_v38 = vld [vmem:[%s6701_s0 + $0x484] sm:$0xf]  ;;  %2170 = vrot.lane.b32.xlu1 %v2169_v37, %s4560_s10 }
  0x40   :  { %v4127_v39 = vld [vmem:[%s6701_s0 + $0x470] sm:$0xf]  ;;  %v4373_v40 = vld [vmem:[%s6701_s0 + $0x98] sm:$0xf]  ;;  %559 = vst [vmem:[#allocation0 + $0x908] sm:$0xf] %v4122_v38 }
  0x41   :  { %584 = vst [vmem:[#allocation0 + $0x8e0] sm:$0xf] %v4127_v39  ;;  %1814 = vst [vmem:[#allocation0 + $0x130] sm:$0xf] %v4373_v40  ;;  %v4378_v14 = vld [vmem:[%s6701_s0 + $0x84] sm:$0xf] }
  0x42   :  { %v2178_v41 = vld [vmem:[#allocation0 + $0x3e2] ss:$40 sm:$0xf0]   ;;  %v2198_v42 = vld [vmem:[#allocation0 + $0x21] ss:$40 sm:$0xf]  }
  0x43   :  { %v2176_v43 = vld [vmem:[#allocation0 + $0x3e2] ss:$40 sm:$0xf]   ;;  %v2200_v44 = vld [vmem:[#allocation0 + $0x21] ss:$40 sm:$0xf0]  }
  0x44   :  { %v2180_v45 = vsel %vm2003_vm0, %v2178_v41, %v2176_v43  ;;  %v2208_v47 = vld [vmem:[#allocation0 + $0x521] ss:$40 sm:$0xf]   ;;  %v2202_v48 = vsel %vm2003_vm0, %v2200_v44, %v2198_v42  ;;  %v2307_v10 = vld [vmem:[#allocation0 + $0x20] ss:$40 sm:$0xf]  }
  0x45   :  { %2181 = vrot.lane.b32.xlu0 %v2180_v45, %s4560_s10  ;;  %v2189_v46 = vld [vmem:[#allocation0 + $0x8e2] ss:$40 sm:$0xf0]   ;;  %v2210_v49 = vld [vmem:[#allocation0 + $0x521] ss:$40 sm:$0xf0]  }
  0x46   :  { %v2219_v50 = vld [vmem:[#allocation0 + $0xa21] ss:$40 sm:$0xf]   ;;  %v2212_v54 = vsel %vm2003_vm0, %v2210_v49, %v2208_v47  ;;  %v2309_v11 = vld [vmem:[#allocation0 + $0x20] ss:$40 sm:$0xf0]  }
  0x47   :  { %v2221_v52 = vld [vmem:[#allocation0 + $0xa21] ss:$40 sm:$0xf0]   ;;  %v4388_v16 = vld [vmem:[%s6701_s0 + $0x5c] sm:$0xf]  ;;  %v2311_v30 = vsel %vm2003_vm0, %v2309_v11, %v2307_v10 }
  0x48   :  { %v2187_v51 = vld [vmem:[#allocation0 + $0x8e2] ss:$40 sm:$0xf]   ;;  %v2223_v55 = vsel %vm2003_vm0, %v2221_v52, %v2219_v50  ;;  %v2230_v56 = vld [vmem:[#allocation0 + $0x161] ss:$40 sm:$0xf]  }
  0x49   :  { %v2191_v53 = vsel %vm2003_vm0, %v2189_v46, %v2187_v51  ;;  %v2232_v57 = vld [vmem:[#allocation0 + $0x161] ss:$40 sm:$0xf0]   ;;  %1839 = vst [vmem:[#allocation0 + $0x108] sm:$0xf] %v4378_v14 }
  0x4a   :  { %2192 = vrot.lane.b32.xlu1 %v2191_v53, %s4560_s10  ;;  %s4561_s10 = smov 104   ;;  %v2241_v58 = vld [vmem:[#allocation0 + $0x661] ss:$40 sm:$0xf]   ;;  %v2234_v60 = vsel %vm2003_vm0, %v2232_v57, %v2230_v56  ;;  %1889 = vst [vmem:[#allocation0 + $0xb8] sm:$0xf] %v4388_v16 }
  0x4b   :  { %2203 = vrot.lane.b32.xlu0 %v2202_v48, %s4561_s10  ;;  %v2243_v59 = vld [vmem:[#allocation0 + $0x661] ss:$40 sm:$0xf0]   ;;  %v4398_v18 = vld [vmem:[%s6701_s0 + $0x34] sm:$0xf] }
  0x4c   :  { %v2245_v61 = vsel %vm2003_vm0, %v2243_v59, %v2241_v58  ;;  %v2252_v62 = vld [vmem:[#allocation0 + $0xb61] ss:$40 sm:$0xf]   ;;  %1939 = vst [vmem:[#allocation0 + $0x68] sm:$0xf] %v4398_v18 }
  0x4d   :  { %v2254_v63 = vld [vmem:[#allocation0 + $0xb61] ss:$40 sm:$0xf0]   ;;  %v4408_v20 = vld [vmem:[%s6701_s0 + $0xc] sm:$0xf] }
  0x4e   :  { %2213 = vrot.lane.b32.xlu1 %v2212_v54, %s4561_s10  ;;  %v2263_v0 = vld [vmem:[#allocation0 + $0x2a1] ss:$40 sm:$0xf]   ;;  %v2256_v2 = vsel %vm2003_vm0, %v2254_v63, %v2252_v62  ;;  %v4218_v22 = vld [vmem:[%s6701_s0 + $0x304] sm:$0xf] }
  0x4f   :  { %2224 = vrot.lane.b32.xlu0 %v2223_v55, %s4561_s10  ;;  %v2265_v1 = vld [vmem:[#allocation0 + $0x2a1] ss:$40 sm:$0xf0]   ;;  %v2317_v23 = vld [vmem:[#allocation0 + $0x520] ss:$40 sm:$0xf]  }
  0x50   :  { %v2267_v3 = vsel %vm2003_vm0, %v2265_v1, %v2263_v0  ;;  %v2274_v4 = vld [vmem:[#allocation0 + $0x7a1] ss:$40 sm:$0xf]   ;;  %v2319_v24 = vld [vmem:[#allocation0 + $0x520] ss:$40 sm:$0xf0]  }
  0x51   :  { %v2276_v5 = vld [vmem:[#allocation0 + $0x7a1] ss:$40 sm:$0xf0]   ;;  %v2328_v25 = vld [vmem:[#allocation0 + $0xa20] ss:$40 sm:$0xf]   ;;  %v2321_v45 = vsel %vm2003_vm0, %v2319_v24, %v2317_v23 }
  0x52   :  { %2235 = vrot.lane.b32.xlu1 %v2234_v60, %s4561_s10  ;;  %v2285_v6 = vld [vmem:[#allocation0 + $0x3e1] ss:$40 sm:$0xf]   ;;  %v2278_v12 = vsel %vm2003_vm0, %v2276_v5, %v2274_v4  ;;  %v2330_v26 = vld [vmem:[#allocation0 + $0xa20] ss:$40 sm:$0xf0]  }
  0x53   :  { %2246 = vrot.lane.b32.xlu0 %v2245_v61, %s4561_s10  ;;  %v2287_v7 = vld [vmem:[#allocation0 + $0x3e1] ss:$40 sm:$0xf0]   ;;  %1989 = vst [vmem:[#allocation0 + $0x18] sm:$0xf] %v4408_v20  ;;  %v2332_v46 = vsel %vm2003_vm0, %v2330_v26, %v2328_v25 }
  0x54   :  { %v2296_v8 = vld [vmem:[#allocation0 + $0x8e1] ss:$40 sm:$0xf]   ;;  %v2289_v13 = vsel %vm2003_vm0, %v2287_v7, %v2285_v6  ;;  %1039 = vst [vmem:[#allocation0 + $0x608] sm:$0xf] %v4218_v22 }
  0x55   :  { %v2298_v9 = vld [vmem:[#allocation0 + $0x8e1] ss:$40 sm:$0xf0]   ;;  %v4228_v28 = vld [vmem:[%s6701_s0 + $0x2dc] sm:$0xf] }
  0x56   :  { %2257 = vrot.lane.b32.xlu1 %v2256_v2, %s4561_s10  ;;  %v4383_v15 = vld [vmem:[%s6701_s0 + $0x70] sm:$0xf]  ;;  %v4393_v17 = vld [vmem:[%s6701_s0 + $0x48] sm:$0xf]  ;;  %v4403_v19 = vld [vmem:[%s6701_s0 + $0x20] sm:$0xf]  ;;  %v2300_v29 = vsel %vm2003_vm0, %v2298_v9, %v2296_v8 }
  0x57   :  { %2268 = vrot.lane.b32.xlu0 %v2267_v3, %s4561_s10  ;;  %1864 = vst [vmem:[#allocation0 + $0xe0] sm:$0xf] %v4383_v15  ;;  %1914 = vst [vmem:[#allocation0 + $0x90] sm:$0xf] %v4393_v17  ;;  %v4213_v21 = vld [vmem:[%s6701_s0 + $0x318] sm:$0xf] }
  0x58   :  { %1964 = vst [vmem:[#allocation0 + $0x40] sm:$0xf] %v4403_v19  ;;  %1014 = vst [vmem:[#allocation0 + $0x630] sm:$0xf] %v4213_v21  ;;  %v4223_v27 = vld [vmem:[%s6701_s0 + $0x2f0] sm:$0xf] }
  0x59   :  { %1064 = vst [vmem:[#allocation0 + $0x5e0] sm:$0xf] %v4223_v27  ;;  %1089 = vst [vmem:[#allocation0 + $0x5b8] sm:$0xf] %v4228_v28  ;;  %v4233_v31 = vld [vmem:[%s6701_s0 + $0x2c8] sm:$0xf] }
  0x5a   :  { %2279 = vrot.lane.b32.xlu1 %v2278_v12, %s4561_s10  ;;  %v4238_v32 = vld [vmem:[%s6701_s0 + $0x2b4] sm:$0xf]  ;;  %v4243_v33 = vld [vmem:[%s6701_s0 + $0x2a0] sm:$0xf]  ;;  %1114 = vst [vmem:[#allocation0 + $0x590] sm:$0xf] %v4233_v31 }
  0x5b   :  { %2290 = vrot.lane.b32.xlu0 %v2289_v13, %s4561_s10  ;;  %1139 = vst [vmem:[#allocation0 + $0x568] sm:$0xf] %v4238_v32  ;;  %1164 = vst [vmem:[#allocation0 + $0x540] sm:$0xf] %v4243_v33  ;;  %v4248_v34 = vld [vmem:[%s6701_s0 + $0x28c] sm:$0xf] }
  0x5c   :  { %v4053_v35 = vld [vmem:[%s6701_s0 + $0x598] sm:$0xf]  ;;  %v4058_v36 = vld [vmem:[%s6701_s0 + $0x584] sm:$0xf]  ;;  %1189 = vst [vmem:[#allocation0 + $0x518] sm:$0xf] %v4248_v34 }
  0x5d   :  { %214 = vst [vmem:[#allocation0 + $0xb30] sm:$0xf] %v4053_v35  ;;  %239 = vst [vmem:[#allocation0 + $0xb08] sm:$0xf] %v4058_v36  ;;  %v4063_v37 = vld [vmem:[%s6701_s0 + $0x570] sm:$0xf] }
  0x5e   :  { %v4068_v38 = vld [vmem:[%s6701_s0 + $0x55c] sm:$0xf]  ;;  %v4073_v39 = vld [vmem:[%s6701_s0 + $0x548] sm:$0xf]  ;;  %2301 = vrot.lane.b32.xlu1 %v2300_v29, %s4561_s10  ;;  %s4562_s10 = smov 96  }
  0x5f   :  { %2312 = vrot.lane.b32.xlu0 %v2311_v30, %s4562_s10  ;;  %v2339_v40 = vld [vmem:[#allocation0 + $0x160] ss:$40 sm:$0xf]   ;;  %264 = vst [vmem:[#allocation0 + $0xae0] sm:$0xf] %v4063_v37 }
  0x60   :  { %v2341_v41 = vld [vmem:[#allocation0 + $0x160] ss:$40 sm:$0xf0]   ;;  %289 = vst [vmem:[#allocation0 + $0xab8] sm:$0xf] %v4068_v38 }
  0x61   :  { %v2350_v42 = vld [vmem:[#allocation0 + $0x660] ss:$40 sm:$0xf]   ;;  %314 = vst [vmem:[#allocation0 + $0xa90] sm:$0xf] %v4073_v39  ;;  %v2343_v57 = vsel %vm2003_vm0, %v2341_v41, %v2339_v40 }
  0x62   :  { %v4078_v43 = vld [vmem:[%s6701_s0 + $0x534] sm:$0xf]  ;;  %v4083_v44 = vld [vmem:[%s6701_s0 + $0x520] sm:$0xf]  ;;  %v4088_v48 = vld [vmem:[%s6701_s0 + $0x50c] sm:$0xf]  ;;  %2322 = vrot.lane.b32.xlu1 %v2321_v45, %s4562_s10 }
  0x63   :  { %v2352_v47 = vld [vmem:[#allocation0 + $0x660] ss:$40 sm:$0xf0]   ;;  %339 = vst [vmem:[#allocation0 + $0xa68] sm:$0xf] %v4078_v43  ;;  %2333 = vrot.lane.b32.xlu0 %v2332_v46, %s4562_s10 }
  0x64   :  { %364 = vst [vmem:[#allocation0 + $0xa40] sm:$0xf] %v4083_v44  ;;  %389 = vst [vmem:[#allocation0 + $0xa18] sm:$0xf] %v4088_v48  ;;  %v4333_v49 = vld [vmem:[%s6701_s0 + $0x138] sm:$0xf]  ;;  %v2354_v58 = vsel %vm2003_vm0, %v2352_v47, %v2350_v42 }
  0x65   :  { %v4338_v50 = vld [vmem:[%s6701_s0 + $0x124] sm:$0xf]  ;;  %v4343_v51 = vld [vmem:[%s6701_s0 + $0x110] sm:$0xf]  ;;  %1614 = vst [vmem:[#allocation0 + $0x270] sm:$0xf] %v4333_v49 }
  0x66   :  { %1639 = vst [vmem:[#allocation0 + $0x248] sm:$0xf] %v4338_v50  ;;  %1664 = vst [vmem:[#allocation0 + $0x220] sm:$0xf] %v4343_v51  ;;  %v4348_v52 = vld [vmem:[%s6701_s0 + $0xfc] sm:$0xf]  ;;  %2344 = vrot.lane.b32.xlu1 %v2343_v57, %s4562_s10 }
  0x67   :  { %v2361_v53 = vld [vmem:[#allocation0 + $0xb60] ss:$40 sm:$0xf]   ;;  %1689 = vst [vmem:[#allocation0 + $0x1f8] sm:$0xf] %v4348_v52  ;;  %2355 = vrot.lane.b32.xlu0 %v2354_v58, %s4562_s10 }
  0x68   :  { %v2363_v54 = vld [vmem:[#allocation0 + $0xb60] ss:$40 sm:$0xf0]   ;;  %v4358_v59 = vld [vmem:[%s6701_s0 + $0xd4] sm:$0xf] }
  0x69   :  { %v2372_v55 = vld [vmem:[#allocation0 + $0x2a0] ss:$40 sm:$0xf]   ;;  %v4368_v61 = vld [vmem:[%s6701_s0 + $0xac] sm:$0xf]  ;;  %v2365_v6 = vsel %vm2003_vm0, %v2363_v54, %v2361_v53 }
  0x6a   :  { %v4353_v56 = vld [vmem:[%s6701_s0 + $0xe8] sm:$0xf]  ;;  %v4363_v60 = vld [vmem:[%s6701_s0 + $0xc0] sm:$0xf]  ;;  %1739 = vst [vmem:[#allocation0 + $0x1a8] sm:$0xf] %v4358_v59  ;;  %2366 = vrot.lane.b32.xlu1 %v2365_v6, %s4562_s10 }
  0x6b   :  { %1714 = vst [vmem:[#allocation0 + $0x1d0] sm:$0xf] %v4353_v56  ;;  %v2374_v62 = vld [vmem:[#allocation0 + $0x2a0] ss:$40 sm:$0xf0]  }
  0x6c   :  { %1764 = vst [vmem:[#allocation0 + $0x180] sm:$0xf] %v4363_v60  ;;  %1789 = vst [vmem:[#allocation0 + $0x158] sm:$0xf] %v4368_v61  ;;  %v4173_v63 = vld [vmem:[%s6701_s0 + $0x3b8] sm:$0xf]  ;;  %v2376_v7 = vsel %vm2003_vm0, %v2374_v62, %v2372_v55 }
  0x6d   :  { %814 = vst [vmem:[#allocation0 + $0x770] sm:$0xf] %v4173_v63  ;;  %v4178_v0 = vld [vmem:[%s6701_s0 + $0x3a4] sm:$0xf]  ;;  %v4183_v4 = vld [vmem:[%s6701_s0 + $0x390] sm:$0xf]  ;;  %2377 = vrot.lane.b32.xlu0 %v2376_v7, %s4562_s10 }
  0x6e   :  { %v2383_v1 = vld [vmem:[#allocation0 + $0x7a0] ss:$40 sm:$0xf]   ;;  %839 = vst [vmem:[#allocation0 + $0x748] sm:$0xf] %v4178_v0 }
  0x6f   :  { %v2385_v2 = vld [vmem:[#allocation0 + $0x7a0] ss:$40 sm:$0xf0]   ;;  %v4188_v5 = vld [vmem:[%s6701_s0 + $0x37c] sm:$0xf] }
  0x70   :  { %v2394_v3 = vld [vmem:[#allocation0 + $0x3e0] ss:$40 sm:$0xf]   ;;  %864 = vst [vmem:[#allocation0 + $0x720] sm:$0xf] %v4183_v4  ;;  %v2387_v19 = vsel %vm2003_vm0, %v2385_v2, %v2383_v1 }
  0x71   :  { %v2396_v8 = vld [vmem:[#allocation0 + $0x3e0] ss:$40 sm:$0xf0]   ;;  %889 = vst [vmem:[#allocation0 + $0x6f8] sm:$0xf] %v4188_v5  ;;  %2388 = vrot.lane.b32.xlu1 %v2387_v19, %s4562_s10 }
  0x72   :  { %v4193_v9 = vld [vmem:[%s6701_s0 + $0x368] sm:$0xf]  ;;  %v4198_v10 = vld [vmem:[%s6701_s0 + $0x354] sm:$0xf]  ;;  %v4203_v11 = vld [vmem:[%s6701_s0 + $0x340] sm:$0xf]  ;;  %v2398_v20 = vsel %vm2003_vm0, %v2396_v8, %v2394_v3 }
  0x73   :  { %914 = vst [vmem:[#allocation0 + $0x6d0] sm:$0xf] %v4193_v9  ;;  %v4208_v12 = vld [vmem:[%s6701_s0 + $0x32c] sm:$0xf]  ;;  %939 = vst [vmem:[#allocation0 + $0x6a8] sm:$0xf] %v4198_v10  ;;  %2399 = vrot.lane.b32.xlu0 %v2398_v20, %s4562_s10 }
  0x74   :  { %964 = vst [vmem:[#allocation0 + $0x680] sm:$0xf] %v4203_v11  ;;  %989 = vst [vmem:[#allocation0 + $0x658] sm:$0xf] %v4208_v12  ;;  %v4013_v13 = vld [vmem:[%s6701_s0 + $0x638] sm:$0xf] }
  0x75   :  { %v2405_v14 = vld [vmem:[#allocation0 + $0x8e0] ss:$40 sm:$0xf]   ;;  %v2418_v16 = vld [vmem:[#allocation0 + $0x1a] ss:$40 sm:$0xf0]  }
  0x76   :  { %v2407_v15 = vld [vmem:[#allocation0 + $0x8e0] ss:$40 sm:$0xf0]   ;;  %14 = vst [vmem:[#allocation0 + $0xc70] sm:$0xf] %v4013_v13 }
  0x77   :  { %v4018_v17 = vld [vmem:[%s6701_s0 + $0x624] sm:$0xf]  ;;  %v4023_v18 = vld [vmem:[%s6701_s0 + $0x610] sm:$0xf]  ;;  %v4028_v22 = vld [vmem:[%s6701_s0 + $0x5fc] sm:$0xf]  ;;  %v2409_v33 = vsel %vm2003_vm0, %v2407_v15, %v2405_v14 }
  0x78   :  { %v2416_v21 = vld [vmem:[#allocation0 + $0x1a] ss:$40 sm:$0xf]   ;;  %39 = vst [vmem:[#allocation0 + $0xc48] sm:$0xf] %v4018_v17  ;;  %2410 = vrot.lane.b32.xlu1 %v2409_v33, %s4562_s10  ;;  %s4563_s10 = smov 88  }
  0x79   :  { %64 = vst [vmem:[#allocation0 + $0xc20] sm:$0xf] %v4023_v18  ;;  %89 = vst [vmem:[#allocation0 + $0xbf8] sm:$0xf] %v4028_v22  ;;  %v4033_v23 = vld [vmem:[%s6701_s0 + $0x5e8] sm:$0xf]  ;;  %v2420_v34 = vsel %vm2003_vm0, %v2418_v16, %v2416_v21 }
  0x7a   :  { %v4038_v24 = vld [vmem:[%s6701_s0 + $0x5d4] sm:$0xf]  ;;  %v4043_v25 = vld [vmem:[%s6701_s0 + $0x5c0] sm:$0xf]  ;;  %114 = vst [vmem:[#allocation0 + $0xbd0] sm:$0xf] %v4033_v23  ;;  %2421 = vrot.lane.b32.xlu0 %v2420_v34, %s4563_s10 }
  0x7b   :  { %139 = vst [vmem:[#allocation0 + $0xba8] sm:$0xf] %v4038_v24  ;;  %164 = vst [vmem:[#allocation0 + $0xb80] sm:$0xf] %v4043_v25  ;;  %v4048_v26 = vld [vmem:[%s6701_s0 + $0x5ac] sm:$0xf] }
  0x7c   :  { %v4293_v27 = vld [vmem:[%s6701_s0 + $0x1d8] sm:$0xf]  ;;  %v4298_v28 = vld [vmem:[%s6701_s0 + $0x1c4] sm:$0xf]  ;;  %189 = vst [vmem:[#allocation0 + $0xb58] sm:$0xf] %v4048_v26 }
  0x7d   :  { %v2426_v29 = vld [vmem:[#allocation0 + $0x51a] ss:$40 sm:$0xf]   ;;  %1414 = vst [vmem:[#allocation0 + $0x3b0] sm:$0xf] %v4293_v27 }
  0x7e   :  { %v2428_v30 = vld [vmem:[#allocation0 + $0x51a] ss:$40 sm:$0xf0]   ;;  %1439 = vst [vmem:[#allocation0 + $0x388] sm:$0xf] %v4298_v28 }
  0x7f   :  { %v2439_v31 = vld [vmem:[#allocation0 + $0xa1a] ss:$40 sm:$0xf0]   ;;  %v4308_v35 = vld [vmem:[%s6701_s0 + $0x19c] sm:$0xf]  ;;  %v2430_v48 = vsel %vm2003_vm0, %v2428_v30, %v2426_v29 }
  0x80   :  { %v4303_v32 = vld [vmem:[%s6701_s0 + $0x1b0] sm:$0xf]  ;;  %v4313_v36 = vld [vmem:[%s6701_s0 + $0x188] sm:$0xf]  ;;  %v4318_v37 = vld [vmem:[%s6701_s0 + $0x174] sm:$0xf]  ;;  %2431 = vrot.lane.b32.xlu1 %v2430_v48, %s4563_s10 }
  0x81   :  { %1464 = vst [vmem:[#allocation0 + $0x360] sm:$0xf] %v4303_v32  ;;  %v2437_v38 = vld [vmem:[#allocation0 + $0xa1a] ss:$40 sm:$0xf]  }
  0x82   :  { %1489 = vst [vmem:[#allocation0 + $0x338] sm:$0xf] %v4308_v35  ;;  %1514 = vst [vmem:[#allocation0 + $0x310] sm:$0xf] %v4313_v36  ;;  %v4323_v39 = vld [vmem:[%s6701_s0 + $0x160] sm:$0xf]  ;;  %v2441_v49 = vsel %vm2003_vm0, %v2439_v31, %v2437_v38 }
  0x83   :  { %1539 = vst [vmem:[#allocation0 + $0x2e8] sm:$0xf] %v4318_v37  ;;  %1564 = vst [vmem:[#allocation0 + $0x2c0] sm:$0xf] %v4323_v39  ;;  %v4328_v40 = vld [vmem:[%s6701_s0 + $0x14c] sm:$0xf]  ;;  %2442 = vrot.lane.b32.xlu0 %v2441_v49, %s4563_s10 }
  0x84   :  { %v4133_v41 = vld [vmem:[%s6701_s0 + $0x458] sm:$0xf]  ;;  %v4138_v42 = vld [vmem:[%s6701_s0 + $0x444] sm:$0xf]  ;;  %1589 = vst [vmem:[#allocation0 + $0x298] sm:$0xf] %v4328_v40 }
  0x85   :  { %v2448_v43 = vld [vmem:[#allocation0 + $0x15a] ss:$40 sm:$0xf]   ;;  %614 = vst [vmem:[#allocation0 + $0x8b0] sm:$0xf] %v4133_v41 }
  0x86   :  { %v2450_v44 = vld [vmem:[#allocation0 + $0x15a] ss:$40 sm:$0xf0]   ;;  %639 = vst [vmem:[#allocation0 + $0x888] sm:$0xf] %v4138_v42 }
  0x87   :  { %v2461_v45 = vld [vmem:[#allocation0 + $0x65a] ss:$40 sm:$0xf0]   ;;  %v4148_v47 = vld [vmem:[%s6701_s0 + $0x41c] sm:$0xf]  ;;  %v2452_v60 = vsel %vm2003_vm0, %v2450_v44, %v2448_v43 }
  0x88   :  { %v4143_v46 = vld [vmem:[%s6701_s0 + $0x430] sm:$0xf]  ;;  %689 = vst [vmem:[#allocation0 + $0x838] sm:$0xf] %v4148_v47  ;;  %v4153_v51 = vld [vmem:[%s6701_s0 + $0x408] sm:$0xf]  ;;  %2453 = vrot.lane.b32.xlu1 %v2452_v60, %s4563_s10 }
  0x89   :  { %v2459_v50 = vld [vmem:[#allocation0 + $0x65a] ss:$40 sm:$0xf]   ;;  %664 = vst [vmem:[#allocation0 + $0x860] sm:$0xf] %v4143_v46 }
  0x8a   :  { %714 = vst [vmem:[#allocation0 + $0x810] sm:$0xf] %v4153_v51  ;;  %v4158_v52 = vld [vmem:[%s6701_s0 + $0x3f4] sm:$0xf]  ;;  %v4163_v53 = vld [vmem:[%s6701_s0 + $0x3e0] sm:$0xf]  ;;  %v2463_v61 = vsel %vm2003_vm0, %v2461_v45, %v2459_v50 }
  0x8b   :  { %v4168_v54 = vld [vmem:[%s6701_s0 + $0x3cc] sm:$0xf]  ;;  %739 = vst [vmem:[#allocation0 + $0x7e8] sm:$0xf] %v4158_v52  ;;  %764 = vst [vmem:[#allocation0 + $0x7c0] sm:$0xf] %v4163_v53  ;;  %2464 = vrot.lane.b32.xlu0 %v2463_v61, %s4563_s10 }
  0x8c   :  { %789 = vst [vmem:[#allocation0 + $0x798] sm:$0xf] %v4168_v54  ;;  %v4253_v55 = vld [vmem:[%s6701_s0 + $0x278] sm:$0xf]  ;;  %v4258_v58 = vld [vmem:[%s6701_s0 + $0x264] sm:$0xf] }
  0x8d   :  { %v2470_v56 = vld [vmem:[#allocation0 + $0xb5a] ss:$40 sm:$0xf]   ;;  %1214 = vst [vmem:[#allocation0 + $0x4f0] sm:$0xf] %v4253_v55 }
  0x8e   :  { %v2472_v57 = vld [vmem:[#allocation0 + $0xb5a] ss:$40 sm:$0xf0]   ;;  %1239 = vst [vmem:[#allocation0 + $0x4c8] sm:$0xf] %v4258_v58 }
  0x8f   :  { %v4263_v59 = vld [vmem:[%s6701_s0 + $0x250] sm:$0xf]  ;;  %v4268_v63 = vld [vmem:[%s6701_s0 + $0x23c] sm:$0xf]  ;;  %v4273_v0 = vld [vmem:[%s6701_s0 + $0x228] sm:$0xf]  ;;  %v2474_v7 = vsel %vm2003_vm0, %v2472_v57, %v2470_v56 }
  0x90   :  { %v2483_v62 = vld [vmem:[#allocation0 + $0x29a] ss:$40 sm:$0xf0]   ;;  %1264 = vst [vmem:[#allocation0 + $0x4a0] sm:$0xf] %v4263_v59  ;;  %2475 = vrot.lane.b32.xlu1 %v2474_v7, %s4563_s10 }
  0x91   :  { %1289 = vst [vmem:[#allocation0 + $0x478] sm:$0xf] %v4268_v63  ;;  %v4278_v1 = vld [vmem:[%s6701_s0 + $0x214] sm:$0xf]  ;;  %v4283_v2 = vld [vmem:[%s6701_s0 + $0x200] sm:$0xf] }
  0x92   :  { %v2481_v3 = vld [vmem:[#allocation0 + $0x29a] ss:$40 sm:$0xf]   ;;  %1314 = vst [vmem:[#allocation0 + $0x450] sm:$0xf] %v4273_v0 }
  0x93   :  { %1339 = vst [vmem:[#allocation0 + $0x428] sm:$0xf] %v4278_v1  ;;  %1364 = vst [vmem:[#allocation0 + $0x400] sm:$0xf] %v4283_v2  ;;  %v4288_v4 = vld [vmem:[%s6701_s0 + $0x1ec] sm:$0xf]  ;;  %v2485_v8 = vsel %vm2003_vm0, %v2483_v62, %v2481_v3 }
  0x94   :  { %v2494_v5 = vld [vmem:[#allocation0 + $0x79a] ss:$40 sm:$0xf0]   ;;  %1389 = vst [vmem:[#allocation0 + $0x3d8] sm:$0xf] %v4288_v4  ;;  %2486 = vrot.lane.b32.xlu0 %v2485_v8, %s4563_s10 }
  0x95   :  { %v4093_v6 = vld [vmem:[%s6701_s0 + $0x4f8] sm:$0xf]  ;;  %v4098_v9 = vld [vmem:[%s6701_s0 + $0x4e4] sm:$0xf]  ;;  %v4103_v10 = vld [vmem:[%s6701_s0 + $0x4d0] sm:$0xf] }
  0x96   :  { %414 = vst [vmem:[#allocation0 + $0x9f0] sm:$0xf] %v4093_v6  ;;  %v4108_v11 = vld [vmem:[%s6701_s0 + $0x4bc] sm:$0xf]  ;;  %439 = vst [vmem:[#allocation0 + $0x9c8] sm:$0xf] %v4098_v9 }
  0x97   :  { %v2492_v12 = vld [vmem:[#allocation0 + $0x79a] ss:$40 sm:$0xf]   ;;  %464 = vst [vmem:[#allocation0 + $0x9a0] sm:$0xf] %v4103_v10 }
  0x98   :  { %489 = vst [vmem:[#allocation0 + $0x978] sm:$0xf] %v4108_v11  ;;  %v4113_v13 = vld [vmem:[%s6701_s0 + $0x4a8] sm:$0xf]  ;;  %v4118_v14 = vld [vmem:[%s6701_s0 + $0x494] sm:$0xf]  ;;  %v2496_v17 = vsel %vm2003_vm0, %v2494_v5, %v2492_v12 }
  0x99   :  { %514 = vst [vmem:[#allocation0 + $0x950] sm:$0xf] %v4113_v13  ;;  %v4123_v15 = vld [vmem:[%s6701_s0 + $0x480] sm:$0xf]  ;;  %v4128_v16 = vld [vmem:[%s6701_s0 + $0x46c] sm:$0xf]  ;;  %2497 = vrot.lane.b32.xlu1 %v2496_v17, %s4563_s10  ;;  %v2095_v13 = vpop.permute.xlu0 %2094  }
  0x9a   :  { %539 = vst [vmem:[#allocation0 + $0x928] sm:$0xf] %v4118_v14  ;;  %564 = vst [vmem:[#allocation0 + $0x900] sm:$0xf] %v4123_v15  ;;  %v4376_v49 = vld [vmem:[%s6701_s0 + $0x8c] sm:$0xf] }
  0x9b   :  { %589 = vst [vmem:[#allocation0 + $0x8d8] sm:$0xf] %v4128_v16  ;;  %v2505_v18 = vld [vmem:[#allocation0 + $0x3da] ss:$40 sm:$0xf0]  }
  0x9c   :  { %v2525_v19 = vld [vmem:[#allocation0 + $0x19] ss:$40 sm:$0xf]   ;;  %v2503_v20 = vld [vmem:[#allocation0 + $0x3da] ss:$40 sm:$0xf]  }
  0x9d   :  { %v2527_v21 = vld [vmem:[#allocation0 + $0x19] ss:$40 sm:$0xf0]   ;;  %v2507_v22 = vsel %vm2003_vm0, %v2505_v18, %v2503_v20  ;;  %v4386_v51 = vld [vmem:[%s6701_s0 + $0x64] sm:$0xf] }
  0x9e   :  { %2508 = vrot.lane.b32.xlu0 %v2507_v22, %s4563_s10  ;;  %v2535_v24 = vld [vmem:[#allocation0 + $0x519] ss:$40 sm:$0xf]   ;;  %v2529_v25 = vsel %vm2003_vm0, %v2527_v21, %v2525_v19  ;;  %v2634_v54 = vld [vmem:[#allocation0 + $0x18] ss:$40 sm:$0xf]  }
  0x9f   :  { %v2516_v23 = vld [vmem:[#allocation0 + $0x8da] ss:$40 sm:$0xf0]   ;;  %v2537_v26 = vld [vmem:[#allocation0 + $0x519] ss:$40 sm:$0xf0]  }
  0xa0   :  { %v2546_v27 = vld [vmem:[#allocation0 + $0xa19] ss:$40 sm:$0xf]   ;;  %v2539_v31 = vsel %vm2003_vm0, %v2537_v26, %v2535_v24  ;;  %v2636_v55 = vld [vmem:[#allocation0 + $0x18] ss:$40 sm:$0xf0]   ;;  %v2116_v26 = vpop.permute.xlu1 %2115  }
  0xa1   :  { %v2548_v29 = vld [vmem:[#allocation0 + $0xa19] ss:$40 sm:$0xf0]   ;;  %1829 = vst [vmem:[#allocation0 + $0x118] sm:$0xf] %v4376_v49  ;;  %v2638_v8 = vsel %vm2003_vm0, %v2636_v55, %v2634_v54 }
  0xa2   :  { %v2514_v28 = vld [vmem:[#allocation0 + $0x8da] ss:$40 sm:$0xf]   ;;  %v2550_v32 = vsel %vm2003_vm0, %v2548_v29, %v2546_v27  ;;  %v2557_v33 = vld [vmem:[#allocation0 + $0x159] ss:$40 sm:$0xf]  }
  0xa3   :  { %v2518_v30 = vsel %vm2003_vm0, %v2516_v23, %v2514_v28  ;;  %v2559_v34 = vld [vmem:[#allocation0 + $0x159] ss:$40 sm:$0xf0]   ;;  %1879 = vst [vmem:[#allocation0 + $0xc8] sm:$0xf] %v4386_v51 }
  0xa4   :  { %2519 = vrot.lane.b32.xlu1 %v2518_v30, %s4563_s10  ;;  %s4564_s10 = smov 80   ;;  %v2568_v35 = vld [vmem:[#allocation0 + $0x659] ss:$40 sm:$0xf]   ;;  %v2561_v37 = vsel %vm2003_vm0, %v2559_v34, %v2557_v33  ;;  %v4396_v57 = vld [vmem:[%s6701_s0 + $0x3c] sm:$0xf] }
  0xa5   :  { %2530 = vrot.lane.b32.xlu0 %v2529_v25, %s4564_s10  ;;  %v2570_v36 = vld [vmem:[#allocation0 + $0x659] ss:$40 sm:$0xf0]   ;;  %1929 = vst [vmem:[#allocation0 + $0x78] sm:$0xf] %v4396_v57 }
  0xa6   :  { %v2572_v38 = vsel %vm2003_vm0, %v2570_v36, %v2568_v35  ;;  %v2579_v39 = vld [vmem:[#allocation0 + $0xb59] ss:$40 sm:$0xf]   ;;  %v4406_v61 = vld [vmem:[%s6701_s0 + $0x14] sm:$0xf] }
  0xa7   :  { %v2581_v40 = vld [vmem:[#allocation0 + $0xb59] ss:$40 sm:$0xf0]   ;;  %1979 = vst [vmem:[#allocation0 + $0x28] sm:$0xf] %v4406_v61 }
  0xa8   :  { %2540 = vrot.lane.b32.xlu1 %v2539_v31, %s4564_s10  ;;  %v2590_v41 = vld [vmem:[#allocation0 + $0x299] ss:$40 sm:$0xf]   ;;  %v2583_v43 = vsel %vm2003_vm0, %v2581_v40, %v2579_v39  ;;  %v4056_v63 = vld [vmem:[%s6701_s0 + $0x58c] sm:$0xf]  ;;  %v5254_v39 = vpop.permute.xlu0 %2104  }
  0xa9   :  { %2551 = vrot.lane.b32.xlu0 %v2550_v32, %s4564_s10  ;;  %v2592_v42 = vld [vmem:[#allocation0 + $0x299] ss:$40 sm:$0xf0]   ;;  %v4066_v1 = vld [vmem:[%s6701_s0 + $0x564] sm:$0xf] }
  0xaa   :  { %v2594_v44 = vsel %vm2003_vm0, %v2592_v42, %v2590_v41  ;;  %v2601_v45 = vld [vmem:[#allocation0 + $0x799] ss:$40 sm:$0xf]   ;;  %229 = vst [vmem:[#allocation0 + $0xb18] sm:$0xf] %v4056_v63 }
  0xab   :  { %v2603_v46 = vld [vmem:[#allocation0 + $0x799] ss:$40 sm:$0xf0]   ;;  %279 = vst [vmem:[#allocation0 + $0xac8] sm:$0xf] %v4066_v1 }
  0xac   :  { %2562 = vrot.lane.b32.xlu1 %v2561_v37, %s4564_s10  ;;  %v2612_v47 = vld [vmem:[#allocation0 + $0x3d9] ss:$40 sm:$0xf]   ;;  %v2605_v58 = vsel %vm2003_vm0, %v2603_v46, %v2601_v45  ;;  %v4076_v3 = vld [vmem:[%s6701_s0 + $0x53c] sm:$0xf] }
  0xad   :  { %2573 = vrot.lane.b32.xlu0 %v2572_v38, %s4564_s10  ;;  %v2614_v48 = vld [vmem:[#allocation0 + $0x3d9] ss:$40 sm:$0xf0]   ;;  %329 = vst [vmem:[#allocation0 + $0xa78] sm:$0xf] %v4076_v3 }
  0xae   :  { %v4381_v50 = vld [vmem:[%s6701_s0 + $0x78] sm:$0xf]  ;;  %v4391_v56 = vld [vmem:[%s6701_s0 + $0x50] sm:$0xf]  ;;  %v2616_v59 = vsel %vm2003_vm0, %v2614_v48, %v2612_v47  ;;  %v4401_v60 = vld [vmem:[%s6701_s0 + $0x28] sm:$0xf] }
  0xaf   :  { %v2623_v52 = vld [vmem:[#allocation0 + $0x8d9] ss:$40 sm:$0xf]   ;;  %1854 = vst [vmem:[#allocation0 + $0xf0] sm:$0xf] %v4381_v50 }
  0xb0   :  { %2584 = vrot.lane.b32.xlu1 %v2583_v43, %s4564_s10  ;;  %v2625_v53 = vld [vmem:[#allocation0 + $0x8d9] ss:$40 sm:$0xf0]   ;;  %1904 = vst [vmem:[#allocation0 + $0xa0] sm:$0xf] %v4391_v56 }
  0xb1   :  { %2595 = vrot.lane.b32.xlu0 %v2594_v44, %s4564_s10  ;;  %v1999_v62 = vld [vmem:[%s6701_s0] sm:$0xf]  ;;  %1954 = vst [vmem:[#allocation0 + $0x50] sm:$0xf] %v4401_v60  ;;  %v4061_v0 = vld [vmem:[%s6701_s0 + $0x578] sm:$0xf]  ;;  %v2627_v7 = vsel %vm2003_vm0, %v2625_v53, %v2623_v52 }
  0xb2   :  { %2000 = vst [vmem:[#allocation0] sm:$0xf] %v1999_v62  ;;  %254 = vst [vmem:[#allocation0 + $0xaf0] sm:$0xf] %v4061_v0  ;;  %v4071_v2 = vld [vmem:[%s6701_s0 + $0x550] sm:$0xf] }
  0xb3   :  { %v4081_v4 = vld [vmem:[%s6701_s0 + $0x528] sm:$0xf]  ;;  %304 = vst [vmem:[#allocation0 + $0xaa0] sm:$0xf] %v4071_v2  ;;  %v4086_v5 = vld [vmem:[%s6701_s0 + $0x514] sm:$0xf] }
  0xb4   :  { %2606 = vrot.lane.b32.xlu1 %v2605_v58, %s4564_s10  ;;  %354 = vst [vmem:[#allocation0 + $0xa50] sm:$0xf] %v4081_v4  ;;  %v4091_v6 = vld [vmem:[%s6701_s0 + $0x500] sm:$0xf]  ;;  %379 = vst [vmem:[#allocation0 + $0xa28] sm:$0xf] %v4086_v5  ;;  %v2127_v58 = vpop.permute.xlu1 %2126  }
  0xb5   :  { %2617 = vrot.lane.b32.xlu0 %v2616_v59, %s4564_s10  ;;  %v2644_v9 = vld [vmem:[#allocation0 + $0x518] ss:$40 sm:$0xf]   ;;  %404 = vst [vmem:[#allocation0 + $0xa00] sm:$0xf] %v4091_v6 }
  0xb6   :  { %v2646_v10 = vld [vmem:[#allocation0 + $0x518] ss:$40 sm:$0xf0]   ;;  %v4216_v14 = vld [vmem:[%s6701_s0 + $0x30c] sm:$0xf] }
  0xb7   :  { %v2655_v11 = vld [vmem:[#allocation0 + $0xa18] ss:$40 sm:$0xf]   ;;  %v4226_v16 = vld [vmem:[%s6701_s0 + $0x2e4] sm:$0xf]  ;;  %v2648_v23 = vsel %vm2003_vm0, %v2646_v10, %v2644_v9 }
  0xb8   :  { %v2657_v12 = vld [vmem:[#allocation0 + $0xa18] ss:$40 sm:$0xf0]   ;;  %2628 = vrot.lane.b32.xlu1 %v2627_v7, %s4564_s10  ;;  %s4565_s10 = smov 72   ;;  %1029 = vst [vmem:[#allocation0 + $0x618] sm:$0xf] %v4216_v14 }
  0xb9   :  { %v4221_v15 = vld [vmem:[%s6701_s0 + $0x2f8] sm:$0xf]  ;;  %2639 = vrot.lane.b32.xlu0 %v2638_v8, %s4565_s10  ;;  %1079 = vst [vmem:[#allocation0 + $0x5c8] sm:$0xf] %v4226_v16  ;;  %v4231_v22 = vld [vmem:[%s6701_s0 + $0x2d0] sm:$0xf]  ;;  %v2659_v24 = vsel %vm2003_vm0, %v2657_v12, %v2655_v11 }
  0xba   :  { %v2666_v17 = vld [vmem:[#allocation0 + $0x158] ss:$40 sm:$0xf]   ;;  %1054 = vst [vmem:[#allocation0 + $0x5f0] sm:$0xf] %v4221_v15  ;;  %v5348_v15 = vpop.permute.xlu0 %2137  }
  0xbb   :  { %v2668_v18 = vld [vmem:[#allocation0 + $0x158] ss:$40 sm:$0xf0]   ;;  %1104 = vst [vmem:[#allocation0 + $0x5a0] sm:$0xf] %v4231_v22 }
  0xbc   :  { %v2677_v19 = vld [vmem:[#allocation0 + $0x658] ss:$40 sm:$0xf]   ;;  %v4236_v27 = vld [vmem:[%s6701_s0 + $0x2bc] sm:$0xf]  ;;  %2649 = vrot.lane.b32.xlu1 %v2648_v23, %s4565_s10  ;;  %v2670_v41 = vsel %vm2003_vm0, %v2668_v18, %v2666_v17 }
  0xbd   :  { %v2679_v20 = vld [vmem:[#allocation0 + $0x658] ss:$40 sm:$0xf0]   ;;  %1129 = vst [vmem:[#allocation0 + $0x578] sm:$0xf] %v4236_v27  ;;  %2660 = vrot.lane.b32.xlu0 %v2659_v24, %s4565_s10 }
  0xbe   :  { %v2002_v21 = vld [vmem:[#allocation0] ss:$40 sm:$0xf0]   ;;  %v4246_v30 = vld [vmem:[%s6701_s0 + $0x294] sm:$0xf]  ;;  %v2681_v42 = vsel %vm2003_vm0, %v2679_v20, %v2677_v19 }
  0xbf   :  { %v2001_v25 = vld [vmem:[#allocation0] ss:$40 sm:$0xf]   ;;  %1179 = vst [vmem:[#allocation0 + $0x528] sm:$0xf] %v4246_v30 }
  0xc0   :  { %v2004_v28 = vsel %vm2003_vm0, %v2002_v21, %v2001_v25  ;;  %v4241_v29 = vld [vmem:[%s6701_s0 + $0x2a8] sm:$0xf]  ;;  %v4251_v31 = vld [vmem:[%s6701_s0 + $0x280] sm:$0xf]  ;;  %v4336_v33 = vld [vmem:[%s6701_s0 + $0x12c] sm:$0xf]  ;;  %2671 = vrot.lane.b32.xlu1 %v2670_v41, %s4565_s10 }
  0xc1   :  { %2006 = vst.msk [vmem:[%s6702_s1] sm:$0xff] %vm2005_vm1, %v2004_v28   ;;  %v2073_v32 = vld [vmem:[#allocation0 + $0xa00] ss:$40 sm:$0xf0]   ;;  %1154 = vst [vmem:[#allocation0 + $0x550] sm:$0xf] %v4241_v29  ;;  %2682 = vrot.lane.b32.xlu0 %v2681_v42, %s4565_s10  ;;  %v5386_v28 = vpop.permute.xlu1 %2148  }
  0xc2   :  { %1204 = vst [vmem:[#allocation0 + $0x500] sm:$0xf] %v4251_v31  ;;  %v2688_v34 = vld [vmem:[#allocation0 + $0xb58] ss:$40 sm:$0xf]   ;;  %2097 = vst.msk [vmem:[%s6702_s1] sm:$0xff] %vm2096_vm2, %v2095_v13  }
  0xc3   :  { %v2690_v35 = vld [vmem:[#allocation0 + $0xb58] ss:$40 sm:$0xf0]   ;;  %1629 = vst [vmem:[#allocation0 + $0x258] sm:$0xf] %v4336_v33 }
  0xc4   :  { %v2699_v36 = vld [vmem:[#allocation0 + $0x298] ss:$40 sm:$0xf]   ;;  %v4346_v44 = vld [vmem:[%s6701_s0 + $0x104] sm:$0xf]  ;;  %v2692_v60 = vsel %vm2003_vm0, %v2690_v35, %v2688_v34 }
  0xc5   :  { %v2701_v37 = vld [vmem:[#allocation0 + $0x298] ss:$40 sm:$0xf0]   ;;  %v4356_v46 = vld [vmem:[%s6701_s0 + $0xdc] sm:$0xf]  ;;  %2693 = vrot.lane.b32.xlu1 %v2692_v60, %s4565_s10 }
  0xc6   :  { %v2071_v38 = vld [vmem:[#allocation0 + $0xa00] ss:$40 sm:$0xf]   ;;  %1679 = vst [vmem:[#allocation0 + $0x208] sm:$0xf] %v4346_v44  ;;  %v2703_v61 = vsel %vm2003_vm0, %v2701_v37, %v2699_v36  ;;  %v5406_v37 = vpop.permute.xlu0 %2159  }
  0xc7   :  { %v4341_v40 = vld [vmem:[%s6701_s0 + $0x118] sm:$0xf]  ;;  %v2075_v43 = vsel %vm2003_vm0, %v2073_v32, %v2071_v38  ;;  %v4351_v45 = vld [vmem:[%s6701_s0 + $0xf0] sm:$0xf]  ;;  %1729 = vst [vmem:[#allocation0 + $0x1b8] sm:$0xf] %v4356_v46  ;;  %2704 = vrot.lane.b32.xlu0 %v2703_v61, %s4565_s10 }
  0xc8   :  { %1654 = vst [vmem:[#allocation0 + $0x230] sm:$0xf] %v4341_v40  ;;  %4418 = vst.msk [vmem:[%s6702_s1 + $0x40] sm:$0xff] %vm2005_vm1, %v2075_v43   ;;  %v4361_v47 = vld [vmem:[%s6701_s0 + $0xc8] sm:$0xf] }
  0xc9   :  { %1704 = vst [vmem:[#allocation0 + $0x1e0] sm:$0xf] %v4351_v45  ;;  %v4366_v48 = vld [vmem:[%s6701_s0 + $0xb4] sm:$0xf]  ;;  %v4371_v49 = vld [vmem:[%s6701_s0 + $0xa0] sm:$0xf] }
  0xca   :  { %4421 = vst.msk [vmem:[%s6702_s1 + $0x40] sm:$0xff] %vm2096_vm2, %v2116_v26   ;;  %1754 = vst [vmem:[#allocation0 + $0x190] sm:$0xf] %v4361_v47  ;;  %v4374_v50 = vld [vmem:[%s6701_s0 + $0x94] sm:$0xf] }
  0xcb   :  { %1779 = vst [vmem:[#allocation0 + $0x168] sm:$0xf] %v4366_v48  ;;  %1804 = vst [vmem:[#allocation0 + $0x140] sm:$0xf] %v4371_v49  ;;  %v4379_v51 = vld [vmem:[%s6701_s0 + $0x80] sm:$0xf] }
  0xcc   :  { %v4384_v52 = vld [vmem:[%s6701_s0 + $0x6c] sm:$0xf]  ;;  %v2710_v53 = vld [vmem:[#allocation0 + $0x798] ss:$40 sm:$0xf]  }
  0xcd   :  { %v2712_v54 = vld [vmem:[#allocation0 + $0x798] ss:$40 sm:$0xf0]   ;;  %1819 = vst [vmem:[#allocation0 + $0x128] sm:$0xf] %v4374_v50  ;;  %v5439_v50 = vpop.permute.xlu1 %2170  }
  0xce   :  { %v2721_v55 = vld [vmem:[#allocation0 + $0x3d8] ss:$40 sm:$0xf]   ;;  %1844 = vst [vmem:[#allocation0 + $0x100] sm:$0xf] %v4379_v51  ;;  %v2714_v11 = vsel %vm2003_vm0, %v2712_v54, %v2710_v53 }
  0xcf   :  { %v2723_v56 = vld [vmem:[#allocation0 + $0x3d8] ss:$40 sm:$0xf0]   ;;  %1869 = vst [vmem:[#allocation0 + $0xd8] sm:$0xf] %v4384_v52  ;;  %2715 = vrot.lane.b32.xlu1 %v2714_v11, %s4565_s10 }
  0xd0   :  { %v2037_v57 = vld [vmem:[#allocation0 + $0x500] ss:$40 sm:$0xf0]   ;;  %v4394_v62 = vld [vmem:[%s6701_s0 + $0x44] sm:$0xf]  ;;  %v2725_v12 = vsel %vm2003_vm0, %v2723_v56, %v2721_v55 }
  0xd1   :  { %v4389_v59 = vld [vmem:[%s6701_s0 + $0x58] sm:$0xf]  ;;  %v4399_v63 = vld [vmem:[%s6701_s0 + $0x30] sm:$0xf]  ;;  %v4404_v0 = vld [vmem:[%s6701_s0 + $0x1c] sm:$0xf]  ;;  %2726 = vrot.lane.b32.xlu0 %v2725_v12, %s4565_s10  ;;  %v5515_v12 = vpop.permute.xlu1 %2192  }
  0xd2   :  { %1894 = vst [vmem:[#allocation0 + $0xb0] sm:$0xf] %v4389_v59  ;;  %v2035_v1 = vld [vmem:[#allocation0 + $0x500] ss:$40 sm:$0xf]  }
  0xd3   :  { %1919 = vst [vmem:[#allocation0 + $0x88] sm:$0xf] %v4394_v62  ;;  %1944 = vst [vmem:[#allocation0 + $0x60] sm:$0xf] %v4399_v63  ;;  %v4409_v2 = vld [vmem:[%s6701_s0 + $0x8] sm:$0xf]  ;;  %v2039_v3 = vsel %vm2003_vm0, %v2037_v57, %v2035_v1 }
  0xd4   :  { %1969 = vst [vmem:[#allocation0 + $0x38] sm:$0xf] %v4404_v0  ;;  %1994 = vst [vmem:[#allocation0 + $0x10] sm:$0xf] %v4409_v2  ;;  %v4214_v4 = vld [vmem:[%s6701_s0 + $0x314] sm:$0xf]  ;;  %v5474_v0 = vpop.permute.xlu0 %2181  }
  0xd5   :  { %v4219_v5 = vld [vmem:[%s6701_s0 + $0x300] sm:$0xf]  ;;  %v4224_v6 = vld [vmem:[%s6701_s0 + $0x2ec] sm:$0xf]  ;;  %4414 = vst.msk [vmem:[%s6702_s1 + $0x20] sm:$0xff] %vm2005_vm1, %v2039_v3  }
  0xd6   :  { %v2732_v7 = vld [vmem:[#allocation0 + $0x8d8] ss:$40 sm:$0xf]   ;;  %1019 = vst [vmem:[#allocation0 + $0x628] sm:$0xf] %v4214_v4  ;;  %4420 = vst.msk [vmem:[%s6702_s1 + $0x20] sm:$0xff] %vm2096_vm2, %v5254_v39  }
  0xd7   :  { %v2734_v8 = vld [vmem:[#allocation0 + $0x8d8] ss:$40 sm:$0xf0]   ;;  %1044 = vst [vmem:[#allocation0 + $0x600] sm:$0xf] %v4219_v5 }
  0xd8   :  { %1069 = vst [vmem:[#allocation0 + $0x5d8] sm:$0xf] %v4224_v6  ;;  %v4229_v9 = vld [vmem:[%s6701_s0 + $0x2d8] sm:$0xf]  ;;  %v4234_v10 = vld [vmem:[%s6701_s0 + $0x2c4] sm:$0xf]  ;;  %v2736_v24 = vsel %vm2003_vm0, %v2734_v8, %v2732_v7 }
  0xd9   :  { %v2010_v13 = vld [vmem:[#allocation0 + $0x140] ss:$40 sm:$0xf0]   ;;  %1094 = vst [vmem:[#allocation0 + $0x5b0] sm:$0xf] %v4229_v9  ;;  %2737 = vrot.lane.b32.xlu1 %v2736_v24, %s4565_s10  ;;  %s4566_s10 = smov 64  }
  0xda   :  { %1119 = vst [vmem:[#allocation0 + $0x588] sm:$0xf] %v4234_v10  ;;  %v4239_v14 = vld [vmem:[%s6701_s0 + $0x2b0] sm:$0xf]  ;;  %v4244_v17 = vld [vmem:[%s6701_s0 + $0x29c] sm:$0xf] }
  0xdb   :  { %v2008_v16 = vld [vmem:[#allocation0 + $0x140] ss:$40 sm:$0xf]   ;;  %1144 = vst [vmem:[#allocation0 + $0x560] sm:$0xf] %v4239_v14 }
  0xdc   :  { %v2012_v18 = vsel %vm2003_vm0, %v2010_v13, %v2008_v16  ;;  %1169 = vst [vmem:[#allocation0 + $0x538] sm:$0xf] %v4244_v17  ;;  %v4249_v19 = vld [vmem:[%s6701_s0 + $0x288] sm:$0xf]  ;;  %v4176_v20 = vld [vmem:[%s6701_s0 + $0x3ac] sm:$0xf]  ;;  %v2204_v13 = vpop.permute.xlu0 %2203  }
  0xdd   :  { %v4181_v21 = vld [vmem:[%s6701_s0 + $0x398] sm:$0xf]  ;;  %4411 = vst.msk [vmem:[%s6702_s1 + $0x8] sm:$0xff] %vm2005_vm1, %v2012_v18   ;;  %1194 = vst [vmem:[#allocation0 + $0x510] sm:$0xf] %v4249_v19 }
  0xde   :  { %v2745_v22 = vld [vmem:[#allocation0 + $0x12] ss:$40 sm:$0xf0]   ;;  %829 = vst [vmem:[#allocation0 + $0x758] sm:$0xf] %v4176_v20  ;;  %4422 = vst.msk [vmem:[%s6702_s1 + $0x8] sm:$0xff] %vm2096_vm2, %v2127_v58  }
  0xdf   :  { %854 = vst [vmem:[#allocation0 + $0x730] sm:$0xf] %v4181_v21  ;;  %v4186_v23 = vld [vmem:[%s6701_s0 + $0x384] sm:$0xf]  ;;  %v4191_v25 = vld [vmem:[%s6701_s0 + $0x370] sm:$0xf] }
  0xe0   :  { %879 = vst [vmem:[#allocation0 + $0x708] sm:$0xf] %v4186_v23  ;;  %v4196_v26 = vld [vmem:[%s6701_s0 + $0x35c] sm:$0xf]  ;;  %v4201_v27 = vld [vmem:[%s6701_s0 + $0x348] sm:$0xf] }
  0xe1   :  { %v2743_v29 = vld [vmem:[#allocation0 + $0x12] ss:$40 sm:$0xf]   ;;  %904 = vst [vmem:[#allocation0 + $0x6e0] sm:$0xf] %v4191_v25  ;;  %2206 = vst.msk [vmem:[%s6702_s1] sm:$0xff] %vm2205_vm3, %v2204_v13   ;;  %v2214_v25 = vpop.permute.xlu1 %2213  }
  0xe2   :  { %929 = vst [vmem:[#allocation0 + $0x6b8] sm:$0xf] %v4196_v26  ;;  %954 = vst [vmem:[#allocation0 + $0x690] sm:$0xf] %v4201_v27  ;;  %v4206_v30 = vld [vmem:[%s6701_s0 + $0x334] sm:$0xf]  ;;  %v2747_v31 = vsel %vm2003_vm0, %v2745_v22, %v2743_v29  ;;  %v2225_v26 = vpop.permute.xlu0 %2224  }
  0xe3   :  { %979 = vst [vmem:[#allocation0 + $0x668] sm:$0xf] %v4206_v30  ;;  %v4211_v32 = vld [vmem:[%s6701_s0 + $0x320] sm:$0xf]  ;;  %v4016_v33 = vld [vmem:[%s6701_s0 + $0x62c] sm:$0xf]  ;;  %2748 = vrot.lane.b32.xlu0 %v2747_v31, %s4566_s10 }
  0xe4   :  { %v4021_v34 = vld [vmem:[%s6701_s0 + $0x618] sm:$0xf]  ;;  %1004 = vst [vmem:[#allocation0 + $0x640] sm:$0xf] %v4211_v32  ;;  %29 = vst [vmem:[#allocation0 + $0xc58] sm:$0xf] %v4016_v33 }
  0xe5   :  { %v2755_v35 = vld [vmem:[#allocation0 + $0x512] ss:$40 sm:$0xf0]   ;;  %54 = vst [vmem:[#allocation0 + $0xc30] sm:$0xf] %v4021_v34  ;;  %4429 = vst.msk [vmem:[%s6702_s1 + $0x20] sm:$0xff] %vm2205_vm3, %v2214_v25  }
  0xe6   :  { %v4026_v36 = vld [vmem:[%s6701_s0 + $0x604] sm:$0xf]  ;;  %v4031_v38 = vld [vmem:[%s6701_s0 + $0x5f0] sm:$0xf]  ;;  %v4036_v39 = vld [vmem:[%s6701_s0 + $0x5dc] sm:$0xf] }
  0xe7   :  { %79 = vst [vmem:[#allocation0 + $0xc08] sm:$0xf] %v4026_v36  ;;  %v4041_v40 = vld [vmem:[%s6701_s0 + $0x5c8] sm:$0xf]  ;;  %104 = vst [vmem:[#allocation0 + $0xbe0] sm:$0xf] %v4031_v38 }
  0xe8   :  { %129 = vst [vmem:[#allocation0 + $0xbb8] sm:$0xf] %v4036_v39  ;;  %154 = vst [vmem:[#allocation0 + $0xb90] sm:$0xf] %v4041_v40  ;;  %v4046_v41 = vld [vmem:[%s6701_s0 + $0x5b4] sm:$0xf]  ;;  %v2236_v39 = vpop.permute.xlu1 %2235   ;;  %v2247_v40 = vpop.permute.xlu0 %2246  }
  0xe9   :  { %v4051_v42 = vld [vmem:[%s6701_s0 + $0x5a0] sm:$0xf]  ;;  %v4054_v43 = vld [vmem:[%s6701_s0 + $0x594] sm:$0xf]  ;;  %179 = vst [vmem:[#allocation0 + $0xb68] sm:$0xf] %v4046_v41 }
  0xea   :  { %v2753_v44 = vld [vmem:[#allocation0 + $0x512] ss:$40 sm:$0xf]   ;;  %204 = vst [vmem:[#allocation0 + $0xb40] sm:$0xf] %v4051_v42  ;;  %4430 = vst.msk [vmem:[%s6702_s1 + $0x40] sm:$0xff] %vm2205_vm3, %v2225_v26  }
  0xeb   :  { %219 = vst [vmem:[#allocation0 + $0xb28] sm:$0xf] %v4054_v43  ;;  %v4059_v45 = vld [vmem:[%s6701_s0 + $0x580] sm:$0xf]  ;;  %v2757_v46 = vsel %vm2003_vm0, %v2755_v35, %v2753_v44  ;;  %v4064_v47 = vld [vmem:[%s6701_s0 + $0x56c] sm:$0xf] }
  0xec   :  { %244 = vst [vmem:[#allocation0 + $0xb00] sm:$0xf] %v4059_v45  ;;  %v4069_v48 = vld [vmem:[%s6701_s0 + $0x558] sm:$0xf]  ;;  %v4074_v49 = vld [vmem:[%s6701_s0 + $0x544] sm:$0xf]  ;;  %2758 = vrot.lane.b32.xlu1 %v2757_v46, %s4566_s10 }
  0xed   :  { %v2046_v51 = vld [vmem:[#allocation0 + $0x640] ss:$40 sm:$0xf0]   ;;  %269 = vst [vmem:[#allocation0 + $0xad8] sm:$0xf] %v4064_v47  ;;  %4431 = vst.msk [vmem:[%s6702_s1 + $0x8] sm:$0xff] %vm2205_vm3, %v2236_v39  }
  0xee   :  { %294 = vst [vmem:[#allocation0 + $0xab0] sm:$0xf] %v4069_v48  ;;  %319 = vst [vmem:[#allocation0 + $0xa88] sm:$0xf] %v4074_v49  ;;  %v4079_v52 = vld [vmem:[%s6701_s0 + $0x530] sm:$0xf] }
  0xef   :  { %344 = vst [vmem:[#allocation0 + $0xa60] sm:$0xf] %v4079_v52  ;;  %v4084_v53 = vld [vmem:[%s6701_s0 + $0x51c] sm:$0xf]  ;;  %v4089_v54 = vld [vmem:[%s6701_s0 + $0x508] sm:$0xf] }
  0xf0   :  { %v4334_v55 = vld [vmem:[%s6701_s0 + $0x134] sm:$0xf]  ;;  %v2044_v56 = vld [vmem:[#allocation0 + $0x640] ss:$40 sm:$0xf]  }
  0xf1   :  { %369 = vst [vmem:[#allocation0 + $0xa38] sm:$0xf] %v4084_v53  ;;  %394 = vst [vmem:[#allocation0 + $0xa10] sm:$0xf] %v4089_v54  ;;  %v4339_v57 = vld [vmem:[%s6701_s0 + $0x120] sm:$0xf]  ;;  %v2048_v58 = vsel %vm2003_vm0, %v2046_v51, %v2044_v56  ;;  %v2258_v53 = vpop.permute.xlu1 %2257   ;;  %v2269_v54 = vpop.permute.xlu0 %2268  }
  0xf2   :  { %1619 = vst [vmem:[#allocation0 + $0x268] sm:$0xf] %v4334_v55  ;;  %1644 = vst [vmem:[#allocation0 + $0x240] sm:$0xf] %v4339_v57  ;;  %v4344_v59 = vld [vmem:[%s6701_s0 + $0x10c] sm:$0xf] }
  0xf3   :  { %v4349_v60 = vld [vmem:[%s6701_s0 + $0xf8] sm:$0xf]  ;;  %v4354_v61 = vld [vmem:[%s6701_s0 + $0xe4] sm:$0xf]  ;;  %4415 = vst.msk [vmem:[%s6702_s1 + $0x28] sm:$0xff] %vm2005_vm1, %v2048_v58  }
  0xf4   :  { %v2082_v62 = vld [vmem:[#allocation0 + $0xb40] ss:$40 sm:$0xf0]   ;;  %1669 = vst [vmem:[#allocation0 + $0x218] sm:$0xf] %v4344_v59  ;;  %4423 = vst.msk [vmem:[%s6702_s1 + $0x28] sm:$0xff] %vm2096_vm2, %v5348_v15  }
  0xf5   :  { %1694 = vst [vmem:[#allocation0 + $0x1f0] sm:$0xf] %v4349_v60  ;;  %1719 = vst [vmem:[#allocation0 + $0x1c8] sm:$0xf] %v4354_v61  ;;  %v4359_v63 = vld [vmem:[%s6701_s0 + $0xd0] sm:$0xf] }
  0xf6   :  { %v2080_v1 = vld [vmem:[#allocation0 + $0xb40] ss:$40 sm:$0xf]   ;;  %1744 = vst [vmem:[#allocation0 + $0x1a0] sm:$0xf] %v4359_v63  ;;  %4432 = vst.msk [vmem:[%s6702_s1 + $0x28] sm:$0xff] %vm2205_vm3, %v2247_v40  }
  0xf7   :  { %v4364_v2 = vld [vmem:[%s6701_s0 + $0xbc] sm:$0xf]  ;;  %v2084_v3 = vsel %vm2003_vm0, %v2082_v62, %v2080_v1  ;;  %v4369_v4 = vld [vmem:[%s6701_s0 + $0xa8] sm:$0xf]  ;;  %v4296_v5 = vld [vmem:[%s6701_s0 + $0x1cc] sm:$0xf]  ;;  %v2280_v1 = vpop.permute.xlu1 %2279  }
  0xf8   :  { %1769 = vst [vmem:[#allocation0 + $0x178] sm:$0xf] %v4364_v2  ;;  %v4301_v6 = vld [vmem:[%s6701_s0 + $0x1b8] sm:$0xf]  ;;  %4419 = vst.msk [vmem:[%s6702_s1 + $0x48] sm:$0xff] %vm2005_vm1, %v2084_v3   ;;  %v5665_v2 = vpop.permute.xlu0 %2290  }
  0xf9   :  { %v2766_v7 = vld [vmem:[#allocation0 + $0xa12] ss:$40 sm:$0xf0]   ;;  %1794 = vst [vmem:[#allocation0 + $0x150] sm:$0xf] %v4369_v4  ;;  %4424 = vst.msk [vmem:[%s6702_s1 + $0x48] sm:$0xff] %vm2096_vm2, %v5386_v28  }
  0xfa   :  { %1429 = vst [vmem:[#allocation0 + $0x398] sm:$0xf] %v4296_v5  ;;  %1454 = vst [vmem:[#allocation0 + $0x370] sm:$0xf] %v4301_v6  ;;  %v4306_v8 = vld [vmem:[%s6701_s0 + $0x1a4] sm:$0xf] }
  0xfb   :  { %1479 = vst [vmem:[#allocation0 + $0x348] sm:$0xf] %v4306_v8  ;;  %v4311_v9 = vld [vmem:[%s6701_s0 + $0x190] sm:$0xf]  ;;  %v4316_v10 = vld [vmem:[%s6701_s0 + $0x17c] sm:$0xf] }
  0xfc   :  { %v4321_v11 = vld [vmem:[%s6701_s0 + $0x168] sm:$0xf]  ;;  %1504 = vst [vmem:[#allocation0 + $0x320] sm:$0xf] %v4311_v9  ;;  %1529 = vst [vmem:[#allocation0 + $0x2f8] sm:$0xf] %v4316_v10 }
  0xfd   :  { %v2764_v14 = vld [vmem:[#allocation0 + $0xa12] ss:$40 sm:$0xf]   ;;  %1554 = vst [vmem:[#allocation0 + $0x2d0] sm:$0xf] %v4321_v11  ;;  %4433 = vst.msk [vmem:[%s6702_s1 + $0x48] sm:$0xff] %vm2205_vm3, %v2258_v53  }
  0xfe   :  { %v4326_v15 = vld [vmem:[%s6701_s0 + $0x154] sm:$0xf]  ;;  %v2768_v16 = vsel %vm2003_vm0, %v2766_v7, %v2764_v14  ;;  %v4331_v17 = vld [vmem:[%s6701_s0 + $0x140] sm:$0xf]  ;;  %v4136_v18 = vld [vmem:[%s6701_s0 + $0x44c] sm:$0xf] }
  0xff   :  { %1579 = vst [vmem:[#allocation0 + $0x2a8] sm:$0xf] %v4326_v15  ;;  %v4141_v19 = vld [vmem:[%s6701_s0 + $0x438] sm:$0xf]  ;;  %2769 = vrot.lane.b32.xlu0 %v2768_v16, %s4566_s10  ;;  %1604 = vst [vmem:[#allocation0 + $0x280] sm:$0xf] %v4331_v17  ;;  %v5697_v15 = vpop.permute.xlu1 %2301   ;;  %v2313_v16 = vpop.permute.xlu0 %2312  }
 0x100   :  { %v2777_v20 = vld [vmem:[#allocation0 + $0x152] ss:$40 sm:$0xf0]   ;;  %629 = vst [vmem:[#allocation0 + $0x898] sm:$0xf] %v4136_v18  ;;  %2315 = vst.msk [vmem:[%s6702_s1] sm:$0xff] %vm2314_vm4, %v2313_v16  }
 0x101   :  { %654 = vst [vmem:[#allocation0 + $0x870] sm:$0xf] %v4141_v19  ;;  %v4146_v21 = vld [vmem:[%s6701_s0 + $0x424] sm:$0xf]  ;;  %v4151_v22 = vld [vmem:[%s6701_s0 + $0x410] sm:$0xf] }
 0x102   :  { %679 = vst [vmem:[#allocation0 + $0x848] sm:$0xf] %v4146_v21  ;;  %v4156_v23 = vld [vmem:[%s6701_s0 + $0x3fc] sm:$0xf]  ;;  %v4161_v24 = vld [vmem:[%s6701_s0 + $0x3e8] sm:$0xf] }
 0x103   :  { %704 = vst [vmem:[#allocation0 + $0x820] sm:$0xf] %v4151_v22  ;;  %729 = vst [vmem:[#allocation0 + $0x7f8] sm:$0xf] %v4156_v23  ;;  %v4166_v27 = vld [vmem:[%s6701_s0 + $0x3d4] sm:$0xf] }
 0x104   :  { %754 = vst [vmem:[#allocation0 + $0x7d0] sm:$0xf] %v4161_v24  ;;  %v4171_v28 = vld [vmem:[%s6701_s0 + $0x3c0] sm:$0xf]  ;;  %v4174_v29 = vld [vmem:[%s6701_s0 + $0x3b4] sm:$0xf] }
 0x105   :  { %v2775_v30 = vld [vmem:[#allocation0 + $0x152] ss:$40 sm:$0xf]   ;;  %779 = vst [vmem:[#allocation0 + $0x7a8] sm:$0xf] %v4166_v27 }
 0x106   :  { %804 = vst [vmem:[#allocation0 + $0x780] sm:$0xf] %v4171_v28  ;;  %819 = vst [vmem:[#allocation0 + $0x768] sm:$0xf] %v4174_v29  ;;  %v4179_v31 = vld [vmem:[%s6701_s0 + $0x3a0] sm:$0xf]  ;;  %v2779_v32 = vsel %vm2003_vm0, %v2777_v20, %v2775_v30  ;;  %v2323_v28 = vpop.permute.xlu1 %2322   ;;  %v2334_v29 = vpop.permute.xlu0 %2333  }
 0x107   :  { %844 = vst [vmem:[#allocation0 + $0x740] sm:$0xf] %v4179_v31  ;;  %v4184_v33 = vld [vmem:[%s6701_s0 + $0x38c] sm:$0xf]  ;;  %v4189_v34 = vld [vmem:[%s6701_s0 + $0x378] sm:$0xf]  ;;  %2780 = vrot.lane.b32.xlu1 %v2779_v32, %s4566_s10 }
 0x108   :  { %v4194_v35 = vld [vmem:[%s6701_s0 + $0x364] sm:$0xf]  ;;  %v2019_v36 = vld [vmem:[#allocation0 + $0x280] ss:$40 sm:$0xf0]   ;;  %4438 = vst.msk [vmem:[%s6702_s1 + $0x20] sm:$0xff] %vm2314_vm4, %v2323_v28  }
 0x109   :  { %869 = vst [vmem:[#allocation0 + $0x718] sm:$0xf] %v4184_v33  ;;  %894 = vst [vmem:[#allocation0 + $0x6f0] sm:$0xf] %v4189_v34  ;;  %v4199_v38 = vld [vmem:[%s6701_s0 + $0x350] sm:$0xf] }
 0x10a   :  { %919 = vst [vmem:[#allocation0 + $0x6c8] sm:$0xf] %v4194_v35  ;;  %944 = vst [vmem:[#allocation0 + $0x6a0] sm:$0xf] %v4199_v38  ;;  %v4204_v41 = vld [vmem:[%s6701_s0 + $0x33c] sm:$0xf] }
 0x10b   :  { %v4209_v42 = vld [vmem:[%s6701_s0 + $0x328] sm:$0xf]  ;;  %v4014_v43 = vld [vmem:[%s6701_s0 + $0x634] sm:$0xf]  ;;  %969 = vst [vmem:[#allocation0 + $0x678] sm:$0xf] %v4204_v41 }
 0x10c   :  { %v2017_v44 = vld [vmem:[#allocation0 + $0x280] ss:$40 sm:$0xf]   ;;  %994 = vst [vmem:[#allocation0 + $0x650] sm:$0xf] %v4209_v42  ;;  %4439 = vst.msk [vmem:[%s6702_s1 + $0x40] sm:$0xff] %vm2314_vm4, %v2334_v29   ;;  %v2345_v42 = vpop.permute.xlu1 %2344  }
 0x10d   :  { %19 = vst [vmem:[#allocation0 + $0xc68] sm:$0xf] %v4014_v43  ;;  %v4019_v45 = vld [vmem:[%s6701_s0 + $0x620] sm:$0xf]  ;;  %v2021_v46 = vsel %vm2003_vm0, %v2019_v36, %v2017_v44  ;;  %v4024_v47 = vld [vmem:[%s6701_s0 + $0x60c] sm:$0xf]  ;;  %v2356_v43 = vpop.permute.xlu0 %2355  }
 0x10e   :  { %44 = vst [vmem:[#allocation0 + $0xc40] sm:$0xf] %v4019_v45  ;;  %v4029_v48 = vld [vmem:[%s6701_s0 + $0x5f8] sm:$0xf]  ;;  %v4034_v49 = vld [vmem:[%s6701_s0 + $0x5e4] sm:$0xf] }
 0x10f   :  { %4412 = vst.msk [vmem:[%s6702_s1 + $0x10] sm:$0xff] %vm2005_vm1, %v2021_v46   ;;  %v2055_v51 = vld [vmem:[#allocation0 + $0x780] ss:$40 sm:$0xf0]   ;;  %69 = vst [vmem:[#allocation0 + $0xc18] sm:$0xf] %v4024_v47 }
 0x110   :  { %94 = vst [vmem:[#allocation0 + $0xbf0] sm:$0xf] %v4029_v48  ;;  %119 = vst [vmem:[#allocation0 + $0xbc8] sm:$0xf] %v4034_v49  ;;  %v4039_v52 = vld [vmem:[%s6701_s0 + $0x5d0] sm:$0xf] }
 0x111   :  { %4425 = vst.msk [vmem:[%s6702_s1 + $0x10] sm:$0xff] %vm2096_vm2, %v5406_v37   ;;  %v2053_v37 = vld [vmem:[#allocation0 + $0x780] ss:$40 sm:$0xf]   ;;  %144 = vst [vmem:[#allocation0 + $0xba0] sm:$0xf] %v4039_v52 }
 0x112   :  { %v4044_v55 = vld [vmem:[%s6701_s0 + $0x5bc] sm:$0xf]  ;;  %v2057_v56 = vsel %vm2003_vm0, %v2055_v51, %v2053_v37  ;;  %v4049_v57 = vld [vmem:[%s6701_s0 + $0x5a8] sm:$0xf]  ;;  %v4256_v58 = vld [vmem:[%s6701_s0 + $0x26c] sm:$0xf]  ;;  %v2378_v37 = vpop.permute.xlu0 %2377  }
 0x113   :  { %169 = vst [vmem:[#allocation0 + $0xb78] sm:$0xf] %v4044_v55  ;;  %v4261_v59 = vld [vmem:[%s6701_s0 + $0x258] sm:$0xf]  ;;  %4434 = vst.msk [vmem:[%s6702_s1 + $0x10] sm:$0xff] %vm2205_vm3, %v2269_v54   ;;  %v2367_v54 = vpop.permute.xlu1 %2366  }
 0x114   :  { %4416 = vst.msk [vmem:[%s6702_s1 + $0x30] sm:$0xff] %vm2005_vm1, %v2057_v56   ;;  %v2788_v60 = vld [vmem:[#allocation0 + $0x652] ss:$40 sm:$0xf0]   ;;  %194 = vst [vmem:[#allocation0 + $0xb50] sm:$0xf] %v4049_v57 }
 0x115   :  { %1229 = vst [vmem:[#allocation0 + $0x4d8] sm:$0xf] %v4256_v58  ;;  %1254 = vst [vmem:[#allocation0 + $0x4b0] sm:$0xf] %v4261_v59  ;;  %v4266_v61 = vld [vmem:[%s6701_s0 + $0x244] sm:$0xf] }
 0x116   :  { %4426 = vst.msk [vmem:[%s6702_s1 + $0x30] sm:$0xff] %vm2096_vm2, %v5439_v50   ;;  %1279 = vst [vmem:[#allocation0 + $0x488] sm:$0xf] %v4266_v61  ;;  %v4271_v50 = vld [vmem:[%s6701_s0 + $0x230] sm:$0xf] }
 0x117   :  { %v4276_v62 = vld [vmem:[%s6701_s0 + $0x21c] sm:$0xf]  ;;  %v4281_v63 = vld [vmem:[%s6701_s0 + $0x208] sm:$0xf]  ;;  %1304 = vst [vmem:[#allocation0 + $0x460] sm:$0xf] %v4271_v50 }
 0x118   :  { %v2786_v3 = vld [vmem:[#allocation0 + $0x652] ss:$40 sm:$0xf]   ;;  %1329 = vst [vmem:[#allocation0 + $0x438] sm:$0xf] %v4276_v62  ;;  %4435 = vst.msk [vmem:[%s6702_s1 + $0x30] sm:$0xff] %vm2205_vm3, %v2280_v1  }
 0x119   :  { %1354 = vst [vmem:[#allocation0 + $0x410] sm:$0xf] %v4281_v63  ;;  %v4286_v4 = vld [vmem:[%s6701_s0 + $0x1f4] sm:$0xf]  ;;  %v2790_v5 = vsel %vm2003_vm0, %v2788_v60, %v2786_v3  ;;  %v4291_v6 = vld [vmem:[%s6701_s0 + $0x1e0] sm:$0xf]  ;;  %v2400_v3 = vpop.permute.xlu0 %2399  }
 0x11a   :  { %1379 = vst [vmem:[#allocation0 + $0x3e8] sm:$0xf] %v4286_v4  ;;  %v4096_v7 = vld [vmem:[%s6701_s0 + $0x4ec] sm:$0xf]  ;;  %v4101_v8 = vld [vmem:[%s6701_s0 + $0x4d8] sm:$0xf]  ;;  %2791 = vrot.lane.b32.xlu0 %v2790_v5, %s4566_s10 }
 0x11b   :  { %v2799_v9 = vld [vmem:[#allocation0 + $0xb52] ss:$40 sm:$0xf0]   ;;  %1404 = vst [vmem:[#allocation0 + $0x3c0] sm:$0xf] %v4291_v6  ;;  %4440 = vst.msk [vmem:[%s6702_s1 + $0x8] sm:$0xff] %vm2314_vm4, %v2345_v42  }
 0x11c   :  { %429 = vst [vmem:[#allocation0 + $0x9d8] sm:$0xf] %v4096_v7  ;;  %454 = vst [vmem:[#allocation0 + $0x9b0] sm:$0xf] %v4101_v8  ;;  %v4106_v10 = vld [vmem:[%s6701_s0 + $0x4c4] sm:$0xf] }
 0x11d   :  { %479 = vst [vmem:[#allocation0 + $0x988] sm:$0xf] %v4106_v10  ;;  %v4111_v11 = vld [vmem:[%s6701_s0 + $0x4b0] sm:$0xf]  ;;  %v4116_v13 = vld [vmem:[%s6701_s0 + $0x49c] sm:$0xf] }
 0x11e   :  { %v4121_v14 = vld [vmem:[%s6701_s0 + $0x488] sm:$0xf]  ;;  %504 = vst [vmem:[#allocation0 + $0x960] sm:$0xf] %v4111_v11  ;;  %529 = vst [vmem:[#allocation0 + $0x938] sm:$0xf] %v4116_v13  ;;  %v2422_v11 = vpop.permute.xlu0 %2421  }
 0x11f   :  { %554 = vst [vmem:[#allocation0 + $0x910] sm:$0xf] %v4121_v14  ;;  %v4126_v17 = vld [vmem:[%s6701_s0 + $0x474] sm:$0xf]  ;;  %v4131_v18 = vld [vmem:[%s6701_s0 + $0x460] sm:$0xf] }
 0x120   :  { %v4294_v19 = vld [vmem:[%s6701_s0 + $0x1d4] sm:$0xf]  ;;  %v2797_v20 = vld [vmem:[#allocation0 + $0xb52] ss:$40 sm:$0xf]   ;;  %4441 = vst.msk [vmem:[%s6702_s1 + $0x28] sm:$0xff] %vm2314_vm4, %v2356_v43  }
 0x121   :  { %579 = vst [vmem:[#allocation0 + $0x8e8] sm:$0xf] %v4126_v17  ;;  %604 = vst [vmem:[#allocation0 + $0x8c0] sm:$0xf] %v4131_v18  ;;  %v4299_v21 = vld [vmem:[%s6701_s0 + $0x1c0] sm:$0xf]  ;;  %v2801_v22 = vsel %vm2003_vm0, %v2799_v9, %v2797_v20 }
 0x122   :  { %1419 = vst [vmem:[#allocation0 + $0x3a8] sm:$0xf] %v4294_v19  ;;  %1444 = vst [vmem:[#allocation0 + $0x380] sm:$0xf] %v4299_v21  ;;  %v4304_v23 = vld [vmem:[%s6701_s0 + $0x1ac] sm:$0xf]  ;;  %2802 = vrot.lane.b32.xlu1 %v2801_v22, %s4566_s10  ;;  %v2443_v20 = vpop.permute.xlu0 %2442  }
 0x123   :  { %v4309_v24 = vld [vmem:[%s6701_s0 + $0x198] sm:$0xf]  ;;  %v4314_v25 = vld [vmem:[%s6701_s0 + $0x184] sm:$0xf]  ;;  %1469 = vst [vmem:[#allocation0 + $0x358] sm:$0xf] %v4304_v23 }
 0x124   :  { %v2028_v26 = vld [vmem:[#allocation0 + $0x3c0] ss:$40 sm:$0xf0]   ;;  %1494 = vst [vmem:[#allocation0 + $0x330] sm:$0xf] %v4309_v24  ;;  %4442 = vst.msk [vmem:[%s6702_s1 + $0x48] sm:$0xff] %vm2314_vm4, %v2367_v54  }
 0x125   :  { %1519 = vst [vmem:[#allocation0 + $0x308] sm:$0xf] %v4314_v25  ;;  %v4319_v27 = vld [vmem:[%s6701_s0 + $0x170] sm:$0xf]  ;;  %v4324_v30 = vld [vmem:[%s6701_s0 + $0x15c] sm:$0xf] }
 0x126   :  { %1544 = vst [vmem:[#allocation0 + $0x2e0] sm:$0xf] %v4319_v27  ;;  %v4329_v31 = vld [vmem:[%s6701_s0 + $0x148] sm:$0xf]  ;;  %v4134_v32 = vld [vmem:[%s6701_s0 + $0x454] sm:$0xf]  ;;  %v2465_v29 = vpop.permute.xlu0 %2464  }
 0x127   :  { %v2026_v33 = vld [vmem:[#allocation0 + $0x3c0] ss:$40 sm:$0xf]   ;;  %1569 = vst [vmem:[#allocation0 + $0x2b8] sm:$0xf] %v4324_v30  ;;  %4443 = vst.msk [vmem:[%s6702_s1 + $0x10] sm:$0xff] %vm2314_vm4, %v2378_v37  }
 0x128   :  { %1594 = vst [vmem:[#allocation0 + $0x290] sm:$0xf] %v4329_v31  ;;  %619 = vst [vmem:[#allocation0 + $0x8a8] sm:$0xf] %v4134_v32  ;;  %v4139_v34 = vld [vmem:[%s6701_s0 + $0x440] sm:$0xf]  ;;  %v2030_v35 = vsel %vm2003_vm0, %v2028_v26, %v2026_v33 }
 0x129   :  { %644 = vst [vmem:[#allocation0 + $0x880] sm:$0xf] %v4139_v34  ;;  %v4144_v36 = vld [vmem:[%s6701_s0 + $0x42c] sm:$0xf]  ;;  %v4149_v38 = vld [vmem:[%s6701_s0 + $0x418] sm:$0xf] }
 0x12a   :  { %v4154_v39 = vld [vmem:[%s6701_s0 + $0x404] sm:$0xf]  ;;  %4413 = vst.msk [vmem:[%s6702_s1 + $0x18] sm:$0xff] %vm2005_vm1, %v2030_v35   ;;  %v2064_v40 = vld [vmem:[#allocation0 + $0x8c0] ss:$40 sm:$0xf0]  }
 0x12b   :  { %669 = vst [vmem:[#allocation0 + $0x858] sm:$0xf] %v4144_v36  ;;  %694 = vst [vmem:[#allocation0 + $0x830] sm:$0xf] %v4149_v38  ;;  %v4159_v41 = vld [vmem:[%s6701_s0 + $0x3f0] sm:$0xf]  ;;  %v2487_v38 = vpop.permute.xlu0 %2486  }
 0x12c   :  { %719 = vst [vmem:[#allocation0 + $0x808] sm:$0xf] %v4154_v39  ;;  %4427 = vst.msk [vmem:[%s6702_s1 + $0x18] sm:$0xff] %vm2096_vm2, %v5474_v0   ;;  %v2062_v0 = vld [vmem:[#allocation0 + $0x8c0] ss:$40 sm:$0xf]  }
 0x12d   :  { %744 = vst [vmem:[#allocation0 + $0x7e0] sm:$0xf] %v4159_v41  ;;  %v4164_v44 = vld [vmem:[%s6701_s0 + $0x3dc] sm:$0xf]  ;;  %v2066_v45 = vsel %vm2003_vm0, %v2064_v40, %v2062_v0  ;;  %v4169_v46 = vld [vmem:[%s6701_s0 + $0x3c8] sm:$0xf] }
 0x12e   :  { %769 = vst [vmem:[#allocation0 + $0x7b8] sm:$0xf] %v4164_v44  ;;  %v4254_v47 = vld [vmem:[%s6701_s0 + $0x274] sm:$0xf]  ;;  %v4259_v48 = vld [vmem:[%s6701_s0 + $0x260] sm:$0xf] }
 0x12f   :  { %4436 = vst.msk [vmem:[%s6702_s1 + $0x18] sm:$0xff] %vm2205_vm3, %v5665_v2   ;;  %v2810_v49 = vld [vmem:[#allocation0 + $0x292] ss:$40 sm:$0xf0]   ;;  %794 = vst [vmem:[#allocation0 + $0x790] sm:$0xf] %v4169_v46  ;;  %v2389_v2 = vpop.permute.xlu1 %2388  }
 0x130   :  { %4417 = vst.msk [vmem:[%s6702_s1 + $0x38] sm:$0xff] %vm2005_vm1, %v2066_v45   ;;  %1219 = vst [vmem:[#allocation0 + $0x4e8] sm:$0xf] %v4254_v47  ;;  %v4264_v51 = vld [vmem:[%s6701_s0 + $0x24c] sm:$0xf] }
 0x131   :  { %1244 = vst [vmem:[#allocation0 + $0x4c0] sm:$0xf] %v4259_v48  ;;  %4428 = vst.msk [vmem:[%s6702_s1 + $0x38] sm:$0xff] %vm2096_vm2, %v5515_v12   ;;  %v4269_v12 = vld [vmem:[%s6701_s0 + $0x238] sm:$0xf]  ;;  %v2509_v48 = vpop.permute.xlu0 %2508  }
 0x132   :  { %1269 = vst [vmem:[#allocation0 + $0x498] sm:$0xf] %v4264_v51  ;;  %v4274_v52 = vld [vmem:[%s6701_s0 + $0x224] sm:$0xf]  ;;  %v4279_v53 = vld [vmem:[%s6701_s0 + $0x210] sm:$0xf] }
 0x133   :  { %v2808_v55 = vld [vmem:[#allocation0 + $0x292] ss:$40 sm:$0xf]   ;;  %1294 = vst [vmem:[#allocation0 + $0x470] sm:$0xf] %v4269_v12  ;;  %4437 = vst.msk [vmem:[%s6702_s1 + $0x38] sm:$0xff] %vm2205_vm3, %v5697_v15   ;;  %v2411_v10 = vpop.permute.xlu1 %2410  }
 0x134   :  { %1319 = vst [vmem:[#allocation0 + $0x448] sm:$0xf] %v4274_v52  ;;  %1344 = vst [vmem:[#allocation0 + $0x420] sm:$0xf] %v4279_v53  ;;  %v4284_v56 = vld [vmem:[%s6701_s0 + $0x1fc] sm:$0xf]  ;;  %v2812_v57 = vsel %vm2003_vm0, %v2810_v49, %v2808_v55 }
 0x135   :  { %1369 = vst [vmem:[#allocation0 + $0x3f8] sm:$0xf] %v4284_v56  ;;  %v4289_v58 = vld [vmem:[%s6701_s0 + $0x1e8] sm:$0xf]  ;;  %v4094_v59 = vld [vmem:[%s6701_s0 + $0x4f4] sm:$0xf]  ;;  %2813 = vrot.lane.b32.xlu0 %v2812_v57, %s4566_s10 }
 0x136   :  { %v4099_v60 = vld [vmem:[%s6701_s0 + $0x4e0] sm:$0xf]  ;;  %1394 = vst [vmem:[#allocation0 + $0x3d0] sm:$0xf] %v4289_v58  ;;  %419 = vst [vmem:[#allocation0 + $0x9e8] sm:$0xf] %v4094_v59 }
 0x137   :  { %v2821_v61 = vld [vmem:[#allocation0 + $0x792] ss:$40 sm:$0xf0]   ;;  %444 = vst [vmem:[#allocation0 + $0x9c0] sm:$0xf] %v4099_v60  ;;  %4444 = vst.msk [vmem:[%s6702_s1 + $0x30] sm:$0xff] %vm2314_vm4, %v2389_v2   ;;  %v2432_v19 = vpop.permute.xlu1 %2431  }
 0x138   :  { %v4104_v50 = vld [vmem:[%s6701_s0 + $0x4cc] sm:$0xf]  ;;  %v4109_v62 = vld [vmem:[%s6701_s0 + $0x4b8] sm:$0xf]  ;;  %v4114_v63 = vld [vmem:[%s6701_s0 + $0x4a4] sm:$0xf] }
 0x139   :  { %469 = vst [vmem:[#allocation0 + $0x998] sm:$0xf] %v4104_v50  ;;  %v4119_v1 = vld [vmem:[%s6701_s0 + $0x490] sm:$0xf]  ;;  %494 = vst [vmem:[#allocation0 + $0x970] sm:$0xf] %v4109_v62 }
 0x13a   :  { %519 = vst [vmem:[#allocation0 + $0x948] sm:$0xf] %v4114_v63  ;;  %544 = vst [vmem:[#allocation0 + $0x920] sm:$0xf] %v4119_v1  ;;  %v4124_v4 = vld [vmem:[%s6701_s0 + $0x47c] sm:$0xf] }
 0x13b   :  { %v4129_v5 = vld [vmem:[%s6701_s0 + $0x468] sm:$0xf]  ;;  %4445 = vst.msk [vmem:[%s6702_s1 + $0x18] sm:$0xff] %vm2314_vm4, %v2400_v3   ;;  %v4375_v6 = vld [vmem:[%s6701_s0 + $0x90] sm:$0xf]  ;;  %4446 = vst.msk [vmem:[%s6702_s1 + $0x38] sm:$0xff] %vm2314_vm4, %v2411_v10   ;;  %v2454_v28 = vpop.permute.xlu1 %2453  }
 0x13c   :  { %v2819_v7 = vld [vmem:[#allocation0 + $0x792] ss:$40 sm:$0xf]   ;;  %569 = vst [vmem:[#allocation0 + $0x8f8] sm:$0xf] %v4124_v4  ;;  %2424 = vst.msk [vmem:[%s6702_s1] sm:$0xff] %vm2423_vm5, %v2422_v11  }
 0x13d   :  { %594 = vst [vmem:[#allocation0 + $0x8d0] sm:$0xf] %v4129_v5  ;;  %1824 = vst [vmem:[#allocation0 + $0x120] sm:$0xf] %v4375_v6  ;;  %v2823_v8 = vsel %vm2003_vm0, %v2821_v61, %v2819_v7  ;;  %v4380_v55 = vld [vmem:[%s6701_s0 + $0x7c] sm:$0xf]  ;;  %v2531_v61 = vpop.permute.xlu0 %2530  }
 0x13e   :  { %2824 = vrot.lane.b32.xlu1 %v2823_v8, %s4566_s10  ;;  %v2832_v9 = vld [vmem:[#allocation0 + $0x3d2] ss:$40 sm:$0xf0]   ;;  %v2852_v13 = vld [vmem:[#allocation0 + $0x11] ss:$40 sm:$0xf]  }
 0x13f   :  { %v2830_v14 = vld [vmem:[#allocation0 + $0x3d2] ss:$40 sm:$0xf]   ;;  %v2854_v15 = vld [vmem:[#allocation0 + $0x11] ss:$40 sm:$0xf0]   ;;  %v2476_v36 = vpop.permute.xlu1 %2475  }
 0x140   :  { %v2834_v16 = vsel %vm2003_vm0, %v2832_v9, %v2830_v14  ;;  %v2843_v17 = vld [vmem:[#allocation0 + $0x8d2] ss:$40 sm:$0xf0]   ;;  %v2862_v18 = vld [vmem:[#allocation0 + $0x511] ss:$40 sm:$0xf]   ;;  %v2856_v22 = vsel %vm2003_vm0, %v2854_v15, %v2852_v13 }
 0x141   :  { %2835 = vrot.lane.b32.xlu0 %v2834_v16, %s4566_s10  ;;  %v2864_v23 = vld [vmem:[#allocation0 + $0x511] ss:$40 sm:$0xf0]   ;;  %4447 = vst.msk [vmem:[%s6702_s1 + $0x20] sm:$0xff] %vm2423_vm5, %v2432_v19   ;;  %4448 = vst.msk [vmem:[%s6702_s1 + $0x40] sm:$0xff] %vm2423_vm5, %v2443_v20  }
 0x142   :  { %v2873_v25 = vld [vmem:[#allocation0 + $0xa11] ss:$40 sm:$0xf]   ;;  %v2866_v27 = vsel %vm2003_vm0, %v2864_v23, %v2862_v18  ;;  %4449 = vst.msk [vmem:[%s6702_s1 + $0x8] sm:$0xff] %vm2423_vm5, %v2454_v28   ;;  %4450 = vst.msk [vmem:[%s6702_s1 + $0x28] sm:$0xff] %vm2423_vm5, %v2465_v29   ;;  %v2552_v18 = vpop.permute.xlu0 %2551  }
 0x143   :  { %v2875_v26 = vld [vmem:[#allocation0 + $0xa11] ss:$40 sm:$0xf0]   ;;  %4451 = vst.msk [vmem:[%s6702_s1 + $0x48] sm:$0xff] %vm2423_vm5, %v2476_v36   ;;  %4452 = vst.msk [vmem:[%s6702_s1 + $0x10] sm:$0xff] %vm2423_vm5, %v2487_v38   ;;  %v2498_v44 = vpop.permute.xlu1 %2497  }
 0x144   :  { %v2841_v21 = vld [vmem:[#allocation0 + $0x8d2] ss:$40 sm:$0xf]   ;;  %v2877_v30 = vsel %vm2003_vm0, %v2875_v26, %v2873_v25  ;;  %v2884_v31 = vld [vmem:[#allocation0 + $0x151] ss:$40 sm:$0xf]  }
 0x145   :  { %v2845_v24 = vsel %vm2003_vm0, %v2843_v17, %v2841_v21  ;;  %v2886_v32 = vld [vmem:[#allocation0 + $0x151] ss:$40 sm:$0xf0]   ;;  %4453 = vst.msk [vmem:[%s6702_s1 + $0x30] sm:$0xff] %vm2423_vm5, %v2498_v44   ;;  %4454 = vst.msk [vmem:[%s6702_s1 + $0x18] sm:$0xff] %vm2423_vm5, %v2509_v48  }
 0x146   :  { %2846 = vrot.lane.b32.xlu1 %v2845_v24, %s4566_s10  ;;  %s4567_s10 = smov 56   ;;  %v2895_v33 = vld [vmem:[#allocation0 + $0x651] ss:$40 sm:$0xf]   ;;  %v2888_v35 = vsel %vm2003_vm0, %v2886_v32, %v2884_v31  ;;  %1849 = vst [vmem:[#allocation0 + $0xf8] sm:$0xf] %v4380_v55 }
 0x147   :  { %2857 = vrot.lane.b32.xlu0 %v2856_v22, %s4567_s10  ;;  %v2897_v34 = vld [vmem:[#allocation0 + $0x651] ss:$40 sm:$0xf0]   ;;  %v2961_v54 = vld [vmem:[#allocation0 + $0x10] ss:$40 sm:$0xf]   ;;  %v2520_v60 = vpop.permute.xlu1 %2519  }
 0x148   :  { %v2899_v39 = vsel %vm2003_vm0, %v2897_v34, %v2895_v33  ;;  %v2906_v40 = vld [vmem:[#allocation0 + $0xb51] ss:$40 sm:$0xf]   ;;  %v2963_v37 = vld [vmem:[#allocation0 + $0x10] ss:$40 sm:$0xf0]  }
 0x149   :  { %v2908_v41 = vld [vmem:[#allocation0 + $0xb51] ss:$40 sm:$0xf0]   ;;  %v4390_v58 = vld [vmem:[%s6701_s0 + $0x54] sm:$0xf]  ;;  %4455 = vst.msk [vmem:[%s6702_s1 + $0x38] sm:$0xff] %vm2423_vm5, %v2520_v60   ;;  %v2965_v13 = vsel %vm2003_vm0, %v2963_v37, %v2961_v54 }
 0x14a   :  { %2867 = vrot.lane.b32.xlu1 %v2866_v27, %s4567_s10  ;;  %v2917_v42 = vld [vmem:[#allocation0 + $0x291] ss:$40 sm:$0xf]   ;;  %v2910_v0 = vsel %vm2003_vm0, %v2908_v41, %v2906_v40  ;;  %1899 = vst [vmem:[#allocation0 + $0xa8] sm:$0xf] %v4390_v58  ;;  %2533 = vst.msk [vmem:[%s6702_s1] sm:$0xff] %vm2532_vm6, %v2531_v61  }
 0x14b   :  { %2878 = vrot.lane.b32.xlu0 %v2877_v30, %s4567_s10  ;;  %v2919_v43 = vld [vmem:[#allocation0 + $0x291] ss:$40 sm:$0xf0]   ;;  %v4400_v50 = vld [vmem:[%s6701_s0 + $0x2c] sm:$0xf]  ;;  %v2541_v17 = vpop.permute.xlu1 %2540   ;;  %4457 = vst.msk [vmem:[%s6702_s1 + $0x40] sm:$0xff] %vm2532_vm6, %v2552_v18  }
 0x14c   :  { %v2921_v45 = vsel %vm2003_vm0, %v2919_v43, %v2917_v42  ;;  %v2928_v46 = vld [vmem:[#allocation0 + $0x791] ss:$40 sm:$0xf]   ;;  %v4410_v63 = vld [vmem:[%s6701_s0 + $0x4] sm:$0xf]  ;;  %4456 = vst.msk [vmem:[%s6702_s1 + $0x20] sm:$0xff] %vm2532_vm6, %v2541_v17  }
 0x14d   :  { %v2930_v47 = vld [vmem:[#allocation0 + $0x791] ss:$40 sm:$0xf0]   ;;  %v2971_v1 = vld [vmem:[#allocation0 + $0x510] ss:$40 sm:$0xf]  }
 0x14e   :  { %2889 = vrot.lane.b32.xlu1 %v2888_v35, %s4567_s10  ;;  %v2939_v49 = vld [vmem:[#allocation0 + $0x3d1] ss:$40 sm:$0xf]   ;;  %v2932_v53 = vsel %vm2003_vm0, %v2930_v47, %v2928_v46  ;;  %v2973_v2 = vld [vmem:[#allocation0 + $0x510] ss:$40 sm:$0xf0]   ;;  %v2574_v35 = vpop.permute.xlu0 %2573  }
 0x14f   :  { %2900 = vrot.lane.b32.xlu0 %v2899_v39, %s4567_s10  ;;  %v2941_v51 = vld [vmem:[#allocation0 + $0x3d1] ss:$40 sm:$0xf0]   ;;  %1949 = vst [vmem:[#allocation0 + $0x58] sm:$0xf] %v4400_v50  ;;  %v2975_v27 = vsel %vm2003_vm0, %v2973_v2, %v2971_v1  ;;  %v2563_v34 = vpop.permute.xlu1 %2562   ;;  %4459 = vst.msk [vmem:[%s6702_s1 + $0x28] sm:$0xff] %vm2532_vm6, %v2574_v35  }
 0x150   :  { %v2950_v12 = vld [vmem:[#allocation0 + $0x8d1] ss:$40 sm:$0xf]   ;;  %v2943_v56 = vsel %vm2003_vm0, %v2941_v51, %v2939_v49  ;;  %1998 = vst [vmem:[#allocation0 + $0x8] sm:$0xf] %v4410_v63  ;;  %4458 = vst.msk [vmem:[%s6702_s1 + $0x8] sm:$0xff] %vm2532_vm6, %v2563_v34  }
 0x151   :  { %v2952_v52 = vld [vmem:[#allocation0 + $0x8d1] ss:$40 sm:$0xf0]   ;;  %v4220_v4 = vld [vmem:[%s6701_s0 + $0x2fc] sm:$0xf] }
 0x152   :  { %2911 = vrot.lane.b32.xlu1 %v2910_v0, %s4567_s10  ;;  %v4385_v57 = vld [vmem:[%s6701_s0 + $0x68] sm:$0xf]  ;;  %v4395_v59 = vld [vmem:[%s6701_s0 + $0x40] sm:$0xf]  ;;  %v4405_v62 = vld [vmem:[%s6701_s0 + $0x18] sm:$0xf]  ;;  %v2954_v6 = vsel %vm2003_vm0, %v2952_v52, %v2950_v12  ;;  %v2596_v49 = vpop.permute.xlu0 %2595  }
 0x153   :  { %2922 = vrot.lane.b32.xlu0 %v2921_v45, %s4567_s10  ;;  %1874 = vst [vmem:[#allocation0 + $0xd0] sm:$0xf] %v4385_v57  ;;  %1924 = vst [vmem:[#allocation0 + $0x80] sm:$0xf] %v4395_v59  ;;  %v4215_v3 = vld [vmem:[%s6701_s0 + $0x310] sm:$0xf]  ;;  %v2585_v48 = vpop.permute.xlu1 %2584  }
 0x154   :  { %1974 = vst [vmem:[#allocation0 + $0x30] sm:$0xf] %v4405_v62  ;;  %v4225_v5 = vld [vmem:[%s6701_s0 + $0x2e8] sm:$0xf]  ;;  %1024 = vst [vmem:[#allocation0 + $0x620] sm:$0xf] %v4215_v3 }
 0x155   :  { %v2982_v7 = vld [vmem:[#allocation0 + $0xa10] ss:$40 sm:$0xf]   ;;  %1049 = vst [vmem:[#allocation0 + $0x5f8] sm:$0xf] %v4220_v4  ;;  %4460 = vst.msk [vmem:[%s6702_s1 + $0x48] sm:$0xff] %vm2532_vm6, %v2585_v48  }
 0x156   :  { %2933 = vrot.lane.b32.xlu1 %v2932_v53, %s4567_s10  ;;  %v2984_v8 = vld [vmem:[#allocation0 + $0xa10] ss:$40 sm:$0xf0]   ;;  %1074 = vst [vmem:[#allocation0 + $0x5d0] sm:$0xf] %v4225_v5  ;;  %4461 = vst.msk [vmem:[%s6702_s1 + $0x10] sm:$0xff] %vm2532_vm6, %v2596_v49   ;;  %v2618_v63 = vpop.permute.xlu0 %2617  }
 0x157   :  { %2944 = vrot.lane.b32.xlu0 %v2943_v56, %s4567_s10  ;;  %v4230_v9 = vld [vmem:[%s6701_s0 + $0x2d4] sm:$0xf]  ;;  %v4235_v10 = vld [vmem:[%s6701_s0 + $0x2c0] sm:$0xf]  ;;  %v4240_v11 = vld [vmem:[%s6701_s0 + $0x2ac] sm:$0xf]  ;;  %v2986_v31 = vsel %vm2003_vm0, %v2984_v8, %v2982_v7  ;;  %v2607_v62 = vpop.permute.xlu1 %2606  }
 0x158   :  { %1099 = vst [vmem:[#allocation0 + $0x5a8] sm:$0xf] %v4230_v9  ;;  %1124 = vst [vmem:[#allocation0 + $0x580] sm:$0xf] %v4235_v10  ;;  %v4245_v14 = vld [vmem:[%s6701_s0 + $0x298] sm:$0xf] }
 0x159   :  { %1149 = vst [vmem:[#allocation0 + $0x558] sm:$0xf] %v4240_v11  ;;  %v4250_v15 = vld [vmem:[%s6701_s0 + $0x284] sm:$0xf]  ;;  %v4055_v16 = vld [vmem:[%s6701_s0 + $0x590] sm:$0xf] }
 0x15a   :  { %1174 = vst [vmem:[#allocation0 + $0x530] sm:$0xf] %v4245_v14  ;;  %1199 = vst [vmem:[#allocation0 + $0x508] sm:$0xf] %v4250_v15  ;;  %v4060_v19 = vld [vmem:[%s6701_s0 + $0x57c] sm:$0xf]  ;;  %2955 = vrot.lane.b32.xlu1 %v2954_v6, %s4567_s10  ;;  %v2640_v18 = vpop.permute.xlu0 %2639  }
 0x15b   :  { %224 = vst [vmem:[#allocation0 + $0xb20] sm:$0xf] %v4055_v16  ;;  %v4065_v20 = vld [vmem:[%s6701_s0 + $0x568] sm:$0xf]  ;;  %v4070_v21 = vld [vmem:[%s6701_s0 + $0x554] sm:$0xf]  ;;  %2966 = vrot.lane.b32.xlu0 %v2965_v13, %s4568_s12  ;;  %v2629_v17 = vpop.permute.xlu1 %2628  }
 0x15c   :  { %v2993_v22 = vld [vmem:[#allocation0 + $0x150] ss:$40 sm:$0xf]   ;;  %249 = vst [vmem:[#allocation0 + $0xaf8] sm:$0xf] %v4060_v19  ;;  %4462 = vst.msk [vmem:[%s6702_s1 + $0x30] sm:$0xff] %vm2532_vm6, %v2607_v62  }
 0x15d   :  { %v2995_v23 = vld [vmem:[#allocation0 + $0x150] ss:$40 sm:$0xf0]   ;;  %274 = vst [vmem:[#allocation0 + $0xad0] sm:$0xf] %v4065_v20  ;;  %4463 = vst.msk [vmem:[%s6702_s1 + $0x18] sm:$0xff] %vm2532_vm6, %v2618_v63  }
 0x15e   :  { %299 = vst [vmem:[#allocation0 + $0xaa8] sm:$0xf] %v4070_v21  ;;  %v4075_v24 = vld [vmem:[%s6701_s0 + $0x540] sm:$0xf]  ;;  %v4080_v25 = vld [vmem:[%s6701_s0 + $0x52c] sm:$0xf]  ;;  %2976 = vrot.lane.b32.xlu1 %v2975_v27, %s4568_s12  ;;  %v2997_v43 = vsel %vm2003_vm0, %v2995_v23, %v2993_v22  ;;  %v2661_v34 = vpop.permute.xlu0 %2660  }
 0x15f   :  { %v4085_v26 = vld [vmem:[%s6701_s0 + $0x518] sm:$0xf]  ;;  %324 = vst [vmem:[#allocation0 + $0xa80] sm:$0xf] %v4075_v24  ;;  %349 = vst [vmem:[#allocation0 + $0xa58] sm:$0xf] %v4080_v25  ;;  %2987 = vrot.lane.b32.xlu0 %v2986_v31, %s4568_s12 }
 0x160   :  { %374 = vst [vmem:[#allocation0 + $0xa30] sm:$0xf] %v4085_v26  ;;  %v4090_v28 = vld [vmem:[%s6701_s0 + $0x504] sm:$0xf]  ;;  %v4335_v29 = vld [vmem:[%s6701_s0 + $0x130] sm:$0xf] }
 0x161   :  { %v4340_v30 = vld [vmem:[%s6701_s0 + $0x11c] sm:$0xf]  ;;  %v3004_v32 = vld [vmem:[#allocation0 + $0x650] ss:$40 sm:$0xf]   ;;  %4464 = vst.msk [vmem:[%s6702_s1 + $0x38] sm:$0xff] %vm2532_vm6, %v2629_v17  }
 0x162   :  { %399 = vst [vmem:[#allocation0 + $0xa08] sm:$0xf] %v4090_v28  ;;  %1624 = vst [vmem:[#allocation0 + $0x260] sm:$0xf] %v4335_v29  ;;  %v4345_v33 = vld [vmem:[%s6701_s0 + $0x108] sm:$0xf]  ;;  %2998 = vrot.lane.b32.xlu1 %v2997_v43, %s4568_s12  ;;  %v2683_v49 = vpop.permute.xlu0 %2682  }
 0x163   :  { %1649 = vst [vmem:[#allocation0 + $0x238] sm:$0xf] %v4340_v30  ;;  %v3006_v36 = vld [vmem:[#allocation0 + $0x650] ss:$40 sm:$0xf0]   ;;  %2642 = vst.msk [vmem:[%s6702_s1] sm:$0xff] %vm2641_vm7, %v2640_v18  }
 0x164   :  { %1674 = vst [vmem:[#allocation0 + $0x210] sm:$0xf] %v4345_v33  ;;  %v4350_v38 = vld [vmem:[%s6701_s0 + $0xf4] sm:$0xf]  ;;  %v4355_v40 = vld [vmem:[%s6701_s0 + $0xe0] sm:$0xf]  ;;  %v3008_v45 = vsel %vm2003_vm0, %v3006_v36, %v3004_v32  ;;  %v2650_v33 = vpop.permute.xlu1 %2649  }
 0x165   :  { %v3015_v39 = vld [vmem:[#allocation0 + $0xb50] ss:$40 sm:$0xf]   ;;  %1699 = vst [vmem:[#allocation0 + $0x1e8] sm:$0xf] %v4350_v38  ;;  %3009 = vrot.lane.b32.xlu0 %v3008_v45, %s4568_s12  ;;  %4465 = vst.msk [vmem:[%s6702_s1 + $0x20] sm:$0xff] %vm2641_vm7, %v2650_v33  }
 0x166   :  { %v4360_v41 = vld [vmem:[%s6701_s0 + $0xcc] sm:$0xf]  ;;  %v4365_v42 = vld [vmem:[%s6701_s0 + $0xb8] sm:$0xf]  ;;  %1724 = vst [vmem:[#allocation0 + $0x1c0] sm:$0xf] %v4355_v40  ;;  %v2705_v63 = vpop.permute.xlu0 %2704  }
 0x167   :  { %v3017_v0 = vld [vmem:[#allocation0 + $0xb50] ss:$40 sm:$0xf0]   ;;  %1749 = vst [vmem:[#allocation0 + $0x198] sm:$0xf] %v4360_v41  ;;  %4466 = vst.msk [vmem:[%s6702_s1 + $0x40] sm:$0xff] %vm2641_vm7, %v2661_v34  }
 0x168   :  { %1774 = vst [vmem:[#allocation0 + $0x170] sm:$0xf] %v4365_v42  ;;  %v4370_v44 = vld [vmem:[%s6701_s0 + $0xa4] sm:$0xf]  ;;  %v4175_v47 = vld [vmem:[%s6701_s0 + $0x3b0] sm:$0xf]  ;;  %v3019_v56 = vsel %vm2003_vm0, %v3017_v0, %v3015_v39  ;;  %v2672_v48 = vpop.permute.xlu1 %2671  }
 0x169   :  { %v3026_v46 = vld [vmem:[#allocation0 + $0x290] ss:$40 sm:$0xf]   ;;  %1799 = vst [vmem:[#allocation0 + $0x148] sm:$0xf] %v4370_v44  ;;  %3020 = vrot.lane.b32.xlu1 %v3019_v56, %s4568_s12  ;;  %4467 = vst.msk [vmem:[%s6702_s1 + $0x8] sm:$0xff] %vm2641_vm7, %v2672_v48  }
 0x16a   :  { %v3028_v51 = vld [vmem:[#allocation0 + $0x290] ss:$40 sm:$0xf0]   ;;  %824 = vst [vmem:[#allocation0 + $0x760] sm:$0xf] %v4175_v47  ;;  %4468 = vst.msk [vmem:[%s6702_s1 + $0x28] sm:$0xff] %vm2641_vm7, %v2683_v49  }
 0x16b   :  { %v4180_v12 = vld [vmem:[%s6701_s0 + $0x39c] sm:$0xf]  ;;  %v3037_v52 = vld [vmem:[#allocation0 + $0x790] ss:$40 sm:$0xf]   ;;  %v3030_v59 = vsel %vm2003_vm0, %v3028_v51, %v3026_v46  ;;  %4470 = vst.msk [vmem:[%s6702_s1 + $0x10] sm:$0xff] %vm2641_vm7, %v2705_v63  }
 0x16c   :  { %v3039_v53 = vld [vmem:[#allocation0 + $0x790] ss:$40 sm:$0xf0]   ;;  %849 = vst [vmem:[#allocation0 + $0x738] sm:$0xf] %v4180_v12  ;;  %3031 = vrot.lane.b32.xlu0 %v3030_v59, %s4568_s12  ;;  %v2694_v62 = vpop.permute.xlu1 %2693  }
 0x16d   :  { %v4185_v54 = vld [vmem:[%s6701_s0 + $0x388] sm:$0xf]  ;;  %v4190_v37 = vld [vmem:[%s6701_s0 + $0x374] sm:$0xf]  ;;  %v4195_v55 = vld [vmem:[%s6701_s0 + $0x360] sm:$0xf]  ;;  %v3041_v8 = vsel %vm2003_vm0, %v3039_v53, %v3037_v52 }
 0x16e   :  { %v3048_v57 = vld [vmem:[#allocation0 + $0x3d0] ss:$40 sm:$0xf]   ;;  %874 = vst [vmem:[#allocation0 + $0x710] sm:$0xf] %v4185_v54  ;;  %3042 = vrot.lane.b32.xlu1 %v3041_v8, %s4568_s12  ;;  %4469 = vst.msk [vmem:[%s6702_s1 + $0x48] sm:$0xff] %vm2641_vm7, %v2694_v62  }
 0x16f   :  { %899 = vst [vmem:[#allocation0 + $0x6e8] sm:$0xf] %v4190_v37  ;;  %924 = vst [vmem:[#allocation0 + $0x6c0] sm:$0xf] %v4195_v55  ;;  %v4200_v58 = vld [vmem:[%s6701_s0 + $0x34c] sm:$0xf] }
 0x170   :  { %949 = vst [vmem:[#allocation0 + $0x698] sm:$0xf] %v4200_v58  ;;  %v4205_v60 = vld [vmem:[%s6701_s0 + $0x338] sm:$0xf]  ;;  %v4210_v61 = vld [vmem:[%s6701_s0 + $0x324] sm:$0xf] }
 0x171   :  { %v4015_v50 = vld [vmem:[%s6701_s0 + $0x630] sm:$0xf]  ;;  %974 = vst [vmem:[#allocation0 + $0x670] sm:$0xf] %v4205_v60  ;;  %999 = vst [vmem:[#allocation0 + $0x648] sm:$0xf] %v4210_v61 }
 0x172   :  { %v3050_v1 = vld [vmem:[#allocation0 + $0x3d0] ss:$40 sm:$0xf0]   ;;  %24 = vst [vmem:[#allocation0 + $0xc60] sm:$0xf] %v4015_v50 }
 0x173   :  { %v4020_v2 = vld [vmem:[%s6701_s0 + $0x61c] sm:$0xf]  ;;  %v3059_v3 = vld [vmem:[#allocation0 + $0x8d0] ss:$40 sm:$0xf]   ;;  %v3052_v13 = vsel %vm2003_vm0, %v3050_v1, %v3048_v57 }
 0x174   :  { %v3061_v4 = vld [vmem:[#allocation0 + $0x8d0] ss:$40 sm:$0xf0]   ;;  %49 = vst [vmem:[#allocation0 + $0xc38] sm:$0xf] %v4020_v2  ;;  %3053 = vrot.lane.b32.xlu0 %v3052_v13, %s4568_s12 }
 0x175   :  { %v4025_v5 = vld [vmem:[%s6701_s0 + $0x608] sm:$0xf]  ;;  %v4030_v6 = vld [vmem:[%s6701_s0 + $0x5f4] sm:$0xf]  ;;  %v4035_v7 = vld [vmem:[%s6701_s0 + $0x5e0] sm:$0xf]  ;;  %v3063_v25 = vsel %vm2003_vm0, %v3061_v4, %v3059_v3 }
 0x176   :  { %v3070_v9 = vld [vmem:[#allocation0 + $0xa] ss:$40 sm:$0xf]   ;;  %74 = vst [vmem:[#allocation0 + $0xc10] sm:$0xf] %v4025_v5  ;;  %3064 = vrot.lane.b32.xlu1 %v3063_v25, %s4568_s12  ;;  %s4570_s12 = smov 32  }
 0x177   :  { %v3072_v10 = vld [vmem:[#allocation0 + $0xa] ss:$40 sm:$0xf0]   ;;  %99 = vst [vmem:[#allocation0 + $0xbe8] sm:$0xf] %v4030_v6 }
 0x178   :  { %124 = vst [vmem:[#allocation0 + $0xbc0] sm:$0xf] %v4035_v7  ;;  %v4040_v11 = vld [vmem:[%s6701_s0 + $0x5cc] sm:$0xf]  ;;  %v4045_v14 = vld [vmem:[%s6701_s0 + $0x5b8] sm:$0xf]  ;;  %v3074_v30 = vsel %vm2003_vm0, %v3072_v10, %v3070_v9 }
 0x179   :  { %149 = vst [vmem:[#allocation0 + $0xb98] sm:$0xf] %v4040_v11  ;;  %v4050_v15 = vld [vmem:[%s6701_s0 + $0x5a4] sm:$0xf]  ;;  %v4295_v16 = vld [vmem:[%s6701_s0 + $0x1d0] sm:$0xf]  ;;  %3075 = vrot.lane.b32.xlu0 %v3074_v30, %s4569_s24 }
 0x17a   :  { %174 = vst [vmem:[#allocation0 + $0xb70] sm:$0xf] %v4045_v14  ;;  %199 = vst [vmem:[#allocation0 + $0xb48] sm:$0xf] %v4050_v15  ;;  %v4300_v19 = vld [vmem:[%s6701_s0 + $0x1bc] sm:$0xf]  ;;  %v2716_v14 = vpop.permute.xlu1 %2715   ;;  %v2727_v15 = vpop.permute.xlu0 %2726  }
 0x17b   :  { %1424 = vst [vmem:[#allocation0 + $0x3a0] sm:$0xf] %v4295_v16  ;;  %v4305_v20 = vld [vmem:[%s6701_s0 + $0x1a8] sm:$0xf]  ;;  %v4310_v21 = vld [vmem:[%s6701_s0 + $0x194] sm:$0xf] }
 0x17c   :  { %v3080_v22 = vld [vmem:[#allocation0 + $0x50a] ss:$40 sm:$0xf]   ;;  %1449 = vst [vmem:[#allocation0 + $0x378] sm:$0xf] %v4300_v19  ;;  %4471 = vst.msk [vmem:[%s6702_s1 + $0x30] sm:$0xff] %vm2641_vm7, %v2716_v14  }
 0x17d   :  { %v3082_v23 = vld [vmem:[#allocation0 + $0x50a] ss:$40 sm:$0xf0]   ;;  %1474 = vst [vmem:[#allocation0 + $0x350] sm:$0xf] %v4305_v20  ;;  %4472 = vst.msk [vmem:[%s6702_s1 + $0x18] sm:$0xff] %vm2641_vm7, %v2727_v15  }
 0x17e   :  { %1499 = vst [vmem:[#allocation0 + $0x328] sm:$0xf] %v4310_v21  ;;  %v4315_v24 = vld [vmem:[%s6701_s0 + $0x180] sm:$0xf]  ;;  %v4320_v27 = vld [vmem:[%s6701_s0 + $0x16c] sm:$0xf]  ;;  %v3084_v42 = vsel %vm2003_vm0, %v3082_v23, %v3080_v22  ;;  %v2738_v19 = vpop.permute.xlu1 %2737   ;;  %v2749_v20 = vpop.permute.xlu0 %2748  }
 0x17f   :  { %v3093_v26 = vld [vmem:[#allocation0 + $0xa0a] ss:$40 sm:$0xf0]   ;;  %1524 = vst [vmem:[#allocation0 + $0x300] sm:$0xf] %v4315_v24  ;;  %3085 = vrot.lane.b32.xlu1 %v3084_v42, %s4569_s24  ;;  %4473 = vst.msk [vmem:[%s6702_s1 + $0x38] sm:$0xff] %vm2641_vm7, %v2738_v19  }
 0x180   :  { %v4325_v28 = vld [vmem:[%s6701_s0 + $0x158] sm:$0xf]  ;;  %v4330_v29 = vld [vmem:[%s6701_s0 + $0x144] sm:$0xf]  ;;  %1549 = vst [vmem:[#allocation0 + $0x2d8] sm:$0xf] %v4320_v27 }
 0x181   :  { %v3091_v31 = vld [vmem:[#allocation0 + $0xa0a] ss:$40 sm:$0xf]   ;;  %1574 = vst [vmem:[#allocation0 + $0x2b0] sm:$0xf] %v4325_v28  ;;  %2751 = vst.msk [vmem:[%s6702_s1] sm:$0xff] %vm2750_vm8, %v2749_v20  }
 0x182   :  { %1599 = vst [vmem:[#allocation0 + $0x288] sm:$0xf] %v4330_v29  ;;  %v4135_v32 = vld [vmem:[%s6701_s0 + $0x450] sm:$0xf]  ;;  %v4140_v35 = vld [vmem:[%s6701_s0 + $0x43c] sm:$0xf]  ;;  %v3095_v45 = vsel %vm2003_vm0, %v3093_v26, %v3091_v31  ;;  %v2770_v49 = vpop.permute.xlu0 %2769  }
 0x183   :  { %624 = vst [vmem:[#allocation0 + $0x8a0] sm:$0xf] %v4135_v32  ;;  %v4145_v36 = vld [vmem:[%s6701_s0 + $0x428] sm:$0xf]  ;;  %v4150_v38 = vld [vmem:[%s6701_s0 + $0x414] sm:$0xf]  ;;  %3096 = vrot.lane.b32.xlu0 %v3095_v45, %s4569_s24  ;;  %v2759_v32 = vpop.permute.xlu1 %2758  }
 0x184   :  { %v3102_v39 = vld [vmem:[#allocation0 + $0x14a] ss:$40 sm:$0xf]   ;;  %649 = vst [vmem:[#allocation0 + $0x878] sm:$0xf] %v4140_v35  ;;  %4474 = vst.msk [vmem:[%s6702_s1 + $0x20] sm:$0xff] %vm2750_vm8, %v2759_v32  }
 0x185   :  { %v3104_v40 = vld [vmem:[#allocation0 + $0x14a] ss:$40 sm:$0xf0]   ;;  %674 = vst [vmem:[#allocation0 + $0x850] sm:$0xf] %v4145_v36  ;;  %4475 = vst.msk [vmem:[%s6702_s1 + $0x40] sm:$0xff] %vm2750_vm8, %v2770_v49  }
 0x186   :  { %699 = vst [vmem:[#allocation0 + $0x828] sm:$0xf] %v4150_v38  ;;  %v4155_v41 = vld [vmem:[%s6701_s0 + $0x400] sm:$0xf]  ;;  %v4160_v43 = vld [vmem:[%s6701_s0 + $0x3ec] sm:$0xf]  ;;  %v3106_v56 = vsel %vm2003_vm0, %v3104_v40, %v3102_v39 }
 0x187   :  { %724 = vst [vmem:[#allocation0 + $0x800] sm:$0xf] %v4155_v41  ;;  %v4165_v0 = vld [vmem:[%s6701_s0 + $0x3d8] sm:$0xf]  ;;  %v4170_v44 = vld [vmem:[%s6701_s0 + $0x3c4] sm:$0xf]  ;;  %3107 = vrot.lane.b32.xlu1 %v3106_v56, %s4569_s24 }
 0x188   :  { %v3115_v46 = vld [vmem:[#allocation0 + $0x64a] ss:$40 sm:$0xf0]   ;;  %749 = vst [vmem:[#allocation0 + $0x7d8] sm:$0xf] %v4160_v43 }
 0x189   :  { %774 = vst [vmem:[#allocation0 + $0x7b0] sm:$0xf] %v4165_v0  ;;  %799 = vst [vmem:[#allocation0 + $0x788] sm:$0xf] %v4170_v44  ;;  %v4255_v47 = vld [vmem:[%s6701_s0 + $0x270] sm:$0xf] }
 0x18a   :  { %v3113_v51 = vld [vmem:[#allocation0 + $0x64a] ss:$40 sm:$0xf]   ;;  %1224 = vst [vmem:[#allocation0 + $0x4e0] sm:$0xf] %v4255_v47 }
 0x18b   :  { %v4260_v12 = vld [vmem:[%s6701_s0 + $0x25c] sm:$0xf]  ;;  %v3124_v52 = vld [vmem:[#allocation0 + $0xb4a] ss:$40 sm:$0xf]   ;;  %v3117_v59 = vsel %vm2003_vm0, %v3115_v46, %v3113_v51 }
 0x18c   :  { %v3126_v53 = vld [vmem:[#allocation0 + $0xb4a] ss:$40 sm:$0xf0]   ;;  %1249 = vst [vmem:[#allocation0 + $0x4b8] sm:$0xf] %v4260_v12  ;;  %3118 = vrot.lane.b32.xlu0 %v3117_v59, %s4569_s24 }
 0x18d   :  { %v4265_v54 = vld [vmem:[%s6701_s0 + $0x248] sm:$0xf]  ;;  %v4270_v37 = vld [vmem:[%s6701_s0 + $0x234] sm:$0xf]  ;;  %v4275_v55 = vld [vmem:[%s6701_s0 + $0x220] sm:$0xf]  ;;  %v3128_v7 = vsel %vm2003_vm0, %v3126_v53, %v3124_v52 }
 0x18e   :  { %v3137_v57 = vld [vmem:[#allocation0 + $0x28a] ss:$40 sm:$0xf0]   ;;  %1274 = vst [vmem:[#allocation0 + $0x490] sm:$0xf] %v4265_v54  ;;  %3129 = vrot.lane.b32.xlu1 %v3128_v7, %s4569_s24 }
 0x18f   :  { %1299 = vst [vmem:[#allocation0 + $0x468] sm:$0xf] %v4270_v37  ;;  %1324 = vst [vmem:[#allocation0 + $0x440] sm:$0xf] %v4275_v55  ;;  %v4280_v58 = vld [vmem:[%s6701_s0 + $0x20c] sm:$0xf] }
 0x190   :  { %1349 = vst [vmem:[#allocation0 + $0x418] sm:$0xf] %v4280_v58  ;;  %v4285_v60 = vld [vmem:[%s6701_s0 + $0x1f8] sm:$0xf]  ;;  %v4290_v61 = vld [vmem:[%s6701_s0 + $0x1e4] sm:$0xf] }
 0x191   :  { %v4095_v50 = vld [vmem:[%s6701_s0 + $0x4f0] sm:$0xf]  ;;  %1374 = vst [vmem:[#allocation0 + $0x3f0] sm:$0xf] %v4285_v60  ;;  %1399 = vst [vmem:[#allocation0 + $0x3c8] sm:$0xf] %v4290_v61 }
 0x192   :  { %v3135_v1 = vld [vmem:[#allocation0 + $0x28a] ss:$40 sm:$0xf]   ;;  %424 = vst [vmem:[#allocation0 + $0x9e0] sm:$0xf] %v4095_v50 }
 0x193   :  { %v4100_v2 = vld [vmem:[%s6701_s0 + $0x4dc] sm:$0xf]  ;;  %v3148_v3 = vld [vmem:[#allocation0 + $0x78a] ss:$40 sm:$0xf0]   ;;  %v3139_v10 = vsel %vm2003_vm0, %v3137_v57, %v3135_v1  ;;  %v2781_v57 = vpop.permute.xlu1 %2780  }
 0x194   :  { %449 = vst [vmem:[#allocation0 + $0x9b8] sm:$0xf] %v4100_v2  ;;  %v4105_v4 = vld [vmem:[%s6701_s0 + $0x4c8] sm:$0xf]  ;;  %v4110_v5 = vld [vmem:[%s6701_s0 + $0x4b4] sm:$0xf]  ;;  %3140 = vrot.lane.b32.xlu0 %v3139_v10, %s4569_s24  ;;  %v2792_v10 = vpop.permute.xlu0 %2791  }
 0x195   :  { %v4115_v6 = vld [vmem:[%s6701_s0 + $0x4a0] sm:$0xf]  ;;  %474 = vst [vmem:[#allocation0 + $0x990] sm:$0xf] %v4105_v4  ;;  %499 = vst [vmem:[#allocation0 + $0x968] sm:$0xf] %v4110_v5 }
 0x196   :  { %v3146_v8 = vld [vmem:[#allocation0 + $0x78a] ss:$40 sm:$0xf]   ;;  %524 = vst [vmem:[#allocation0 + $0x940] sm:$0xf] %v4115_v6  ;;  %4476 = vst.msk [vmem:[%s6702_s1 + $0x8] sm:$0xff] %vm2750_vm8, %v2781_v57  }
 0x197   :  { %v4120_v9 = vld [vmem:[%s6701_s0 + $0x48c] sm:$0xf]  ;;  %v4125_v11 = vld [vmem:[%s6701_s0 + $0x478] sm:$0xf]  ;;  %v4130_v13 = vld [vmem:[%s6701_s0 + $0x464] sm:$0xf]  ;;  %v3150_v17 = vsel %vm2003_vm0, %v3148_v3, %v3146_v8  ;;  %v2803_v20 = vpop.permute.xlu1 %2802  }
 0x198   :  { %549 = vst [vmem:[#allocation0 + $0x918] sm:$0xf] %v4120_v9  ;;  %574 = vst [vmem:[#allocation0 + $0x8f0] sm:$0xf] %v4125_v11  ;;  %3151 = vrot.lane.b32.xlu1 %v3150_v17, %s4569_s24 }
 0x199   :  { %599 = vst [vmem:[#allocation0 + $0x8c8] sm:$0xf] %v4130_v13  ;;  %v3159_v16 = vld [vmem:[#allocation0 + $0x3ca] ss:$40 sm:$0xf0]   ;;  %4477 = vst.msk [vmem:[%s6702_s1 + $0x28] sm:$0xff] %vm2750_vm8, %v2792_v10  }
 0x19a   :  { %v3157_v18 = vld [vmem:[#allocation0 + $0x3ca] ss:$40 sm:$0xf]   ;;  %v3179_v22 = vld [vmem:[#allocation0 + $0x9] ss:$40 sm:$0xf]  }
 0x19b   :  { %v3161_v21 = vsel %vm2003_vm0, %v3159_v16, %v3157_v18  ;;  %v3181_v23 = vld [vmem:[#allocation0 + $0x9] ss:$40 sm:$0xf0]   ;;  %v3288_v55 = vld [vmem:[#allocation0 + $0x8] ss:$40 sm:$0xf]  }
 0x19c   :  { %v3170_v24 = vld [vmem:[#allocation0 + $0x8ca] ss:$40 sm:$0xf0]   ;;  %3162 = vrot.lane.b32.xlu0 %v3161_v21, %s4569_s24  ;;  %v3189_v25 = vld [vmem:[#allocation0 + $0x509] ss:$40 sm:$0xf]   ;;  %v3183_v27 = vsel %vm2003_vm0, %v3181_v23, %v3179_v22 }
 0x19d   :  { %v3191_v28 = vld [vmem:[#allocation0 + $0x509] ss:$40 sm:$0xf0]   ;;  %v3290_v56 = vld [vmem:[#allocation0 + $0x8] ss:$40 sm:$0xf0]  }
 0x19e   :  { %v3200_v30 = vld [vmem:[#allocation0 + $0xa09] ss:$40 sm:$0xf]   ;;  %v3193_v33 = vsel %vm2003_vm0, %v3191_v28, %v3189_v25  ;;  %v3292_v59 = vsel %vm2003_vm0, %v3290_v56, %v3288_v55  ;;  %v3298_v60 = vld [vmem:[#allocation0 + $0x508] ss:$40 sm:$0xf]  }
 0x19f   :  { %v3202_v31 = vld [vmem:[#allocation0 + $0xa09] ss:$40 sm:$0xf0]   ;;  %v3300_v61 = vld [vmem:[#allocation0 + $0x508] ss:$40 sm:$0xf0]  }
 0x1a0   :  { %v3168_v26 = vld [vmem:[#allocation0 + $0x8ca] ss:$40 sm:$0xf]   ;;  %3184 = vrot.lane.b32.xlu0 %v3183_v27, %s4570_s12  ;;  %v3204_v34 = vsel %vm2003_vm0, %v3202_v31, %v3200_v30  ;;  %v3211_v35 = vld [vmem:[#allocation0 + $0x149] ss:$40 sm:$0xf]   ;;  %v3302_v63 = vsel %vm2003_vm0, %v3300_v61, %v3298_v60 }
 0x1a1   :  { %v3172_v29 = vsel %vm2003_vm0, %v3170_v24, %v3168_v26  ;;  %v3213_v36 = vld [vmem:[#allocation0 + $0x149] ss:$40 sm:$0xf0]   ;;  %v3309_v50 = vld [vmem:[#allocation0 + $0xa08] ss:$40 sm:$0xf]  }
 0x1a2   :  { %3173 = vrot.lane.b32.xlu1 %v3172_v29, %s4569_s24  ;;  %v3222_v38 = vld [vmem:[#allocation0 + $0x649] ss:$40 sm:$0xf]   ;;  %v3215_v40 = vsel %vm2003_vm0, %v3213_v36, %v3211_v35  ;;  %v3311_v62 = vld [vmem:[#allocation0 + $0xa08] ss:$40 sm:$0xf0]  }
 0x1a3   :  { %v3224_v39 = vld [vmem:[#allocation0 + $0x649] ss:$40 sm:$0xf0]   ;;  %v3313_v1 = vsel %vm2003_vm0, %v3311_v62, %v3309_v50  ;;  %v3320_v2 = vld [vmem:[#allocation0 + $0x148] ss:$40 sm:$0xf]  }
 0x1a4   :  { %3205 = vrot.lane.b32.xlu0 %v3204_v34, %s4570_s12  ;;  %v3226_v41 = vsel %vm2003_vm0, %v3224_v39, %v3222_v38  ;;  %v3233_v42 = vld [vmem:[#allocation0 + $0xb49] ss:$40 sm:$0xf]   ;;  %v3322_v3 = vld [vmem:[#allocation0 + $0x148] ss:$40 sm:$0xf0]  }
 0x1a5   :  { %v3235_v43 = vld [vmem:[#allocation0 + $0xb49] ss:$40 sm:$0xf0]   ;;  %v3331_v4 = vld [vmem:[#allocation0 + $0x648] ss:$40 sm:$0xf]   ;;  %v3324_v6 = vsel %vm2003_vm0, %v3322_v3, %v3320_v2 }
 0x1a6   :  { %3194 = vrot.lane.b32.xlu1 %v3193_v33, %s4570_s12  ;;  %v3244_v0 = vld [vmem:[#allocation0 + $0x289] ss:$40 sm:$0xf]   ;;  %v3237_v45 = vsel %vm2003_vm0, %v3235_v43, %v3233_v42  ;;  %v3333_v5 = vld [vmem:[#allocation0 + $0x648] ss:$40 sm:$0xf0]  }
 0x1a7   :  { %v3246_v44 = vld [vmem:[#allocation0 + $0x289] ss:$40 sm:$0xf0]   ;;  %v3335_v7 = vsel %vm2003_vm0, %v3333_v5, %v3331_v4  ;;  %v3342_v8 = vld [vmem:[#allocation0 + $0xb48] ss:$40 sm:$0xf]   ;;  %v2814_v38 = vpop.permute.xlu0 %2813  }
 0x1a8   :  { %3227 = vrot.lane.b32.xlu0 %v3226_v41, %s4570_s12  ;;  %v3248_v46 = vsel %vm2003_vm0, %v3246_v44, %v3244_v0  ;;  %v3255_v47 = vld [vmem:[#allocation0 + $0x789] ss:$40 sm:$0xf]   ;;  %v3344_v9 = vld [vmem:[#allocation0 + $0xb48] ss:$40 sm:$0xf0]  }
 0x1a9   :  { %v3257_v48 = vld [vmem:[#allocation0 + $0x789] ss:$40 sm:$0xf0]   ;;  %v3353_v11 = vld [vmem:[#allocation0 + $0x288] ss:$40 sm:$0xf]   ;;  %v3346_v14 = vsel %vm2003_vm0, %v3344_v9, %v3342_v8 }
 0x1aa   :  { %3216 = vrot.lane.b32.xlu1 %v3215_v40, %s4570_s12  ;;  %v3266_v51 = vld [vmem:[#allocation0 + $0x3c9] ss:$40 sm:$0xf]   ;;  %v3259_v52 = vsel %vm2003_vm0, %v3257_v48, %v3255_v47  ;;  %v3355_v13 = vld [vmem:[#allocation0 + $0x288] ss:$40 sm:$0xf0]  }
 0x1ab   :  { %v3268_v12 = vld [vmem:[#allocation0 + $0x3c9] ss:$40 sm:$0xf0]   ;;  %v3357_v15 = vsel %vm2003_vm0, %v3355_v13, %v3353_v11  ;;  %v3364_v16 = vld [vmem:[#allocation0 + $0x788] ss:$40 sm:$0xf]  }
 0x1ac   :  { %3249 = vrot.lane.b32.xlu0 %v3248_v46, %s4570_s12  ;;  %v3270_v53 = vsel %vm2003_vm0, %v3268_v12, %v3266_v51  ;;  %v3277_v54 = vld [vmem:[#allocation0 + $0x8c9] ss:$40 sm:$0xf]   ;;  %v3366_v17 = vld [vmem:[#allocation0 + $0x788] ss:$40 sm:$0xf0]  }
 0x1ad   :  { %v3279_v37 = vld [vmem:[#allocation0 + $0x8c9] ss:$40 sm:$0xf0]   ;;  %v3375_v18 = vld [vmem:[#allocation0 + $0x3c8] ss:$40 sm:$0xf]   ;;  %v3368_v21 = vsel %vm2003_vm0, %v3366_v17, %v3364_v16 }
 0x1ae   :  { %3238 = vrot.lane.b32.xlu1 %v3237_v45, %s4570_s12  ;;  %v3281_v58 = vsel %vm2003_vm0, %v3279_v37, %v3277_v54  ;;  %v3377_v19 = vld [vmem:[#allocation0 + $0x3c8] ss:$40 sm:$0xf0]   ;;  %4478 = vst.msk [vmem:[%s6702_s1 + $0x48] sm:$0xff] %vm2750_vm8, %v2803_v20   ;;  %4479 = vst.msk [vmem:[%s6702_s1 + $0x10] sm:$0xff] %vm2750_vm8, %v2814_v38  }
 0x1af   :  { %v3379_v22 = vsel %vm2003_vm0, %v3377_v19, %v3375_v18  ;;  %v3386_v23 = vld [vmem:[#allocation0 + $0x8c8] ss:$40 sm:$0xf]   ;;  %v3397_v25 = vld [vmem:[#allocation0 + $0x2] ss:$40 sm:$0xf]  }
 0x1b0   :  { %3271 = vrot.lane.b32.xlu0 %v3270_v53, %s4570_s12  ;;  %v3388_v24 = vld [vmem:[#allocation0 + $0x8c8] ss:$40 sm:$0xf0]   ;;  %v3399_v26 = vld [vmem:[#allocation0 + $0x2] ss:$40 sm:$0xf0]   ;;  %v2825_v44 = vpop.permute.xlu1 %2824  }
 0x1b1   :  { %v3390_v27 = vsel %vm2003_vm0, %v3388_v24, %v3386_v23  ;;  %v3401_v28 = vsel %vm2003_vm0, %v3399_v26, %v3397_v25  ;;  %v3407_v29 = vld [vmem:[#allocation0 + $0x502] ss:$40 sm:$0xf]   ;;  %4480 = vst.msk [vmem:[%s6702_s1 + $0x30] sm:$0xff] %vm2750_vm8, %v2825_v44  }
 0x1b2   :  { %3260 = vrot.lane.b32.xlu1 %v3259_v52, %s4570_s12  ;;  %v3409_v30 = vld [vmem:[#allocation0 + $0x502] ss:$40 sm:$0xf0]   ;;  %v3508_v60 = vld [vmem:[#allocation0 + $0x1] ss:$40 sm:$0xf0]  }
 0x1b3   :  { %v3418_v31 = vld [vmem:[#allocation0 + $0xa02] ss:$40 sm:$0xf]   ;;  %v3411_v33 = vsel %vm2003_vm0, %v3409_v30, %v3407_v29  ;;  %v2836_v12 = vpop.permute.xlu0 %2835   ;;  %v3527_v3 = vld [vmem:[#allocation0 + $0xa01] ss:$40 sm:$0xf]  }
 0x1b4   :  { %3293 = vrot.lane.b32.xlu0 %v3292_v59, %s4571_s28  ;;  %v3420_v32 = vld [vmem:[#allocation0 + $0xa02] ss:$40 sm:$0xf0]   ;;  %4481 = vst.msk [vmem:[%s6702_s1 + $0x18] sm:$0xff] %vm2750_vm8, %v2836_v12  }
 0x1b5   :  { %v3422_v34 = vsel %vm2003_vm0, %v3420_v32, %v3418_v31  ;;  %v3429_v35 = vld [vmem:[#allocation0 + $0x142] ss:$40 sm:$0xf]   ;;  %v3506_v59 = vld [vmem:[#allocation0 + $0x1] ss:$40 sm:$0xf]  }
 0x1b6   :  { %3282 = vrot.lane.b32.xlu1 %v3281_v58, %s4570_s12  ;;  %v3431_v36 = vld [vmem:[#allocation0 + $0x142] ss:$40 sm:$0xf0]   ;;  %v3510_v62 = vsel %vm2003_vm0, %v3508_v60, %v3506_v59  ;;  %v3529_v4 = vld [vmem:[#allocation0 + $0xa01] ss:$40 sm:$0xf0]  }
 0x1b7   :  { %v3440_v39 = vld [vmem:[#allocation0 + $0x642] ss:$40 sm:$0xf]   ;;  %v3433_v41 = vsel %vm2003_vm0, %v3431_v36, %v3429_v35  ;;  %v3538_v8 = vld [vmem:[#allocation0 + $0x141] ss:$40 sm:$0xf]  }
 0x1b8   :  { %3314 = vrot.lane.b32.xlu0 %v3313_v1, %s4571_s28  ;;  %v3442_v40 = vld [vmem:[#allocation0 + $0x642] ss:$40 sm:$0xf0]   ;;  %v2847_v37 = vpop.permute.xlu1 %2846   ;;  %v3518_v1 = vld [vmem:[#allocation0 + $0x501] ss:$40 sm:$0xf0]  }
 0x1b9   :  { %v3444_v42 = vsel %vm2003_vm0, %v3442_v40, %v3440_v39  ;;  %v3451_v43 = vld [vmem:[#allocation0 + $0xb42] ss:$40 sm:$0xf]   ;;  %4482 = vst.msk [vmem:[%s6702_s1 + $0x38] sm:$0xff] %vm2750_vm8, %v2847_v37   ;;  %v2858_v58 = vpop.permute.xlu0 %2857  }
 0x1ba   :  { %3303 = vrot.lane.b32.xlu1 %v3302_v63, %s4571_s28  ;;  %v3453_v0 = vld [vmem:[#allocation0 + $0xb42] ss:$40 sm:$0xf0]   ;;  %2860 = vst.msk [vmem:[%s6702_s1] sm:$0xff] %vm2859_vm9, %v2858_v58  }
 0x1bb   :  { %v3462_v45 = vld [vmem:[#allocation0 + $0x282] ss:$40 sm:$0xf]   ;;  %v3455_v47 = vsel %vm2003_vm0, %v3453_v0, %v3451_v43  ;;  %v3516_v63 = vld [vmem:[#allocation0 + $0x501] ss:$40 sm:$0xf]  }
 0x1bc   :  { %3336 = vrot.lane.b32.xlu0 %v3335_v7, %s4571_s28  ;;  %v3464_v46 = vld [vmem:[#allocation0 + $0x282] ss:$40 sm:$0xf0]   ;;  %v2868_v50 = vpop.permute.xlu1 %2867   ;;  %v3520_v5 = vsel %vm2003_vm0, %v3518_v1, %v3516_v63  ;;  %v3531_v7 = vsel %vm2003_vm0, %v3529_v4, %v3527_v3  ;;  %v3540_v9 = vld [vmem:[#allocation0 + $0x141] ss:$40 sm:$0xf0]  }
 0x1bd   :  { %v3466_v48 = vsel %vm2003_vm0, %v3464_v46, %v3462_v45  ;;  %v3473_v49 = vld [vmem:[#allocation0 + $0x782] ss:$40 sm:$0xf]   ;;  %4483 = vst.msk [vmem:[%s6702_s1 + $0x20] sm:$0xff] %vm2859_vm9, %v2868_v50   ;;  %v2879_v2 = vpop.permute.xlu0 %2878  }
 0x1be   :  { %3325 = vrot.lane.b32.xlu1 %v3324_v6, %s4571_s28  ;;  %v3475_v51 = vld [vmem:[#allocation0 + $0x782] ss:$40 sm:$0xf0]   ;;  %4484 = vst.msk [vmem:[%s6702_s1 + $0x40] sm:$0xff] %vm2859_vm9, %v2879_v2  }
 0x1bf   :  { %v3484_v52 = vld [vmem:[#allocation0 + $0x3c2] ss:$40 sm:$0xf]   ;;  %v3477_v54 = vsel %vm2003_vm0, %v3475_v51, %v3473_v49  ;;  %v3549_v11 = vld [vmem:[#allocation0 + $0x641] ss:$40 sm:$0xf]  }
 0x1c0   :  { %3358 = vrot.lane.b32.xlu0 %v3357_v15, %s4571_s28  ;;  %v3486_v53 = vld [vmem:[#allocation0 + $0x3c2] ss:$40 sm:$0xf0]   ;;  %v2890_v6 = vpop.permute.xlu1 %2889   ;;  %v3551_v13 = vld [vmem:[#allocation0 + $0x641] ss:$40 sm:$0xf0]  }
 0x1c1   :  { %v3488_v55 = vsel %vm2003_vm0, %v3486_v53, %v3484_v52  ;;  %v3495_v56 = vld [vmem:[#allocation0 + $0x8c2] ss:$40 sm:$0xf]   ;;  %4485 = vst.msk [vmem:[%s6702_s1 + $0x8] sm:$0xff] %vm2859_vm9, %v2890_v6   ;;  %v2901_v10 = vpop.permute.xlu0 %2900   ;;  %v3553_v16 = vsel %vm2003_vm0, %v3551_v13, %v3549_v11 }
 0x1c2   :  { %3347 = vrot.lane.b32.xlu1 %v3346_v14, %s4571_s28  ;;  %v3497_v57 = vld [vmem:[#allocation0 + $0x8c2] ss:$40 sm:$0xf0]   ;;  %4486 = vst.msk [vmem:[%s6702_s1 + $0x28] sm:$0xff] %vm2859_vm9, %v2901_v10   ;;  %v3542_v14 = vsel %vm2003_vm0, %v3540_v9, %v3538_v8 }
 0x1c3   :  { %v3499_v61 = vsel %vm2003_vm0, %v3497_v57, %v3495_v56  ;;  %v3560_v17 = vld [vmem:[#allocation0 + $0xb41] ss:$40 sm:$0xf]  }
 0x1c4   :  { %3380 = vrot.lane.b32.xlu0 %v3379_v22, %s4571_s28  ;;  %v2912_v15 = vpop.permute.xlu1 %2911   ;;  %v3562_v18 = vld [vmem:[#allocation0 + $0xb41] ss:$40 sm:$0xf0]  }
 0x1c5   :  { %4487 = vst.msk [vmem:[%s6702_s1 + $0x48] sm:$0xff] %vm2859_vm9, %v2912_v15   ;;  %v2923_v19 = vpop.permute.xlu0 %2922   ;;  %v3571_v20 = vld [vmem:[#allocation0 + $0x281] ss:$40 sm:$0xf]   ;;  %v3564_v22 = vsel %vm2003_vm0, %v3562_v18, %v3560_v17 }
 0x1c6   :  { %3369 = vrot.lane.b32.xlu1 %v3368_v21, %s4571_s28  ;;  %v3573_v21 = vld [vmem:[#allocation0 + $0x281] ss:$40 sm:$0xf0]   ;;  %4488 = vst.msk [vmem:[%s6702_s1 + $0x10] sm:$0xff] %vm2859_vm9, %v2923_v19  }
 0x1c7   :  { %v3575_v24 = vsel %vm2003_vm0, %v3573_v21, %v3571_v20  ;;  %v3582_v25 = vld [vmem:[#allocation0 + $0x781] ss:$40 sm:$0xf]  }
 0x1c8   :  { %3402 = vrot.lane.b32.xlu0 %v3401_v28, %s4572_s4  ;;  %v2934_v23 = vpop.permute.xlu1 %2933   ;;  %v3584_v26 = vld [vmem:[#allocation0 + $0x781] ss:$40 sm:$0xf0]  }
 0x1c9   :  { %4489 = vst.msk [vmem:[%s6702_s1 + $0x30] sm:$0xff] %vm2859_vm9, %v2934_v23   ;;  %v3593_v28 = vld [vmem:[#allocation0 + $0x3c1] ss:$40 sm:$0xf]   ;;  %v3586_v30 = vsel %vm2003_vm0, %v3584_v26, %v3582_v25 }
 0x1ca   :  { %3391 = vrot.lane.b32.xlu1 %v3390_v27, %s4571_s28  ;;  %v2945_v27 = vpop.permute.xlu0 %2944   ;;  %v3595_v29 = vld [vmem:[#allocation0 + $0x3c1] ss:$40 sm:$0xf0]  }
 0x1cb   :  { %4490 = vst.msk [vmem:[%s6702_s1 + $0x18] sm:$0xff] %vm2859_vm9, %v2945_v27   ;;  %v3597_v32 = vsel %vm2003_vm0, %v3595_v29, %v3593_v28 }
 0x1cc   :  { %3423 = vrot.lane.b32.xlu0 %v3422_v34, %s4572_s4  ;;  %v2956_v31 = vpop.permute.xlu1 %2955   ;;  %v3606_v34 = vld [vmem:[#allocation0 + $0x8c1] ss:$40 sm:$0xf0]  }
 0x1cd   :  { %4491 = vst.msk [vmem:[%s6702_s1 + $0x38] sm:$0xff] %vm2859_vm9, %v2956_v31  }
 0x1ce   :  { %3412 = vrot.lane.b32.xlu1 %v3411_v33, %s4572_s4  ;;  %v3604_v33 = vld [vmem:[#allocation0 + $0x8c1] ss:$40 sm:$0xf]   ;;  %v2967_v35 = vpop.permute.xlu0 %2966  }
 0x1cf   :  { %2969 = vst.msk [vmem:[%s6702_s1] sm:$0xff] %vm2968_vm10, %v2967_v35   ;;  %v3608_v36 = vsel %vm2003_vm0, %v3606_v34, %v3604_v33 }
 0x1d0   :  { %3445 = vrot.lane.b32.xlu0 %v3444_v42, %s4572_s4  ;;  %v2977_v38 = vpop.permute.xlu1 %2976  }
 0x1d1   :  { %4492 = vst.msk [vmem:[%s6702_s1 + $0x20] sm:$0xff] %vm2968_vm10, %v2977_v38  }
 0x1d2   :  { %3434 = vrot.lane.b32.xlu1 %v3433_v41, %s4572_s4  ;;  %v2988_v39 = vpop.permute.xlu0 %2987  }
 0x1d3   :  { %4493 = vst.msk [vmem:[%s6702_s1 + $0x40] sm:$0xff] %vm2968_vm10, %v2988_v39  }
 0x1d4   :  { %3467 = vrot.lane.b32.xlu0 %v3466_v48, %s4572_s4  ;;  %v2999_v40 = vpop.permute.xlu1 %2998  }
 0x1d5   :  { %4494 = vst.msk [vmem:[%s6702_s1 + $0x8] sm:$0xff] %vm2968_vm10, %v2999_v40  }
 0x1d6   :  { %3456 = vrot.lane.b32.xlu1 %v3455_v47, %s4572_s4 }
 0x1d7   :  { %v3010_v41 = vpop.permute.xlu0 %3009  }
 0x1d8   :  { %3489 = vrot.lane.b32.xlu0 %v3488_v55, %s4572_s4  ;;  %4495 = vst.msk [vmem:[%s6702_s1 + $0x28] sm:$0xff] %vm2968_vm10, %v3010_v41  }
 0x1da   :  { %3478 = vrot.lane.b32.xlu1 %v3477_v54, %s4572_s4 }
 0x1db   :  { %v3021_v42 = vpop.permute.xlu1 %3020  }
 0x1dc   :  { %3511 = vrot.lane.b32.xlu0 %v3510_v62, %s4573_s19  ;;  %4496 = vst.msk [vmem:[%s6702_s1 + $0x48] sm:$0xff] %vm2968_vm10, %v3021_v42  }
 0x1de   :  { %3500 = vrot.lane.b32.xlu1 %v3499_v61, %s4572_s4  ;;  %v3032_v43 = vpop.permute.xlu0 %3031  }
 0x1df   :  { %4497 = vst.msk [vmem:[%s6702_s1 + $0x10] sm:$0xff] %vm2968_vm10, %v3032_v43  }
 0x1e0   :  { %3532 = vrot.lane.b32.xlu0 %v3531_v7, %s4573_s19  ;;  %v3043_v0 = vpop.permute.xlu1 %3042  }
 0x1e1   :  { %4498 = vst.msk [vmem:[%s6702_s1 + $0x30] sm:$0xff] %vm2968_vm10, %v3043_v0  }
 0x1e2   :  { %3521 = vrot.lane.b32.xlu1 %v3520_v5, %s4573_s19 }
 0x1e4   :  { %3554 = vrot.lane.b32.xlu0 %v3553_v16, %s4573_s19 }
 0x1e6   :  { %3543 = vrot.lane.b32.xlu1 %v3542_v14, %s4573_s19  ;;  %v3054_v44 = vpop.permute.xlu0 %3053  }
 0x1e7   :  { %4499 = vst.msk [vmem:[%s6702_s1 + $0x18] sm:$0xff] %vm2968_vm10, %v3054_v44  }
 0x1e8   :  { %3576 = vrot.lane.b32.xlu0 %v3575_v24, %s4573_s19  ;;  %v3065_v45 = vpop.permute.xlu1 %3064  }
 0x1e9   :  { %4500 = vst.msk [vmem:[%s6702_s1 + $0x38] sm:$0xff] %vm2968_vm10, %v3065_v45  }
 0x1ea   :  { %3565 = vrot.lane.b32.xlu1 %v3564_v22, %s4573_s19 }
 0x1eb   :  { %v3076_v46 = vpop.permute.xlu0 %3075  }
 0x1ec   :  { %3598 = vrot.lane.b32.xlu0 %v3597_v32, %s4573_s19  ;;  %3078 = vst.msk [vmem:[%s6702_s1] sm:$0xff] %vm3077_vm11, %v3076_v46  }
 0x1ee   :  { %3587 = vrot.lane.b32.xlu1 %v3586_v30, %s4573_s19 }
 0x1f1   :  { %v3086_v47 = vpop.permute.xlu1 %3085  }
 0x1f2   :  { %3609 = vrot.lane.b32.xlu1 %v3608_v36, %s4573_s19  ;;  %4501 = vst.msk [vmem:[%s6702_s1 + $0x20] sm:$0xff] %vm3077_vm11, %v3086_v47  }
 0x1f5   :  { %v3097_v48 = vpop.permute.xlu0 %3096  }
 0x1f6   :  { %4502 = vst.msk [vmem:[%s6702_s1 + $0x40] sm:$0xff] %vm3077_vm11, %v3097_v48  }
 0x1f9   :  { %v3108_v49 = vpop.permute.xlu1 %3107  }
 0x1fa   :  { %4503 = vst.msk [vmem:[%s6702_s1 + $0x8] sm:$0xff] %vm3077_vm11, %v3108_v49  }
 0x1fe   :  { %v3119_v51 = vpop.permute.xlu0 %3118  }
 0x1ff   :  { %4504 = vst.msk [vmem:[%s6702_s1 + $0x28] sm:$0xff] %vm3077_vm11, %v3119_v51  }
 0x200   :  { %v3130_v12 = vpop.permute.xlu1 %3129  }
 0x201   :  { %4505 = vst.msk [vmem:[%s6702_s1 + $0x48] sm:$0xff] %vm3077_vm11, %v3130_v12  }
 0x206   :  { %v3141_v52 = vpop.permute.xlu0 %3140  }
 0x207   :  { %4506 = vst.msk [vmem:[%s6702_s1 + $0x10] sm:$0xff] %vm3077_vm11, %v3141_v52  }
 0x20a   :  { %v3152_v53 = vpop.permute.xlu1 %3151  }
 0x20b   :  { %4507 = vst.msk [vmem:[%s6702_s1 + $0x30] sm:$0xff] %vm3077_vm11, %v3152_v53  }
 0x20e   :  { %v3163_v54 = vpop.permute.xlu0 %3162  }
 0x20f   :  { %4508 = vst.msk [vmem:[%s6702_s1 + $0x18] sm:$0xff] %vm3077_vm11, %v3163_v54  }
 0x212   :  { %v3185_v55 = vpop.permute.xlu0 %3184  }
 0x213   :  { %3187 = vst.msk [vmem:[%s6702_s1] sm:$0xff] %vm3186_vm12, %v3185_v55  }
 0x214   :  { %v3174_v37 = vpop.permute.xlu1 %3173  }
 0x215   :  { %4509 = vst.msk [vmem:[%s6702_s1 + $0x38] sm:$0xff] %vm3077_vm11, %v3174_v37  }
 0x216   :  { %v3206_v57 = vpop.permute.xlu0 %3205  }
 0x217   :  { %4511 = vst.msk [vmem:[%s6702_s1 + $0x40] sm:$0xff] %vm3186_vm12, %v3206_v57  }
 0x218   :  { %v3195_v56 = vpop.permute.xlu1 %3194  }
 0x219   :  { %4510 = vst.msk [vmem:[%s6702_s1 + $0x20] sm:$0xff] %vm3186_vm12, %v3195_v56  }
 0x21a   :  { %v3228_v59 = vpop.permute.xlu0 %3227  }
 0x21b   :  { %4513 = vst.msk [vmem:[%s6702_s1 + $0x28] sm:$0xff] %vm3186_vm12, %v3228_v59  }
 0x21c   :  { %v3217_v58 = vpop.permute.xlu1 %3216  }
 0x21d   :  { %4512 = vst.msk [vmem:[%s6702_s1 + $0x8] sm:$0xff] %vm3186_vm12, %v3217_v58  }
 0x21e   :  { %v3250_v61 = vpop.permute.xlu0 %3249  }
 0x21f   :  { %4515 = vst.msk [vmem:[%s6702_s1 + $0x10] sm:$0xff] %vm3186_vm12, %v3250_v61  }
 0x220   :  { %v3239_v60 = vpop.permute.xlu1 %3238  }
 0x221   :  { %4514 = vst.msk [vmem:[%s6702_s1 + $0x48] sm:$0xff] %vm3186_vm12, %v3239_v60  }
 0x222   :  { %v3272_v62 = vpop.permute.xlu0 %3271  }
 0x223   :  { %4517 = vst.msk [vmem:[%s6702_s1 + $0x18] sm:$0xff] %vm3186_vm12, %v3272_v62  }
 0x224   :  { %v3261_v50 = vpop.permute.xlu1 %3260  }
 0x225   :  { %4516 = vst.msk [vmem:[%s6702_s1 + $0x30] sm:$0xff] %vm3186_vm12, %v3261_v50  }
 0x226   :  { %v3294_v1 = vpop.permute.xlu0 %3293  }
 0x227   :  { %3296 = vst.msk [vmem:[%s6702_s1] sm:$0xff] %vm3295_vm13, %v3294_v1  }
 0x228   :  { %v3283_v63 = vpop.permute.xlu1 %3282  }
 0x229   :  { %4518 = vst.msk [vmem:[%s6702_s1 + $0x38] sm:$0xff] %vm3186_vm12, %v3283_v63  }
 0x22a   :  { %v3315_v3 = vpop.permute.xlu0 %3314  }
 0x22b   :  { %4520 = vst.msk [vmem:[%s6702_s1 + $0x40] sm:$0xff] %vm3295_vm13, %v3315_v3  }
 0x22c   :  { %v3304_v2 = vpop.permute.xlu1 %3303  }
 0x22d   :  { %4519 = vst.msk [vmem:[%s6702_s1 + $0x20] sm:$0xff] %vm3295_vm13, %v3304_v2  }
 0x22e   :  { %v3337_v5 = vpop.permute.xlu0 %3336  }
 0x22f   :  { %4522 = vst.msk [vmem:[%s6702_s1 + $0x28] sm:$0xff] %vm3295_vm13, %v3337_v5  }
 0x230   :  { %v3326_v4 = vpop.permute.xlu1 %3325  }
 0x231   :  { %4521 = vst.msk [vmem:[%s6702_s1 + $0x8] sm:$0xff] %vm3295_vm13, %v3326_v4  }
 0x232   :  { %v3359_v7 = vpop.permute.xlu0 %3358  }
 0x233   :  { %4524 = vst.msk [vmem:[%s6702_s1 + $0x10] sm:$0xff] %vm3295_vm13, %v3359_v7  }
 0x234   :  { %v3348_v6 = vpop.permute.xlu1 %3347  }
 0x235   :  { %4523 = vst.msk [vmem:[%s6702_s1 + $0x48] sm:$0xff] %vm3295_vm13, %v3348_v6  }
 0x236   :  { %v3381_v9 = vpop.permute.xlu0 %3380  }
 0x237   :  { %4526 = vst.msk [vmem:[%s6702_s1 + $0x18] sm:$0xff] %vm3295_vm13, %v3381_v9  }
 0x238   :  { %v3370_v8 = vpop.permute.xlu1 %3369  }
 0x239   :  { %4525 = vst.msk [vmem:[%s6702_s1 + $0x30] sm:$0xff] %vm3295_vm13, %v3370_v8  }
 0x23a   :  { %v3403_v11 = vpop.permute.xlu0 %3402  }
 0x23b   :  { %3405 = vst.msk [vmem:[%s6702_s1] sm:$0xff] %vm3404_vm14, %v3403_v11  }
 0x23c   :  { %v3392_v10 = vpop.permute.xlu1 %3391  }
 0x23d   :  { %4527 = vst.msk [vmem:[%s6702_s1 + $0x38] sm:$0xff] %vm3295_vm13, %v3392_v10  }
 0x23e   :  { %v3424_v14 = vpop.permute.xlu0 %3423  }
 0x23f   :  { %4529 = vst.msk [vmem:[%s6702_s1 + $0x40] sm:$0xff] %vm3404_vm14, %v3424_v14  }
 0x240   :  { %v3413_v13 = vpop.permute.xlu1 %3412  }
 0x241   :  { %4528 = vst.msk [vmem:[%s6702_s1 + $0x20] sm:$0xff] %vm3404_vm14, %v3413_v13  }
 0x242   :  { %v3446_v16 = vpop.permute.xlu0 %3445  }
 0x243   :  { %4531 = vst.msk [vmem:[%s6702_s1 + $0x28] sm:$0xff] %vm3404_vm14, %v3446_v16  }
 0x244   :  { %v3435_v15 = vpop.permute.xlu1 %3434  }
 0x245   :  { %4530 = vst.msk [vmem:[%s6702_s1 + $0x8] sm:$0xff] %vm3404_vm14, %v3435_v15  }
 0x246   :  { %v3468_v18 = vpop.permute.xlu0 %3467  }
 0x247   :  { %4533 = vst.msk [vmem:[%s6702_s1 + $0x10] sm:$0xff] %vm3404_vm14, %v3468_v18  }
 0x248   :  { %v3457_v17 = vpop.permute.xlu1 %3456  }
 0x249   :  { %4532 = vst.msk [vmem:[%s6702_s1 + $0x48] sm:$0xff] %vm3404_vm14, %v3457_v17  }
 0x24a   :  { %v3490_v20 = vpop.permute.xlu0 %3489  }
 0x24b   :  { %4535 = vst.msk [vmem:[%s6702_s1 + $0x18] sm:$0xff] %vm3404_vm14, %v3490_v20  }
 0x24c   :  { %v3479_v19 = vpop.permute.xlu1 %3478  }
 0x24d   :  { %4534 = vst.msk [vmem:[%s6702_s1 + $0x30] sm:$0xff] %vm3404_vm14, %v3479_v19  }
 0x24e   :  { %v3512_v22 = vpop.permute.xlu0 %3511  }
 0x24f   :  { %3514 = vst.msk [vmem:[%s6702_s1] sm:$0xff] %vm3513_vm15, %v3512_v22  }
 0x250   :  { %v3501_v21 = vpop.permute.xlu1 %3500  }
 0x251   :  { %4536 = vst.msk [vmem:[%s6702_s1 + $0x38] sm:$0xff] %vm3404_vm14, %v3501_v21  }
 0x252   :  { %v3533_v24 = vpop.permute.xlu0 %3532  }
 0x253   :  { %4538 = vst.msk [vmem:[%s6702_s1 + $0x40] sm:$0xff] %vm3513_vm15, %v3533_v24  }
 0x254   :  { %v3522_v23 = vpop.permute.xlu1 %3521  }
 0x255   :  { %4537 = vst.msk [vmem:[%s6702_s1 + $0x20] sm:$0xff] %vm3513_vm15, %v3522_v23  }
 0x256   :  { %v3555_v26 = vpop.permute.xlu0 %3554  }
 0x257   :  { %4540 = vst.msk [vmem:[%s6702_s1 + $0x28] sm:$0xff] %vm3513_vm15, %v3555_v26  }
 0x258   :  { %v3544_v25 = vpop.permute.xlu1 %3543  }
 0x259   :  { %4539 = vst.msk [vmem:[%s6702_s1 + $0x8] sm:$0xff] %vm3513_vm15, %v3544_v25  }
 0x25a   :  { %v3577_v28 = vpop.permute.xlu0 %3576  }
 0x25b   :  { %4542 = vst.msk [vmem:[%s6702_s1 + $0x10] sm:$0xff] %vm3513_vm15, %v3577_v28  }
 0x25c   :  { %v3566_v27 = vpop.permute.xlu1 %3565  }
 0x25d   :  { %4541 = vst.msk [vmem:[%s6702_s1 + $0x48] sm:$0xff] %vm3513_vm15, %v3566_v27  }
 0x25e   :  { %v3599_v30 = vpop.permute.xlu0 %3598  }
 0x25f   :  { %4544 = vst.msk [vmem:[%s6702_s1 + $0x18] sm:$0xff] %vm3513_vm15, %v3599_v30  }
 0x260   :  { %v3588_v29 = vpop.permute.xlu1 %3587  }
 0x261   :  { %4543 = vst.msk [vmem:[%s6702_s1 + $0x30] sm:$0xff] %vm3513_vm15, %v3588_v29  }
 0x264   :  { %v3610_v31 = vpop.permute.xlu1 %3609  }
 0x265   :  { %4545 = vst.msk [vmem:[%s6702_s1 + $0x38] sm:$0xff] %vm3513_vm15, %v3610_v31  }

// kernel: convtranspose_silu.1
= control target key start
LH: loop header
LB: loop body
LE: loop exit
PB: predicated region body
PF: predicated region fallthrough
CT: control target
= control target key end

     0   :  { %s3594_s12 = smov 0   ;;  %s3596_s13 = smov 0   ;;  %s5875_s0 = inlined_call_operand.vmem [shape: f32[2,3,16,80], index: 0, kind: input, shape index: {}]   ;;  %s5876_s1 = inlined_call_operand.vmem [shape: f32[120,80], index: 1, kind: input, shape index: {}]   ;;  %s5877_s2 = inlined_call_operand.vmem [shape: f32[8,1], index: 2, kind: input, shape index: {}]   ;;  %s5878_s3 = inlined_call_operand.vmem [shape: f32[2,8,16,400], index: 3, kind: output, shape index: {}]  }
   0x1   :  { %s3598_s14 = smov 0  }
   0x2 LB: > { %s25_s15 = sadd.s32 1, %s3564_s13  ;;  %p2710_p0 = scmp.ge.s32.totalorder %s3568_s14, 1  ;;  %s3568_s14 = sphi %s3598_s14, %s13_s14   ;;  %s3564_s13 = sphi %s3596_s13, %s6201_s13   ;;  %s3560_s12 = sphi %s3594_s12, %s6200_s12  }
   0x3   : > { %p27_p1 = scmp.ge.s32.totalorder %s25_s15, 2  ;;  %p158_p2 = scmp.lt.s32.totalorder %s3568_s14, 3 }
   0x5   : > { %s6203_s15 = smov (%p27_p1, %s25_s15), 0  ;;  %p159_p3 = pnand %p2710_p0, %p158_p2 }
   0x7   : > { %162 = sbr.rel (%p159_p3) target bundleno = 453 (0x1c5), region = 32 }
   0xc   : > { %v212_v0 = vld [vmem:[%s5877_s2] sm:$0x1]  ;;  %v267_v1 = vld [vmem:[%s5877_s2 + $0x1] sm:$0x1]  ;;  %v320_v2 = vld [vmem:[%s5877_s2 + $0x2] sm:$0x1] }
   0xd   : > { %3110 = vpush %v212_v0  ;;  %v373_v3 = vld [vmem:[%s5877_s2 + $0x3] sm:$0x1]  ;;  %v426_v4 = vld [vmem:[%s5877_s2 + $0x4] sm:$0x1]  ;;  %v479_v5 = vld [vmem:[%s5877_s2 + $0x5] sm:$0x1] }
   0xe   : > { %3112 = vpush %v267_v1  ;;  %v532_v6 = vld [vmem:[%s5877_s2 + $0x6] sm:$0x1]  ;;  %v585_v7 = vld [vmem:[%s5877_s2 + $0x7] sm:$0x1]  ;;  %v638_v8 = vld [vmem:[%s5877_s2] sm:$0x1] }
   0xf   : > { %3114 = vpush %v320_v2  ;;  %v702_v9 = vld [vmem:[%s5877_s2 + $0x1] sm:$0x1]  ;;  %v764_v10 = vld [vmem:[%s5877_s2 + $0x2] sm:$0x1]  ;;  %v826_v11 = vld [vmem:[%s5877_s2 + $0x3] sm:$0x1] }
  0x10   : > { %3116 = vpush %v373_v3  ;;  %v888_v12 = vld [vmem:[%s5877_s2 + $0x4] sm:$0x1]  ;;  %v950_v13 = vld [vmem:[%s5877_s2 + $0x5] sm:$0x1]  ;;  %v1012_v14 = vld [vmem:[%s5877_s2 + $0x6] sm:$0x1] }
  0x11   : > { %3118 = vpush %v426_v4  ;;  %v1074_v15 = vld [vmem:[%s5877_s2 + $0x7] sm:$0x1]  ;;  %v1136_v16 = vld [vmem:[%s5877_s2] sm:$0x1]  ;;  %v1197_v17 = vld [vmem:[%s5877_s2 + $0x1] sm:$0x1] }
  0x12   : > { %3120 = vpush %v479_v5  ;;  %v1257_v18 = vld [vmem:[%s5877_s2 + $0x2] sm:$0x1]  ;;  %v1317_v19 = vld [vmem:[%s5877_s2 + $0x3] sm:$0x1]  ;;  %v1377_v20 = vld [vmem:[%s5877_s2 + $0x4] sm:$0x1] }
  0x13   : > { %3122 = vpush %v532_v6  ;;  %v1437_v21 = vld [vmem:[%s5877_s2 + $0x5] sm:$0x1]  ;;  %v1497_v22 = vld [vmem:[%s5877_s2 + $0x6] sm:$0x1]  ;;  %v1557_v23 = vld [vmem:[%s5877_s2 + $0x7] sm:$0x1] }
  0x14   : > { %3124 = vpush %v585_v7  ;;  %v1617_v24 = vld [vmem:[%s5877_s2] sm:$0x1]  ;;  %v1681_v25 = vld [vmem:[%s5877_s2 + $0x1] sm:$0x1]  ;;  %v1743_v26 = vld [vmem:[%s5877_s2 + $0x2] sm:$0x1] }
  0x15   : > { %3126 = vpush %v638_v8  ;;  %v1805_v27 = vld [vmem:[%s5877_s2 + $0x3] sm:$0x1]  ;;  %v1867_v28 = vld [vmem:[%s5877_s2 + $0x4] sm:$0x1]  ;;  %p192_p4 = scmp.lt.s32.totalorder %s3560_s12, 1  ;;  %s3570_s30 = smov 80  }
  0x16   : > { %3128 = vpush %v702_v9  ;;  %v1929_v29 = vld [vmem:[%s5877_s2 + $0x5] sm:$0x1]  ;;  %v1991_v30 = vld [vmem:[%s5877_s2 + $0x6] sm:$0x1]  ;;  %v2053_v31 = vld [vmem:[%s5877_s2 + $0x7] sm:$0x1] }
  0x17   : > { %3130 = vpush %v764_v10  ;;  %s6205_s12 = smov (!%p192_p4, %s3560_s12), 1  ;;  %v2115_v32 = vld [vmem:[%s5877_s2] sm:$0x1]  ;;  %v2179_v33 = vld [vmem:[%s5877_s2 + $0x1] sm:$0x1]  ;;  %vm264_vm0 = vcmask 654336  }
  0x18   : > { %3132 = vpush %v826_v11  ;;  %s3109_s9 = smul.u32 48, %s6205_s12  ;;  %v2241_v34 = vld [vmem:[%s5877_s2 + $0x2] sm:$0x1]  ;;  %v2303_v35 = vld [vmem:[%s5877_s2 + $0x3] sm:$0x1]  ;;  %vm696_vm1 = vcmask 1048192  }
  0x19   : > { %3134 = vpush %v888_v12  ;;  %v2365_v36 = vld [vmem:[%s5877_s2 + $0x4] sm:$0x1]  ;;  %v2714_v37 = vld [vmem:[%s5876_s1] ss:$0 sm:$0xff]  ;;  %v2427_v38 = vld [vmem:[%s5877_s2 + $0x5] sm:$0x1] }
  0x1a   : > { %3136 = vpush %v950_v13  ;;  %s3730_s22 = scalar_lea.vmem %s5875_s0, %s3109_s9  ;;  %v2717_v39 = vld [vmem:[%s5876_s1 + $0x8] ss:$0 sm:$0xff]  ;;  %v2720_v40 = vld [vmem:[%s5876_s1 + $0x10] ss:$0 sm:$0xff]  ;;  %v2721_v41 = vld [vmem:[%s5876_s1 + $0x1] ss:$0 sm:$0xff] }
  0x1b   : > { %3138 = vpush %v1012_v14  ;;  %v2489_v42 = vld [vmem:[%s5877_s2 + $0x6] sm:$0x1]  ;;  %v3757_v44 = vld [vmem:[%s3730_s22 + $0x8] sm:$0xff]  ;;  %v3760_v45 = vld [vmem:[%s3730_s22 + $0x10] sm:$0xff]  ;;  %vm698_vm2 = vcmask 261120   ;;  %vm1194_vm3 = vcmask 916736  }
  0x1c   : > { %3140 = vpush %v1074_v15  ;;  %v3754_v43 = vld [vmem:[%s3730_s22] sm:$0xff]  ;;  %v3763_v46 = vld [vmem:[%s3730_s22 + $0x18] sm:$0xff]  ;;  %v3772_v49 = vld [vmem:[%s3730_s22 + $0x28] sm:$0xff]  ;;  %v3781_v52 = vmul.f32 %v2714_v37, %v3757_v44  ;;  %v3790_v55 = vmul.f32 %v2717_v39, %v3760_v45  ;;  %v3811_v62 = vmul.f32 %v2721_v41, %v3757_v44  ;;  %vm1675_vm4 = vcmask 1048448  }
  0x1d   : > { %3142 = vpush %v1136_v16  ;;  %v3766_v47 = vld [vmem:[%s3730_s22 + $0x20] sm:$0xff]  ;;  %v2724_v50 = vld [vmem:[%s5876_s1 + $0x9] ss:$0 sm:$0xff]  ;;  %v3778_v51 = vmul.f32 %v2714_v37, %v3754_v43  ;;  %v2727_v53 = vld [vmem:[%s5876_s1 + $0x11] ss:$0 sm:$0xff]  ;;  %v3793_v56 = vmul.f32 %v2717_v39, %v3763_v46  ;;  %v3799_v58 = vmul.f32 %v2721_v41, %v3754_v43  ;;  %v3808_v61 = vmul.f32 %v2720_v40, %v3772_v49 }
  0x1e   : > { %3144 = vpush %v1197_v17  ;;  %v2551_v48 = vld [vmem:[%s5877_s2 + $0x7] sm:$0x1]  ;;  %v2730_v54 = vld [vmem:[%s5876_s1 + $0x2] ss:$0 sm:$0xff]  ;;  %v3796_v57 = vmul.f32 %v2720_v40, %v3766_v47  ;;  %v2733_v59 = vld [vmem:[%s5876_s1 + $0xa] ss:$0 sm:$0xff]  ;;  %v3814_v63 = vmul.f32 %v2724_v50, %v3760_v45  ;;  %v3817_v0 = vmul.f32 %v2724_v50, %v3763_v46  ;;  %v3826_v3 = vmul.f32 %v2727_v53, %v3766_v47 }
  0x1f   : > { %3146 = vpush %v1257_v18  ;;  %v2736_v60 = vld [vmem:[%s5876_s1 + $0x12] ss:$0 sm:$0xff]  ;;  %v2739_v1 = vld [vmem:[%s5876_s1 + $0x3] ss:$0 sm:$0xff]  ;;  %v2742_v2 = vld [vmem:[%s5876_s1 + $0xb] ss:$0 sm:$0xff]  ;;  %v3829_v4 = vmul.f32 %v2727_v53, %v3772_v49  ;;  %v3832_v5 = vmul.f32 %v2730_v54, %v3754_v43  ;;  %v3835_v6 = vmul.f32 %v2730_v54, %v3757_v44  ;;  %v3844_v9 = vmul.f32 %v2733_v59, %v3760_v45 }
  0x20   : > { %3148 = vpush %v1317_v19  ;;  %v2745_v7 = vld [vmem:[%s5876_s1 + $0x13] ss:$0 sm:$0xff]  ;;  %v2748_v8 = vld [vmem:[%s5876_s1 + $0x4] ss:$0 sm:$0xff]  ;;  %v3847_v10 = vmul.f32 %v2733_v59, %v3763_v46  ;;  %v3850_v11 = vmul.f32 %v2736_v60, %v3766_v47  ;;  %v3853_v12 = vmul.f32 %v2736_v60, %v3772_v49  ;;  %v2751_v13 = vld [vmem:[%s5876_s1 + $0xc] ss:$0 sm:$0xff]  ;;  %v3862_v15 = vmul.f32 %v2739_v1, %v3754_v43 }
  0x21   : > { %3150 = vpush %v1377_v20  ;;  %v2754_v14 = vld [vmem:[%s5876_s1 + $0x14] ss:$0 sm:$0xff]  ;;  %v3865_v16 = vmul.f32 %v2739_v1, %v3757_v44  ;;  %v3868_v17 = vmul.f32 %v2742_v2, %v3760_v45  ;;  %v3871_v18 = vmul.f32 %v2742_v2, %v3763_v46  ;;  %v2757_v19 = vld [vmem:[%s5876_s1 + $0x5] ss:$0 sm:$0xff]  ;;  %v2760_v20 = vld [vmem:[%s5876_s1 + $0xd] ss:$0 sm:$0xff] }
  0x22   : > { %3152 = vpush %v1437_v21  ;;  %v3880_v21 = vmul.f32 %v2745_v7, %v3766_v47  ;;  %v2775_v37 = vld [vmem:[%s5876_s1 + $0x7] ss:$0 sm:$0xff]  ;;  %v2784_v50 = vld [vmem:[%s5876_s1 + $0x18] ss:$0 sm:$0xff]  ;;  %v2787_v1 = vld [vmem:[%s5876_s1 + $0x20] ss:$0 sm:$0xff] }
  0x23   : > { %3154 = vpush %v1497_v22  ;;  %v3883_v22 = vmul.f32 %v2745_v7, %v3772_v49  ;;  %v2790_v2 = vld [vmem:[%s5876_s1 + $0x28] ss:$0 sm:$0xff]  ;;  %v2791_v7 = vld [vmem:[%s5876_s1 + $0x19] ss:$0 sm:$0xff]  ;;  %vm1677_vm5 = vcmask 523264   ;;  %vm2173_vm6 = vcmask 1048064  }
  0x24   : > { %3156 = vpush %v1557_v23  ;;  %v3886_v23 = vmul.f32 %v2748_v8, %v3754_v43  ;;  %vm2175_vm7 = vcmask 130048  }
  0x25   : > { %3158 = vpush %v1617_v24  ;;  %v3889_v24 = vmul.f32 %v2748_v8, %v3757_v44  ;;  %v3975_v8 = vmul.f32 %v2775_v37, %v3754_v43 }
  0x26   : > { %3160 = vpush %v1681_v25  ;;  %v2763_v25 = vld [vmem:[%s5876_s1 + $0x15] ss:$0 sm:$0xff] }
  0x27   : > { %3162 = vpush %v1743_v26  ;;  %v2766_v26 = vld [vmem:[%s5876_s1 + $0x6] ss:$0 sm:$0xff]  ;;  %v3934_v39 = vmul.f32 %v2763_v25, %v3766_v47  ;;  %v3937_v40 = vmul.f32 %v2763_v25, %v3772_v49 }
  0x28   : > { %3164 = vpush %v1805_v27  ;;  %v3898_v27 = vmul.f32 %v2751_v13, %v3760_v45  ;;  %v3940_v41 = vmul.f32 %v2766_v26, %v3754_v43 }
  0x29   : > { %3166 = vpush %v1867_v28  ;;  %v3901_v28 = vmul.f32 %v2751_v13, %v3763_v46  ;;  %v3978_v13 = vmul.f32 %v2775_v37, %v3757_v44  ;;  %v2797_v37 = vld [vmem:[%s5876_s1 + $0x29] ss:$0 sm:$0xff] }
  0x2a   : > { %3168 = vpush %v1929_v29  ;;  %v3904_v29 = vmul.f32 %v2754_v14, %v3766_v47 }
  0x2b   : > { %3170 = vpush %v1991_v30  ;;  %v3907_v30 = vmul.f32 %v2754_v14, %v3772_v49 }
  0x2c   : > { %3172 = vpush %v2053_v31  ;;  %v2769_v31 = vld [vmem:[%s5876_s1 + $0xe] ss:$0 sm:$0xff] }
  0x2d   : > { %3174 = vpush %v2115_v32  ;;  %v2772_v32 = vld [vmem:[%s5876_s1 + $0x16] ss:$0 sm:$0xff]  ;;  %v3952_v53 = vmul.f32 %v2769_v31, %v3760_v45  ;;  %v3955_v54 = vmul.f32 %v2769_v31, %v3763_v46  ;;  %v3996_v31 = vmul.f32 %v2784_v50, %v3754_v43 }
  0x2e   : > { %3176 = vpush %v2179_v33  ;;  %v3916_v33 = vmul.f32 %v2757_v19, %v3754_v43  ;;  %v3958_v59 = vmul.f32 %v2772_v32, %v3766_v47  ;;  %v3961_v60 = vmul.f32 %v2772_v32, %v3772_v49  ;;  %v3999_v32 = vmul.f32 %v2784_v50, %v3757_v44 }
  0x2f   : > { %3178 = vpush %v2241_v34  ;;  %v3919_v34 = vmul.f32 %v2757_v19, %v3757_v44  ;;  %5943 = vst [vmem:[#allocation7_spill] sm:$0xff] %v3996_v31  ;;  %v4014_v31 = vmul.f32 %v2787_v1, %v3763_v46  ;;  %v4017_v50 = vmul.f32 %v2790_v2, %v3772_v49 }
  0x30   : > { %3180 = vpush %v2303_v35  ;;  %v3922_v35 = vmul.f32 %v2760_v20, %v3760_v45  ;;  %5938 = vst [vmem:[#allocation2_spill] sm:$0xff] %v3961_v60  ;;  %v2813_v60 = vld [vmem:[%s5876_s1 + $0x1b] ss:$0 sm:$0xff] }
  0x31   : > { %3182 = vpush %v2365_v36  ;;  %v3925_v36 = vmul.f32 %v2760_v20, %v3763_v46  ;;  %v2794_v20 = vld [vmem:[%s5876_s1 + $0x21] ss:$0 sm:$0xff]  ;;  %5945 = vst [vmem:[#allocation9_spill] sm:$0xff] %v4014_v31 }
  0x32   : > { %3184 = vpush %v2427_v38  ;;  %v2778_v38 = vld [vmem:[%s5876_s1 + $0xf] ss:$0 sm:$0xff]  ;;  %5946 = vst [vmem:[#allocation10_spill] sm:$0xff] %v4017_v50  ;;  %v4035_v2 = vmul.f32 %v2794_v20, %v3760_v45  ;;  %v4044_v50 = vmul.f32 %v2797_v37, %v3772_v49 }
  0x33   : > { %3186 = vpush %v2489_v42  ;;  %v3943_v42 = vmul.f32 %v2766_v26, %v3757_v44  ;;  %v3981_v14 = vmul.f32 %v2778_v38, %v3760_v45  ;;  %v3984_v19 = vmul.f32 %v2778_v38, %v3763_v46  ;;  %v2802_v38 = vld [vmem:[%s5876_s1 + $0x1a] ss:$0 sm:$0xff] }
  0x34   : > { %3188 = vpush %v2551_v48  ;;  %v2781_v48 = vld [vmem:[%s5876_s1 + $0x17] ss:$0 sm:$0xff]  ;;  %5949 = vst [vmem:[#allocation13_spill] sm:$0xff] %v4035_v2  ;;  %v4047_v31 = vmul.f32 %v2802_v38, %v3754_v43  ;;  %v2824_v2 = vld [vmem:[%s5876_s1 + $0x1c] ss:$0 sm:$0xff] }
  0x35   : > { %5939 = vst [vmem:[#allocation3_spill] sm:$0xff] %v3981_v14  ;;  %5940 = vst [vmem:[#allocation4_spill] sm:$0xff] %v3984_v19  ;;  %v3990_v25 = vmul.f32 %v2781_v48, %v3766_v47  ;;  %v3993_v26 = vmul.f32 %v2781_v48, %v3772_v49  ;;  %v4011_v48 = vmul.f32 %v2787_v1, %v3760_v45  ;;  %v2808_v19 = vld [vmem:[%s5876_s1 + $0x2a] ss:$0 sm:$0xff] }
  0x36   : > { %v4032_v1 = vmul.f32 %v2791_v7, %v3757_v44  ;;  %5951 = vst [vmem:[#allocation15_spill] sm:$0xff] %v4044_v50  ;;  %5952 = vst [vmem:[#allocation16_spill] sm:$0xff] %v4047_v31  ;;  %v4070_v50 = vmul.f32 %v2808_v19, %v3772_v49 }
  0x37   : > { %5941 = vst [vmem:[#allocation5_spill] sm:$0xff] %v3990_v25  ;;  %5942 = vst [vmem:[#allocation6_spill] sm:$0xff] %v3993_v26  ;;  %v2805_v25 = vld [vmem:[%s5876_s1 + $0x22] ss:$0 sm:$0xff]  ;;  %v4020_v26 = vmul.f32 %v2791_v7, %v3754_v43  ;;  %v4050_v7 = vmul.f32 %v2802_v38, %v3757_v44  ;;  %v4067_v38 = vmul.f32 %v2808_v19, %v3766_v47  ;;  %v2830_v19 = vld [vmem:[%s5876_s1 + $0x2c] ss:$0 sm:$0xff] }
  0x38   : > { %5944 = vst [vmem:[#allocation8_spill] sm:$0xff] %v4011_v48  ;;  %5948 = vst [vmem:[#allocation12_spill] sm:$0xff] %v4032_v1  ;;  %v2816_v48 = vld [vmem:[%s5876_s1 + $0x23] ss:$0 sm:$0xff]  ;;  %v4053_v1 = vmul.f32 %v2805_v25, %v3760_v45  ;;  %v4064_v37 = vmul.f32 %v2805_v25, %v3763_v46  ;;  %v4081_v25 = vmul.f32 %v2813_v60, %v3757_v44 }
  0x39   : > { %5947 = vst [vmem:[#allocation11_spill] sm:$0xff] %v4020_v26  ;;  %v4038_v26 = vmul.f32 %v2794_v20, %v3763_v46  ;;  %5953 = vst [vmem:[#allocation17_spill] sm:$0xff] %v4050_v7  ;;  %v2819_v20 = vld [vmem:[%s5876_s1 + $0x2b] ss:$0 sm:$0xff] }
  0x3a   : > { %5954 = vst [vmem:[#allocation18_spill] sm:$0xff] %v4053_v1  ;;  %5955 = vst [vmem:[#allocation19_spill] sm:$0xff] %v4064_v37  ;;  %v4073_v1 = vmul.f32 %v2813_v60, %v3754_v43  ;;  %v4084_v37 = vmul.f32 %v2816_v48, %v3760_v45  ;;  %v2835_v60 = vld [vmem:[%s5876_s1 + $0x1d] ss:$0 sm:$0xff] }
  0x3b   : > { %5950 = vst [vmem:[#allocation14_spill] sm:$0xff] %v4038_v26  ;;  %5956 = vst [vmem:[#allocation20_spill] sm:$0xff] %v4067_v38  ;;  %v2827_v26 = vld [vmem:[%s5876_s1 + $0x24] ss:$0 sm:$0xff]  ;;  %v4093_v38 = vmul.f32 %v2819_v20, %v3766_v47 }
  0x3c   : > { %5957 = vst [vmem:[#allocation21_spill] sm:$0xff] %v4070_v50  ;;  %5958 = vst [vmem:[#allocation22_spill] sm:$0xff] %v4073_v1  ;;  %v4090_v50 = vmul.f32 %v2816_v48, %v3763_v46  ;;  %v4096_v1 = vmul.f32 %v2819_v20, %v3772_v49  ;;  %v4109_v48 = vmul.f32 %v2824_v2, %v3757_v44  ;;  %v2838_v20 = vld [vmem:[%s5876_s1 + $0x25] ss:$0 sm:$0xff] }
  0x3d   : > { %5959 = vst [vmem:[#allocation23_spill] sm:$0xff] %v4081_v25  ;;  %5960 = vst [vmem:[#allocation24_spill] sm:$0xff] %v4084_v37 }
  0x3e   : > { %s3972_s20 = spop %3110  ;;  %5961 = vst [vmem:[#allocation25_spill] sm:$0xff] %v4090_v50  ;;  %5962 = vst [vmem:[#allocation26_spill] sm:$0xff] %v4093_v38  ;;  %v4112_v38 = vmul.f32 %v2827_v26, %v3760_v45  ;;  %v4133_v50 = vmul.f32 %v2835_v60, %v3754_v43 }
  0x3f   : > { %v224_v14 = vstv %s3972_s20  ;;  %s4029_s7 = spop %3112  ;;  %5963 = vst [vmem:[#allocation27_spill] sm:$0xff] %v4096_v1  ;;  %5965 = vst [vmem:[#allocation29_spill] sm:$0xff] %v4109_v48 }
  0x40   : > { %s4061_s18 = spop %3114  ;;  %v226_v7 = vadd.f32 %v224_v14, %v3778_v51  ;;  %v279_v31 = vstv %s4029_s7  ;;  %v4099_v51 = vmul.f32 %v2824_v2, %v3754_v43  ;;  %v227_v37 = vadd.f32 %v224_v14, %v3781_v52  ;;  %5966 = vst [vmem:[#allocation30_spill] sm:$0xff] %v4112_v38  ;;  %v2841_v2 = vld [vmem:[%s5876_s1 + $0x2d] ss:$0 sm:$0xff] }
  0x41   : > { %v332_v25 = vstv %s4061_s18  ;;  %s4106_s26 = spop %3116  ;;  %v281_v1 = vadd.f32 %v279_v31, %v3799_v58  ;;  %v4122_v52 = vmul.f32 %v2830_v19, %v3766_v47  ;;  %v4125_v14 = vmul.f32 %v2830_v19, %v3772_v49  ;;  %v2849_v19 = vld [vmem:[%s5876_s1 + $0x26] ss:$0 sm:$0xff] }
  0x42   : > { %5964 = vst [vmem:[#allocation28_spill] sm:$0xff] %v4099_v51  ;;  %v4119_v51 = vmul.f32 %v2827_v26, %v3763_v46  ;;  %v238_v38 = vadd.f32 %v3790_v55, %v226_v7  ;;  %v282_v48 = vadd.f32 %v279_v31, %v3811_v62  ;;  %v4136_v58 = vmul.f32 %v2835_v60, %v3757_v44  ;;  %v2846_v26 = vld [vmem:[%s5876_s1 + $0x1e] ss:$0 sm:$0xff]  ;;  %s4164_s10 = spop %3118 }
  0x43   : > { %5967 = vst [vmem:[#allocation31_spill] sm:$0xff] %v4122_v52  ;;  %5968 = vst [vmem:[#allocation32_spill] sm:$0xff] %v4125_v14  ;;  %v334_v14 = vadd.f32 %v332_v25, %v3832_v5  ;;  %v335_v55 = vadd.f32 %v332_v25, %v3835_v6  ;;  %v385_v7 = vstv %s4106_s26  ;;  %v4148_v62 = vmul.f32 %v2838_v20, %v3760_v45  ;;  %v2852_v5 = vld [vmem:[%s5876_s1 + $0x2e] ss:$0 sm:$0xff]  ;;  %s4211_s21 = spop %3120 }
  0x44   : > { %5969 = vst [vmem:[#allocation33_spill] sm:$0xff] %v4136_v58  ;;  %v239_v31 = vadd.f32 %v3793_v56, %v227_v37  ;;  %v4152_v60 = vmul.f32 %v2838_v20, %v3763_v46  ;;  %v4155_v58 = vmul.f32 %v2841_v2, %v3766_v47  ;;  %v4158_v52 = vmul.f32 %v2841_v2, %v3772_v49  ;;  %v2857_v20 = vld [vmem:[%s5876_s1 + $0x1f] ss:$0 sm:$0xff]  ;;  %s4300_s4 = spop %3122 }
  0x45   : > { %v292_v6 = vadd.f32 %v3814_v63, %v281_v1  ;;  %v4167_v56 = vmul.f32 %v2846_v26, %v3754_v43  ;;  %v4170_v37 = vmul.f32 %v2846_v26, %v3757_v44  ;;  %v4173_v25 = vmul.f32 %v2849_v19, %v3760_v45  ;;  %v2860_v26 = vld [vmem:[%s5876_s1 + $0x27] ss:$0 sm:$0xff]  ;;  %s4340_s11 = spop %3124 }
  0x46   : > { %5970 = vst [vmem:[#allocation34_spill] sm:$0xff] %v4152_v60  ;;  %5971 = vst [vmem:[#allocation35_spill] sm:$0xff] %v4155_v58  ;;  %v4179_v2 = vadd.f32 %v3796_v57, %v238_v38  ;;  %v293_v63 = vadd.f32 %v3817_v0, %v282_v48  ;;  %v387_v1 = vadd.f32 %v385_v7, %v3862_v15  ;;  %v438_v15 = vstv %s4164_s10  ;;  %s4364_s20 = spop %3126 }
  0x47   : > { %5972 = vst [vmem:[#allocation36_spill] sm:$0xff] %v4158_v52  ;;  %5973 = vst [vmem:[#allocation37_spill] sm:$0xff] %v4173_v25  ;;  %v388_v52 = vadd.f32 %v385_v7, %v3865_v16  ;;  %v345_v25 = vadd.f32 %v3844_v9, %v334_v14  ;;  %v346_v58 = vadd.f32 %v3847_v10, %v335_v55  ;;  %v2863_v9 = vld [vmem:[%s5876_s1 + $0x2f] ss:$0 sm:$0xff]  ;;  %s4396_s28 = spop %3128 }
  0x48   : > { %5974 = vst [vmem:[#allocation38_spill] sm:$0xff] %v4179_v2  ;;  %v4190_v60 = vmul.f32 %v2849_v19, %v3763_v46  ;;  %v4193_v57 = vmul.f32 %v2852_v5, %v3766_v47  ;;  %v4196_v0 = vadd.f32 %v3808_v61, %v239_v31  ;;  %v4200_v16 = vmul.f32 %v2852_v5, %v3772_v49  ;;  %v4226_v19 = vld [vmem:[%s3730_s22 + $0x8] sm:$0xff]  ;;  %v2871_v31 = vld [vmem:[%s5876_s1 + $0x38] ss:$0 sm:$0xff]  ;;  %s4430_s6 = spop %3130 }
  0x49   : > { %v4203_v38 = vmul.f32 %v2857_v20, %v3754_v43  ;;  %v4209_v10 = vadd.f32 %v3826_v3, %v292_v6  ;;  %v4214_v61 = vmul.f32 %v2857_v20, %v3757_v44  ;;  %v4217_v48 = vmul.f32 %v2860_v26, %v3760_v45  ;;  %v4223_v43 = vld [vmem:[%s3730_s22] sm:$0xff]  ;;  %v2868_v45 = vld [vmem:[%s5876_s1 + $0x30] ss:$0 sm:$0xff]  ;;  %s4459_s9 = spop %3132 }
  0x4a   : > { %5975 = vst [vmem:[#allocation39_spill] sm:$0xff] %v4196_v0  ;;  %v4220_v14 = vmul.f32 %v2860_v26, %v3763_v46  ;;  %v252_v55 = vsub.f32 0.0, %v4179_v2  ;;  %v4230_v3 = vadd.f32 %v3829_v4, %v293_v63  ;;  %v398_v7 = vadd.f32 %v3868_v17, %v387_v1  ;;  %v4238_v46 = vld [vmem:[%s3730_s22 + $0x10] sm:$0xff]  ;;  %s4484_s10 = spop %3134 }
  0x4b   : > { %5976 = vst [vmem:[#allocation40_spill] sm:$0xff] %v4209_v10  ;;  %v399_v44 = vadd.f32 %v3871_v18, %v388_v52  ;;  %v4244_v5 = vadd.f32 %v3850_v11, %v345_v25  ;;  %v4247_v4 = vadd.f32 %v3853_v12, %v346_v58  ;;  %v440_v17 = vadd.f32 %v438_v15, %v3886_v23  ;;  %v4267_v23 = vld [vmem:[%s3730_s22 + $0x18] sm:$0xff]  ;;  %v4273_v58 = vld [vmem:[%s3730_s22 + $0x20] sm:$0xff] }
  0x4c   : > { %5977 = vst [vmem:[#allocation41_spill] sm:$0xff] %v4230_v3  ;;  %v4251_v18 = vmul.f32 %v2863_v9, %v3766_v47  ;;  %v253_v52 = vsub.f32 0.0, %v4196_v0  ;;  %v441_v6 = vadd.f32 %v438_v15, %v3889_v24  ;;  %v491_v20 = vstv %s4211_s21 }
  0x4d   : > { %5978 = vst [vmem:[#allocation42_spill] sm:$0xff] %v4244_v5  ;;  %5979 = vst [vmem:[#allocation43_spill] sm:$0xff] %v4247_v4  ;;  %v4257_v63 = vmul.f32 %v2863_v9, %v3772_v49  ;;  %v305_v11 = vsub.f32 0.0, %v4209_v10  ;;  %v4261_v25 = vmul.f32 %v2868_v45, %v4223_v43  ;;  %v4264_v12 = vmul.f32 %v2868_v45, %v4226_v19  ;;  %v2874_v49 = vld [vmem:[%s5876_s1 + $0x40] ss:$0 sm:$0xff]  ;;  %v4286_v9 = vld [vmem:[%s3730_s22 + $0x28] sm:$0xff] }
  0x4e   : > { %v4270_v47 = vmul.f32 %v2871_v31, %v4238_v46  ;;  %v254_v24 = vmul.f32 1.442695, %v252_v55  ;;  %v306_v1 = vsub.f32 0.0, %v4230_v3  ;;  %v4280_v26 = vadd.f32 %v3880_v21, %v398_v7  ;;  %v2875_v45 = vld [vmem:[%s5876_s1 + $0x31] ss:$0 sm:$0xff] }
  0x4f   : > { %5980 = vst [vmem:[#allocation44_spill] sm:$0xff] %v4257_v63  ;;  %v4283_v15 = vadd.f32 %v3883_v22, %v399_v44  ;;  %v358_v10 = vsub.f32 0.0, %v4244_v5  ;;  %v359_v0 = vsub.f32 0.0, %v4247_v4  ;;  %v451_v55 = vadd.f32 %v3898_v27, %v440_v17 }
  0x50   : > { %5981 = vst [vmem:[#allocation45_spill] sm:$0xff] %v4280_v26  ;;  %v493_v3 = vadd.f32 %v491_v20, %v3916_v33  ;;  %v256_v2 = vmul.f32 1.442695, %v253_v52  ;;  %v452_v21 = vadd.f32 %v3901_v28, %v441_v6  ;;  %v494_v22 = vadd.f32 %v491_v20, %v3919_v34 }
  0x51   : > { %5982 = vst [vmem:[#allocation46_spill] sm:$0xff] %v4283_v15  ;;  %v4298_v7 = vmul.f32 %v2871_v31, %v4267_v23  ;;  %v307_v44 = vmul.f32 1.442695, %v305_v11  ;;  %v4303_v63 = vmul.f32 %v2874_v49, %v4273_v58  ;;  %v4306_v4 = vmul.f32 %v2874_v49, %v4286_v9  ;;  %v2878_v31 = vld [vmem:[%s5876_s1 + $0x39] ss:$0 sm:$0xff] }
  0x52   : > { %v4309_v27 = vmul.f32 %v2875_v45, %v4223_v43  ;;  %3218 = vpow2.f32 %v254_v24  ;;  %v309_v28 = vmul.f32 1.442695, %v306_v1  ;;  %v411_v33 = vsub.f32 0.0, %v4280_v26  ;;  %v2881_v11 = vld [vmem:[%s5876_s1 + $0x41] ss:$0 sm:$0xff] }
  0x53   : > { %v412_v34 = vsub.f32 0.0, %v4283_v15  ;;  %v360_v17 = vmul.f32 1.442695, %v358_v10  ;;  %v362_v52 = vmul.f32 1.442695, %v359_v0  ;;  %v4317_v6 = vadd.f32 %v3904_v29, %v451_v55 }
  0x54   : > { %v504_v20 = vadd.f32 %v3922_v35, %v493_v3  ;;  %3220 = vpow2.f32 %v256_v2  ;;  %v4324_v49 = vadd.f32 %v3907_v30, %v452_v21  ;;  %v505_v24 = vadd.f32 %v3925_v36, %v494_v22  ;;  %v2884_v2 = vld [vmem:[%s5876_s1 + $0x32] ss:$0 sm:$0xff]  ;;  %v2887_v3 = vld [vmem:[%s5876_s1 + $0x3a] ss:$0 sm:$0xff]  ;;  %v2890_v22 = vld [vmem:[%s5876_s1 + $0x42] ss:$0 sm:$0xff] }
  0x55   : > { %5983 = vst [vmem:[#allocation47_spill] sm:$0xff] %v4317_v6  ;;  %v544_v1 = vstv %s4300_s4  ;;  %3222 = vpow2.f32 %v307_v44  ;;  %v4329_v10 = vmul.f32 %v2875_v45, %v4226_v19  ;;  %v4332_v29 = vmul.f32 %v2878_v31, %v4238_v46 }
  0x56   : > { %5984 = vst [vmem:[#allocation48_spill] sm:$0xff] %v4324_v49  ;;  %v4335_v35 = vmul.f32 %v2878_v31, %v4267_v23  ;;  %3224 = vpow2.f32 %v309_v28  ;;  %v413_v30 = vmul.f32 1.442695, %v411_v33  ;;  %v415_v0 = vmul.f32 1.442695, %v412_v34 }
  0x57   : > { %v4343_v36 = vmul.f32 %v2881_v11, %v4273_v58  ;;  %3226 = vpow2.f32 %v360_v17  ;;  %v464_v45 = vsub.f32 0.0, %v4317_v6  ;;  %v4350_v55 = vadd.f32 %v3934_v39, %v504_v20  ;;  %v2893_v20 = vld [vmem:[%s5876_s1 + $0x33] ss:$0 sm:$0xff] }
  0x58   : > { %v546_v21 = vadd.f32 %v544_v1, %v3940_v41  ;;  %3228 = vpow2.f32 %v362_v52  ;;  %v465_v44 = vsub.f32 0.0, %v4324_v49  ;;  %v4358_v28 = vadd.f32 %v3937_v40, %v505_v24 }
  0x59   : > { %5985 = vst [vmem:[#allocation49_spill] sm:$0xff] %v4350_v55  ;;  %v4361_v33 = vmul.f32 %v2881_v11, %v4286_v9  ;;  %v597_v34 = vstv %s4340_s11  ;;  %v4367_v39 = vmul.f32 %v2884_v2, %v4223_v43  ;;  %v4370_v41 = vmul.f32 %v2884_v2, %v4226_v19  ;;  %v2896_v11 = vld [vmem:[%s5876_s1 + $0x3b] ss:$0 sm:$0xff]  ;;  %s4501_s11 = spop %3136 }
  0x5a   : > { %5986 = vst [vmem:[#allocation50_spill] sm:$0xff] %v4358_v28  ;;  %v4373_v31 = vmul.f32 %v2887_v3, %v4238_v46  ;;  %3230 = vpow2.f32 %v413_v30  ;;  %v547_v40 = vadd.f32 %v544_v1, %v3943_v42  ;;  %v4377_v17 = vmul.f32 %v2887_v3, %v4267_v23  ;;  %v2899_v1 = vld [vmem:[%s5876_s1 + $0x43] ss:$0 sm:$0xff]  ;;  %s4518_s18 = spop %3138 }
  0x5b   : > { %v4380_v52 = vmul.f32 %v2890_v22, %v4273_v58  ;;  %3232 = vpow2.f32 %v415_v0  ;;  %v466_v24 = vmul.f32 1.442695, %v464_v45  ;;  %v517_v2 = vsub.f32 0.0, %v4350_v55  ;;  %s4529_s19 = spop %3140 }
  0x5c   : > { %5987 = vst [vmem:[#allocation51_spill] sm:$0xff] %v4377_v17  ;;  %v557_v42 = vadd.f32 %v3952_v53, %v546_v21  ;;  %v468_v30 = vmul.f32 1.442695, %v465_v44  ;;  %v518_v3 = vsub.f32 0.0, %v4358_v28  ;;  %v599_v49 = vadd.f32 %v597_v34, %v3975_v8  ;;  %s4559_s24 = spop %3142 }
  0x5d   : > { %5988 = vst [vmem:[#allocation52_spill] sm:$0xff] %v4380_v52  ;;  %v4399_v0 = vmul.f32 %v2890_v22, %v4286_v9  ;;  %v4402_v45 = vmul.f32 %v2893_v20, %v4223_v43  ;;  %v4405_v53 = vmul.f32 %v2893_v20, %v4226_v19  ;;  %v4408_v21 = vmul.f32 %v2896_v11, %v4238_v46  ;;  %v2902_v22 = vld [vmem:[%s5876_s1 + $0x34] ss:$0 sm:$0xff]  ;;  %v2905_v20 = vld [vmem:[%s5876_s1 + $0x3c] ss:$0 sm:$0xff]  ;;  %s4591_s27 = spop %3144 }
  0x5e   : > { %v558_v44 = vadd.f32 %v3955_v54, %v547_v40  ;;  %v600_v8 = vadd.f32 %v597_v34, %v3978_v13  ;;  %v4413_v6 = vmul.f32 %v2896_v11, %v4267_v23  ;;  %v4416_v28 = vmul.f32 %v2899_v1, %v4273_v58  ;;  %v5997_v11 = vld [vmem:[#allocation3_spill] sm:$0xff]  ;;  %s4653_s8 = spop %3146 }
  0x5f   : > { %5989 = vst [vmem:[#allocation53_spill] sm:$0xff] %v4399_v0  ;;  %5990 = vst [vmem:[#allocation54_spill] sm:$0xff] %v4402_v45  ;;  %v3219_v55 = vpop.eup %3218  ;;  %3234 = vpow2.f32 %v466_v24  ;;  %v519_v15 = vmul.f32 1.442695, %v517_v2  ;;  %v4425_v54 = vadd.f32 %v3958_v59, %v557_v42  ;;  %v5996_v13 = vstv %s4364_s20 }
  0x60   : > { %5991 = vst [vmem:[#allocation55_spill] sm:$0xff] %v4405_v53  ;;  %5992 = vst [vmem:[#allocation56_spill] sm:$0xff] %v4408_v21  ;;  %v653_v34 = vadd.f32 %v5996_v13, %v3999_v32  ;;  %3236 = vpow2.f32 %v468_v30  ;;  %v521_v40 = vmul.f32 1.442695, %v518_v3  ;;  %v610_v26 = vadd.f32 %v5997_v11, %v599_v49  ;;  %v2908_v49 = vld [vmem:[%s5876_s1 + $0x44] ss:$0 sm:$0xff] }
  0x61   : > { %5993 = vst [vmem:[#allocation57_spill] sm:$0xff] %v4413_v6  ;;  %5994 = vst [vmem:[#allocation58_spill] sm:$0xff] %v4416_v28  ;;  %v4434_v5 = vmul.f32 %v2899_v1, %v4286_v9  ;;  %v3221_v28 = vpop.eup %3220  ;;  %v4437_v24 = vmul.f32 %v2902_v22, %v4223_v43  ;;  %v4440_v59 = vmul.f32 %v2902_v22, %v4226_v19  ;;  %v6003_v1 = vld [vmem:[#allocation2_spill] sm:$0xff]  ;;  %v6005_v3 = vld [vmem:[#allocation4_spill] sm:$0xff]  ;;  %v776_v22 = vstv %s4430_s6 }
  0x62   : > { %5995 = vst [vmem:[#allocation59_spill] sm:$0xff] %v4425_v54  ;;  %v4443_v2 = vmul.f32 %v2905_v20, %v4238_v46  ;;  %v4446_v32 = vmul.f32 %v2905_v20, %v4267_v23  ;;  %v3223_v42 = vpop.eup %3222  ;;  %v4452_v30 = vadd.f32 %v6003_v1, %v558_v44  ;;  %v611_v13 = vadd.f32 %v6005_v3, %v600_v8  ;;  %v6006_v20 = vld [vmem:[#allocation9_spill] sm:$0xff] }
  0x63   : > { %5998 = vst [vmem:[#allocation3_spill] sm:$0xff] %v4434_v5  ;;  %5999 = vst [vmem:[#allocation60_spill] sm:$0xff] %v4437_v24  ;;  %v3225_v5 = vpop.eup %3224  ;;  %v258_v6 = vadd.f32 1.0, %v3219_v55  ;;  %3238 = vpow2.f32 %v519_v15  ;;  %v6007_v44 = vld [vmem:[#allocation5_spill] sm:$0xff]  ;;  %v4465_v8 = vmul.f32 %v2908_v49, %v4273_v58  ;;  %v311_v11 = vadd.f32 1.0, %v3223_v42  ;;  %v6010_v55 = vld [vmem:[#allocation12_spill] sm:$0xff] }
  0x64   : > { %6000 = vst [vmem:[#allocation61_spill] sm:$0xff] %v4440_v59  ;;  %6001 = vst [vmem:[#allocation62_spill] sm:$0xff] %v4443_v2  ;;  %v570_v2 = vsub.f32 0.0, %v4425_v54  ;;  %v3227_v0 = vpop.eup %3226  ;;  %v259_v59 = vadd.f32 1.0, %v3221_v28  ;;  %3240 = vpow2.f32 %v521_v40  ;;  %v4462_v1 = vadd.f32 %v6007_v44, %v610_v26  ;;  %v6012_v54 = vld [vmem:[#allocation16_spill] sm:$0xff]  ;;  %v6014_v40 = vld [vmem:[#allocation6_spill] sm:$0xff] }
  0x65   : > { %6002 = vst [vmem:[#allocation63_spill] sm:$0xff] %v4446_v32  ;;  %6004 = vst [vmem:[#allocation2_spill] sm:$0xff] %v4452_v30  ;;  %v664_v32 = vadd.f32 %v6006_v20, %v653_v34  ;;  %v3229_v3 = vpop.eup %3228  ;;  %v6011_v15 = vstv %s4396_s28  ;;  %v778_v52 = vadd.f32 %v776_v22, %v6012_v54  ;;  %v4472_v34 = vmul.f32 %v2908_v49, %v4286_v9  ;;  %v6016_v42 = vld [vmem:[#allocation10_spill] sm:$0xff] }
  0x66   : > { %6008 = vst [vmem:[#allocation4_spill] sm:$0xff] %v4462_v1  ;;  %6009 = vst [vmem:[#allocation9_spill] sm:$0xff] %v4465_v8  ;;  %v717_v21 = vadd.f32 %v6011_v15, %v6010_v55  ;;  %v312_v20 = vadd.f32 1.0, %v3225_v5  ;;  %v571_v28 = vsub.f32 0.0, %v4452_v30  ;;  %v4476_v24 = vadd.f32 %v6014_v40, %v611_v13  ;;  %v6017_v15 = vld [vmem:[#allocation17_spill] sm:$0xff]  ;;  %v6018_v13 = vld [vmem:[#allocation14_spill] sm:$0xff] }
  0x67   : > { %6013 = vst [vmem:[#allocation5_spill] sm:$0xff] %v4472_v34  ;;  %v838_v26 = vstv %s4459_s9  ;;  %v3231_v44 = vpop.eup %3230  ;;  %3242 = vrcp.f32 %v258_v6  ;;  %v364_v8 = vadd.f32 1.0, %v3227_v0  ;;  %v572_v53 = vmul.f32 1.442695, %v570_v2  ;;  %v6019_v30 = vld [vmem:[#allocation18_spill] sm:$0xff]  ;;  %s3571_s9 = smov 32  }
  0x68   : > { %6015 = vst [vmem:[#allocation12_spill] sm:$0xff] %v4476_v24  ;;  %v4480_v17 = vadd.f32 %v6016_v42, %v664_v32  ;;  %v3233_v55 = vpop.eup %3232  ;;  %3244 = vrcp.f32 %v259_v59  ;;  %v365_v54 = vadd.f32 1.0, %v3229_v3  ;;  %v623_v49 = vsub.f32 0.0, %v4462_v1  ;;  %v6020_v0 = vld [vmem:[#allocation22_spill] sm:$0xff]  ;;  %v6021_v59 = vld [vmem:[#allocation23_spill] sm:$0xff] }
  0x69   : > { %v779_v5 = vadd.f32 %v776_v22, %v6017_v15  ;;  %3246 = vrcp.f32 %v311_v11  ;;  %v728_v40 = vadd.f32 %v6018_v13, %v717_v21  ;;  %v789_v6 = vadd.f32 %v6019_v30, %v778_v52  ;;  %v6022_v21 = vld [vmem:[#allocation19_spill] sm:$0xff] }
  0x6a   : > { %v840_v2 = vadd.f32 %v838_v26, %v6020_v0  ;;  %3248 = vrcp.f32 %v312_v20  ;;  %v417_v32 = vadd.f32 1.0, %v3231_v44  ;;  %v624_v42 = vsub.f32 0.0, %v4476_v24  ;;  %v6023_v30 = vld [vmem:[#allocation15_spill] sm:$0xff]  ;;  %v6024_v44 = vld [vmem:[#allocation20_spill] sm:$0xff]  ;;  %v2914_v24 = vld [vmem:[%s5876_s1 + $0x3d] ss:$0 sm:$0xff] }
  0x6b   : > { %v841_v3 = vadd.f32 %v838_v26, %v6021_v59  ;;  %3250 = vrcp.f32 %v364_v8  ;;  %v574_v1 = vmul.f32 1.442695, %v571_v28  ;;  %v677_v22 = vsub.f32 0.0, %v4480_v17  ;;  %v6026_v26 = vld [vmem:[#allocation24_spill] sm:$0xff] }
  0x6c   : > { %v900_v15 = vstv %s4484_s10  ;;  %v3235_v34 = vpop.eup %3234  ;;  %3252 = vrcp.f32 %v365_v54  ;;  %v418_v11 = vadd.f32 1.0, %v3233_v55  ;;  %v625_v45 = vmul.f32 1.442695, %v623_v49  ;;  %v6027_v54 = vld [vmem:[#allocation25_spill] sm:$0xff]  ;;  %v6028_v49 = vld [vmem:[#allocation28_spill] sm:$0xff] }
  0x6d   : > { %v790_v13 = vadd.f32 %v6022_v21, %v779_v5  ;;  %v3237_v52 = vpop.eup %3236  ;;  %3254 = vpow2.f32 %v572_v53  ;;  %v4495_v20 = vadd.f32 %v6023_v30, %v728_v40  ;;  %v4498_v0 = vadd.f32 %v6024_v44, %v789_v6  ;;  %v6029_v21 = vld [vmem:[#allocation29_spill] sm:$0xff]  ;;  %v2911_v6 = vld [vmem:[%s5876_s1 + $0x35] ss:$0 sm:$0xff] }
  0x6e   : > { %v851_v8 = vadd.f32 %v6026_v26, %v840_v2  ;;  %3256 = vrcp.f32 %v417_v32  ;;  %v627_v28 = vmul.f32 1.442695, %v624_v42  ;;  %v852_v55 = vadd.f32 %v6027_v54, %v841_v3  ;;  %v6030_v44 = vld [vmem:[#allocation21_spill] sm:$0xff] }
  0x6f   : > { %6025 = vst [vmem:[#allocation16_spill] sm:$0xff] %v4498_v0  ;;  %v902_v59 = vadd.f32 %v900_v15, %v6028_v49  ;;  %v470_v5 = vadd.f32 1.0, %v3235_v34  ;;  %3258 = vpow2.f32 %v574_v1  ;;  %v680_v53 = vmul.f32 1.442695, %v677_v22  ;;  %v6031_v34 = vld [vmem:[#allocation26_spill] sm:$0xff] }
  0x70   : > { %v903_v40 = vadd.f32 %v900_v15, %v6029_v21  ;;  %v3239_v30 = vpop.eup %3238  ;;  %3260 = vrcp.f32 %v418_v11  ;;  %v471_v2 = vadd.f32 1.0, %v3237_v52  ;;  %v4510_v26 = vadd.f32 %v6030_v44, %v790_v13  ;;  %v6033_v15 = vld [vmem:[#allocation27_spill] sm:$0xff]  ;;  %v6034_v52 = vld [vmem:[#allocation30_spill] sm:$0xff] }
  0x71   : > { %v962_v32 = vstv %s4501_s11  ;;  %v3241_v42 = vpop.eup %3240  ;;  %3262 = vpow2.f32 %v625_v45  ;;  %v741_v3 = vsub.f32 0.0, %v4495_v20  ;;  %v802_v1 = vsub.f32 0.0, %v4498_v0  ;;  %s4677_s11 = spop %3148 }
  0x72   : > { %v4516_v22 = vadd.f32 %v6031_v34, %v851_v8  ;;  %3264 = vpow2.f32 %v627_v28  ;;  %v4521_v11 = vadd.f32 %v6033_v15, %v852_v55  ;;  %v913_v13 = vadd.f32 %v6034_v52, %v902_v59  ;;  %v6038_v52 = vld [vmem:[#allocation33_spill] sm:$0xff]  ;;  %s4685_s16 = spop %3150 }
  0x73   : > { %v4525_v54 = vmul.f32 %v2911_v6, %v4223_v43  ;;  %3266 = vrcp.f32 %v470_v5  ;;  %v523_v45 = vadd.f32 1.0, %v3239_v30  ;;  %v914_v49 = vadd.f32 %v4119_v51, %v903_v40  ;;  %v6036_v40 = vld [vmem:[#allocation31_spill] sm:$0xff] }
  0x74   : > { %6032 = vst [vmem:[#allocation6_spill] sm:$0xff] %v4516_v22  ;;  %v964_v21 = vadd.f32 %v962_v32, %v4133_v50  ;;  %v4531_v8 = vpop.eup %3242  ;;  %3268 = vrcp.f32 %v471_v2  ;;  %v524_v28 = vadd.f32 1.0, %v3241_v42  ;;  %v803_v55 = vsub.f32 0.0, %v4510_v26 }
  0x75   : > { %v1024_v44 = vstv %s4518_s18  ;;  %v4535_v59 = vpop.eup %3244  ;;  %3270 = vpow2.f32 %v680_v53  ;;  %v744_v34 = vmul.f32 1.442695, %v741_v3  ;;  %v804_v5 = vmul.f32 1.442695, %v802_v1  ;;  %v6039_v53 = vld [vmem:[#allocation32_spill] sm:$0xff] }
  0x76   : > { %v864_v30 = vsub.f32 0.0, %v4516_v22  ;;  %v4538_v51 = vpop.eup %3246  ;;  %v865_v50 = vsub.f32 0.0, %v4521_v11  ;;  %v4542_v15 = vadd.f32 %v6036_v40, %v913_v13  ;;  %v965_v2 = vadd.f32 %v962_v32, %v6038_v52 }
  0x77   : > { %6035 = vst [vmem:[#allocation10_spill] sm:$0xff] %v4538_v51  ;;  %v1086_v42 = vstv %s4529_s19  ;;  %v4549_v0 = vpop.eup %3248  ;;  %3272 = vrcp.f32 %v523_v45  ;;  %v4552_v3 = vadd.f32 %v6039_v53, %v914_v49  ;;  %v975_v1 = vadd.f32 %v4148_v62, %v964_v21  ;;  %v6046_v53 = vld [vmem:[#allocation37_spill] sm:$0xff]  ;;  %s4723_s19 = spop %3152 }
  0x78   : > { %6037 = vst [vmem:[#allocation17_spill] sm:$0xff] %v4542_v15  ;;  %v1026_v51 = vadd.f32 %v1024_v44, %v4167_v56  ;;  %v4556_v22 = vpop.eup %3250  ;;  %3274 = vrcp.f32 %v524_v28  ;;  %v806_v13 = vmul.f32 1.442695, %v803_v55  ;;  %v1027_v32 = vadd.f32 %v1024_v44, %v4170_v37  ;;  %v6043_v55 = vld [vmem:[#allocation34_spill] sm:$0xff] }
  0x79   : > { %6040 = vst [vmem:[#allocation14_spill] sm:$0xff] %v4552_v3  ;;  %6041 = vst [vmem:[#allocation18_spill] sm:$0xff] %v4556_v22  ;;  %v4562_v40 = vmul.f32 %v2911_v6, %v4226_v19  ;;  %v4564_v45 = vpop.eup %3252  ;;  %3276 = vpow2.f32 %v744_v34  ;;  %v866_v49 = vmul.f32 1.442695, %v864_v30  ;;  %v1088_v62 = vadd.f32 %v1086_v42, %v4203_v38  ;;  %v2917_v6 = vld [vmem:[%s5876_s1 + $0x45] ss:$0 sm:$0xff] }
  0x7a   : > { %6042 = vst [vmem:[#allocation22_spill] sm:$0xff] %v4564_v45  ;;  %v4568_v56 = vmul.f32 %v2914_v24, %v4238_v46  ;;  %v3255_v21 = vpop.eup %3254  ;;  %3278 = vpow2.f32 %v804_v5  ;;  %v868_v28 = vmul.f32 1.442695, %v865_v50  ;;  %v926_v37 = vsub.f32 0.0, %v4542_v15  ;;  %v6045_v30 = vld [vmem:[#allocation35_spill] sm:$0xff] }
  0x7b   : > { %v976_v44 = vadd.f32 %v6043_v55, %v965_v2  ;;  %v4575_v52 = vpop.eup %3256  ;;  %v927_v34 = vsub.f32 0.0, %v4552_v3  ;;  %v4579_v38 = vadd.f32 %v6045_v30, %v975_v1  ;;  %v1037_v45 = vadd.f32 %v6046_v53, %v1026_v51 }
  0x7c   : > { %6044 = vst [vmem:[#allocation23_spill] sm:$0xff] %v4575_v52  ;;  %v1148_v22 = vstv %s4559_s24  ;;  %v3259_v5 = vpop.eup %3258  ;;  %3280 = vpow2.f32 %v806_v13  ;;  %v1038_v50 = vadd.f32 %v4190_v60, %v1027_v32  ;;  %v1089_v2 = vadd.f32 %v1086_v42, %v4214_v61  ;;  %v6048_v13 = vld [vmem:[#allocation36_spill] sm:$0xff]  ;;  %s3108_s24 = sshll.u32 %s6205_s12, 9 }
  0x7d   : > { %v4586_v55 = vmul.f32 %v2914_v24, %v4267_v23  ;;  %v4588_v15 = vpop.eup %3260  ;;  %v576_v52 = vadd.f32 1.0, %v3255_v21  ;;  %3282 = vpow2.f32 %v866_v49  ;;  %v1099_v3 = vadd.f32 %v4217_v48, %v1088_v62  ;;  %s5369_s4 = scalar_lea.vmem %s5878_s3, %s3108_s24 }
  0x7e   : > { %6047 = vst [vmem:[#allocation19_spill] sm:$0xff] %v4588_v15  ;;  %v4594_v51 = vmul.f32 %v2917_v6, %v4273_v58  ;;  %v3263_v1 = vpop.eup %3262  ;;  %3284 = vpow2.f32 %v868_v28  ;;  %v928_v60 = vmul.f32 1.442695, %v926_v37  ;;  %v4597_v61 = vadd.f32 %v6048_v13, %v976_v44 }
  0x7f   : > { %v1150_v24 = vadd.f32 %v1148_v22, %v4261_v25  ;;  %v3265_v42 = vpop.eup %3264  ;;  %v577_v32 = vadd.f32 1.0, %v3259_v5  ;;  %v930_v21 = vmul.f32 1.442695, %v927_v34  ;;  %v988_v49 = vsub.f32 0.0, %v4579_v38 }
  0x80   : > { %v4602_v48 = vadd.f32 %v4193_v57, %v1037_v45  ;;  %v4604_v62 = vpop.eup %3266  ;;  %v4607_v30 = vadd.f32 %v4200_v16, %v1038_v50  ;;  %v1100_v28 = vadd.f32 %v4220_v14, %v1089_v2  ;;  %v1151_v37 = vadd.f32 %v1148_v22, %v4264_v12  ;;  %v2920_v12 = vld [vmem:[%s5876_s1 + $0x36] ss:$0 sm:$0xff] }
  0x81   : > { %6050 = vst [vmem:[#allocation20_spill] sm:$0xff] %v4604_v62  ;;  %v1209_v44 = vstv %s4591_s27  ;;  %v4612_v53 = vpop.eup %3268  ;;  %3286 = vrcp.f32 %v576_v52  ;;  %v629_v25 = vadd.f32 1.0, %v3263_v1  ;;  %v4615_v34 = vadd.f32 %v4251_v18, %v1099_v3  ;;  %v6055_v50 = vld [vmem:[#allocation44_spill] sm:$0xff]  ;;  %v2923_v1 = vld [vmem:[%s5876_s1 + $0x3e] ss:$0 sm:$0xff] }
  0x82   : > { %6049 = vst [vmem:[#allocation15_spill] sm:$0xff] %v4602_v48  ;;  %6051 = vst [vmem:[#allocation24_spill] sm:$0xff] %v4607_v30  ;;  %v4618_v57 = vmul.f32 %v2917_v6, %v4286_v9  ;;  %v3271_v45 = vpop.eup %3270  ;;  %v630_v5 = vadd.f32 1.0, %v3265_v42  ;;  %3288 = vpow2.f32 %v928_v60  ;;  %v989_v16 = vsub.f32 0.0, %v4597_v61 }
  0x83   : > { %6052 = vst [vmem:[#allocation25_spill] sm:$0xff] %v4612_v53  ;;  %6053 = vst [vmem:[#allocation28_spill] sm:$0xff] %v4615_v34  ;;  %v1161_v14 = vadd.f32 %v4270_v47, %v1150_v24  ;;  %3290 = vrcp.f32 %v577_v32  ;;  %v990_v22 = vmul.f32 1.442695, %v988_v49  ;;  %v1050_v52 = vsub.f32 0.0, %v4602_v48 }
  0x84   : > { %v1211_v18 = vadd.f32 %v1209_v44, %v4309_v27  ;;  %v4627_v3 = vpop.eup %3272  ;;  %3292 = vpow2.f32 %v930_v21  ;;  %v1051_v6 = vsub.f32 0.0, %v4607_v30  ;;  %v4631_v2 = vadd.f32 %v6055_v50, %v1100_v28  ;;  %v2926_v49 = vld [vmem:[%s5876_s1 + $0x46] ss:$0 sm:$0xff] }
  0x85   : > { %6054 = vst [vmem:[#allocation29_spill] sm:$0xff] %v4627_v3  ;;  %v1162_v47 = vadd.f32 %v4298_v7, %v1151_v37  ;;  %v4637_v60 = vpop.eup %3274  ;;  %3294 = vrcp.f32 %v629_v25  ;;  %v683_v13 = vadd.f32 1.0, %v3271_v45  ;;  %v1112_v27 = vsub.f32 0.0, %v4615_v34 }
  0x86   : > { %6056 = vst [vmem:[#allocation21_spill] sm:$0xff] %v4631_v2  ;;  %6057 = vst [vmem:[#allocation26_spill] sm:$0xff] %v4637_v60  ;;  %v4641_v24 = vmul.f32 %v2920_v12, %v4223_v43  ;;  %v3277_v42 = vpop.eup %3276  ;;  %3296 = vrcp.f32 %v630_v5  ;;  %v992_v32 = vmul.f32 1.442695, %v989_v16  ;;  %v4644_v21 = vadd.f32 %v4303_v63, %v1161_v14 }
  0x87   : > { %v4647_v7 = vmul.f32 %v2920_v12, %v4226_v19  ;;  %v3279_v28 = vpop.eup %3278  ;;  %3298 = vpow2.f32 %v990_v22  ;;  %v1052_v37 = vmul.f32 1.442695, %v1050_v52  ;;  %v1222_v25 = vadd.f32 %v4332_v29, %v1211_v18 }
  0x88   : > { %6058 = vst [vmem:[#allocation27_spill] sm:$0xff] %v4644_v21  ;;  %v4656_v45 = vmul.f32 %v2923_v1, %v4238_v46  ;;  %v1054_v63 = vmul.f32 1.442695, %v1051_v6  ;;  %v1113_v5 = vsub.f32 0.0, %v4631_v2  ;;  %v4660_v16 = vadd.f32 %v4306_v4, %v1162_v47  ;;  %v2929_v4 = vld [vmem:[%s5876_s1 + $0x37] ss:$0 sm:$0xff] }
  0x89   : > { %v1212_v14 = vadd.f32 %v1209_v44, %v4329_v10  ;;  %v3281_v12 = vpop.eup %3280  ;;  %3300 = vrcp.f32 %v683_v13  ;;  %v1114_v22 = vmul.f32 1.442695, %v1112_v27  ;;  %v4664_v52 = vmul.f32 %v2923_v1, %v4267_v23 }
  0x8a   : > { %6059 = vst [vmem:[#allocation30_spill] sm:$0xff] %v4660_v16  ;;  %v4667_v29 = vmul.f32 %v2926_v49, %v4273_v58  ;;  %v3283_v18 = vpop.eup %3282  ;;  %v747_v50 = vadd.f32 1.0, %v3277_v42  ;;  %3302 = vpow2.f32 %v992_v32  ;;  %v1174_v6 = vsub.f32 0.0, %v4644_v21  ;;  %v6069_v21 = vld [vmem:[#allocation60_spill] sm:$0xff] }
  0x8b   : > { %v1269_v60 = vstv %s4653_s8  ;;  %v3285_v10 = vpop.eup %3284  ;;  %v808_v44 = vadd.f32 1.0, %v3279_v28  ;;  %3304 = vpow2.f32 %v1052_v37  ;;  %v4675_v47 = vadd.f32 %v4343_v36, %v1222_v25 }
  0x8c   : > { %v4680_v1 = vmul.f32 %v2926_v49, %v4286_v9  ;;  %3306 = vpow2.f32 %v1054_v63  ;;  %v1116_v13 = vmul.f32 1.442695, %v1113_v5  ;;  %v1175_v27 = vsub.f32 0.0, %v4660_v16 }
  0x8d   : > { %6060 = vst [vmem:[#allocation31_spill] sm:$0xff] %v4675_v47  ;;  %v1223_v42 = vadd.f32 %v4335_v35, %v1212_v14  ;;  %v809_v32 = vadd.f32 1.0, %v3281_v12  ;;  %3308 = vpow2.f32 %v1114_v22  ;;  %v1271_v28 = vadd.f32 %v1269_v60, %v4367_v39 }
  0x8e   : > { %v4688_v36 = vmul.f32 %v2929_v4, %v4223_v43  ;;  %v4690_v37 = vpop.eup %3286  ;;  %3310 = vrcp.f32 %v747_v50  ;;  %v1176_v49 = vmul.f32 1.442695, %v1174_v6  ;;  %v1272_v25 = vadd.f32 %v1269_v60, %v4370_v41  ;;  %v2932_v41 = vld [vmem:[%s5876_s1 + $0x3f] ss:$0 sm:$0xff] }
  0x8f   : > { %6061 = vst [vmem:[#allocation33_spill] sm:$0xff] %v4690_v37  ;;  %v1329_v63 = vstv %s4677_s11  ;;  %v3289_v5 = vpop.eup %3288  ;;  %3312 = vrcp.f32 %v808_v44  ;;  %v870_v35 = vadd.f32 1.0, %v3283_v18  ;;  %v1235_v14 = vsub.f32 0.0, %v4675_v47 }
  0x90   : > { %v4696_v39 = vmul.f32 %v2929_v4, %v4226_v19  ;;  %v4698_v12 = vpop.eup %3290  ;;  %3314 = vpow2.f32 %v1116_v13  ;;  %v1178_v22 = vmul.f32 1.442695, %v1175_v27  ;;  %v4701_v3 = vadd.f32 %v4361_v33, %v1223_v42  ;;  %v6064_v4 = vld [vmem:[#allocation54_spill] sm:$0xff]  ;;  %v6066_v27 = vld [vmem:[#allocation51_spill] sm:$0xff] }
  0x91   : > { %6062 = vst [vmem:[#allocation32_spill] sm:$0xff] %v4698_v12  ;;  %v1389_v50 = vstv %s4685_s16  ;;  %v3293_v60 = vpop.eup %3292  ;;  %3316 = vrcp.f32 %v809_v32  ;;  %v871_v18 = vadd.f32 1.0, %v3285_v10  ;;  %v1282_v6 = vadd.f32 %v4373_v31, %v1271_v28  ;;  %v6067_v42 = vld [vmem:[#allocation55_spill] sm:$0xff] }
  0x92   : > { %6063 = vst [vmem:[#allocation34_spill] sm:$0xff] %v4701_v3  ;;  %v1331_v44 = vadd.f32 %v1329_v63, %v6064_v4  ;;  %v4709_v37 = vpop.eup %3294  ;;  %v932_v13 = vadd.f32 1.0, %v3289_v5  ;;  %3318 = vpow2.f32 %v1176_v49  ;;  %v1283_v33 = vadd.f32 %v6066_v27, %v1272_v25  ;;  %v6070_v32 = vld [vmem:[#allocation7_spill] sm:$0xff]  ;;  %v6072_v25 = vld [vmem:[#allocation52_spill] sm:$0xff]  ;;  %v4733_v27 = vld [vmem:[%s5876_s1 + $0x47] ss:$0 sm:$0xff] }
  0x93   : > { %6065 = vst [vmem:[#allocation35_spill] sm:$0xff] %v4709_v37  ;;  %v1332_v12 = vadd.f32 %v1329_v63, %v6067_v42  ;;  %v4713_v47 = vpop.eup %3296  ;;  %3320 = vrcp.f32 %v870_v35  ;;  %v1237_v53 = vmul.f32 1.442695, %v1235_v14  ;;  %v1391_v16 = vadd.f32 %v1389_v50, %v6069_v21  ;;  %v6074_v5 = vld [vmem:[#allocation56_spill] sm:$0xff]  ;;  %v6075_v35 = vld [vmem:[#allocation61_spill] sm:$0xff] }
  0x94   : > { %6068 = vst [vmem:[#allocation37_spill] sm:$0xff] %v4713_v47  ;;  %v4717_v10 = vmul.f32 %v2932_v41, %v4238_v46  ;;  %v3299_v31 = vpop.eup %3298  ;;  %v6071_v28 = vstv %s4364_s20  ;;  %v933_v37 = vadd.f32 1.0, %v3293_v60  ;;  %3322 = vpow2.f32 %v1178_v22  ;;  %v6076_v22 = vld [vmem:[#allocation53_spill] sm:$0xff]  ;;  %s4741_s20 = spop %3154  ;;  %v6080_v47 = vld [vmem:[#allocation8_spill] sm:$0xff] }
  0x95   : > { %v652_v4 = vadd.f32 %v6071_v28, %v6070_v32  ;;  %v1236_v49 = vsub.f32 0.0, %v4701_v3  ;;  %3324 = vrcp.f32 %v871_v18  ;;  %v4726_v63 = vadd.f32 %v6072_v25, %v1282_v6  ;;  %v6078_v32 = vld [vmem:[#allocation57_spill] sm:$0xff]  ;;  %v6079_v28 = vld [vmem:[#allocation62_spill] sm:$0xff] }
  0x96   : > { %v1342_v21 = vadd.f32 %v6074_v5, %v1331_v44  ;;  %v1392_v14 = vadd.f32 %v1389_v50, %v6075_v35  ;;  %v4735_v60 = vpop.eup %3300  ;;  %3326 = vrcp.f32 %v932_v13  ;;  %v4738_v42 = vadd.f32 %v6076_v22, %v1283_v33 }
  0x97   : > { %6073 = vst [vmem:[#allocation36_spill] sm:$0xff] %v4726_v63  ;;  %v1343_v18 = vadd.f32 %v6078_v32, %v1332_v12  ;;  %v4744_v6 = vmul.f32 %v2932_v41, %v4267_v23  ;;  %v3303_v50 = vpop.eup %3302  ;;  %v994_v44 = vadd.f32 1.0, %v3299_v31  ;;  %3328 = vpow2.f32 %v1237_v53  ;;  %v6081_v32 = vld [vmem:[#allocation58_spill] sm:$0xff]  ;;  %v6083_v53 = vld [vmem:[#allocation63_spill] sm:$0xff] }
  0x98   : > { %6077 = vst [vmem:[#allocation44_spill] sm:$0xff] %v4738_v42  ;;  %v1402_v25 = vadd.f32 %v6079_v28, %v1391_v16  ;;  %v1449_v5 = vstv %s4723_s19  ;;  %v3305_v35 = vpop.eup %3304  ;;  %v4749_v13 = vadd.f32 %v6080_v47, %v652_v4  ;;  %3330 = vrcp.f32 %v933_v37  ;;  %v6084_v37 = vld [vmem:[#allocation3_spill] sm:$0xff] }
  0x99   : > { %v1239_v33 = vmul.f32 1.442695, %v1236_v49  ;;  %v4753_v12 = vmul.f32 %v4733_v27, %v4273_v58  ;;  %v3307_v22 = vpop.eup %3306  ;;  %v1295_v41 = vsub.f32 0.0, %v4726_v63  ;;  %v4757_v31 = vadd.f32 %v6081_v32, %v1342_v21  ;;  %v6086_v63 = vld [vmem:[#allocation9_spill] sm:$0xff]  ;;  %v6088_v32 = vld [vmem:[#allocation11_spill] sm:$0xff] }
  0x9a   : > { %v1403_v16 = vadd.f32 %v6083_v53, %v1392_v14  ;;  %v1509_v28 = vstv %s4741_s20  ;;  %v3309_v3 = vpop.eup %3308  ;;  %v995_v62 = vadd.f32 1.0, %v3303_v50  ;;  %v1296_v47 = vsub.f32 0.0, %v4738_v42 }
  0x9b   : > { %6082 = vst [vmem:[#allocation54_spill] sm:$0xff] %v4757_v31  ;;  %v4763_v4 = vadd.f32 %v6084_v37, %v1343_v18  ;;  %v1451_v49 = vadd.f32 %v1449_v5, %v4525_v54  ;;  %v4766_v15 = vpop.eup %3310  ;;  %3332 = vrcp.f32 %v994_v44  ;;  %v1056_v34 = vadd.f32 1.0, %v3305_v35  ;;  %v6090_v35 = vld [vmem:[#allocation5_spill] sm:$0xff] }
  0x9c   : > { %v4769_v2 = vadd.f32 %v6086_v63, %v1402_v25  ;;  %v1452_v21 = vadd.f32 %v1449_v5, %v4562_v40  ;;  %v4772_v14 = vpop.eup %3312  ;;  %v6089_v50 = vstv %s4396_s28  ;;  %v1057_v42 = vadd.f32 1.0, %v3307_v22  ;;  %s4786_s28 = spop %3156 }
  0x9d   : > { %6085 = vst [vmem:[#allocation51_spill] sm:$0xff] %v4763_v4  ;;  %v716_v53 = vadd.f32 %v6089_v50, %v6088_v32  ;;  %3334 = vpow2.f32 %v1239_v33  ;;  %v1511_v18 = vadd.f32 %v1509_v28, %v4641_v24  ;;  %v3315_v37 = vpop.eup %3314  ;;  %v1118_v54 = vadd.f32 1.0, %v3309_v3  ;;  %s4811_s26 = spop %3158 }
  0x9e   : > { %6087 = vst [vmem:[#allocation55_spill] sm:$0xff] %v4769_v2  ;;  %v1297_v48 = vmul.f32 1.442695, %v1295_v41  ;;  %v1355_v44 = vsub.f32 0.0, %v4757_v31  ;;  %v4780_v30 = vadd.f32 %v6090_v35, %v1403_v16  ;;  %v4782_v63 = vpop.eup %3316  ;;  %3336 = vrcp.f32 %v995_v62  ;;  %v6092_v16 = vld [vmem:[#allocation13_spill] sm:$0xff]  ;;  %s4878_s11 = spop %3160 }
  0x9f   : > { %v1299_v40 = vmul.f32 1.442695, %v1296_v47  ;;  %v1356_v25 = vsub.f32 0.0, %v4763_v4  ;;  %v1462_v5 = vadd.f32 %v4568_v56, %v1451_v49  ;;  %v3319_v24 = vpop.eup %3318  ;;  %3338 = vrcp.f32 %v1056_v34  ;;  %s3163_s20 = spop %3162 }
  0xa0   : > { %6091 = vst [vmem:[#allocation60_spill] sm:$0xff] %v4780_v30  ;;  %v1415_v3 = vsub.f32 0.0, %v4769_v2  ;;  %v1463_v33 = vadd.f32 %v4586_v55, %v1452_v21  ;;  %v1512_v22 = vadd.f32 %v1509_v28, %v4647_v7  ;;  %v4791_v41 = vpop.eup %3320  ;;  %v727_v62 = vadd.f32 %v6092_v16, %v716_v53  ;;  %s4941_s27 = spop %3164 }
  0xa1   : > { %3340 = vrcp.f32 %v1057_v42  ;;  %v1119_v47 = vadd.f32 1.0, %v3315_v37  ;;  %v1522_v32 = vadd.f32 %v4656_v45, %v1511_v18  ;;  %v3323_v56 = vpop.eup %3322  ;;  %v1357_v49 = vmul.f32 1.442695, %v1355_v44  ;;  %v2938_v42 = vld [vmem:[%s5876_s1 + $0x48] ss:$0 sm:$0xff]  ;;  %s4967_s8 = spop %3166 }
  0xa2   : > { %3342 = vrcp.f32 %v1118_v54  ;;  %v1416_v50 = vsub.f32 0.0, %v4780_v30  ;;  %v1569_v34 = vstv %s4786_s28  ;;  %v4797_v35 = vpop.eup %3324  ;;  %v1180_v2 = vadd.f32 1.0, %v3319_v24  ;;  %s4992_s19 = spop %3168 }
  0xa3   : > { %3344 = vpow2.f32 %v1297_v48  ;;  %v1359_v55 = vmul.f32 1.442695, %v1356_v25  ;;  %v4800_v7 = vadd.f32 %v4594_v51, %v1462_v5  ;;  %v4805_v28 = vpop.eup %3326  ;;  %v1417_v45 = vmul.f32 1.442695, %v1415_v3 }
  0xa4   : > { %3346 = vpow2.f32 %v1299_v40  ;;  %v4808_v21 = vadd.f32 %v4618_v57, %v1463_v33  ;;  %v1523_v53 = vadd.f32 %v4664_v52, %v1512_v22  ;;  %v3329_v48 = vpop.eup %3328  ;;  %v1181_v51 = vadd.f32 1.0, %v3323_v56 }
  0xa5   : > { %6093 = vst [vmem:[#allocation7_spill] sm:$0xff] %v4800_v7  ;;  %3348 = vrcp.f32 %v1119_v47  ;;  %v4814_v18 = vadd.f32 %v4667_v29, %v1522_v32  ;;  %v1571_v37 = vadd.f32 %v1569_v34, %v4688_v36  ;;  %v4817_v54 = vpop.eup %3330  ;;  %v1419_v44 = vmul.f32 1.442695, %v1416_v50  ;;  %v2941_v29 = vld [vmem:[%s5876_s1 + $0x50] ss:$0 sm:$0xff] }
  0xa6   : > { %6094 = vst [vmem:[#allocation52_spill] sm:$0xff] %v4808_v21  ;;  %3350 = vpow2.f32 %v1357_v49  ;;  %v1572_v57 = vadd.f32 %v1569_v34, %v4696_v39  ;;  %v1625_v40 = vmul.f32 %v2938_v42, %v4223_v43  ;;  %v1475_v52 = vsub.f32 0.0, %v4800_v7 }
  0xa7   : > { %6095 = vst [vmem:[#allocation56_spill] sm:$0xff] %v4814_v18  ;;  %3352 = vrcp.f32 %v1180_v2  ;;  %v1626_v25 = vmul.f32 %v2938_v42, %v4226_v19  ;;  %v1629_v5 = vstv %s4811_s26  ;;  %v1241_v24 = vadd.f32 1.0, %v3329_v48  ;;  %s5028_s26 = spop %3170 }
  0xa8   : > { %3354 = vpow2.f32 %v1359_v55  ;;  %v1476_v36 = vsub.f32 0.0, %v4808_v21  ;;  %v4829_v3 = vadd.f32 %v4680_v1, %v1523_v53  ;;  %v4831_v39 = vpop.eup %3332  ;;  %v1535_v43 = vsub.f32 0.0, %v4814_v18  ;;  %v3538_v1 = vld [vmem:[%s5876_s1 + $0x29] ss:$0 sm:$0xff]  ;;  %s5107_s10 = spop %3172 }
  0xa9   : > { %3356 = vrcp.f32 %v1181_v51  ;;  %v1582_v2 = vadd.f32 %v4717_v10, %v1571_v37  ;;  %v1592_v19 = vmul.f32 %v4733_v27, %v4286_v9  ;;  %v1583_v22 = vadd.f32 %v4744_v6, %v1572_v57  ;;  %v2944_v10 = vld [vmem:[%s5876_s1 + $0x58] ss:$0 sm:$0xff]  ;;  %v3539_v27 = vld [vmem:[%s5876_s1 + $0x28] ss:$0 sm:$0xff]  ;;  %s5155_s21 = spop %3174 }
  0xaa   : > { %6096 = vst [vmem:[#allocation61_spill] sm:$0xff] %v4829_v3  ;;  %v3335_v33 = vpop.eup %3334  ;;  %v1631_v16 = vadd.f32 %v1629_v5, %v1625_v40  ;;  %v1640_v47 = vmul.f32 %v2941_v29, %v4238_v46  ;;  %v736_v32 = vmul.f32 %v3538_v1, %v4273_v58  ;;  %v1477_v56 = vmul.f32 1.442695, %v1475_v52 }
  0xab   : > { %v1632_v49 = vadd.f32 %v1629_v5, %v1626_v25  ;;  %v1641_v50 = vmul.f32 %v2941_v29, %v4267_v23  ;;  %v672_v46 = vmul.f32 %v3539_v27, %v4273_v58  ;;  %v4851_v6 = vpop.eup %3336  ;;  %3358 = vpow2.f32 %v1417_v45 }
  0xac   : > { %v1479_v34 = vmul.f32 1.442695, %v1476_v36  ;;  %v1536_v55 = vsub.f32 0.0, %v4829_v3  ;;  %v4854_v42 = vadd.f32 %v736_v32, %v727_v62  ;;  %v4856_v53 = vpop.eup %3338  ;;  %3360 = vpow2.f32 %v1419_v44 }
  0xad   : > { %v1537_v23 = vmul.f32 1.442695, %v1535_v43  ;;  %v4859_v48 = vadd.f32 %v4753_v12, %v1582_v2  ;;  %v4862_v51 = vadd.f32 %v672_v46, %v4749_v13  ;;  %v4866_v57 = vadd.f32 %v1592_v19, %v1583_v22  ;;  %v2945_v13 = vld [vmem:[%s5876_s1 + $0x49] ss:$0 sm:$0xff]  ;;  %v2948_v46 = vld [vmem:[%s5876_s1 + $0x51] ss:$0 sm:$0xff] }
  0xae   : > { %v4864_v37 = vpop.eup %3340  ;;  %v1642_v45 = vadd.f32 %v1640_v47, %v1631_v16  ;;  %v1651_v40 = vmul.f32 %v2944_v10, %v4273_v58  ;;  %v740_v62 = vsub.f32 0.0, %v4854_v42  ;;  %3362 = vrcp.f32 %v1241_v24 }
  0xaf   : > { %6097 = vst [vmem:[#allocation53_spill] sm:$0xff] %v4859_v48  ;;  %6098 = vst [vmem:[#allocation57_spill] sm:$0xff] %v4866_v57  ;;  %v4870_v52 = vpop.eup %3342  ;;  %v1643_v44 = vadd.f32 %v1641_v50, %v1632_v49  ;;  %v1652_v25 = vmul.f32 %v2944_v10, %v4286_v9  ;;  %v676_v12 = vsub.f32 0.0, %v4862_v51  ;;  %3364 = vpow2.f32 %v1477_v56  ;;  %v4894_v50 = vld [vmem:[%s3730_s22 + $0x8] sm:$0xff] }
  0xb0   : > { %v3345_v5 = vpop.eup %3344  ;;  %v742_v29 = vmul.f32 1.442695, %v740_v62  ;;  %v1242_v58 = vadd.f32 1.0, %v3335_v33  ;;  %3366 = vpow2.f32 %v1479_v34  ;;  %v1595_v43 = vsub.f32 0.0, %v4859_v48  ;;  %v4888_v33 = vld [vmem:[%s3730_s22] sm:$0xff] }
  0xb1   : > { %v3347_v36 = vpop.eup %3346  ;;  %v678_v24 = vmul.f32 1.442695, %v676_v12  ;;  %3368 = vpow2.f32 %v1537_v23  ;;  %v1539_v2 = vmul.f32 1.442695, %v1536_v55  ;;  %v1596_v19 = vsub.f32 0.0, %v4866_v57  ;;  %v4906_v12 = vld [vmem:[%s3730_s22 + $0x10] sm:$0xff] }
  0xb2   : > { %v4880_v9 = vpop.eup %3348  ;;  %v4883_v22 = vadd.f32 %v1651_v40, %v1642_v45  ;;  %v1301_v47 = vadd.f32 1.0, %v3345_v5  ;;  %v4885_v1 = vadd.f32 %v1652_v25, %v1643_v44  ;;  %v1689_v32 = vmul.f32 %v4888_v33, %v2945_v13 }
  0xb3   : > { %v3351_v16 = vpop.eup %3350  ;;  %3370 = vpow2.f32 %v742_v29  ;;  %v1302_v49 = vadd.f32 1.0, %v3347_v36  ;;  %v1690_v10 = vmul.f32 %v4894_v50, %v2945_v13  ;;  %v1693_v27 = vstv %s4878_s11  ;;  %v4910_v29 = vld [vmem:[%s3730_s22 + $0x18] sm:$0xff] }
  0xb4   : > { %6099 = vst [vmem:[#allocation62_spill] sm:$0xff] %v4883_v22  ;;  %6100 = vst [vmem:[#allocation8_spill] sm:$0xff] %v4885_v1  ;;  %v4891_v56 = vpop.eup %3352  ;;  %3372 = vpow2.f32 %v678_v24  ;;  %v1597_v55 = vmul.f32 1.442695, %v1595_v43  ;;  %v1361_v45 = vadd.f32 1.0, %v3351_v16  ;;  %v1655_v62 = vsub.f32 0.0, %v4883_v22 }
  0xb5   : > { %v3355_v34 = vpop.eup %3354  ;;  %3374 = vrcp.f32 %v1242_v58  ;;  %v1599_v40 = vmul.f32 1.442695, %v1596_v19  ;;  %v1656_v44 = vsub.f32 0.0, %v4885_v1  ;;  %v1695_v25 = vadd.f32 %v1693_v27, %v1689_v32  ;;  %v2951_v58 = vld [vmem:[%s5876_s1 + $0x59] ss:$0 sm:$0xff] }
  0xb6   : > { %v4901_v23 = vpop.eup %3356  ;;  %3376 = vpow2.f32 %v1539_v2  ;;  %v1704_v5 = vmul.f32 %v4906_v12, %v2948_v46  ;;  %v1696_v13 = vadd.f32 %v1693_v27, %v1690_v10  ;;  %v1705_v36 = vmul.f32 %v4910_v29, %v2948_v46  ;;  %v2956_v2 = vld [vmem:[%s5876_s1 + $0x4a] ss:$0 sm:$0xff] }
  0xb7   : > { %3378 = vrcp.f32 %v1301_v47  ;;  %v1362_v24 = vadd.f32 1.0, %v3355_v34  ;;  %v1657_v16 = vmul.f32 1.442695, %v1655_v62  ;;  %v1659_v47 = vmul.f32 1.442695, %v1656_v44 }
  0xb8   : > { %3380 = vrcp.f32 %v1302_v49  ;;  %v3359_v43 = vpop.eup %3358  ;;  %v1706_v32 = vadd.f32 %v1704_v5, %v1695_v25  ;;  %v4920_v49 = vld [vmem:[%s3730_s22 + $0x20] sm:$0xff]  ;;  %v1707_v34 = vadd.f32 %v1705_v36, %v1696_v13  ;;  %v1751_v1 = vmul.f32 %v4888_v33, %v2956_v2  ;;  %v2959_v5 = vld [vmem:[%s5876_s1 + $0x52] ss:$0 sm:$0xff]  ;;  %v2967_v36 = vld [vmem:[%s5876_s1 + $0x4b] ss:$0 sm:$0xff] }
  0xb9   : > { %3382 = vpow2.f32 %v1597_v55  ;;  %v3361_v19 = vpop.eup %3360  ;;  %v1715_v10 = vmul.f32 %v4920_v49, %v2951_v58  ;;  %v1421_v46 = vadd.f32 1.0, %v3359_v43  ;;  %v4926_v55 = vld [vmem:[%s3730_s22 + $0x28] sm:$0xff]  ;;  %v1755_v62 = vstv %s3163_s20 }
  0xba   : > { %3384 = vrcp.f32 %v1361_v45  ;;  %v1716_v22 = vmul.f32 %v4926_v55, %v2951_v58  ;;  %v1422_v25 = vadd.f32 1.0, %v3361_v19  ;;  %v1766_v48 = vmul.f32 %v4906_v12, %v2959_v5 }
  0xbb   : > { %3386 = vpow2.f32 %v1599_v40  ;;  %v4923_v27 = vpop.eup %3362  ;;  %v1752_v40 = vmul.f32 %v4894_v50, %v2956_v2  ;;  %v4934_v13 = vadd.f32 %v1715_v10, %v1706_v32  ;;  %v1757_v2 = vadd.f32 %v1755_v62, %v1751_v1 }
  0xbc   : > { %v3365_v45 = vpop.eup %3364  ;;  %3388 = vrcp.f32 %v1362_v24  ;;  %v4939_v24 = vadd.f32 %v1716_v22, %v1707_v34  ;;  %v1813_v22 = vmul.f32 %v4888_v33, %v2967_v36  ;;  %v1814_v1 = vmul.f32 %v4894_v50, %v2967_v36  ;;  %v2978_v36 = vld [vmem:[%s5876_s1 + $0x4c] ss:$0 sm:$0xff] }
  0xbd   : > { %v3367_v44 = vpop.eup %3366  ;;  %3390 = vpow2.f32 %v1657_v16  ;;  %6101 = vst [vmem:[#allocation58_spill] sm:$0xff] %v4934_v13  ;;  %v1758_v16 = vadd.f32 %v1755_v62, %v1752_v40  ;;  %v1481_v18 = vadd.f32 1.0, %v3365_v45  ;;  %v1719_v40 = vsub.f32 0.0, %v4934_v13 }
  0xbe   : > { %v3369_v43 = vpop.eup %3368  ;;  %3392 = vpow2.f32 %v1659_v47  ;;  %6102 = vst [vmem:[#allocation63_spill] sm:$0xff] %v4939_v24  ;;  %v1767_v47 = vmul.f32 %v4910_v29, %v2959_v5  ;;  %v1817_v62 = vstv %s4941_s27  ;;  %v2970_v5 = vld [vmem:[%s5876_s1 + $0x53] ss:$0 sm:$0xff]  ;;  %v1720_v7 = vsub.f32 0.0, %v4939_v24  ;;  %s5195_s27 = spop %3176 }
  0xbf   : > { %3394 = vrcp.f32 %v1421_v46  ;;  %v2962_v46 = vld [vmem:[%s5876_s1 + $0x5a] ss:$0 sm:$0xff]  ;;  %v1541_v3 = vadd.f32 1.0, %v3369_v43  ;;  %v1819_v43 = vadd.f32 %v1817_v62, %v1813_v22  ;;  %v1829_v24 = vmul.f32 %v4910_v29, %v2970_v5  ;;  %v2981_v22 = vld [vmem:[%s5876_s1 + $0x54] ss:$0 sm:$0xff] }
  0xc0   : > { %v3371_v58 = vpop.eup %3370  ;;  %3396 = vrcp.f32 %v1422_v25  ;;  %v1769_v13 = vadd.f32 %v1767_v47, %v1758_v16  ;;  %v1777_v21 = vmul.f32 %v4920_v49, %v2962_v46  ;;  %v1778_v30 = vmul.f32 %v4926_v55, %v2962_v46 }
  0xc1   : > { %v3373_v19 = vpop.eup %3372  ;;  %v746_v32 = vadd.f32 1.0, %v3371_v58  ;;  %v1482_v58 = vadd.f32 1.0, %v3367_v44  ;;  %v1721_v4 = vmul.f32 1.442695, %v1719_v40  ;;  %v1879_v46 = vstv %s4967_s8  ;;  %v2989_v40 = vld [vmem:[%s5876_s1 + $0x4d] ss:$0 sm:$0xff] }
  0xc2   : > { %v4945_v10 = vpop.eup %3374  ;;  %v682_v34 = vadd.f32 1.0, %v3373_v19  ;;  %v1768_v19 = vadd.f32 %v1766_v48, %v1757_v2  ;;  %v2973_v48 = vld [vmem:[%s5876_s1 + $0x5b] ss:$0 sm:$0xff]  ;;  %v1875_v2 = vmul.f32 %v4888_v33, %v2978_v36  ;;  %s3573_s8 = smov 64  }
  0xc3   : > { %v3377_v57 = vpop.eup %3376  ;;  %3398 = vrcp.f32 %v746_v32  ;;  %v1820_v32 = vadd.f32 %v1817_v62, %v1814_v1  ;;  %v1723_v1 = vmul.f32 1.442695, %v1720_v7 }
  0xc4   : > { %v4957_v25 = vpop.eup %3378  ;;  %3400 = vrcp.f32 %v682_v34  ;;  %v1828_v34 = vmul.f32 %v4906_v12, %v2970_v5  ;;  %v1542_v47 = vadd.f32 1.0, %v3377_v57  ;;  %v4981_v62 = vadd.f32 %v1777_v21, %v1768_v19 }
  0xc5   : > { %6103 = vst [vmem:[#allocation3_spill] sm:$0xff] %v4957_v25  ;;  %v4963_v45 = vpop.eup %3380  ;;  %3402 = vrcp.f32 %v1481_v18  ;;  %v4983_v18 = vadd.f32 %v1778_v30, %v1769_v13  ;;  %v1839_v57 = vmul.f32 %v4920_v49, %v2973_v48  ;;  %v1840_v25 = vmul.f32 %v4926_v55, %v2973_v48 }
  0xc6   : > { %6104 = vst [vmem:[#allocation9_spill] sm:$0xff] %v4963_v45  ;;  %v3383_v44 = vpop.eup %3382  ;;  %3404 = vrcp.f32 %v1482_v58  ;;  %6106 = vst [vmem:[#allocation5_spill] sm:$0xff] %v4981_v62  ;;  %v1831_v58 = vadd.f32 %v1829_v24, %v1820_v32  ;;  %v1876_v30 = vmul.f32 %v4894_v50, %v2978_v36  ;;  %v1881_v21 = vadd.f32 %v1879_v46, %v1875_v2  ;;  %v2984_v24 = vld [vmem:[%s5876_s1 + $0x5c] ss:$0 sm:$0xff]  ;;  %v2992_v2 = vld [vmem:[%s5876_s1 + $0x55] ss:$0 sm:$0xff] }
  0xc7   : > { %v4971_v31 = vpop.eup %3384  ;;  %3406 = vrcp.f32 %v1541_v3  ;;  %6107 = vst [vmem:[#allocation13_spill] sm:$0xff] %v4983_v18  ;;  %v1890_v3 = vmul.f32 %v4906_v12, %v2981_v22  ;;  %v1601_v19 = vadd.f32 1.0, %v3383_v44  ;;  %v1782_v36 = vsub.f32 0.0, %v4983_v18  ;;  %v5021_v45 = vld [vmem:[%s3730_s22] sm:$0xff]  ;;  %v3000_v18 = vld [vmem:[%s5876_s1 + $0x4e] ss:$0 sm:$0xff] }
  0xc8   : > { %6105 = vst [vmem:[#allocation11_spill] sm:$0xff] %v4971_v31  ;;  %v3387_v16 = vpop.eup %3386  ;;  %v1830_v31 = vadd.f32 %v1828_v34, %v1819_v43  ;;  %3408 = vpow2.f32 %v1721_v4  ;;  %v1937_v43 = vmul.f32 %v4888_v33, %v2989_v40  ;;  %v1781_v4 = vsub.f32 0.0, %v4981_v62 }
  0xc9   : > { %v4988_v5 = vpop.eup %3388  ;;  %3410 = vrcp.f32 %v1542_v47  ;;  %v1602_v34 = vadd.f32 1.0, %v3387_v16  ;;  %v1941_v48 = vstv %s4992_s19  ;;  %v5014_v47 = vadd.f32 %v1840_v25, %v1831_v58 }
  0xca   : > { %6108 = vst [vmem:[#allocation64_spill] sm:$0xff] %v4988_v5  ;;  %v4994_v7 = vpop.eup %3390  ;;  %3412 = vpow2.f32 %v1723_v1  ;;  %v5012_v44 = vadd.f32 %v1839_v57, %v1830_v31  ;;  %v1882_v33 = vadd.f32 %v1879_v46, %v1876_v30  ;;  %v1892_v16 = vadd.f32 %v1890_v3, %v1881_v21  ;;  %v2995_v21 = vld [vmem:[%s5876_s1 + $0x5d] ss:$0 sm:$0xff] }
  0xcb   : > { %v4998_v13 = vpop.eup %3392  ;;  %6111 = vst [vmem:[#allocation67_spill] sm:$0xff] %v5014_v47  ;;  %v1901_v62 = vmul.f32 %v4920_v49, %v2984_v24  ;;  %3414 = vrcp.f32 %v1601_v19  ;;  %v1938_v31 = vmul.f32 %v4894_v50, %v2989_v40  ;;  %v1943_v25 = vadd.f32 %v1941_v48, %v1937_v43  ;;  %v5038_v40 = vld [vmem:[%s3730_s22 + $0x8] sm:$0xff] }
  0xcc   : > { %v5004_v32 = vpop.eup %3394  ;;  %6110 = vst [vmem:[#allocation66_spill] sm:$0xff] %v5012_v44  ;;  %v1952_v58 = vmul.f32 %v4906_v12, %v2992_v2  ;;  %3416 = vrcp.f32 %v1602_v34  ;;  %v1785_v57 = vmul.f32 1.442695, %v1782_v36  ;;  %v1843_v3 = vsub.f32 0.0, %v5012_v44  ;;  %v5047_v36 = vld [vmem:[%s3730_s22 + $0x10] sm:$0xff] }
  0xcd   : > { %6109 = vst [vmem:[#allocation65_spill] sm:$0xff] %v5004_v32  ;;  %v5016_v5 = vpop.eup %3396  ;;  %v1891_v32 = vmul.f32 %v4910_v29, %v2981_v22  ;;  %v1783_v22 = vmul.f32 1.442695, %v1781_v4  ;;  %v1844_v50 = vsub.f32 0.0, %v5014_v47  ;;  %v1999_v19 = vmul.f32 %v3000_v18, %v5021_v45 }
  0xce   : > { %v5043_v34 = vadd.f32 %v1901_v62, %v1892_v16  ;;  %v2003_v4 = vstv %s5028_s26  ;;  %v751_v44 = vmul.f32 %v4766_v15, %v4495_v20  ;;  %v2000_v47 = vmul.f32 %v3000_v18, %v5038_v40  ;;  %v5082_v15 = vld [vmem:[%s3730_s22 + $0x20] sm:$0xff] }
  0xcf   : > { %v1893_v43 = vadd.f32 %v1891_v32, %v1882_v33  ;;  %v1954_v32 = vadd.f32 %v1952_v58, %v1943_v25  ;;  %v6113_v33 = vld [vmem:[#allocation38_spill] sm:$0xff]  ;;  %3418 = vpow2.f32 %v1783_v22  ;;  %v6114_v25 = vld [vmem:[#allocation39_spill] sm:$0xff]  ;;  %v1847_v58 = vmul.f32 1.442695, %v1844_v50 }
  0xd0   : > { %v3399_v1 = vpop.eup %3398  ;;  %6112 = vst [vmem:[#allocation68_spill] sm:$0xff] %v5043_v34  ;;  %v5061_v16 = vmul.f32 %v4531_v8, %v6113_v33  ;;  %v5076_v8 = vmul.f32 %v4535_v59, %v6114_v25  ;;  %3420 = vpow2.f32 %v1785_v57  ;;  %v1905_v18 = vsub.f32 0.0, %v5043_v34 }
  0xd1   : > { %v3401_v46 = vpop.eup %3400  ;;  %v750_v30 = vmul.f32 %v3399_v1, %v4854_v42  ;;  %v1902_v42 = vmul.f32 %v4926_v55, %v2984_v24  ;;  %v3003_v1 = vld [vmem:[%s5876_s1 + $0x56] ss:$0 sm:$0xff]  ;;  %v1963_v24 = vmul.f32 %v4920_v49, %v2995_v21  ;;  %v2005_v49 = vadd.f32 %v2003_v4, %v1999_v19 }
  0xd2   : > { %v686_v12 = vmul.f32 %v3401_v46, %v4862_v51  ;;  %v5052_v51 = vpop.eup %3402  ;;  %v1944_v46 = vadd.f32 %v1941_v48, %v1938_v31  ;;  %v1845_v48 = vmul.f32 1.442695, %v1843_v3  ;;  %v2014_v31 = vmul.f32 %v3003_v1, %v5047_v36  ;;  %265 = vst.msk [vmem:[%s5369_s4] sm:$0xff] %vm264_vm0, %v5061_v16  ;;  %266 = vst.msk [vmem:[%s5369_s4 + $0x20] sm:$0xff] %vm264_vm0, %v5076_v8 }
  0xd3   : > { %754 = vrot.lane.b32.xlu1 %v750_v30, %s3570_s30  ;;  %v1953_v30 = vmul.f32 %v4910_v29, %v2992_v2  ;;  %v5057_v62 = vpop.eup %3404  ;;  %v687_v29 = vmul.f32 %v4735_v60, %v4480_v17  ;;  %v5071_v2 = vld [vmem:[%s3730_s22 + $0x18] sm:$0xff]  ;;  %v5078_v20 = vadd.f32 %v1902_v42, %v1893_v43  ;;  %v1964_v22 = vmul.f32 %v4926_v55, %v2995_v21  ;;  %v3011_v42 = vld [vmem:[%s5876_s1 + $0x4f] ss:$0 sm:$0xff] }
  0xd4   : > { %690 = vrot.lane.b32.xlu0 %v686_v12, %s3570_s30  ;;  %v5066_v12 = vpop.eup %3406  ;;  %v3006_v17 = vld [vmem:[%s5876_s1 + $0x5e] ss:$0 sm:$0xff]  ;;  %v5090_v57 = vadd.f32 %v1963_v24, %v1954_v32  ;;  %v813_v50 = vmul.f32 %v4782_v63, %v4510_v26  ;;  %v2006_v19 = vadd.f32 %v2003_v4, %v2000_v47  ;;  %v2015_v43 = vmul.f32 %v3003_v1, %v5071_v2 }
  0xd5   : > { %v3409_v60 = vpop.eup %3408  ;;  %v1955_v59 = vadd.f32 %v1953_v30, %v1944_v46  ;;  %3422 = vpow2.f32 %v1845_v48  ;;  %v6116_v46 = vld [vmem:[#allocation16_spill] sm:$0xff]  ;;  %v2016_v21 = vadd.f32 %v2014_v31, %v2005_v49  ;;  %v5104_v30 = vld [vmem:[%s3730_s22 + $0x28] sm:$0xff]  ;;  %v2025_v32 = vmul.f32 %v3006_v17, %v5082_v15 }
  0xd6   : > { %6115 = vst [vmem:[#allocation38_spill] sm:$0xff] %v5090_v57  ;;  %v5092_v3 = vpop.eup %3410  ;;  %v812_v55 = vmul.f32 %v4772_v14, %v6116_v46  ;;  %v1662_v63 = vadd.f32 1.0, %v4998_v13  ;;  %3424 = vpow2.f32 %v1847_v58  ;;  %v1906_v47 = vsub.f32 0.0, %v5078_v20  ;;  %v3014_v31 = vld [vmem:[%s5876_s1 + $0x57] ss:$0 sm:$0xff] }
  0xd7   : > { %756 = vrot.lane.b32.xlu1 %v751_v44, %s3570_s30  ;;  %v1661_v44 = vadd.f32 1.0, %v4994_v7  ;;  %v3413_v26 = vpop.eup %3412  ;;  %v1725_v7 = vadd.f32 1.0, %v3409_v60  ;;  %v1907_v4 = vmul.f32 1.442695, %v1905_v18  ;;  %v5112_v1 = vadd.f32 %v1964_v22, %v1955_v59  ;;  %v6119_v60 = vld [vmem:[#allocation6_spill] sm:$0xff]  ;;  %v6120_v22 = vld [vmem:[#allocation40_spill] sm:$0xff] }
  0xd8   : > { %692 = vrot.lane.b32.xlu0 %v687_v29, %s3570_s30  ;;  %v1967_v14 = vsub.f32 0.0, %v5090_v57  ;;  %v2061_v24 = vmul.f32 %v3011_v42, %v5021_v45  ;;  %v5117_v33 = vpop.eup %3414  ;;  %v2017_v48 = vadd.f32 %v2015_v43, %v2006_v19  ;;  %v2026_v13 = vmul.f32 %v3006_v17, %v5104_v30  ;;  %v6121_v17 = vld [vmem:[#allocation10_spill] sm:$0xff] }
  0xd9   : > { %6117 = vst [vmem:[#allocation39_spill] sm:$0xff] %v5112_v1  ;;  %v875_v29 = vmul.f32 %v4797_v35, %v4521_v11  ;;  %v2065_v49 = vstv %s5107_s10  ;;  %v5126_v25 = vpop.eup %3416  ;;  %3426 = vrcp.f32 %v1661_v44  ;;  %v5128_v58 = vadd.f32 %v2025_v32, %v2016_v21  ;;  %v6122_v11 = vld [vmem:[#allocation41_spill] sm:$0xff]  ;;  %v6124_v21 = vld [vmem:[#allocation14_spill] sm:$0xff] }
  0xda   : > { %v874_v18 = vmul.f32 %v4791_v41, %v6119_v60  ;;  %v2062_v59 = vmul.f32 %v3011_v42, %v5038_v40  ;;  %v5139_v35 = vmul.f32 %v4549_v0, %v6122_v11  ;;  %3428 = vrcp.f32 %v1662_v63  ;;  %v3022_v42 = vld [vmem:[%s5876_s1 + $0x60] ss:$0 sm:$0xff] }
  0xdb   : > { %818 = vrot.lane.b32.xlu1 %v813_v50, %s3570_s30  ;;  %6118 = vst [vmem:[#allocation16_spill] sm:$0xff] %v5128_v58  ;;  %v5135_v50 = vmul.f32 %v6121_v17, %v6120_v22  ;;  %v1909_v19 = vmul.f32 1.442695, %v1906_v47  ;;  %3430 = vrcp.f32 %v1725_v7  ;;  %v1968_v44 = vsub.f32 0.0, %v5112_v1 }
  0xdc   : > { %816 = vrot.lane.b32.xlu0 %v812_v55, %s3570_s30  ;;  %v2067_v41 = vadd.f32 %v2065_v49, %v2061_v24  ;;  %v2076_v43 = vmul.f32 %v3014_v31, %v5047_v36  ;;  %3432 = vpow2.f32 %v1907_v4  ;;  %v1969_v46 = vmul.f32 1.442695, %v1967_v14  ;;  %v3017_v55 = vld [vmem:[%s5876_s1 + $0x5f] ss:$0 sm:$0xff]  ;;  %v3419_v63 = vpop.eup %3418  ;;  %2729 = vst.msk [vmem:[%s5369_s4 + $0x60] sm:$0xff] %vm264_vm0, %v5139_v35 }
  0xdd   : > { %v5148_v0 = vadd.f32 %v2026_v13, %v2017_v48  ;;  %v937_v32 = vmul.f32 %v4817_v54, %v6124_v21  ;;  %v2029_v7 = vsub.f32 0.0, %v5128_v58  ;;  %v2068_v47 = vadd.f32 %v2065_v49, %v2062_v59  ;;  %v6125_v4 = vld [vmem:[#allocation17_spill] sm:$0xff]  ;;  %v6126_v48 = vld [vmem:[#allocation42_spill] sm:$0xff]  ;;  %v6168_v58 = vld [vmem:[#allocation4_spill] sm:$0xff]  ;;  %2728 = vst.msk [vmem:[%s5369_s4 + $0x40] sm:$0xff] %vm264_vm0, %v5135_v50 }
  0xde   : > { %v2077_v24 = vmul.f32 %v3014_v31, %v5071_v2  ;;  %v936_v14 = vmul.f32 %v4805_v28, %v6125_v4  ;;  %v6127_v13 = vld [vmem:[#allocation18_spill] sm:$0xff]  ;;  %v1726_v60 = vadd.f32 1.0, %v3413_v26  ;;  %3434 = vpow2.f32 %v1909_v19  ;;  %v3025_v28 = vld [vmem:[%s5876_s1 + $0x68] ss:$0 sm:$0xff] }
  0xdf   : > { %880 = vrot.lane.b32.xlu1 %v875_v29, %s3570_s30  ;;  %6123 = vst [vmem:[#allocation6_spill] sm:$0xff] %v5148_v0  ;;  %v5163_v29 = vmul.f32 %v6127_v13, %v6126_v48  ;;  %v2123_v54 = vmul.f32 %v3022_v42, %v5021_v45  ;;  %v1971_v22 = vmul.f32 1.442695, %v1968_v44  ;;  %v2078_v17 = vadd.f32 %v2076_v43, %v2067_v41  ;;  %v6129_v4 = vld [vmem:[#allocation22_spill] sm:$0xff]  ;;  %v6131_v13 = vld [vmem:[#allocation24_spill] sm:$0xff] }
  0xe0   : > { %878 = vrot.lane.b32.xlu0 %v874_v18, %s3570_s30  ;;  %v3421_v18 = vpop.eup %3420  ;;  %v2087_v49 = vmul.f32 %v3017_v55, %v5082_v15  ;;  %v2127_v31 = vstv %s5155_s21  ;;  %3436 = vpow2.f32 %v1969_v46  ;;  %v2030_v26 = vsub.f32 0.0, %v5148_v0  ;;  %v6169_v0 = vld [vmem:[#allocation35_spill] sm:$0xff] }
  0xe1   : > { %v2124_v59 = vmul.f32 %v3022_v42, %v5038_v40  ;;  %v999_v11 = vmul.f32 %v4851_v6, %v4597_v61  ;;  %v2031_v19 = vmul.f32 1.442695, %v2029_v7  ;;  %v2079_v44 = vadd.f32 %v2077_v24, %v2068_v47  ;;  %v3029_v61 = vld [vmem:[%s5876_s1 + $0x61] ss:$0 sm:$0xff]  ;;  %2737 = vst.msk [vmem:[%s5369_s4 + $0x80] sm:$0xff] %vm264_vm0, %v5163_v29 }
  0xe2   : > { %v2088_v41 = vmul.f32 %v3017_v55, %v5104_v30  ;;  %v998_v43 = vmul.f32 %v4831_v39, %v4579_v38  ;;  %v3423_v21 = vpop.eup %3422  ;;  %3438 = vrcp.f32 %v1726_v60  ;;  %v2129_v46 = vadd.f32 %v2127_v31, %v2123_v54  ;;  %v3028_v39 = vld [vmem:[%s5876_s1 + $0x70] ss:$0 sm:$0xff]  ;;  %v3068_v29 = vld [vmem:[%s5876_s1 + $0x74] ss:$0 sm:$0xff] }
  0xe3   : > { %942 = vrot.lane.b32.xlu1 %v937_v32, %s3570_s30  ;;  %v6128_v32 = vld [vmem:[#allocation43_spill] sm:$0xff]  ;;  %v2138_v48 = vmul.f32 %v3025_v28, %v5047_v36  ;;  %v3425_v6 = vpop.eup %3424  ;;  %v1787_v42 = vadd.f32 1.0, %v3419_v63  ;;  %v1788_v55 = vadd.f32 1.0, %v3421_v18  ;;  %3440 = vpow2.f32 %v1971_v22 }
  0xe4   : > { %940 = vrot.lane.b32.xlu0 %v936_v14, %s3570_s30  ;;  %v5182_v14 = vmul.f32 %v6129_v4, %v6128_v32  ;;  %v5189_v38 = vadd.f32 %v2087_v49, %v2078_v17  ;;  %v2033_v7 = vmul.f32 1.442695, %v2030_v26  ;;  %v2130_v47 = vadd.f32 %v2127_v31, %v2124_v59  ;;  %v6133_v18 = vld [vmem:[#allocation15_spill] sm:$0xff]  ;;  %v6134_v32 = vld [vmem:[#allocation21_spill] sm:$0xff] }
  0xe5   : > { %v2139_v24 = vmul.f32 %v3025_v28, %v5071_v2  ;;  %v1061_v63 = vmul.f32 %v4864_v37, %v6131_v13  ;;  %3442 = vpow2.f32 %v2031_v19  ;;  %v5200_v60 = vadd.f32 %v2088_v41, %v2079_v44  ;;  %v3032_v37 = vld [vmem:[%s5876_s1 + $0x69] ss:$0 sm:$0xff] }
  0xe6   : > { %6130 = vst [vmem:[#allocation40_spill] sm:$0xff] %v5189_v38  ;;  %v2187_v54 = vmul.f32 %v3029_v61, %v5021_v45  ;;  %v1060_v22 = vmul.f32 %v4856_v53, %v6133_v18  ;;  %v5205_v17 = vpop.eup %3426  ;;  %v2140_v49 = vadd.f32 %v2138_v48, %v2129_v46  ;;  %v2188_v31 = vmul.f32 %v3029_v61, %v5038_v40  ;;  %v6139_v18 = vld [vmem:[#allocation46_spill] sm:$0xff] }
  0xe7   : > { %1004 = vrot.lane.b32.xlu1 %v999_v11, %s3570_s30  ;;  %6132 = vst [vmem:[#allocation10_spill] sm:$0xff] %v5200_v60  ;;  %v2149_v11 = vmul.f32 %v3028_v39, %v5082_v15  ;;  %v2191_v26 = vstv %s5195_s27  ;;  %v5214_v28 = vpop.eup %3428  ;;  %3444 = vrcp.f32 %v1787_v42  ;;  %v1849_v59 = vadd.f32 1.0, %v3423_v21  ;;  %2738 = vst.msk [vmem:[%s5369_s4 + $0xa0] sm:$0xff] %vm264_vm0, %v5182_v14 }
  0xe8   : > { %1002 = vrot.lane.b32.xlu0 %v998_v43, %s3570_s30  ;;  %v1850_v19 = vadd.f32 1.0, %v3425_v6  ;;  %v2091_v53 = vsub.f32 0.0, %v5189_v38  ;;  %v5218_v44 = vpop.eup %3430  ;;  %3446 = vpow2.f32 %v2033_v7  ;;  %v2141_v41 = vadd.f32 %v2139_v24, %v2130_v47  ;;  %v6135_v6 = vld [vmem:[#allocation28_spill] sm:$0xff]  ;;  %v6137_v47 = vld [vmem:[#allocation45_spill] sm:$0xff]  ;;  %v6138_v24 = vld [vmem:[#allocation23_spill] sm:$0xff] }
  0xe9   : > { %v2150_v43 = vmul.f32 %v3028_v39, %v5104_v30  ;;  %v1123_v4 = vmul.f32 %v4880_v9, %v6134_v32  ;;  %v3433_v46 = vpop.eup %3432  ;;  %v2092_v48 = vsub.f32 0.0, %v5200_v60  ;;  %v2193_v61 = vadd.f32 %v2191_v26, %v2187_v54  ;;  %v3035_v39 = vld [vmem:[%s5876_s1 + $0x71] ss:$0 sm:$0xff]  ;;  %v6144_v32 = vld [vmem:[#allocation30_spill] sm:$0xff] }
  0xea   : > { %v2202_v21 = vmul.f32 %v3032_v37, %v5047_v36  ;;  %v1122_v42 = vmul.f32 %v4870_v52, %v6135_v6  ;;  %3448 = vrcp.f32 %v1788_v55  ;;  %v5227_v13 = vadd.f32 %v2149_v11, %v2140_v49  ;;  %v6141_v49 = vld [vmem:[#allocation47_spill] sm:$0xff]  ;;  %v6142_v11 = vld [vmem:[#allocation20_spill] sm:$0xff] }
  0xeb   : > { %1066 = vrot.lane.b32.xlu1 %v1061_v63, %s3570_s30  ;;  %v2194_v63 = vadd.f32 %v2191_v26, %v2188_v31  ;;  %v2203_v7 = vmul.f32 %v3032_v37, %v5071_v2  ;;  %v3435_v9 = vpop.eup %3434  ;;  %v5236_v54 = vmul.f32 %v6138_v24, %v6137_v47  ;;  %3450 = vrcp.f32 %v1849_v59  ;;  %v3040_v37 = vld [vmem:[%s5876_s1 + $0x62] ss:$0 sm:$0xff] }
  0xec   : > { %1064 = vrot.lane.b32.xlu0 %v1060_v22, %s3570_s30  ;;  %6136 = vst [vmem:[#allocation41_spill] sm:$0xff] %v5227_v13  ;;  %v6140_v22 = vld [vmem:[#allocation19_spill] sm:$0xff]  ;;  %v2093_v55 = vmul.f32 1.442695, %v2091_v53  ;;  %v5245_v31 = vmul.f32 %v6142_v11, %v6141_v49  ;;  %3452 = vrcp.f32 %v1850_v19  ;;  %v5247_v26 = vadd.f32 %v2150_v43, %v2141_v41  ;;  %v6148_v11 = vld [vmem:[#allocation34_spill] sm:$0xff] }
  0xed   : > { %v5240_v52 = vmul.f32 %v6140_v22, %v6139_v18  ;;  %v3437_v6 = vpop.eup %3436  ;;  %v2095_v47 = vmul.f32 1.442695, %v2092_v48  ;;  %v2204_v59 = vadd.f32 %v2202_v21, %v2193_v61  ;;  %v2213_v53 = vmul.f32 %v3035_v39, %v5082_v15  ;;  %v6146_v48 = vld [vmem:[#allocation48_spill] sm:$0xff]  ;;  %v6147_v61 = vld [vmem:[#allocation25_spill] sm:$0xff]  ;;  %v3043_v49 = vld [vmem:[%s5876_s1 + $0x6a] ss:$0 sm:$0xff] }
  0xee   : > { %6143 = vst [vmem:[#allocation14_spill] sm:$0xff] %v5247_v26  ;;  %v1911_v19 = vadd.f32 1.0, %v3433_v46  ;;  %v2153_v41 = vsub.f32 0.0, %v5227_v13  ;;  %v2205_v43 = vadd.f32 %v2203_v7, %v2194_v63  ;;  %v2214_v18 = vmul.f32 %v3035_v39, %v5104_v30  ;;  %2746 = vst.msk [vmem:[%s5369_s4 + $0xc0] sm:$0xff] %vm264_vm0, %v5236_v54 }
  0xef   : > { %1128 = vrot.lane.b32.xlu1 %v1123_v4, %s3570_s30  ;;  %v1185_v4 = vmul.f32 %v4901_v23, %v6144_v32  ;;  %v5262_v23 = vpop.eup %3438  ;;  %v5266_v21 = vmul.f32 %v6147_v61, %v6146_v48  ;;  %3454 = vpow2.f32 %v2093_v55  ;;  %v2249_v22 = vmul.f32 %v3040_v37, %v5021_v45  ;;  %v6151_v48 = vld [vmem:[#allocation49_spill] sm:$0xff]  ;;  %2747 = vst.msk [vmem:[%s5369_s4 + $0xe0] sm:$0xff] %vm264_vm0, %v5240_v52 }
  0xf0   : > { %1126 = vrot.lane.b32.xlu0 %v1122_v42, %s3570_s30  ;;  %s5255_s30 = spop %3178  ;;  %v6145_v42 = vld [vmem:[#allocation27_spill] sm:$0xff]  ;;  %v3441_v46 = vpop.eup %3440  ;;  %v1912_v63 = vadd.f32 1.0, %v3435_v9  ;;  %v2154_v7 = vsub.f32 0.0, %v5247_v26  ;;  %v1246_v32 = vmul.f32 %v4945_v10, %v6148_v11  ;;  %3456 = vpow2.f32 %v2095_v47  ;;  %v6152_v9 = vld [vmem:[#allocation29_spill] sm:$0xff]  ;;  %2755 = vst.msk [vmem:[%s5369_s4 + $0x100] sm:$0xff] %vm264_vm0, %v5245_v31 }
  0xf1   : > { %v1184_v24 = vmul.f32 %v4891_v56, %v6145_v42  ;;  %v2250_v56 = vmul.f32 %v3040_v37, %v5038_v40  ;;  %v2253_v39 = vstv %s5255_s30  ;;  %v5278_v55 = vadd.f32 %v2213_v53, %v2204_v59  ;;  %v6150_v42 = vld [vmem:[#allocation31_spill] sm:$0xff]  ;;  %v6154_v59 = vld [vmem:[#allocation50_spill] sm:$0xff]  ;;  %s5314_s19 = spop %3180  ;;  %2756 = vst.msk [vmem:[%s5369_s4 + $0x120] sm:$0xff] %vm264_vm0, %v5266_v21  ;;  %v6177_v21 = vld [vmem:[#allocation61_spill] sm:$0xff] }
  0xf2   : > { %v1245_v37 = vmul.f32 %v4923_v27, %v6150_v42  ;;  %v5284_v61 = vmul.f32 %v6152_v9, %v6151_v48  ;;  %3458 = vrcp.f32 %v1911_v19  ;;  %v2155_v13 = vmul.f32 1.442695, %v2153_v41  ;;  %v6155_v53 = vld [vmem:[#allocation26_spill] sm:$0xff]  ;;  %v3046_v41 = vld [vmem:[%s5876_s1 + $0x72] ss:$0 sm:$0xff]  ;;  %s5353_s25 = spop %3182 }
  0xf3   : > { %1190 = vrot.lane.b32.xlu1 %v1185_v4, %s3571_s9  ;;  %v1973_v4 = vadd.f32 1.0, %v3437_v6  ;;  %6149 = vst [vmem:[#allocation17_spill] sm:$0xff] %v5278_v55  ;;  %v5286_v26 = vadd.f32 %v2214_v18, %v2205_v43  ;;  %v2255_v38 = vadd.f32 %v2253_v39, %v2249_v22  ;;  %v2256_v10 = vadd.f32 %v2253_v39, %v2250_v56  ;;  %v6156_v43 = vld [vmem:[#allocation44_spill] sm:$0xff]  ;;  %v6157_v18 = vld [vmem:[#allocation9_spill] sm:$0xff]  ;;  %v6158_v39 = vld [vmem:[#allocation59_spill] sm:$0xff]  ;;  %s5389_s30 = spop %3184 }
  0xf4   : > { %1188 = vrot.lane.b32.xlu0 %v1184_v24, %s3571_s9  ;;  %v3443_v24 = vpop.eup %3442  ;;  %v2264_v6 = vmul.f32 %v3043_v49, %v5047_v36  ;;  %v2265_v47 = vmul.f32 %v3043_v49, %v5071_v2  ;;  %v5296_v11 = vmul.f32 %v6155_v53, %v6154_v59  ;;  %3460 = vrcp.f32 %v1912_v63  ;;  %v6159_v49 = vld [vmem:[#allocation33_spill] sm:$0xff]  ;;  %v3051_v63 = vld [vmem:[%s5876_s1 + $0x63] ss:$0 sm:$0xff]  ;;  %2764 = vst.msk [vmem:[%s5369_s4 + $0x140] sm:$0xff] %vm264_vm0, %v5284_v61  ;;  %v3076_v31 = vld [vmem:[%s5876_s1 + $0x6d] ss:$0 sm:$0xff] }
  0xf5   : > { %6153 = vst [vmem:[#allocation42_spill] sm:$0xff] %v5286_v26  ;;  %v5292_v27 = vpop.eup %3444  ;;  %v2157_v19 = vmul.f32 1.442695, %v2154_v7  ;;  %v1306_v22 = vmul.f32 %v6157_v18, %v6156_v43  ;;  %3462 = vrcp.f32 %v1973_v4  ;;  %v2217_v42 = vsub.f32 0.0, %v5278_v55  ;;  %v6160_v7 = vld [vmem:[#allocation36_spill] sm:$0xff] }
  0xf6   : > { %v3447_v56 = vpop.eup %3446  ;;  %v1974_v9 = vadd.f32 1.0, %v3441_v46  ;;  %v2035_v59 = vadd.f32 1.0, %v3443_v24  ;;  %3464 = vpow2.f32 %v2155_v13  ;;  %v2218_v53 = vsub.f32 0.0, %v5286_v26  ;;  %2765 = vst.msk [vmem:[%s5369_s4 + $0x160] sm:$0xff] %vm264_vm0, %v5296_v11 }
  0xf7   : > { %1251 = vrot.lane.b32.xlu1 %v1246_v32, %s3571_s9  ;;  %v5305_v32 = vmul.f32 %v6159_v49, %v6158_v39  ;;  %v5317_v4 = vpop.eup %3448  ;;  %v2266_v43 = vadd.f32 %v2264_v6, %v2255_v38  ;;  %v2267_v18 = vadd.f32 %v2265_v47, %v2256_v10  ;;  %v2275_v39 = vmul.f32 %v3046_v41, %v5082_v15  ;;  %v3054_v6 = vld [vmem:[%s5876_s1 + $0x6b] ss:$0 sm:$0xff]  ;;  %v6164_v47 = vld [vmem:[#allocation54_spill] sm:$0xff] }
  0xf8   : > { %1249 = vrot.lane.b32.xlu0 %v1245_v37, %s3571_s9  ;;  %v6161_v37 = vld [vmem:[#allocation3_spill] sm:$0xff]  ;;  %v2276_v49 = vmul.f32 %v3046_v41, %v5104_v30  ;;  %v5322_v46 = vpop.eup %3450  ;;  %v2036_v13 = vadd.f32 1.0, %v3447_v56  ;;  %3466 = vpow2.f32 %v2157_v19  ;;  %v2311_v24 = vmul.f32 %v3051_v63, %v5021_v45  ;;  %v6166_v19 = vld [vmem:[#allocation2_spill] sm:$0xff] }
  0xf9   : > { %v1305_v48 = vmul.f32 %v6161_v37, %v6160_v7  ;;  %v6162_v7 = vld [vmem:[#allocation51_spill] sm:$0xff]  ;;  %v6163_v37 = vld [vmem:[#allocation64_spill] sm:$0xff]  ;;  %v2219_v26 = vmul.f32 1.442695, %v2217_v42  ;;  %v2312_v38 = vmul.f32 %v3051_v63, %v5038_v40  ;;  %v2315_v10 = vstv %s5314_s19  ;;  %v6171_v63 = vld [vmem:[#allocation37_spill] sm:$0xff]  ;;  %2773 = vst.msk [vmem:[%s5369_s4 + $0x180] sm:$0xff] %vm264_vm0, %v5305_v32  ;;  %s5470_s19 = spop %3186 }
  0xfa   : > { %v1366_v55 = vmul.f32 %v6163_v37, %v6162_v7  ;;  %v6165_v41 = vld [vmem:[#allocation11_spill] sm:$0xff]  ;;  %v633_v7 = vmul.f32 %v6169_v0, %v6168_v58  ;;  %3468 = vrcp.f32 %v1974_v9  ;;  %v2221_v37 = vmul.f32 1.442695, %v2218_v53  ;;  %v6170_v42 = vld [vmem:[#allocation12_spill] sm:$0xff]  ;;  %s5507_s26 = spop %3188 }
  0xfb   : > { %1311 = vrot.lane.b32.xlu1 %v1306_v22, %s3571_s9  ;;  %v5327_v22 = vpop.eup %3452  ;;  %v1365_v56 = vmul.f32 %v6165_v41, %v6164_v47  ;;  %v634_v57 = vmul.f32 %v6171_v63, %v6170_v42  ;;  %3470 = vrcp.f32 %v2035_v59  ;;  %v5343_v1 = vadd.f32 %v2275_v39, %v2266_v43  ;;  %v3062_v47 = vld [vmem:[%s5876_s1 + $0x64] ss:$0 sm:$0xff]  ;;  %v6172_v9 = vld [vmem:[#allocation60_spill] sm:$0xff]  ;;  %v6173_v39 = vld [vmem:[#allocation55_spill] sm:$0xff] }
  0xfc   : > { %1309 = vrot.lane.b32.xlu0 %v1305_v48, %s3571_s9  ;;  %v6167_v48 = vld [vmem:[#allocation32_spill] sm:$0xff]  ;;  %v5345_v34 = vadd.f32 %v2276_v49, %v2267_v18  ;;  %v3455_v58 = vpop.eup %3454  ;;  %3472 = vrcp.f32 %v2036_v13  ;;  %v2317_v0 = vadd.f32 %v2315_v10, %v2311_v24  ;;  %v1426_v59 = vmul.f32 %v5016_v5, %v6172_v9  ;;  %v6174_v49 = vld [vmem:[#allocation65_spill] sm:$0xff]  ;;  %v3073_v42 = vld [vmem:[%s5876_s1 + $0x65] ss:$0 sm:$0xff]  ;;  %2782 = vst.msk [vmem:[%s5369_s4 + $0x1c0] sm:$0xff] %vm264_vm0, %v633_v7 }
  0xfd   : > { %v581_v60 = vmul.f32 %v6167_v48, %v6166_v19  ;;  %3474 = vpow2.f32 %v2219_v26  ;;  %v2318_v53 = vadd.f32 %v2315_v10, %v2312_v38  ;;  %v2327_v43 = vmul.f32 %v3054_v6, %v5071_v2  ;;  %v3057_v18 = vld [vmem:[%s5876_s1 + $0x73] ss:$0 sm:$0xff]  ;;  %v3457_v24 = vpop.eup %3456  ;;  %v3065_v19 = vld [vmem:[%s5876_s1 + $0x6c] ss:$0 sm:$0xff]  ;;  %2783 = vst.msk [vmem:[%s5369_s4 + $0x1e0] sm:$0xff] %vm264_vm0, %v634_v57 }
  0xfe   : > { %v1425_v13 = vmul.f32 %v6174_v49, %v6173_v39  ;;  %3476 = vpow2.f32 %v2221_v37  ;;  %v2373_v41 = vmul.f32 %v3062_v47, %v5021_v45  ;;  %v2097_v26 = vadd.f32 1.0, %v3455_v58  ;;  %v6175_v63 = vld [vmem:[#allocation52_spill] sm:$0xff] }
  0xff   : > { %1371 = vrot.lane.b32.xlu1 %v1366_v55, %s3571_s9  ;;  %v2326_v55 = vmul.f32 %v3054_v6, %v5047_v36  ;;  %v5371_v5 = vpop.eup %3458  ;;  %v2279_v38 = vsub.f32 0.0, %v5343_v1  ;;  %v2280_v10 = vsub.f32 0.0, %v5345_v34  ;;  %v2377_v6 = vstv %s5353_s25  ;;  %2774 = vst.msk [vmem:[%s5369_s4 + $0x1a0] sm:$0xff] %vm264_vm0, %v581_v60 }
 0x100   : > { %1369 = vrot.lane.b32.xlu0 %v1365_v56, %s3571_s9  ;;  %v2374_v56 = vmul.f32 %v3062_v47, %v5038_v40  ;;  %v2337_v37 = vmul.f32 %v3057_v18, %v5082_v15  ;;  %v1486_v47 = vmul.f32 %v5057_v62, %v6175_v63  ;;  %v2098_v9 = vadd.f32 1.0, %v3457_v24 }
 0x101   : > { %v2328_v48 = vadd.f32 %v2326_v55, %v2317_v0  ;;  %v5386_v58 = vpop.eup %3460  ;;  %v2329_v0 = vadd.f32 %v2327_v43, %v2318_v53  ;;  %v2338_v55 = vmul.f32 %v3057_v18, %v5104_v30  ;;  %v2379_v62 = vadd.f32 %v2377_v6, %v2373_v41  ;;  %v3084_v53 = vld [vmem:[%s5876_s1 + $0x66] ss:$0 sm:$0xff]  ;;  %v6178_v43 = vld [vmem:[#allocation56_spill] sm:$0xff] }
 0x102   : > { %v2380_v16 = vadd.f32 %v2377_v6, %v2374_v56  ;;  %v2388_v8 = vmul.f32 %v3065_v19, %v5047_v36  ;;  %v2389_v50 = vmul.f32 %v3065_v19, %v5071_v2  ;;  %3478 = vrcp.f32 %v2097_v26 }
 0x103   : > { %1431 = vrot.lane.b32.xlu1 %v1426_v59, %s3571_s9  ;;  %v6176_v59 = vld [vmem:[#allocation7_spill] sm:$0xff]  ;;  %v2435_v14 = vmul.f32 %v3073_v42, %v5021_v45  ;;  %v2436_v57 = vmul.f32 %v3073_v42, %v5038_v40  ;;  %v2281_v60 = vmul.f32 1.442695, %v2279_v38  ;;  %v5451_v54 = vadd.f32 %v2337_v37, %v2328_v48  ;;  %v6179_v42 = vld [vmem:[#allocation57_spill] sm:$0xff] }
 0x104   : > { %1429 = vrot.lane.b32.xlu0 %v1425_v13, %s3571_s9  ;;  %v1485_v39 = vmul.f32 %v5052_v51, %v6176_v59  ;;  %v5438_v51 = vpop.eup %3462  ;;  %v2439_v52 = vstv %s5389_s30  ;;  %v1546_v61 = vmul.f32 %v5092_v3, %v6177_v21  ;;  %3480 = vrcp.f32 %v2098_v9  ;;  %v3087_v37 = vld [vmem:[%s5876_s1 + $0x6e] ss:$0 sm:$0xff]  ;;  %v3095_v59 = vld [vmem:[%s5876_s1 + $0x67] ss:$0 sm:$0xff] }
 0x105   : > { %v5443_v35 = vpop.eup %3464  ;;  %v2283_v32 = vmul.f32 1.442695, %v2280_v10  ;;  %v5461_v7 = vadd.f32 %v2338_v55, %v2329_v0  ;;  %v1545_v18 = vmul.f32 %v5066_v12, %v6178_v43  ;;  %v2390_v49 = vadd.f32 %v2388_v8, %v2379_v62  ;;  %v3079_v12 = vld [vmem:[%s5876_s1 + $0x75] ss:$0 sm:$0xff]  ;;  %v3090_v21 = vld [vmem:[%s5876_s1 + $0x76] ss:$0 sm:$0xff] }
 0x106   : > { %v5459_v11 = vpop.eup %3466  ;;  %v2391_v13 = vadd.f32 %v2389_v50, %v2380_v16  ;;  %v2399_v24 = vmul.f32 %v3068_v29, %v5082_v15  ;;  %v2400_v41 = vmul.f32 %v3068_v29, %v5104_v30  ;;  %v2441_v56 = vadd.f32 %v2439_v52, %v2435_v14 }
 0x107   : > { %1491 = vrot.lane.b32.xlu1 %v1486_v47, %s3571_s9  ;;  %v5473_v3 = vpop.eup %3468  ;;  %v2442_v26 = vadd.f32 %v2439_v52, %v2436_v57  ;;  %v2450_v38 = vmul.f32 %v3076_v31, %v5047_v36  ;;  %v2451_v10 = vmul.f32 %v3076_v31, %v5071_v2  ;;  %3482 = vpow2.f32 %v2281_v60 }
 0x108   : > { %1489 = vrot.lane.b32.xlu0 %v1485_v39, %s3571_s9  ;;  %v5481_v6 = vpop.eup %3470  ;;  %v2341_v19 = vsub.f32 0.0, %v5451_v54  ;;  %v2498_v48 = vmul.f32 %v3084_v53, %v5038_v40  ;;  %v1606_v63 = vmul.f32 %v5126_v25, %v6179_v42  ;;  %v2342_v9 = vsub.f32 0.0, %v5461_v7  ;;  %v6180_v39 = vld [vmem:[#allocation53_spill] sm:$0xff]  ;;  %v6183_v42 = vld [vmem:[#allocation63_spill] sm:$0xff] }
 0x109   : > { %v5490_v47 = vpop.eup %3472  ;;  %v2497_v0 = vmul.f32 %v3084_v53, %v5021_v45  ;;  %v2501_v55 = vstv %s5470_s19  ;;  %v1605_v62 = vmul.f32 %v5117_v33, %v6180_v39  ;;  %3484 = vpow2.f32 %v2283_v32  ;;  %v6181_v32 = vld [vmem:[#allocation8_spill] sm:$0xff]  ;;  %v6184_v39 = vld [vmem:[#allocation58_spill] sm:$0xff] }
 0x10a   : > { %v5500_v16 = vpop.eup %3474  ;;  %v5502_v8 = vadd.f32 %v2399_v24, %v2390_v49  ;;  %v5504_v25 = vadd.f32 %v2400_v41, %v2391_v13  ;;  %v2461_v50 = vmul.f32 %v3079_v12, %v5082_v15  ;;  %v2452_v14 = vadd.f32 %v2450_v38, %v2441_v56  ;;  %v3098_v13 = vld [vmem:[%s5876_s1 + $0x6f] ss:$0 sm:$0xff]  ;;  %v6182_v24 = vld [vmem:[#allocation62_spill] sm:$0xff] }
 0x10b   : > { %1551 = vrot.lane.b32.xlu1 %v1546_v61, %s3571_s9  ;;  %v5510_v29 = vpop.eup %3476  ;;  %v2453_v57 = vadd.f32 %v2451_v10, %v2442_v26  ;;  %v2462_v33 = vmul.f32 %v3079_v12, %v5104_v30  ;;  %v2512_v60 = vmul.f32 %v3087_v37, %v5047_v36  ;;  %v2504_v52 = vadd.f32 %v2501_v55, %v2498_v48 }
 0x10c   : > { %1549 = vrot.lane.b32.xlu0 %v1545_v18, %s3571_s9  ;;  %v2513_v31 = vmul.f32 %v3087_v37, %v5071_v2  ;;  %v2560_v61 = vmul.f32 %v3095_v59, %v5038_v40  ;;  %v1666_v53 = vmul.f32 %v5214_v28, %v6181_v32  ;;  %v2503_v43 = vadd.f32 %v2501_v55, %v2497_v0 }
 0x10d   : > { %v2559_v18 = vmul.f32 %v3095_v59, %v5021_v45  ;;  %v2563_v49 = vstv %s5507_s26  ;;  %v1665_v41 = vmul.f32 %v5205_v17, %v6182_v24  ;;  %v2343_v56 = vmul.f32 1.442695, %v2341_v19  ;;  %v3101_v59 = vld [vmem:[%s5876_s1 + $0x77] ss:$0 sm:$0xff] }
 0x10e   : > { %v2345_v26 = vmul.f32 1.442695, %v2342_v9  ;;  %v2403_v38 = vsub.f32 0.0, %v5502_v8  ;;  %v2404_v40 = vsub.f32 0.0, %v5504_v25  ;;  %v5532_v28 = vadd.f32 %v2461_v50, %v2452_v14 }
 0x10f   : > { %1611 = vrot.lane.b32.xlu1 %v1606_v63, %s3571_s9  ;;  %v5534_v45 = vadd.f32 %v2462_v33, %v2453_v57  ;;  %v2523_v10 = vmul.f32 %v3090_v21, %v5082_v15  ;;  %v2524_v12 = vmul.f32 %v3090_v21, %v5104_v30  ;;  %v5539_v17 = vpop.eup %3478  ;;  %v2515_v19 = vadd.f32 %v2513_v31, %v2504_v52 }
 0x110   : > { %1609 = vrot.lane.b32.xlu0 %v1605_v62, %s3571_s9  ;;  %s3572_s9 = smov 112   ;;  %v2566_v48 = vadd.f32 %v2563_v49, %v2560_v61  ;;  %v2575_v37 = vmul.f32 %v3098_v13, %v5071_v2  ;;  %v1730_v63 = vmul.f32 %v5262_v23, %v6183_v42  ;;  %v2514_v9 = vadd.f32 %v2512_v60, %v2503_v43 }
 0x111   : > { %v2565_v0 = vadd.f32 %v2563_v49, %v2559_v18  ;;  %v2574_v55 = vmul.f32 %v3098_v13, %v5047_v36  ;;  %v1729_v62 = vmul.f32 %v5218_v44, %v6184_v39  ;;  %v5550_v50 = vpop.eup %3480  ;;  %3486 = vpow2.f32 %v2343_v56  ;;  %v6185_v44 = vld [vmem:[#allocation13_spill] sm:$0xff] }
 0x112   : > { %v2405_v14 = vmul.f32 1.442695, %v2403_v38  ;;  %3488 = vpow2.f32 %v2345_v26  ;;  %v2407_v2 = vmul.f32 1.442695, %v2404_v40  ;;  %v2465_v23 = vsub.f32 0.0, %v5532_v28  ;;  %v6188_v26 = vld [vmem:[#allocation66_spill] sm:$0xff] }
 0x113   : > { %1671 = vrot.lane.b32.xlu1 %v1666_v53, %s3572_s9  ;;  %v2466_v57 = vsub.f32 0.0, %v5534_v45  ;;  %v5556_v36 = vadd.f32 %v2524_v12, %v2515_v19  ;;  %v2577_v33 = vadd.f32 %v2575_v37, %v2566_v48  ;;  %v2586_v60 = vmul.f32 %v3101_v59, %v5104_v30  ;;  %v6186_v53 = vld [vmem:[#allocation5_spill] sm:$0xff]  ;;  %v6189_v48 = vld [vmem:[#allocation68_spill] sm:$0xff] }
 0x114   : > { %1669 = vrot.lane.b32.xlu0 %v1665_v41, %s3572_s9  ;;  %v1792_v52 = vmul.f32 %v5317_v4, %v6185_v44  ;;  %v3483_v31 = vpop.eup %3482  ;;  %v5561_v21 = vadd.f32 %v2523_v10, %v2514_v9  ;;  %v2576_v61 = vadd.f32 %v2574_v55, %v2565_v0  ;;  %v2585_v32 = vmul.f32 %v3101_v59, %v5082_v15  ;;  %v6187_v15 = vld [vmem:[#allocation67_spill] sm:$0xff]  ;;  %v6191_v55 = vld [vmem:[#allocation38_spill] sm:$0xff] }
 0x115   : > { %v1791_v43 = vmul.f32 %v5292_v27, %v6186_v53  ;;  %v2159_v18 = vadd.f32 1.0, %v5443_v35  ;;  %3490 = vpow2.f32 %v2405_v14  ;;  %v2160_v30 = vadd.f32 1.0, %v5459_v11  ;;  %v6192_v14 = vld [vmem:[#allocation6_spill] sm:$0xff] }
 0x116   : > { %v3485_v49 = vpop.eup %3484  ;;  %3492 = vpow2.f32 %v2407_v2  ;;  %v2469_v4 = vmul.f32 1.442695, %v2466_v57  ;;  %v2528_v13 = vsub.f32 0.0, %v5556_v36  ;;  %v5571_v24 = vadd.f32 %v2586_v60, %v2577_v33  ;;  %v6194_v44 = vld [vmem:[#allocation10_spill] sm:$0xff] }
 0x117   : > { %1735 = vrot.lane.b32.xlu1 %v1730_v63, %s3572_s9  ;;  %v1854_v41 = vmul.f32 %v5327_v22, %v6187_v15  ;;  %v2467_v27 = vmul.f32 1.442695, %v2465_v23  ;;  %v2527_v35 = vsub.f32 0.0, %v5561_v21  ;;  %v5576_v56 = vadd.f32 %v2585_v32, %v2576_v61 }
 0x118   : > { %1733 = vrot.lane.b32.xlu0 %v1729_v62, %s3572_s9  ;;  %v1853_v38 = vmul.f32 %v5322_v46, %v6188_v26  ;;  %3494 = vrcp.f32 %v2159_v18  ;;  %v2223_v11 = vadd.f32 1.0, %v5500_v16  ;;  %v2224_v40 = vadd.f32 1.0, %v5510_v29  ;;  %v6198_v26 = vld [vmem:[#allocation42_spill] sm:$0xff] }
 0x119   : > { %3496 = vrcp.f32 %v2160_v30  ;;  %v2531_v22 = vmul.f32 1.442695, %v2528_v13  ;;  %v2590_v10 = vsub.f32 0.0, %v5571_v24  ;;  %v1916_v12 = vmul.f32 %v5386_v58, %v5078_v20  ;;  %v6190_v20 = vld [vmem:[#allocation39_spill] sm:$0xff]  ;;  %v6197_v13 = vld [vmem:[#allocation41_spill] sm:$0xff] }
 0x11a   : > { %3498 = vpow2.f32 %v2469_v4  ;;  %v2529_v19 = vmul.f32 1.442695, %v2527_v35  ;;  %v2589_v46 = vsub.f32 0.0, %v5576_v56  ;;  %v1915_v16 = vmul.f32 %v5371_v5, %v6189_v48 }
 0x11b   : > { %1797 = vrot.lane.b32.xlu1 %v1792_v52, %s3572_s9  ;;  %3500 = vpow2.f32 %v2467_v27  ;;  %v2285_v37 = vadd.f32 1.0, %v3483_v31  ;;  %v2286_v42 = vadd.f32 1.0, %v3485_v49  ;;  %v2593_v9 = vmul.f32 1.442695, %v2590_v10  ;;  %v6196_v49 = vld [vmem:[#allocation14_spill] sm:$0xff] }
 0x11c   : > { %1795 = vrot.lane.b32.xlu0 %v1791_v43, %s3572_s9  ;;  %3502 = vrcp.f32 %v2223_v11  ;;  %v1978_v58 = vmul.f32 %v5473_v3, %v6190_v20  ;;  %v2591_v0 = vmul.f32 1.442695, %v2589_v46  ;;  %v1977_v5 = vmul.f32 %v5438_v51, %v6191_v55  ;;  %v6193_v3 = vld [vmem:[#allocation16_spill] sm:$0xff] }
 0x11d   : > { %3504 = vrcp.f32 %v2224_v40  ;;  %v2040_v2 = vmul.f32 %v5490_v47, %v6192_v14  ;;  %v2039_v57 = vmul.f32 %v5481_v6, %v6193_v3  ;;  %v2102_v52 = vmul.f32 %v5550_v50, %v6194_v44  ;;  %v6195_v47 = vld [vmem:[#allocation40_spill] sm:$0xff] }
 0x11e   : > { %v3487_v29 = vpop.eup %3486  ;;  %3506 = vpow2.f32 %v2531_v22  ;;  %v2101_v32 = vmul.f32 %v5539_v17, %v6195_v47  ;;  %v6199_v22 = vld [vmem:[#allocation17_spill] sm:$0xff] }
 0x11f   : > { %1859 = vrot.lane.b32.xlu1 %v1854_v41, %s3572_s9  ;;  %v3489_v63 = vpop.eup %3488  ;;  %3508 = vpow2.f32 %v2529_v19  ;;  %v2347_v23 = vadd.f32 1.0, %v3487_v29 }
 0x120   : > { %1857 = vrot.lane.b32.xlu0 %v1853_v38, %s3572_s9  ;;  %3510 = vrcp.f32 %v2285_v37  ;;  %v2348_v62 = vadd.f32 1.0, %v3489_v63 }
 0x121   : > { %3512 = vrcp.f32 %v2286_v42 }
 0x122   : > { %v3491_v59 = vpop.eup %3490  ;;  %3514 = vpow2.f32 %v2593_v9 }
 0x123   : > { %1921 = vrot.lane.b32.xlu1 %v1916_v12, %s3572_s9  ;;  %v3493_v39 = vpop.eup %3492  ;;  %3516 = vpow2.f32 %v2591_v0  ;;  %v2409_v61 = vadd.f32 1.0, %v3491_v59 }
 0x124   : > { %1919 = vrot.lane.b32.xlu0 %v1915_v16, %s3572_s9  ;;  %3518 = vrcp.f32 %v2348_v62  ;;  %v2410_v60 = vadd.f32 1.0, %v3493_v39 }
 0x125   : > { %v3495_v51 = vpop.eup %3494  ;;  %3520 = vrcp.f32 %v2347_v23 }
 0x126   : > { %v3497_v33 = vpop.eup %3496  ;;  %3522 = vrcp.f32 %v2410_v60  ;;  %v2163_v15 = vmul.f32 %v3495_v51, %v6197_v13 }
 0x127   : > { %1983 = vrot.lane.b32.xlu1 %v1978_v58, %s3572_s9  ;;  %v3499_v31 = vpop.eup %3498  ;;  %v2164_v30 = vmul.f32 %v3497_v33, %v6196_v49  ;;  %3524 = vrcp.f32 %v2409_v61 }
 0x128   : > { %1981 = vrot.lane.b32.xlu0 %v1977_v5, %s3572_s9  ;;  %v3501_v53 = vpop.eup %3500  ;;  %v2472_v18 = vadd.f32 1.0, %v3499_v31 }
 0x129   : > { %v3503_v6 = vpop.eup %3502  ;;  %v2471_v50 = vadd.f32 1.0, %v3501_v53 }
 0x12a   : > { %v3505_v43 = vpop.eup %3504  ;;  %3526 = vrcp.f32 %v2472_v18  ;;  %v2227_v10 = vmul.f32 %v3503_v6, %v6199_v22 }
 0x12b   : > { %2045 = vrot.lane.b32.xlu1 %v2040_v2, %s3572_s9  ;;  %v3507_v4 = vpop.eup %3506  ;;  %v2228_v38 = vmul.f32 %v3505_v43, %v6198_v26  ;;  %3528 = vrcp.f32 %v2471_v50 }
 0x12c   : > { %2043 = vrot.lane.b32.xlu0 %v2039_v57, %s3572_s9  ;;  %v3509_v41 = vpop.eup %3508  ;;  %v2534_v35 = vadd.f32 1.0, %v3507_v4 }
 0x12d   : > { %v3511_v17 = vpop.eup %3510  ;;  %v2533_v40 = vadd.f32 1.0, %v3509_v41 }
 0x12e   : > { %v3513_v27 = vpop.eup %3512  ;;  %3530 = vrcp.f32 %v2534_v35  ;;  %v2289_v37 = vmul.f32 %v3511_v17, %v5343_v1 }
 0x12f   : > { %2107 = vrot.lane.b32.xlu1 %v2102_v52, %s3572_s9  ;;  %v3515_v11 = vpop.eup %3514  ;;  %v2290_v46 = vmul.f32 %v3513_v27, %v5345_v34  ;;  %3532 = vrcp.f32 %v2533_v40 }
 0x130   : > { %2105 = vrot.lane.b32.xlu0 %v2101_v32, %s3572_s9  ;;  %v3517_v12 = vpop.eup %3516  ;;  %v2596_v19 = vadd.f32 1.0, %v3515_v11 }
 0x131   : > { %v3519_v48 = vpop.eup %3518  ;;  %v2595_v16 = vadd.f32 1.0, %v3517_v12 }
 0x132   : > { %v3521_v29 = vpop.eup %3520  ;;  %3534 = vrcp.f32 %v2596_v19  ;;  %v2352_v42 = vmul.f32 %v3519_v48, %v5461_v7 }
 0x133   : > { %2169 = vrot.lane.b32.xlu1 %v2164_v30, %s3573_s8  ;;  %v3523_v63 = vpop.eup %3522  ;;  %3536 = vrcp.f32 %v2595_v16  ;;  %v2351_v9 = vmul.f32 %v3521_v29, %v5451_v54 }
 0x134   : > { %2167 = vrot.lane.b32.xlu0 %v2163_v15, %s3573_s8  ;;  %v3525_v34 = vpop.eup %3524  ;;  %v2414_v1 = vmul.f32 %v3523_v63, %v5504_v25 }
 0x135   : > { %v2413_v58 = vmul.f32 %v3525_v34, %v5502_v8 }
 0x137   : > { %2233 = vrot.lane.b32.xlu1 %v2228_v38, %s3573_s8  ;;  %v3527_v20 = vpop.eup %3526 }
 0x138   : > { %2231 = vrot.lane.b32.xlu0 %v2227_v10, %s3573_s8  ;;  %v3529_v0 = vpop.eup %3528  ;;  %v2476_v7 = vmul.f32 %v3527_v20, %v5534_v45 }
 0x139   : > { %v2475_v8 = vmul.f32 %v3529_v0, %v5532_v28 }
 0x13b   : > { %2295 = vrot.lane.b32.xlu1 %v2290_v46, %s3573_s8  ;;  %v3531_v55 = vpop.eup %3530 }
 0x13c   : > { %2293 = vrot.lane.b32.xlu0 %v2289_v37, %s3573_s8  ;;  %v3533_v5 = vpop.eup %3532  ;;  %v2538_v59 = vmul.f32 %v3531_v55, %v5556_v36 }
 0x13d   : > { %v2537_v62 = vmul.f32 %v3533_v5, %v5561_v21 }
 0x13f   : > { %2357 = vrot.lane.b32.xlu1 %v2352_v42, %s3573_s8  ;;  %v3535_v39 = vpop.eup %3534 }
 0x140   : > { %2355 = vrot.lane.b32.xlu0 %v2351_v9, %s3573_s8  ;;  %v3537_v14 = vpop.eup %3536  ;;  %v2600_v2 = vmul.f32 %v3535_v39, %v5571_v24 }
 0x141   : > { %v2599_v23 = vmul.f32 %v3537_v14, %v5576_v56 }
 0x143   : > { %2419 = vrot.lane.b32.xlu1 %v2414_v1, %s3573_s8 }
 0x144   : > { %2417 = vrot.lane.b32.xlu0 %v2413_v58, %s3573_s8 }
 0x145   : > { %v755_v54 = vpop.permute.xlu1 %754 }
 0x146   : > { %2798 = vst.msk [vmem:[%s5369_s4 + $0x40] sm:$0xff] %vm696_vm1, %v755_v54  ;;  %v691_v25 = vpop.permute.xlu0 %690 }
 0x147   : > { %2799 = vst.msk [vmem:[%s5369_s4 + $0x48] sm:$0xff] %vm698_vm2, %v755_v54  ;;  %699 = vst.msk [vmem:[%s5369_s4 + $0x8] sm:$0xff] %vm698_vm2, %v691_v25  ;;  %2481 = vrot.lane.b32.xlu1 %v2476_v7, %s3573_s8 }
 0x148   : > { %697 = vst.msk [vmem:[%s5369_s4] sm:$0xff] %vm696_vm1, %v691_v25  ;;  %2479 = vrot.lane.b32.xlu0 %v2475_v8, %s3573_s8 }
 0x149   : > { %v757_v45 = vpop.permute.xlu1 %756 }
 0x14a   : > { %2800 = vst.msk [vmem:[%s5369_s4 + $0x60] sm:$0xff] %vm696_vm1, %v757_v45  ;;  %v693_v28 = vpop.permute.xlu0 %692 }
 0x14b   : > { %2801 = vst.msk [vmem:[%s5369_s4 + $0x68] sm:$0xff] %vm698_vm2, %v757_v45  ;;  %701 = vst.msk [vmem:[%s5369_s4 + $0x28] sm:$0xff] %vm698_vm2, %v693_v28  ;;  %2543 = vrot.lane.b32.xlu1 %v2538_v59, %s3573_s8 }
 0x14c   : > { %700 = vst.msk [vmem:[%s5369_s4 + $0x20] sm:$0xff] %vm696_vm1, %v693_v28  ;;  %2541 = vrot.lane.b32.xlu0 %v2537_v62, %s3573_s8 }
 0x14d   : > { %v819_v36 = vpop.permute.xlu1 %818 }
 0x14e   : > { %2811 = vst.msk [vmem:[%s5369_s4 + $0xa0] sm:$0xff] %vm696_vm1, %v819_v36  ;;  %v817_v21 = vpop.permute.xlu0 %816 }
 0x14f   : > { %2812 = vst.msk [vmem:[%s5369_s4 + $0xa8] sm:$0xff] %vm698_vm2, %v819_v36  ;;  %2810 = vst.msk [vmem:[%s5369_s4 + $0x88] sm:$0xff] %vm698_vm2, %v817_v21  ;;  %2605 = vrot.lane.b32.xlu1 %v2600_v2, %s3573_s8 }
 0x150   : > { %2809 = vst.msk [vmem:[%s5369_s4 + $0x80] sm:$0xff] %vm696_vm1, %v817_v21  ;;  %2603 = vrot.lane.b32.xlu0 %v2599_v23, %s3573_s8 }
 0x151   : > { %v881_v24 = vpop.permute.xlu1 %880 }
 0x152   : > { %2822 = vst.msk [vmem:[%s5369_s4 + $0xe0] sm:$0xff] %vm696_vm1, %v881_v24  ;;  %v879_v3 = vpop.permute.xlu0 %878 }
 0x153   : > { %2823 = vst.msk [vmem:[%s5369_s4 + $0xe8] sm:$0xff] %vm698_vm2, %v881_v24  ;;  %2821 = vst.msk [vmem:[%s5369_s4 + $0xc8] sm:$0xff] %vm698_vm2, %v879_v3 }
 0x154   : > { %2820 = vst.msk [vmem:[%s5369_s4 + $0xc0] sm:$0xff] %vm696_vm1, %v879_v3 }
 0x155   : > { %v943_v56 = vpop.permute.xlu1 %942 }
 0x156   : > { %2833 = vst.msk [vmem:[%s5369_s4 + $0x120] sm:$0xff] %vm696_vm1, %v943_v56  ;;  %v941_v57 = vpop.permute.xlu0 %940 }
 0x157   : > { %2834 = vst.msk [vmem:[%s5369_s4 + $0x128] sm:$0xff] %vm698_vm2, %v943_v56  ;;  %2832 = vst.msk [vmem:[%s5369_s4 + $0x108] sm:$0xff] %vm698_vm2, %v941_v57 }
 0x158   : > { %2831 = vst.msk [vmem:[%s5369_s4 + $0x100] sm:$0xff] %vm696_vm1, %v941_v57 }
 0x159   : > { %v1005_v51 = vpop.permute.xlu1 %1004 }
 0x15a   : > { %2844 = vst.msk [vmem:[%s5369_s4 + $0x160] sm:$0xff] %vm696_vm1, %v1005_v51  ;;  %v1003_v33 = vpop.permute.xlu0 %1002 }
 0x15b   : > { %2845 = vst.msk [vmem:[%s5369_s4 + $0x168] sm:$0xff] %vm698_vm2, %v1005_v51  ;;  %2843 = vst.msk [vmem:[%s5369_s4 + $0x148] sm:$0xff] %vm698_vm2, %v1003_v33 }
 0x15c   : > { %2842 = vst.msk [vmem:[%s5369_s4 + $0x140] sm:$0xff] %vm696_vm1, %v1003_v33 }
 0x15d   : > { %v1067_v60 = vpop.permute.xlu1 %1066 }
 0x15e   : > { %2855 = vst.msk [vmem:[%s5369_s4 + $0x1a0] sm:$0xff] %vm696_vm1, %v1067_v60  ;;  %v1065_v44 = vpop.permute.xlu0 %1064 }
 0x15f   : > { %2856 = vst.msk [vmem:[%s5369_s4 + $0x1a8] sm:$0xff] %vm698_vm2, %v1067_v60  ;;  %2854 = vst.msk [vmem:[%s5369_s4 + $0x188] sm:$0xff] %vm698_vm2, %v1065_v44 }
 0x160   : > { %2853 = vst.msk [vmem:[%s5369_s4 + $0x180] sm:$0xff] %vm696_vm1, %v1065_v44 }
 0x161   : > { %v1129_v52 = vpop.permute.xlu1 %1128 }
 0x162   : > { %2866 = vst.msk [vmem:[%s5369_s4 + $0x1e0] sm:$0xff] %vm696_vm1, %v1129_v52  ;;  %v1127_v31 = vpop.permute.xlu0 %1126 }
 0x163   : > { %2867 = vst.msk [vmem:[%s5369_s4 + $0x1e8] sm:$0xff] %vm698_vm2, %v1129_v52  ;;  %2865 = vst.msk [vmem:[%s5369_s4 + $0x1c8] sm:$0xff] %vm698_vm2, %v1127_v31 }
 0x164   : > { %2864 = vst.msk [vmem:[%s5369_s4 + $0x1c0] sm:$0xff] %vm696_vm1, %v1127_v31 }
 0x165   : > { %v1191_v61 = vpop.permute.xlu1 %1190 }
 0x166   : > { %1196 = vst.msk [vmem:[%s5369_s4 + $0x28] sm:$0xff] %vm1194_vm3, %v1191_v61  ;;  %v1189_v47 = vpop.permute.xlu0 %1188 }
 0x167   : > { %1195 = vst.msk [vmem:[%s5369_s4 + $0x8] sm:$0xff] %vm1194_vm3, %v1189_v47 }
 0x169   : > { %v1252_v32 = vpop.permute.xlu1 %1251 }
 0x16a   : > { %2883 = vst.msk [vmem:[%s5369_s4 + $0x68] sm:$0xff] %vm1194_vm3, %v1252_v32  ;;  %v1250_v53 = vpop.permute.xlu0 %1249 }
 0x16b   : > { %2882 = vst.msk [vmem:[%s5369_s4 + $0x48] sm:$0xff] %vm1194_vm3, %v1250_v53 }
 0x16d   : > { %v1312_v6 = vpop.permute.xlu1 %1311 }
 0x16e   : > { %2892 = vst.msk [vmem:[%s5369_s4 + $0xa8] sm:$0xff] %vm1194_vm3, %v1312_v6  ;;  %v1310_v43 = vpop.permute.xlu0 %1309 }
 0x16f   : > { %2891 = vst.msk [vmem:[%s5369_s4 + $0x88] sm:$0xff] %vm1194_vm3, %v1310_v43 }
 0x171   : > { %v1372_v18 = vpop.permute.xlu1 %1371 }
 0x172   : > { %2901 = vst.msk [vmem:[%s5369_s4 + $0xe8] sm:$0xff] %vm1194_vm3, %v1372_v18  ;;  %v1370_v49 = vpop.permute.xlu0 %1369 }
 0x173   : > { %2900 = vst.msk [vmem:[%s5369_s4 + $0xc8] sm:$0xff] %vm1194_vm3, %v1370_v49 }
 0x175   : > { %v1432_v30 = vpop.permute.xlu1 %1431 }
 0x176   : > { %2910 = vst.msk [vmem:[%s5369_s4 + $0x128] sm:$0xff] %vm1194_vm3, %v1432_v30  ;;  %v1430_v4 = vpop.permute.xlu0 %1429 }
 0x177   : > { %2909 = vst.msk [vmem:[%s5369_s4 + $0x108] sm:$0xff] %vm1194_vm3, %v1430_v4 }
 0x179   : > { %v1492_v50 = vpop.permute.xlu1 %1491 }
 0x17a   : > { %2919 = vst.msk [vmem:[%s5369_s4 + $0x168] sm:$0xff] %vm1194_vm3, %v1492_v50  ;;  %v1490_v13 = vpop.permute.xlu0 %1489 }
 0x17b   : > { %2918 = vst.msk [vmem:[%s5369_s4 + $0x148] sm:$0xff] %vm1194_vm3, %v1490_v13 }
 0x17d   : > { %v1552_v15 = vpop.permute.xlu1 %1551 }
 0x17e   : > { %2928 = vst.msk [vmem:[%s5369_s4 + $0x1a8] sm:$0xff] %vm1194_vm3, %v1552_v15  ;;  %v1550_v41 = vpop.permute.xlu0 %1549 }
 0x17f   : > { %2927 = vst.msk [vmem:[%s5369_s4 + $0x188] sm:$0xff] %vm1194_vm3, %v1550_v41 }
 0x181   : > { %v1612_v17 = vpop.permute.xlu1 %1611 }
 0x182   : > { %2937 = vst.msk [vmem:[%s5369_s4 + $0x1e8] sm:$0xff] %vm1194_vm3, %v1612_v17  ;;  %v1610_v27 = vpop.permute.xlu0 %1609 }
 0x183   : > { %2936 = vst.msk [vmem:[%s5369_s4 + $0x1c8] sm:$0xff] %vm1194_vm3, %v1610_v27 }
 0x185   : > { %v1672_v35 = vpop.permute.xlu1 %1671 }
 0x186   : > { %1679 = vst.msk [vmem:[%s5369_s4 + $0x28] sm:$0xff] %vm1675_vm4, %v1672_v35  ;;  %v1670_v26 = vpop.permute.xlu0 %1669 }
 0x187   : > { %1680 = vst.msk [vmem:[%s5369_s4 + $0x30] sm:$0xff] %vm1677_vm5, %v1672_v35  ;;  %1678 = vst.msk [vmem:[%s5369_s4 + $0x10] sm:$0xff] %vm1677_vm5, %v1670_v26 }
 0x188   : > { %1676 = vst.msk [vmem:[%s5369_s4 + $0x8] sm:$0xff] %vm1675_vm4, %v1670_v26 }
 0x189   : > { %v1736_v38 = vpop.permute.xlu1 %1735 }
 0x18a   : > { %2954 = vst.msk [vmem:[%s5369_s4 + $0x68] sm:$0xff] %vm1675_vm4, %v1736_v38  ;;  %v1734_v11 = vpop.permute.xlu0 %1733 }
 0x18b   : > { %2955 = vst.msk [vmem:[%s5369_s4 + $0x70] sm:$0xff] %vm1677_vm5, %v1736_v38  ;;  %2953 = vst.msk [vmem:[%s5369_s4 + $0x50] sm:$0xff] %vm1677_vm5, %v1734_v11 }
 0x18c   : > { %2952 = vst.msk [vmem:[%s5369_s4 + $0x48] sm:$0xff] %vm1675_vm4, %v1734_v11 }
 0x18d   : > { %v1798_v40 = vpop.permute.xlu1 %1797 }
 0x18e   : > { %2965 = vst.msk [vmem:[%s5369_s4 + $0xa8] sm:$0xff] %vm1675_vm4, %v1798_v40  ;;  %v1796_v22 = vpop.permute.xlu0 %1795 }
 0x18f   : > { %2966 = vst.msk [vmem:[%s5369_s4 + $0xb0] sm:$0xff] %vm1677_vm5, %v1798_v40  ;;  %2964 = vst.msk [vmem:[%s5369_s4 + $0x90] sm:$0xff] %vm1677_vm5, %v1796_v22 }
 0x190   : > { %2963 = vst.msk [vmem:[%s5369_s4 + $0x88] sm:$0xff] %vm1675_vm4, %v1796_v22 }
 0x191   : > { %v1860_v10 = vpop.permute.xlu1 %1859 }
 0x192   : > { %2976 = vst.msk [vmem:[%s5369_s4 + $0xe8] sm:$0xff] %vm1675_vm4, %v1860_v10  ;;  %v1858_v12 = vpop.permute.xlu0 %1857 }
 0x193   : > { %2977 = vst.msk [vmem:[%s5369_s4 + $0xf0] sm:$0xff] %vm1677_vm5, %v1860_v10  ;;  %2975 = vst.msk [vmem:[%s5369_s4 + $0xd0] sm:$0xff] %vm1677_vm5, %v1858_v12 }
 0x194   : > { %2974 = vst.msk [vmem:[%s5369_s4 + $0xc8] sm:$0xff] %vm1675_vm4, %v1858_v12 }
 0x195   : > { %v1922_v19 = vpop.permute.xlu1 %1921 }
 0x196   : > { %2987 = vst.msk [vmem:[%s5369_s4 + $0x128] sm:$0xff] %vm1675_vm4, %v1922_v19  ;;  %v1920_v46 = vpop.permute.xlu0 %1919 }
 0x197   : > { %2988 = vst.msk [vmem:[%s5369_s4 + $0x130] sm:$0xff] %vm1677_vm5, %v1922_v19  ;;  %2986 = vst.msk [vmem:[%s5369_s4 + $0x110] sm:$0xff] %vm1677_vm5, %v1920_v46 }
 0x198   : > { %2985 = vst.msk [vmem:[%s5369_s4 + $0x108] sm:$0xff] %vm1675_vm4, %v1920_v46 }
 0x199   : > { %v1984_v48 = vpop.permute.xlu1 %1983 }
 0x19a   : > { %2998 = vst.msk [vmem:[%s5369_s4 + $0x168] sm:$0xff] %vm1675_vm4, %v1984_v48  ;;  %v1982_v16 = vpop.permute.xlu0 %1981 }
 0x19b   : > { %2999 = vst.msk [vmem:[%s5369_s4 + $0x170] sm:$0xff] %vm1677_vm5, %v1984_v48  ;;  %2997 = vst.msk [vmem:[%s5369_s4 + $0x150] sm:$0xff] %vm1677_vm5, %v1982_v16 }
 0x19c   : > { %2996 = vst.msk [vmem:[%s5369_s4 + $0x148] sm:$0xff] %vm1675_vm4, %v1982_v16 }
 0x19d   : > { %v2046_v37 = vpop.permute.xlu1 %2045 }
 0x19e   : > { %3009 = vst.msk [vmem:[%s5369_s4 + $0x1a8] sm:$0xff] %vm1675_vm4, %v2046_v37  ;;  %v2044_v29 = vpop.permute.xlu0 %2043 }
 0x19f   : > { %3010 = vst.msk [vmem:[%s5369_s4 + $0x1b0] sm:$0xff] %vm1677_vm5, %v2046_v37  ;;  %3008 = vst.msk [vmem:[%s5369_s4 + $0x190] sm:$0xff] %vm1677_vm5, %v2044_v29 }
 0x1a0   : > { %3007 = vst.msk [vmem:[%s5369_s4 + $0x188] sm:$0xff] %vm1675_vm4, %v2044_v29 }
 0x1a1   : > { %v2108_v42 = vpop.permute.xlu1 %2107 }
 0x1a2   : > { %3020 = vst.msk [vmem:[%s5369_s4 + $0x1e8] sm:$0xff] %vm1675_vm4, %v2108_v42  ;;  %v2106_v63 = vpop.permute.xlu0 %2105 }
 0x1a3   : > { %3021 = vst.msk [vmem:[%s5369_s4 + $0x1f0] sm:$0xff] %vm1677_vm5, %v2108_v42  ;;  %3019 = vst.msk [vmem:[%s5369_s4 + $0x1d0] sm:$0xff] %vm1677_vm5, %v2106_v63 }
 0x1a4   : > { %3018 = vst.msk [vmem:[%s5369_s4 + $0x1c8] sm:$0xff] %vm1675_vm4, %v2106_v63 }
 0x1a5   : > { %v2170_v9 = vpop.permute.xlu1 %2169 }
 0x1a6   : > { %2177 = vst.msk [vmem:[%s5369_s4 + $0x30] sm:$0xff] %vm2173_vm6, %v2170_v9  ;;  %v2168_v34 = vpop.permute.xlu0 %2167 }
 0x1a7   : > { %2178 = vst.msk [vmem:[%s5369_s4 + $0x38] sm:$0xff] %vm2175_vm7, %v2170_v9  ;;  %2176 = vst.msk [vmem:[%s5369_s4 + $0x18] sm:$0xff] %vm2175_vm7, %v2168_v34 }
 0x1a8   : > { %2174 = vst.msk [vmem:[%s5369_s4 + $0x10] sm:$0xff] %vm2173_vm6, %v2168_v34 }
 0x1a9   : > { %v2234_v1 = vpop.permute.xlu1 %2233 }
 0x1aa   : > { %3038 = vst.msk [vmem:[%s5369_s4 + $0x70] sm:$0xff] %vm2173_vm6, %v2234_v1  ;;  %v2232_v20 = vpop.permute.xlu0 %2231 }
 0x1ab   : > { %3039 = vst.msk [vmem:[%s5369_s4 + $0x78] sm:$0xff] %vm2175_vm7, %v2234_v1  ;;  %3037 = vst.msk [vmem:[%s5369_s4 + $0x58] sm:$0xff] %vm2175_vm7, %v2232_v20 }
 0x1ac   : > { %3036 = vst.msk [vmem:[%s5369_s4 + $0x50] sm:$0xff] %vm2173_vm6, %v2232_v20 }
 0x1ad   : > { %v2296_v58 = vpop.permute.xlu1 %2295 }
 0x1ae   : > { %3049 = vst.msk [vmem:[%s5369_s4 + $0xb0] sm:$0xff] %vm2173_vm6, %v2296_v58  ;;  %v2294_v0 = vpop.permute.xlu0 %2293 }
 0x1af   : > { %3050 = vst.msk [vmem:[%s5369_s4 + $0xb8] sm:$0xff] %vm2175_vm7, %v2296_v58  ;;  %3048 = vst.msk [vmem:[%s5369_s4 + $0x98] sm:$0xff] %vm2175_vm7, %v2294_v0 }
 0x1b0   : > { %3047 = vst.msk [vmem:[%s5369_s4 + $0x90] sm:$0xff] %vm2173_vm6, %v2294_v0 }
 0x1b1   : > { %v2358_v54 = vpop.permute.xlu1 %2357 }
 0x1b2   : > { %3060 = vst.msk [vmem:[%s5369_s4 + $0xf0] sm:$0xff] %vm2173_vm6, %v2358_v54  ;;  %v2356_v7 = vpop.permute.xlu0 %2355 }
 0x1b3   : > { %3061 = vst.msk [vmem:[%s5369_s4 + $0xf8] sm:$0xff] %vm2175_vm7, %v2358_v54  ;;  %3059 = vst.msk [vmem:[%s5369_s4 + $0xd8] sm:$0xff] %vm2175_vm7, %v2356_v7 }
 0x1b4   : > { %3058 = vst.msk [vmem:[%s5369_s4 + $0xd0] sm:$0xff] %vm2173_vm6, %v2356_v7 }
 0x1b5   : > { %v2420_v55 = vpop.permute.xlu1 %2419 }
 0x1b6   : > { %3071 = vst.msk [vmem:[%s5369_s4 + $0x130] sm:$0xff] %vm2173_vm6, %v2420_v55  ;;  %v2418_v25 = vpop.permute.xlu0 %2417 }
 0x1b7   : > { %3072 = vst.msk [vmem:[%s5369_s4 + $0x138] sm:$0xff] %vm2175_vm7, %v2420_v55  ;;  %3070 = vst.msk [vmem:[%s5369_s4 + $0x118] sm:$0xff] %vm2175_vm7, %v2418_v25 }
 0x1b8   : > { %3069 = vst.msk [vmem:[%s5369_s4 + $0x110] sm:$0xff] %vm2173_vm6, %v2418_v25 }
 0x1b9   : > { %v2482_v8 = vpop.permute.xlu1 %2481 }
 0x1ba   : > { %3082 = vst.msk [vmem:[%s5369_s4 + $0x170] sm:$0xff] %vm2173_vm6, %v2482_v8  ;;  %v2480_v5 = vpop.permute.xlu0 %2479 }
 0x1bb   : > { %3083 = vst.msk [vmem:[%s5369_s4 + $0x178] sm:$0xff] %vm2175_vm7, %v2482_v8  ;;  %3081 = vst.msk [vmem:[%s5369_s4 + $0x158] sm:$0xff] %vm2175_vm7, %v2480_v5 }
 0x1bc   : > { %3080 = vst.msk [vmem:[%s5369_s4 + $0x150] sm:$0xff] %vm2173_vm6, %v2480_v5 }
 0x1bd   : > { %v2544_v45 = vpop.permute.xlu1 %2543 }
 0x1be   : > { %3093 = vst.msk [vmem:[%s5369_s4 + $0x1b0] sm:$0xff] %vm2173_vm6, %v2544_v45  ;;  %v2542_v59 = vpop.permute.xlu0 %2541 }
 0x1bf   : > { %3094 = vst.msk [vmem:[%s5369_s4 + $0x1b8] sm:$0xff] %vm2175_vm7, %v2544_v45  ;;  %3092 = vst.msk [vmem:[%s5369_s4 + $0x198] sm:$0xff] %vm2175_vm7, %v2542_v59 }
 0x1c0   : > { %3091 = vst.msk [vmem:[%s5369_s4 + $0x190] sm:$0xff] %vm2173_vm6, %v2542_v59 }
 0x1c1   : > { %v2606_v39 = vpop.permute.xlu1 %2605 }
 0x1c2   : > { %3104 = vst.msk [vmem:[%s5369_s4 + $0x1f0] sm:$0xff] %vm2173_vm6, %v2606_v39  ;;  %v2604_v28 = vpop.permute.xlu0 %2603 }
 0x1c3   : > { %3105 = vst.msk [vmem:[%s5369_s4 + $0x1f8] sm:$0xff] %vm2175_vm7, %v2606_v39  ;;  %3103 = vst.msk [vmem:[%s5369_s4 + $0x1d8] sm:$0xff] %vm2175_vm7, %v2604_v28 }
 0x1c4   : > { %3102 = vst.msk [vmem:[%s5369_s4 + $0x1d0] sm:$0xff] %vm2173_vm6, %v2604_v28 }
 0x1c5 PF: > { %s13_s14 = sadd.s32 1, %s3568_s14   ;;  %s6200_s12 = smov %s3564_s13 }
 0x1c6   : > { %p10_p5 = scmp.ge.s32.totalorder %s13_s14, 4   ;;  %s6201_s13 = smov %s6203_s15 }
 0x1c8   :  { %12 = sbr.rel (!%p10_p5) target bundleno = 2 (0x2), region = 71 }

</bundles_post_ra>
